<compile_context>
chip_gen: v6e
topology: v6e:2x2x1
jax: 0.10.0
libtpu: 0.0.40
codegen_flags: <defaults>
</compile_context>

<pallas_src>
import numpy as np

import jax
import jax.numpy as jnp
from jax.experimental import pallas as pl
from jax.experimental.pallas import tpu as pltpu


# ------------------------- Pallas kernels ----------------------------------

def features_kernel(x_ref, t1_ref, b1_ref, t2_ref, sc2_ref, sh2_ref,
                    srow_ref, scol_ref, o_ref):
    """Per-image: conv1+ReLU+pool1+conv2+BN+ReLU+pool2 -> (14, 280) slab."""
    x = x_ref[0]                                              # (64, 64) f32

    # --- conv1 (1->10, k=5) as 5 width-Toeplitz matmuls on the MXU (bf16) ---
    # y1[ho, oc*60 + wo] = conv1 output, shape (60, 600)
    y1 = jnp.zeros((60, 600), jnp.float32)
    for kh in range(5):
        lhs = x[kh:kh + 60, :].astype(jnp.bfloat16)           # (60, 64)
        y1 = y1 + jnp.dot(lhs, t1_ref[kh],
                          preferred_element_type=jnp.float32)
    y1 = jnp.maximum(y1 + b1_ref[...], 0.0)                   # bias + ReLU (f32 epilogue)

    # --- maxpool1 2x2, un-compacted: valid entries sit at even row / even
    #     in-block column; odd positions hold finite junk that the next
    #     Toeplitz matmul multiplies by zero (its odd rows are all-zero). ---
    m1 = jnp.maximum(y1[:, 0:599], y1[:, 1:600])              # (60, 599) pair-max over wo
    m1 = jnp.maximum(m1[0:59, :], m1[1:60, :])                # (59, 599) pair-max over ho

    # --- conv2 (10->20, k=3) as 3 Toeplitz matmuls (contraction over
    #     input-channel x width = 599 lanes). ---
    # y2[2*h2, oc2*28 + w2] = conv2 output, shape (55, 560); odd rows = junk
    y2 = jnp.zeros((55, 560), jnp.float32)
    for kh in range(3):
        lhs = m1[2 * kh:2 * kh + 55, :].astype(jnp.bfloat16)  # (55, 599)
        y2 = y2 + jnp.dot(lhs, t2_ref[kh],
                          preferred_element_type=jnp.float32)
    # fused inference BatchNorm (+ conv2 bias) + ReLU, f32 epilogue
    y2 = jnp.maximum(y2 * sc2_ref[...] + sh2_ref[...], 0.0)

    # --- maxpool2 2x2 + compaction to a lane-dense (14, 280) feature slab ---
    m2 = jnp.maximum(y2[:, 0:559], y2[:, 1:560])              # (55, 559) pair-max over w2
    m2 = jnp.maximum(m2[0:53, :], m2[2:55, :])                # (53, 559) pair-max over h2
    m2 = m2.astype(jnp.bfloat16)
    # 0/1 selection matmuls pick rows 4*i and columns oc2*28 + 2*j
    f = jnp.dot(srow_ref[...], m2, preferred_element_type=jnp.float32)   # (14, 559)
    g = jnp.dot(f.astype(jnp.bfloat16), scol_ref[...],
                preferred_element_type=jnp.float32)                      # (14, 280)
    o_ref[0] = g.astype(o_ref.dtype)          # layout: [h, c*14 + w]


def mlp_kernel(x_ref, w1_ref, b1_ref, w2_ref, b2_ref, w3_ref, b3_ref, o_ref):
    """Fused classifier: Linear-ReLU-Linear-ReLU-Linear (Dropout == identity)."""
    h = jnp.dot(x_ref[...].astype(jnp.bfloat16), w1_ref[...],
                preferred_element_type=jnp.float32) + b1_ref[...]
    h = jnp.maximum(h, 0.0)
    h = jnp.dot(h.astype(jnp.bfloat16), w2_ref[...],
                preferred_element_type=jnp.float32) + b2_ref[...]
    h = jnp.maximum(h, 0.0)
    o = jnp.dot(h.astype(jnp.bfloat16), w3_ref[...],
                preferred_element_type=jnp.float32) + b3_ref[...]
    o_ref[...] = o.astype(o_ref.dtype)


# ------------------------- host-side parameter preparation ------------------

def prepare_params(params):
    """Fold BN, build Toeplitz / selection matrices, permute fc1 rows (once)."""
    eps = 1e-5
    bf = jnp.bfloat16

    # conv1 width-Toeplitz: t1[kh][win, oc*60 + wo] = w1[oc, 0, kh, win - wo]
    w1 = np.asarray(params["conv1_w"], np.float32)[:, 0]      # (10, 5, 5)
    t1 = np.zeros((5, 64, 600), np.float32)
    oc = np.arange(10)
    for kh in range(5):
        for kw in range(5):
            for wo in range(60):
                t1[kh, wo + kw, oc * 60 + wo] = w1[:, kh, kw]
    bias1 = np.repeat(np.asarray(params["conv1_b"], np.float32), 60)[None, :]  # (1,600)

    # conv2 Toeplitz over (input channel, width); rows live on the un-compacted
    # pool1 grid (ic*60 + 2*(w2+kw)), so odd (never-pooled) columns are zeroed.
    w2 = np.asarray(params["conv2_w"], np.float32)             # (20, 10, 3, 3)
    t2 = np.zeros((3, 599, 560), np.float32)
    ic = np.arange(10)
    oc2 = np.arange(20)
    for kh in range(3):
        for kw in range(3):
            for wc in range(28):
                rows = ic * 60 + 2 * (wc + kw)                 # (10,)
                cols = oc2 * 28 + wc                           # (20,)
                t2[kh, rows[:, None], cols[None, :]] = w2[:, :, kh, kw].T

    # inference BatchNorm folded with the conv2 bias
    gamma = np.asarray(params["bn_gamma"], np.float32)
    beta = np.asarray(params["bn_beta"], np.float32)
    mean = np.asarray(params["bn_mean"], np.float32)
    var = np.asarray(params["bn_var"], np.float32)
    cb2 = np.asarray(params["conv2_b"], np.float32)
    scale = gamma / np.sqrt(var + eps)
    shift = beta + (cb2 - mean) * scale
    scale2 = np.repeat(scale, 28)[None, :]                     # (1, 560)
    shift2 = np.repeat(shift, 28)[None, :]                     # (1, 560)

    # pool2 compaction selectors (0/1 matrices -> exact in bf16)
    s_row = np.zeros((14, 53), np.float32)
    s_row[np.arange(14), 4 * np.arange(14)] = 1.0
    s_col = np.zeros((559, 280), np.float32)
    for o in range(20):
        s_col[o * 28 + 2 * np.arange(14), o * 14 + np.arange(14)] = 1.0

    # fc1 rows: PyTorch flatten order (c,h,w) -> kernel slab order (h,c,w)
    fc1 = np.asarray(params["fc1_w"], np.float32).reshape(20, 14, 14, 200)
    fc1 = fc1.transpose(1, 0, 2, 3).reshape(3920, 200)

    return {
        "t1": jnp.asarray(t1, dtype=bf),
        "bias1": jnp.asarray(bias1, dtype=jnp.float32),
        "t2": jnp.asarray(t2, dtype=bf),
        "scale2": jnp.asarray(scale2, dtype=jnp.float32),
        "shift2": jnp.asarray(shift2, dtype=jnp.float32),
        "s_row": jnp.asarray(s_row, dtype=bf),
        "s_col": jnp.asarray(s_col, dtype=bf),
        "fc1_w": jnp.asarray(fc1, dtype=bf),
        "fc1_b": jnp.asarray(params["fc1_b"], dtype=jnp.float32).reshape(1, 200),
        "fc2_w": params["fc2_w"].astype(bf),
        "fc2_b": params["fc2_b"].astype(jnp.float32).reshape(1, 80),
        "fc3_w": params["fc3_w"].astype(bf),
        "fc3_b": params["fc3_b"].astype(jnp.float32).reshape(1, 8),
    }


# ------------------------- forward ------------------------------------------

@jax.jit
def net7_forward(x_nchw, prep):
    n = x_nchw.shape[0]
    x = x_nchw[:, 0].astype(jnp.float32)             # (N, 64, 64); conv1 has C_in == 1

    feats = pl.pallas_call(
        features_kernel,
        out_shape=jax.ShapeDtypeStruct((n, 14, 280), jnp.float32),
        grid=(n,),
        in_specs=[
            pl.BlockSpec((1, 64, 64), lambda b: (b, 0, 0)),     # per-image input
            pl.BlockSpec((5, 64, 600), lambda b: (0, 0, 0)),    # conv1 Toeplitz (bf16)
            pl.BlockSpec((1, 600), lambda b: (0, 0)),           # conv1 bias row
            pl.BlockSpec((3, 599, 560), lambda b: (0, 0, 0)),   # conv2 Toeplitz (bf16)
            pl.BlockSpec((1, 560), lambda b: (0, 0)),           # BN scale row
            pl.BlockSpec((1, 560), lambda b: (0, 0)),           # BN shift row
            pl.BlockSpec((14, 53), lambda b: (0, 0)),           # pool2 row selector
            pl.BlockSpec((559, 280), lambda b: (0, 0)),         # pool2 col selector
        ],
        out_specs=pl.BlockSpec((1, 14, 280), lambda b: (b, 0, 0)),
        compiler_params=pltpu.CompilerParams(
            dimension_semantics=("parallel",)),                 # 2x on v7x's two TCs
    )(x, prep["t1"], prep["bias1"], prep["t2"], prep["scale2"], prep["shift2"],
      prep["s_row"], prep["s_col"])

    # free reshape; fc1 rows were pre-permuted to this (h, c, w) flatten order
    xf = feats.reshape(n, 3920)

    tb = min(n, 256)
    out = pl.pallas_call(
        mlp_kernel,
        out_shape=jax.ShapeDtypeStruct((n, 8), jnp.float32),
        grid=(pl.cdiv(n, tb),),
        in_specs=[
            pl.BlockSpec((tb, 3920), lambda i: (i, 0)),
            pl.BlockSpec((3920, 200), lambda i: (0, 0)),
            pl.BlockSpec((1, 200), lambda i: (0, 0)),
            pl.BlockSpec((200, 80), lambda i: (0, 0)),
            pl.BlockSpec((1, 80), lambda i: (0, 0)),
            pl.BlockSpec((80, 8), lambda i: (0, 0)),
            pl.BlockSpec((1, 8), lambda i: (0, 0)),
        ],
        out_specs=pl.BlockSpec((tb, 8), lambda i: (i, 0)),
        compiler_params=pltpu.CompilerParams(
            dimension_semantics=("parallel",)),
    )(xf, prep["fc1_w"], prep["fc1_b"], prep["fc2_w"], prep["fc2_b"],
      prep["fc3_w"], prep["fc3_b"])
    return out


# ------------------------- pure-JAX reference (for checking) ---------------

def net7_reference(x_nchw, params):
    hi = jax.lax.Precision.HIGHEST
    x = x_nchw.astype(jnp.float32)
    dn = ("NCHW", "OIHW", "NCHW")
    y = jax.lax.conv_general_dilated(x, params["conv1_w"], (1, 1), "VALID",
                                     dimension_numbers=dn, precision=hi)
    y = jnp.maximum(y + params["conv1_b"].reshape(1, 10, 1, 1), 0.0)
    y = jax.lax.reduce_window(y, -jnp.inf, jax.lax.max,
                              (1, 1, 2, 2), (1, 1, 2, 2), "VALID")
    y = jax.lax.conv_general_dilated(y, params["conv2_w"], (1, 1), "VALID",
                                     dimension_numbers=dn, precision=hi)
    y = y + params["conv2_b"].reshape(1, 20, 1, 1)
    eps = 1e-5
    scale = (params["bn_gamma"] / jnp.sqrt(params["bn_var"] + eps)).reshape(1, 20, 1, 1)
    y = (y - params["bn_mean"].reshape(1, 20, 1, 1)) * scale \
        + params["bn_beta"].reshape(1, 20, 1, 1)
    y = jnp.maximum(y, 0.0)
    y = jax.lax.reduce_window(y, -jnp.inf, jax.lax.max,
                              (1, 1, 2, 2), (1, 1, 2, 2), "VALID")
    xf = y.reshape(y.shape[0], -1)
    h = jnp.maximum(jnp.dot(xf, params["fc1_w"], precision=hi) + params["fc1_b"], 0.0)
    h = jnp.maximum(jnp.dot(h, params["fc2_w"], precision=hi) + params["fc2_b"], 0.0)
    return jnp.dot(h, params["fc3_w"], precision=hi) + params["fc3_b"]


# ------------------------- params -------------------------------------------

def init_params(key):
    ks = jax.random.split(key, 10)

    def uni(k, shape, fan_in):
        b = 1.0 / (fan_in ** 0.5)
        return jax.random.uniform(k, shape, jnp.float32, -b, b)

    i20 = jnp.arange(20, dtype=jnp.float32)
    return {
        "conv1_w": uni(ks[0], (10, 1, 5, 5), 1 * 5 * 5),
        "conv1_b": uni(ks[1], (10,), 1 * 5 * 5),
        "conv2_w": uni(ks[2], (20, 10, 3, 3), 10 * 3 * 3),
        "conv2_b": uni(ks[3], (20,), 10 * 3 * 3),
        "bn_gamma": 1.0 + 0.1 * jnp.cos(i20),
        "bn_beta": 0.05 * jnp.sin(i20),
        "bn_mean": 0.02 * i20,
        "bn_var": 1.0 + 0.01 * i20,
        # stored as (in_features, out_features); semantics == x @ W_pt.T
        "fc1_w": uni(ks[4], (3920, 200), 3920),
        "fc1_b": uni(ks[5], (200,), 3920),
        "fc2_w": uni(ks[6], (200, 80), 200),
        "fc2_b": uni(ks[7], (80,), 200),
        "fc3_w": uni(ks[8], (80, 8), 80),
        "fc3_b": uni(ks[9], (80,), 8)[:8] * 0 + uni(ks[9], (8,), 80),
    }


if __name__ == "__main__":
    key = jax.random.PRNGKey(0)
    kx, kp = jax.random.split(key)
    # spatial 64x64 is fixed by the module (3920 = 20 * 14 * 14); batch kept small.
    x = jax.random.normal(kx, (2, 1, 64, 64), jnp.float32)
    params = init_params(kp)
    prep = prepare_params(params)

    out = jax.block_until_ready(net7_forward(x, prep))
    assert out.shape == (2, 8), out.shape

    ref = jax.block_until_ready(net7_reference(x, params))
    assert jnp.allclose(out, ref, atol=2e-2, rtol=2e-2), (out, ref)

    print("KERNEL_OK")
</pallas_src>

<mosaic_0001>
module attributes {stable_mosaic.version = 11 : i64} {
  func.func @features_kernel(%arg0: i32, %arg1: memref<1x64x64xf32, #tpu.memory_space<vmem>>, %arg2: memref<5x64x600xbf16, #tpu.memory_space<vmem>>, %arg3: memref<1x600xf32, #tpu.memory_space<vmem>>, %arg4: memref<3x599x560xbf16, #tpu.memory_space<vmem>>, %arg5: memref<1x560xf32, #tpu.memory_space<vmem>>, %arg6: memref<1x560xf32, #tpu.memory_space<vmem>>, %arg7: memref<14x53xbf16, #tpu.memory_space<vmem>>, %arg8: memref<559x280xbf16, #tpu.memory_space<vmem>>, %arg9: memref<1x14x280xf32, #tpu.memory_space<vmem>>) attributes {dimension_semantics = [#tpu.dimension_semantics<parallel>], iteration_bounds = array<i64: 2>, scalar_prefetch = 0 : i64, scratch_operands = 0 : i64, tpu.core_type = #tpu.core_type<tc>, window_params = [{transform_indices = @transform_0, window_bounds = array<i64: 1, 64, 64>}, {pipeline_mode = #tpu.pipeline_mode<synchronous>, transform_indices = @transform_1, window_bounds = array<i64: 5, 64, 600>}, {pipeline_mode = #tpu.pipeline_mode<synchronous>, transform_indices = @transform_2, window_bounds = array<i64: 1, 600>}, {pipeline_mode = #tpu.pipeline_mode<synchronous>, transform_indices = @transform_3, window_bounds = array<i64: 3, 599, 560>}, {pipeline_mode = #tpu.pipeline_mode<synchronous>, transform_indices = @transform_4, window_bounds = array<i64: 1, 560>}, {pipeline_mode = #tpu.pipeline_mode<synchronous>, transform_indices = @transform_5, window_bounds = array<i64: 1, 560>}, {pipeline_mode = #tpu.pipeline_mode<synchronous>, transform_indices = @transform_6, window_bounds = array<i64: 14, 53>}, {pipeline_mode = #tpu.pipeline_mode<synchronous>, transform_indices = @transform_7, window_bounds = array<i64: 559, 280>}, {transform_indices = @transform_8, window_bounds = array<i64: 1, 14, 280>}]} {
    %c0 = arith.constant 0 : index
    %c0_0 = arith.constant 0 : index
    %c0_1 = arith.constant 0 : index
    %0 = vector.load %arg1[%c0, %c0_0, %c0_1] : memref<1x64x64xf32, #tpu.memory_space<vmem>>, vector<1x64x64xf32>
    %1 = vector.shape_cast %0 : vector<1x64x64xf32> to vector<64x64xf32>
    %cst = arith.constant 0.000000e+00 : f32
    %2 = vector.broadcast %cst : f32 to vector<60x600xf32>
    %3 = vector.extract_strided_slice %1 {offsets = [0, 0], sizes = [60, 64], strides = [1, 1]} : vector<64x64xf32> to vector<60x64xf32>
    %4 = arith.truncf %3 : vector<60x64xf32> to vector<60x64xbf16>
    %c0_2 = arith.constant 0 : index
    %c0_3 = arith.constant 0 : index
    %c0_4 = arith.constant 0 : index
    %5 = vector.load %arg2[%c0_2, %c0_3, %c0_4] : memref<5x64x600xbf16, #tpu.memory_space<vmem>>, vector<1x64x600xbf16>
    %6 = vector.shape_cast %5 : vector<1x64x600xbf16> to vector<64x600xbf16>
    %cst_5 = arith.constant dense<0.000000e+00> : vector<60x600xf32>
    %7 = tpu.matmul %4, %6, %cst_5 {dimension_numbers = #tpu.dot_dimension_numbers<[1], [0], [0], [1], [0, 0, 1, 1], [], []>} : vector<60x64xbf16>, vector<64x600xbf16>, vector<60x600xf32> -> vector<60x600xf32>
    %8 = arith.addf %2, %7 : vector<60x600xf32>
    %9 = vector.extract_strided_slice %1 {offsets = [1, 0], sizes = [60, 64], strides = [1, 1]} : vector<64x64xf32> to vector<60x64xf32>
    %10 = arith.truncf %9 : vector<60x64xf32> to vector<60x64xbf16>
    %c1 = arith.constant 1 : index
    %c0_6 = arith.constant 0 : index
    %c0_7 = arith.constant 0 : index
    %11 = vector.load %arg2[%c1, %c0_6, %c0_7] : memref<5x64x600xbf16, #tpu.memory_space<vmem>>, vector<1x64x600xbf16>
    %12 = vector.shape_cast %11 : vector<1x64x600xbf16> to vector<64x600xbf16>
    %cst_8 = arith.constant dense<0.000000e+00> : vector<60x600xf32>
    %13 = tpu.matmul %10, %12, %cst_8 {dimension_numbers = #tpu.dot_dimension_numbers<[1], [0], [0], [1], [0, 0, 1, 1], [], []>} : vector<60x64xbf16>, vector<64x600xbf16>, vector<60x600xf32> -> vector<60x600xf32>
    %14 = arith.addf %8, %13 : vector<60x600xf32>
    %15 = vector.extract_strided_slice %1 {offsets = [2, 0], sizes = [60, 64], strides = [1, 1]} : vector<64x64xf32> to vector<60x64xf32>
    %16 = arith.truncf %15 : vector<60x64xf32> to vector<60x64xbf16>
    %c2 = arith.constant 2 : index
    %c0_9 = arith.constant 0 : index
    %c0_10 = arith.constant 0 : index
    %17 = vector.load %arg2[%c2, %c0_9, %c0_10] : memref<5x64x600xbf16, #tpu.memory_space<vmem>>, vector<1x64x600xbf16>
    %18 = vector.shape_cast %17 : vector<1x64x600xbf16> to vector<64x600xbf16>
    %cst_11 = arith.constant dense<0.000000e+00> : vector<60x600xf32>
    %19 = tpu.matmul %16, %18, %cst_11 {dimension_numbers = #tpu.dot_dimension_numbers<[1], [0], [0], [1], [0, 0, 1, 1], [], []>} : vector<60x64xbf16>, vector<64x600xbf16>, vector<60x600xf32> -> vector<60x600xf32>
    %20 = arith.addf %14, %19 : vector<60x600xf32>
    %21 = vector.extract_strided_slice %1 {offsets = [3, 0], sizes = [60, 64], strides = [1, 1]} : vector<64x64xf32> to vector<60x64xf32>
    %22 = arith.truncf %21 : vector<60x64xf32> to vector<60x64xbf16>
    %c3 = arith.constant 3 : index
    %c0_12 = arith.constant 0 : index
    %c0_13 = arith.constant 0 : index
    %23 = vector.load %arg2[%c3, %c0_12, %c0_13] : memref<5x64x600xbf16, #tpu.memory_space<vmem>>, vector<1x64x600xbf16>
    %24 = vector.shape_cast %23 : vector<1x64x600xbf16> to vector<64x600xbf16>
    %cst_14 = arith.constant dense<0.000000e+00> : vector<60x600xf32>
    %25 = tpu.matmul %22, %24, %cst_14 {dimension_numbers = #tpu.dot_dimension_numbers<[1], [0], [0], [1], [0, 0, 1, 1], [], []>} : vector<60x64xbf16>, vector<64x600xbf16>, vector<60x600xf32> -> vector<60x600xf32>
    %26 = arith.addf %20, %25 : vector<60x600xf32>
    %27 = vector.extract_strided_slice %1 {offsets = [4, 0], sizes = [60, 64], strides = [1, 1]} : vector<64x64xf32> to vector<60x64xf32>
    %28 = arith.truncf %27 : vector<60x64xf32> to vector<60x64xbf16>
    %c4 = arith.constant 4 : index
    %c0_15 = arith.constant 0 : index
    %c0_16 = arith.constant 0 : index
    %29 = vector.load %arg2[%c4, %c0_15, %c0_16] : memref<5x64x600xbf16, #tpu.memory_space<vmem>>, vector<1x64x600xbf16>
    %30 = vector.shape_cast %29 : vector<1x64x600xbf16> to vector<64x600xbf16>
    %cst_17 = arith.constant dense<0.000000e+00> : vector<60x600xf32>
    %31 = tpu.matmul %28, %30, %cst_17 {dimension_numbers = #tpu.dot_dimension_numbers<[1], [0], [0], [1], [0, 0, 1, 1], [], []>} : vector<60x64xbf16>, vector<64x600xbf16>, vector<60x600xf32> -> vector<60x600xf32>
    %32 = arith.addf %26, %31 : vector<60x600xf32>
    %c0_18 = arith.constant 0 : index
    %c0_19 = arith.constant 0 : index
    %33 = vector.load %arg3[%c0_18, %c0_19] : memref<1x600xf32, #tpu.memory_space<vmem>>, vector<1x600xf32>
    %34 = vector.broadcast %33 : vector<1x600xf32> to vector<60x600xf32>
    %35 = arith.addf %32, %34 : vector<60x600xf32>
    %cst_20 = arith.constant 0.000000e+00 : f32
    %36 = vector.broadcast %cst_20 : f32 to vector<60x600xf32>
    %37 = arith.maximumf %35, %36 : vector<60x600xf32>
    %38 = vector.extract_strided_slice %37 {offsets = [0, 0], sizes = [60, 599], strides = [1, 1]} : vector<60x600xf32> to vector<60x599xf32>
    %39 = vector.extract_strided_slice %37 {offsets = [0, 1], sizes = [60, 599], strides = [1, 1]} : vector<60x600xf32> to vector<60x599xf32>
    %40 = arith.maximumf %38, %39 : vector<60x599xf32>
    %41 = vector.extract_strided_slice %40 {offsets = [0, 0], sizes = [59, 599], strides = [1, 1]} : vector<60x599xf32> to vector<59x599xf32>
    %42 = vector.extract_strided_slice %40 {offsets = [1, 0], sizes = [59, 599], strides = [1, 1]} : vector<60x599xf32> to vector<59x599xf32>
    %43 = arith.maximumf %41, %42 : vector<59x599xf32>
    %cst_21 = arith.constant 0.000000e+00 : f32
    %44 = vector.broadcast %cst_21 : f32 to vector<55x560xf32>
    %45 = vector.extract_strided_slice %43 {offsets = [0, 0], sizes = [55, 599], strides = [1, 1]} : vector<59x599xf32> to vector<55x599xf32>
    %46 = arith.truncf %45 : vector<55x599xf32> to vector<55x599xbf16>
    %c0_22 = arith.constant 0 : index
    %c0_23 = arith.constant 0 : index
    %c0_24 = arith.constant 0 : index
    %47 = vector.load %arg4[%c0_22, %c0_23, %c0_24] : memref<3x599x560xbf16, #tpu.memory_space<vmem>>, vector<1x599x560xbf16>
    %48 = vector.shape_cast %47 : vector<1x599x560xbf16> to vector<599x560xbf16>
    %cst_25 = arith.constant dense<0.000000e+00> : vector<55x560xf32>
    %49 = tpu.matmul %46, %48, %cst_25 {dimension_numbers = #tpu.dot_dimension_numbers<[1], [0], [0], [1], [0, 0, 1, 1], [], []>} : vector<55x599xbf16>, vector<599x560xbf16>, vector<55x560xf32> -> vector<55x560xf32>
    %50 = arith.addf %44, %49 : vector<55x560xf32>
    %51 = vector.extract_strided_slice %43 {offsets = [2, 0], sizes = [55, 599], strides = [1, 1]} : vector<59x599xf32> to vector<55x599xf32>
    %52 = arith.truncf %51 : vector<55x599xf32> to vector<55x599xbf16>
    %c1_26 = arith.constant 1 : index
    %c0_27 = arith.constant 0 : index
    %c0_28 = arith.constant 0 : index
    %53 = vector.load %arg4[%c1_26, %c0_27, %c0_28] : memref<3x599x560xbf16, #tpu.memory_space<vmem>>, vector<1x599x560xbf16>
    %54 = vector.shape_cast %53 : vector<1x599x560xbf16> to vector<599x560xbf16>
    %cst_29 = arith.constant dense<0.000000e+00> : vector<55x560xf32>
    %55 = tpu.matmul %52, %54, %cst_29 {dimension_numbers = #tpu.dot_dimension_numbers<[1], [0], [0], [1], [0, 0, 1, 1], [], []>} : vector<55x599xbf16>, vector<599x560xbf16>, vector<55x560xf32> -> vector<55x560xf32>
    %56 = arith.addf %50, %55 : vector<55x560xf32>
    %57 = vector.extract_strided_slice %43 {offsets = [4, 0], sizes = [55, 599], strides = [1, 1]} : vector<59x599xf32> to vector<55x599xf32>
    %58 = arith.truncf %57 : vector<55x599xf32> to vector<55x599xbf16>
    %c2_30 = arith.constant 2 : index
    %c0_31 = arith.constant 0 : index
    %c0_32 = arith.constant 0 : index
    %59 = vector.load %arg4[%c2_30, %c0_31, %c0_32] : memref<3x599x560xbf16, #tpu.memory_space<vmem>>, vector<1x599x560xbf16>
    %60 = vector.shape_cast %59 : vector<1x599x560xbf16> to vector<599x560xbf16>
    %cst_33 = arith.constant dense<0.000000e+00> : vector<55x560xf32>
    %61 = tpu.matmul %58, %60, %cst_33 {dimension_numbers = #tpu.dot_dimension_numbers<[1], [0], [0], [1], [0, 0, 1, 1], [], []>} : vector<55x599xbf16>, vector<599x560xbf16>, vector<55x560xf32> -> vector<55x560xf32>
    %62 = arith.addf %56, %61 : vector<55x560xf32>
    %c0_34 = arith.constant 0 : index
    %c0_35 = arith.constant 0 : index
    %63 = vector.load %arg5[%c0_34, %c0_35] : memref<1x560xf32, #tpu.memory_space<vmem>>, vector<1x560xf32>
    %64 = vector.broadcast %63 : vector<1x560xf32> to vector<55x560xf32>
    %65 = arith.mulf %62, %64 : vector<55x560xf32>
    %c0_36 = arith.constant 0 : index
    %c0_37 = arith.constant 0 : index
    %66 = vector.load %arg6[%c0_36, %c0_37] : memref<1x560xf32, #tpu.memory_space<vmem>>, vector<1x560xf32>
    %67 = vector.broadcast %66 : vector<1x560xf32> to vector<55x560xf32>
    %68 = arith.addf %65, %67 : vector<55x560xf32>
    %cst_38 = arith.constant 0.000000e+00 : f32
    %69 = vector.broadcast %cst_38 : f32 to vector<55x560xf32>
    %70 = arith.maximumf %68, %69 : vector<55x560xf32>
    %71 = vector.extract_strided_slice %70 {offsets = [0, 0], sizes = [55, 559], strides = [1, 1]} : vector<55x560xf32> to vector<55x559xf32>
    %72 = vector.extract_strided_slice %70 {offsets = [0, 1], sizes = [55, 559], strides = [1, 1]} : vector<55x560xf32> to vector<55x559xf32>
    %73 = arith.maximumf %71, %72 : vector<55x559xf32>
    %74 = vector.extract_strided_slice %73 {offsets = [0, 0], sizes = [53, 559], strides = [1, 1]} : vector<55x559xf32> to vector<53x559xf32>
    %75 = vector.extract_strided_slice %73 {offsets = [2, 0], sizes = [53, 559], strides = [1, 1]} : vector<55x559xf32> to vector<53x559xf32>
    %76 = arith.maximumf %74, %75 : vector<53x559xf32>
    %77 = arith.truncf %76 : vector<53x559xf32> to vector<53x559xbf16>
    %c0_39 = arith.constant 0 : index
    %c0_40 = arith.constant 0 : index
    %78 = vector.load %arg7[%c0_39, %c0_40] : memref<14x53xbf16, #tpu.memory_space<vmem>>, vector<14x53xbf16>
    %cst_41 = arith.constant dense<0.000000e+00> : vector<14x559xf32>
    %79 = tpu.matmul %78, %77, %cst_41 {dimension_numbers = #tpu.dot_dimension_numbers<[1], [0], [0], [1], [0, 0, 1, 1], [], []>} : vector<14x53xbf16>, vector<53x559xbf16>, vector<14x559xf32> -> vector<14x559xf32>
    %80 = arith.truncf %79 : vector<14x559xf32> to vector<14x559xbf16>
    %c0_42 = arith.constant 0 : index
    %c0_43 = arith.constant 0 : index
    %81 = vector.load %arg8[%c0_42, %c0_43] : memref<559x280xbf16, #tpu.memory_space<vmem>>, vector<559x280xbf16>
    %cst_44 = arith.constant dense<0.000000e+00> : vector<14x280xf32>
    %82 = tpu.matmul %80, %81, %cst_44 {dimension_numbers = #tpu.dot_dimension_numbers<[1], [0], [0], [1], [0, 0, 1, 1], [], []>} : vector<14x559xbf16>, vector<559x280xbf16>, vector<14x280xf32> -> vector<14x280xf32>
    %c0_45 = arith.constant 0 : index
    %c0_46 = arith.constant 0 : index
    %c0_47 = arith.constant 0 : index
    %83 = vector.load %arg9[%c0_45, %c0_46, %c0_47] : memref<1x14x280xf32, #tpu.memory_space<vmem>>, vector<1x14x280xf32>
    %84 = vector.shape_cast %83 : vector<1x14x280xf32> to vector<14x280xf32>
    %85 = vector.shape_cast %82 : vector<14x280xf32> to vector<1x14x280xf32>
    tpu.vector_store %arg9[%c0_45, %c0_46, %c0_47], %85 {strides = array<i32>} : memref<1x14x280xf32, #tpu.memory_space<vmem>>, vector<1x14x280xf32>,
    return
  }
  func.func @transform_0(%arg0: i32) -> (i32, i32, i32) {
    %c0_i32 = arith.constant 0 : i32
    %c0_i32_0 = arith.constant 0 : i32
    %c0_i32_1 = arith.constant 0 : i32
    return %arg0, %c0_i32, %c0_i32_0 : i32, i32, i32
  }
  func.func @transform_1(%arg0: i32) -> (i32, i32, i32) {
    %c0_i32 = arith.constant 0 : i32
    %c0_i32_0 = arith.constant 0 : i32
    %c0_i32_1 = arith.constant 0 : i32
    %c0_i32_2 = arith.constant 0 : i32
    return %c0_i32, %c0_i32_0, %c0_i32_1 : i32, i32, i32
  }
  func.func @transform_2(%arg0: i32) -> (i32, i32) {
    %c0_i32 = arith.constant 0 : i32
    %c0_i32_0 = arith.constant 0 : i32
    %c0_i32_1 = arith.constant 0 : i32
    return %c0_i32, %c0_i32_0 : i32, i32
  }
  func.func @transform_3(%arg0: i32) -> (i32, i32, i32) {
    %c0_i32 = arith.constant 0 : i32
    %c0_i32_0 = arith.constant 0 : i32
    %c0_i32_1 = arith.constant 0 : i32
    %c0_i32_2 = arith.constant 0 : i32
    return %c0_i32, %c0_i32_0, %c0_i32_1 : i32, i32, i32
  }
  func.func @transform_4(%arg0: i32) -> (i32, i32) {
    %c0_i32 = arith.constant 0 : i32
    %c0_i32_0 = arith.constant 0 : i32
    %c0_i32_1 = arith.constant 0 : i32
    return %c0_i32, %c0_i32_0 : i32, i32
  }
  func.func @transform_5(%arg0: i32) -> (i32, i32) {
    %c0_i32 = arith.constant 0 : i32
    %c0_i32_0 = arith.constant 0 : i32
    %c0_i32_1 = arith.constant 0 : i32
    return %c0_i32, %c0_i32_0 : i32, i32
  }
  func.func @transform_6(%arg0: i32) -> (i32, i32) {
    %c0_i32 = arith.constant 0 : i32
    %c0_i32_0 = arith.constant 0 : i32
    %c0_i32_1 = arith.constant 0 : i32
    return %c0_i32, %c0_i32_0 : i32, i32
  }
  func.func @transform_7(%arg0: i32) -> (i32, i32) {
    %c0_i32 = arith.constant 0 : i32
    %c0_i32_0 = arith.constant 0 : i32
    %c0_i32_1 = arith.constant 0 : i32
    return %c0_i32, %c0_i32_0 : i32, i32
  }
  func.func @transform_8(%arg0: i32) -> (i32, i32, i32) {
    %c0_i32 = arith.constant 0 : i32
    %c0_i32_0 = arith.constant 0 : i32
    %c0_i32_1 = arith.constant 0 : i32
    return %arg0, %c0_i32, %c0_i32_0 : i32, i32, i32
  }
}

module attributes {stable_mosaic.version = 11 : i64} {
  func.func @mlp_kernel(%arg0: i32, %arg1: memref<2x3920xf32, #tpu.memory_space<vmem>>, %arg2: memref<3920x200xbf16, #tpu.memory_space<vmem>>, %arg3: memref<1x200xf32, #tpu.memory_space<vmem>>, %arg4: memref<200x80xbf16, #tpu.memory_space<vmem>>, %arg5: memref<1x80xf32, #tpu.memory_space<vmem>>, %arg6: memref<80x8xbf16, #tpu.memory_space<vmem>>, %arg7: memref<1x8xf32, #tpu.memory_space<vmem>>, %arg8: memref<2x8xf32, #tpu.memory_space<vmem>>) attributes {dimension_semantics = [#tpu.dimension_semantics<parallel>], iteration_bounds = array<i64: 1>, scalar_prefetch = 0 : i64, scratch_operands = 0 : i64, tpu.core_type = #tpu.core_type<tc>, window_params = [{transform_indices = @transform_0, window_bounds = array<i64: 2, 3920>}, {pipeline_mode = #tpu.pipeline_mode<synchronous>, transform_indices = @transform_1, window_bounds = array<i64: 3920, 200>}, {pipeline_mode = #tpu.pipeline_mode<synchronous>, transform_indices = @transform_2, window_bounds = array<i64: 1, 200>}, {pipeline_mode = #tpu.pipeline_mode<synchronous>, transform_indices = @transform_3, window_bounds = array<i64: 200, 80>}, {pipeline_mode = #tpu.pipeline_mode<synchronous>, transform_indices = @transform_4, window_bounds = array<i64: 1, 80>}, {pipeline_mode = #tpu.pipeline_mode<synchronous>, transform_indices = @transform_5, window_bounds = array<i64: 80, 8>}, {pipeline_mode = #tpu.pipeline_mode<synchronous>, transform_indices = @transform_6, window_bounds = array<i64: 1, 8>}, {transform_indices = @transform_7, window_bounds = array<i64: 2, 8>}]} {
    %c0 = arith.constant 0 : index
    %c0_0 = arith.constant 0 : index
    %0 = vector.load %arg1[%c0, %c0_0] : memref<2x3920xf32, #tpu.memory_space<vmem>>, vector<2x3920xf32>
    %1 = arith.truncf %0 : vector<2x3920xf32> to vector<2x3920xbf16>
    %c0_1 = arith.constant 0 : index
    %c0_2 = arith.constant 0 : index
    %2 = vector.load %arg2[%c0_1, %c0_2] : memref<3920x200xbf16, #tpu.memory_space<vmem>>, vector<3920x200xbf16>
    %cst = arith.constant dense<0.000000e+00> : vector<2x200xf32>
    %3 = tpu.matmul %1, %2, %cst {dimension_numbers = #tpu.dot_dimension_numbers<[1], [0], [0], [1], [0, 0, 1, 1], [], []>} : vector<2x3920xbf16>, vector<3920x200xbf16>, vector<2x200xf32> -> vector<2x200xf32>
    %c0_3 = arith.constant 0 : index
    %c0_4 = arith.constant 0 : index
    %4 = vector.load %arg3[%c0_3, %c0_4] : memref<1x200xf32, #tpu.memory_space<vmem>>, vector<1x200xf32>
    %5 = vector.broadcast %4 : vector<1x200xf32> to vector<2x200xf32>
    %6 = arith.addf %3, %5 : vector<2x200xf32>
    %cst_5 = arith.constant 0.000000e+00 : f32
    %7 = vector.broadcast %cst_5 : f32 to vector<2x200xf32>
    %8 = arith.maximumf %6, %7 : vector<2x200xf32>
    %9 = arith.truncf %8 : vector<2x200xf32> to vector<2x200xbf16>
    %c0_6 = arith.constant 0 : index
    %c0_7 = arith.constant 0 : index
    %10 = vector.load %arg4[%c0_6, %c0_7] : memref<200x80xbf16, #tpu.memory_space<vmem>>, vector<200x80xbf16>
    %cst_8 = arith.constant dense<0.000000e+00> : vector<2x80xf32>
    %11 = tpu.matmul %9, %10, %cst_8 {dimension_numbers = #tpu.dot_dimension_numbers<[1], [0], [0], [1], [0, 0, 1, 1], [], []>} : vector<2x200xbf16>, vector<200x80xbf16>, vector<2x80xf32> -> vector<2x80xf32>
    %c0_9 = arith.constant 0 : index
    %c0_10 = arith.constant 0 : index
    %12 = vector.load %arg5[%c0_9, %c0_10] : memref<1x80xf32, #tpu.memory_space<vmem>>, vector<1x80xf32>
    %13 = vector.broadcast %12 : vector<1x80xf32> to vector<2x80xf32>
    %14 = arith.addf %11, %13 : vector<2x80xf32>
    %cst_11 = arith.constant 0.000000e+00 : f32
    %15 = vector.broadcast %cst_11 : f32 to vector<2x80xf32>
    %16 = arith.maximumf %14, %15 : vector<2x80xf32>
    %17 = arith.truncf %16 : vector<2x80xf32> to vector<2x80xbf16>
    %c0_12 = arith.constant 0 : index
    %c0_13 = arith.constant 0 : index
    %18 = vector.load %arg6[%c0_12, %c0_13] : memref<80x8xbf16, #tpu.memory_space<vmem>>, vector<80x8xbf16>
    %cst_14 = arith.constant dense<0.000000e+00> : vector<2x8xf32>
    %19 = tpu.matmul %17, %18, %cst_14 {dimension_numbers = #tpu.dot_dimension_numbers<[1], [0], [0], [1], [0, 0, 1, 1], [], []>} : vector<2x80xbf16>, vector<80x8xbf16>, vector<2x8xf32> -> vector<2x8xf32>
    %c0_15 = arith.constant 0 : index
    %c0_16 = arith.constant 0 : index
    %20 = vector.load %arg7[%c0_15, %c0_16] : memref<1x8xf32, #tpu.memory_space<vmem>>, vector<1x8xf32>
    %21 = vector.broadcast %20 : vector<1x8xf32> to vector<2x8xf32>
    %22 = arith.addf %19, %21 : vector<2x8xf32>
    %c0_17 = arith.constant 0 : index
    %c0_18 = arith.constant 0 : index
    %23 = vector.load %arg8[%c0_17, %c0_18] : memref<2x8xf32, #tpu.memory_space<vmem>>, vector<2x8xf32>
    tpu.vector_store %arg8[%c0_17, %c0_18], %22 {strides = array<i32>} : memref<2x8xf32, #tpu.memory_space<vmem>>, vector<2x8xf32>,
    return
  }
  func.func @transform_0(%arg0: i32) -> (i32, i32) {
    %c0_i32 = arith.constant 0 : i32
    %c0_i32_0 = arith.constant 0 : i32
    return %arg0, %c0_i32 : i32, i32
  }
  func.func @transform_1(%arg0: i32) -> (i32, i32) {
    %c0_i32 = arith.constant 0 : i32
    %c0_i32_0 = arith.constant 0 : i32
    %c0_i32_1 = arith.constant 0 : i32
    return %c0_i32, %c0_i32_0 : i32, i32
  }
  func.func @transform_2(%arg0: i32) -> (i32, i32) {
    %c0_i32 = arith.constant 0 : i32
    %c0_i32_0 = arith.constant 0 : i32
    %c0_i32_1 = arith.constant 0 : i32
    return %c0_i32, %c0_i32_0 : i32, i32
  }
  func.func @transform_3(%arg0: i32) -> (i32, i32) {
    %c0_i32 = arith.constant 0 : i32
    %c0_i32_0 = arith.constant 0 : i32
    %c0_i32_1 = arith.constant 0 : i32
    return %c0_i32, %c0_i32_0 : i32, i32
  }
  func.func @transform_4(%arg0: i32) -> (i32, i32) {
    %c0_i32 = arith.constant 0 : i32
    %c0_i32_0 = arith.constant 0 : i32
    %c0_i32_1 = arith.constant 0 : i32
    return %c0_i32, %c0_i32_0 : i32, i32
  }
  func.func @transform_5(%arg0: i32) -> (i32, i32) {
    %c0_i32 = arith.constant 0 : i32
    %c0_i32_0 = arith.constant 0 : i32
    %c0_i32_1 = arith.constant 0 : i32
    return %c0_i32, %c0_i32_0 : i32, i32
  }
  func.func @transform_6(%arg0: i32) -> (i32, i32) {
    %c0_i32 = arith.constant 0 : i32
    %c0_i32_0 = arith.constant 0 : i32
    %c0_i32_1 = arith.constant 0 : i32
    return %c0_i32, %c0_i32_0 : i32, i32
  }
  func.func @transform_7(%arg0: i32) -> (i32, i32) {
    %c0_i32 = arith.constant 0 : i32
    %c0_i32_0 = arith.constant 0 : i32
    return %arg0, %c0_i32 : i32, i32
  }
}

</mosaic_0001>

<bundles_post_ra>
// kernel: net7_forward.3
= control target key start
LH: loop header
LB: loop body
LE: loop exit
PB: predicated region body
PF: predicated region fallthrough
CT: control target
= control target key end

     0   :  { %v5441_v35 = vmov 1983009808   ;;  %v48_v37 = vlaneseq  ;;  %s7192_s0 = inlined_call_operand.vmem [shape: f32[2,3920], index: 0, kind: input, shape index: {}]   ;;  %s7193_s1 = inlined_call_operand.vmem [shape: bf16[3920,200], index: 1, kind: input, shape index: {}]   ;;  %s7194_s2 = inlined_call_operand.vmem [shape: f32[1,200], index: 2, kind: input, shape index: {}]   ;;  %s7195_s3 = inlined_call_operand.vmem [shape: bf16[200,80], index: 3, kind: input, shape index: {}]   ;;  %s7196_s4 = inlined_call_operand.vmem [shape: f32[1,80], index: 4, kind: input, shape index: {}]   ;;  %s7197_s5 = inlined_call_operand.vmem [shape: bf16[80,8], index: 5, kind: input, shape index: {}]   ;;  %s7198_s6 = inlined_call_operand.vmem [shape: f32[1,8], index: 6, kind: input, shape index: {}]   ;;  %s7199_s7 = inlined_call_operand.hbm [shape: f32[2,8], index: 7, kind: output, shape index: {}]  }
   0x1   :  { %v4658_v0 = vld [vmem:[%s7193_s1 + $0x74] ss:$8 sps:$4 sm:$0xff]   ;;  %v4660_v1 = vld [vmem:[%s7193_s1 + $0x70] ss:$8 sps:$4 sm:$0xff]   ;;  %v4664_v4 = vld [vmem:[%s7193_s1 + $0x64] ss:$8 sps:$4 sm:$0xff]   ;;  %v46_v36 = vunpack.c.l.s4 %v5441_v35 }
   0x2   :  { %3197 = vmatprep.subr.bf16.mxu0 %v4658_v0  ;;  %v4661_v2 = vld [vmem:[%s7193_s1 + $0x174] ss:$8 sps:$4 sm:$0xff]   ;;  %v4663_v3 = vld [vmem:[%s7193_s1 + $0x170] ss:$8 sps:$4 sm:$0xff]   ;;  %v4666_v5 = vld [vmem:[%s7193_s1 + $0x60] ss:$8 sps:$4 sm:$0xff]  }
   0x3   :  { %3198 = vmatpush1.bf16.msra.mxu0 %v4660_v1  ;;  %3238 = vmatprep.subr.bf16.mxu1 %v4661_v2  ;;  %v4667_v6 = vld [vmem:[%s7193_s1 + $0x164] ss:$8 sps:$4 sm:$0xff]   ;;  %v4669_v7 = vld [vmem:[%s7193_s1 + $0x160] ss:$8 sps:$4 sm:$0xff]   ;;  %v4670_v8 = vld [vmem:[%s7193_s1 + $0x54] ss:$8 sps:$4 sm:$0xff]   ;;  %v47_v42 = vunpack.c.0.s8 %v46_v36 }
   0x4   :  { %3239 = vmatpush1.bf16.msra.mxu1 %v4663_v3  ;;  %3199 = vmatprep.subr.bf16.mxu0 %v4664_v4  ;;  %v4672_v9 = vld [vmem:[%s7193_s1 + $0x50] ss:$8 sps:$4 sm:$0xff]   ;;  %v4673_v10 = vld [vmem:[%s7193_s1 + $0x154] ss:$8 sps:$4 sm:$0xff]   ;;  %v4676_v11 = vld [vmem:[%s7193_s1 + $0x44] ss:$8 sps:$4 sm:$0xff]  }
   0x5   :  { %3240 = vmatprep.subr.bf16.mxu1 %v4667_v6  ;;  %v4675_v12 = vld [vmem:[%s7193_s1 + $0x150] ss:$8 sps:$4 sm:$0xff]   ;;  %v4679_v13 = vld [vmem:[%s7193_s1 + $0x144] ss:$8 sps:$4 sm:$0xff]   ;;  %v4678_v14 = vld [vmem:[%s7193_s1 + $0x40] ss:$8 sps:$4 sm:$0xff]  }
   0x6   :  { %v4682_v15 = vld [vmem:[%s7193_s1 + $0x34] ss:$8 sps:$4 sm:$0xff]   ;;  %v4681_v16 = vld [vmem:[%s7193_s1 + $0x140] ss:$8 sps:$4 sm:$0xff]   ;;  %v4684_v18 = vld [vmem:[%s7193_s1 + $0x30] ss:$8 sps:$4 sm:$0xff]  }
   0x7   :  { %3200 = vmatpush1.bf16.msra.mxu0 %v4666_v5  ;;  %v4685_v17 = vld [vmem:[%s7193_s1 + $0x134] ss:$8 sps:$4 sm:$0xff]   ;;  %v4688_v19 = vld [vmem:[%s7193_s1 + $0x24] ss:$8 sps:$4 sm:$0xff]   ;;  %v4687_v20 = vld [vmem:[%s7193_s1 + $0x130] ss:$8 sps:$4 sm:$0xff]  }
   0x8   :  { %3201 = vmatprep.subr.bf16.mxu0 %v4670_v8  ;;  %3241 = vmatpush1.bf16.msra.mxu1 %v4669_v7  ;;  %v4691_v21 = vld [vmem:[%s7193_s1 + $0x124] ss:$8 sps:$4 sm:$0xff]   ;;  %v4690_v22 = vld [vmem:[%s7193_s1 + $0x20] ss:$8 sps:$4 sm:$0xff]   ;;  %v4694_v23 = vld [vmem:[%s7193_s1 + $0x14] ss:$8 sps:$4 sm:$0xff]  }
   0x9   :  { %3242 = vmatprep.subr.bf16.mxu1 %v4673_v10  ;;  %v4693_v24 = vld [vmem:[%s7193_s1 + $0x120] ss:$8 sps:$4 sm:$0xff]   ;;  %v4697_v25 = vld [vmem:[%s7193_s1 + $0x114] ss:$8 sps:$4 sm:$0xff]   ;;  %v4696_v26 = vld [vmem:[%s7193_s1 + $0x10] ss:$8 sps:$4 sm:$0xff]  }
   0xa   :  { %v4700_v27 = vld [vmem:[%s7193_s1 + $0x4] ss:$8 sps:$4 sm:$0xff]   ;;  %v4699_v28 = vld [vmem:[%s7193_s1 + $0x110] ss:$8 sps:$4 sm:$0xff]   ;;  %v4702_v30 = vld [vmem:[%s7193_s1] ss:$8 sps:$4 sm:$0xff]  }
   0xb   :  { %3202 = vmatpush1.bf16.msra.mxu0 %v4672_v9  ;;  %v4703_v29 = vld [vmem:[%s7193_s1 + $0x104] ss:$8 sps:$4 sm:$0xff]   ;;  %v4706_v31 = vld [vmem:[%s7193_s1 + $0xf4] ss:$8 sps:$4 sm:$0xff]   ;;  %v4705_v32 = vld [vmem:[%s7193_s1 + $0x100] ss:$8 sps:$4 sm:$0xff]  }
   0xc   :  { %3203 = vmatprep.subr.bf16.mxu0 %v4676_v11  ;;  %3243 = vmatpush1.bf16.msra.mxu1 %v4675_v12  ;;  %v4709_v33 = vld [vmem:[%s7193_s1 + $0x1f4] ss:$8 sps:$4 sm:$0xff]   ;;  %v4708_v34 = vld [vmem:[%s7193_s1 + $0xf0] ss:$8 sps:$4 sm:$0xff]   ;;  %v4712_v38 = vld [vmem:[%s7193_s1 + $0xe4] ss:$8 sps:$4 sm:$0xff]  }
   0xd   :  { %3244 = vmatprep.subr.bf16.mxu1 %v4679_v13  ;;  %v4711_v39 = vld [vmem:[%s7193_s1 + $0x1f0] ss:$8 sps:$4 sm:$0xff]   ;;  %v4715_v40 = vld [vmem:[%s7193_s1 + $0x1e4] ss:$8 sps:$4 sm:$0xff]   ;;  %v4714_v41 = vld [vmem:[%s7193_s1 + $0xe0] ss:$8 sps:$4 sm:$0xff]  }
   0xe   :  { %v5603_v43 = vshrl.u32 %v48_v37, 7  ;;  %v4718_v44 = vld [vmem:[%s7193_s1 + $0xd4] ss:$8 sps:$4 sm:$0xff]   ;;  %v4717_v45 = vld [vmem:[%s7193_s1 + $0x1e0] ss:$8 sps:$4 sm:$0xff]  }
   0xf   :  { %3204 = vmatpush1.bf16.msra.mxu0 %v4678_v14  ;;  %v4721_v46 = vld [vmem:[%s7193_s1 + $0x1d4] ss:$8 sps:$4 sm:$0xff]   ;;  %v4720_v47 = vld [vmem:[%s7193_s1 + $0xd0] ss:$8 sps:$4 sm:$0xff]   ;;  %v4724_v49 = vld [vmem:[%s7193_s1 + $0xc4] ss:$8 sps:$4 sm:$0xff]  }
  0x10   :  { %3205 = vmatprep.subr.bf16.mxu0 %v4682_v15  ;;  %3245 = vmatpush1.bf16.msra.mxu1 %v4681_v16  ;;  %v5618_v48 = vsub.s32 %v47_v42, %v5603_v43  ;;  %v4723_v50 = vld [vmem:[%s7193_s1 + $0x1d0] ss:$8 sps:$4 sm:$0xff]   ;;  %v4727_v51 = vld [vmem:[%s7193_s1 + $0x1c4] ss:$8 sps:$4 sm:$0xff]   ;;  %v4726_v53 = vld [vmem:[%s7193_s1 + $0xc0] ss:$8 sps:$4 sm:$0xff]  }
  0x11   :  { %3246 = vmatprep.subr.bf16.mxu1 %v4685_v17  ;;  %v28_v52 = vld [vmem:[%s7192_s0] sm:$0xff]  ;;  %v4730_v56 = vld [vmem:[%s7193_s1 + $0xb4] ss:$8 sps:$4 sm:$0xff]   ;;  %v4732_v61 = vld [vmem:[%s7193_s1 + $0xb0] ss:$8 sps:$4 sm:$0xff]  }
  0x12   :  { %v51_v54 = vrot.slane %v28_v52, %v5618_v48  ;;  %v44_v55 = vcombine.high %v28_v52, %v28_v52  ;;  %v4729_v57 = vld [vmem:[%s7193_s1 + $0x1c0] ss:$8 sps:$4 sm:$0xff]   ;;  %v4733_v60 = vld [vmem:[%s7193_s1 + $0x1b4] ss:$8 sps:$4 sm:$0xff]   ;;  %v4736_v0 = vld [vmem:[%s7193_s1 + $0xa4] ss:$8 sps:$4 sm:$0xff]  }
  0x13   :  { %3206 = vmatpush1.bf16.msra.mxu0 %v4684_v18  ;;  %v4735_v1 = vld [vmem:[%s7193_s1 + $0x1b0] ss:$8 sps:$4 sm:$0xff]   ;;  %v4739_v3 = vld [vmem:[%s7193_s1 + $0x1a4] ss:$8 sps:$4 sm:$0xff]   ;;  %v4738_v4 = vld [vmem:[%s7193_s1 + $0xa0] ss:$8 sps:$4 sm:$0xff]  }
  0x14   :  { %3207 = vmatprep.subr.bf16.mxu0 %v4688_v19  ;;  %3247 = vmatpush1.bf16.msra.mxu1 %v4687_v20  ;;  %v59_v58 = vcombine.high %v51_v54, %v51_v54  ;;  %v58_v59 = vrot.slane %v44_v55, %v5618_v48  ;;  %v4742_v5 = vld [vmem:[%s7193_s1 + $0x94] ss:$8 sps:$4 sm:$0xff]   ;;  %v4741_v6 = vld [vmem:[%s7193_s1 + $0x1a0] ss:$8 sps:$4 sm:$0xff]   ;;  %v4744_v8 = vld [vmem:[%s7193_s1 + $0x90] ss:$8 sps:$4 sm:$0xff]   ;;  %v210_v15 = vpack.c.bf16 %v51_v54, %v51_v54 }
  0x15   :  { %3248 = vmatprep.subr.bf16.mxu1 %v4691_v21  ;;  %v4745_v7 = vld [vmem:[%s7193_s1 + $0x194] ss:$8 sps:$4 sm:$0xff]   ;;  %v4748_v9 = vld [vmem:[%s7193_s1 + $0x84] ss:$8 sps:$4 sm:$0xff]   ;;  %v4747_v10 = vld [vmem:[%s7193_s1 + $0x190] ss:$8 sps:$4 sm:$0xff]  }
  0x16   :  { %v211_v62 = vpack.c.bf16 %v59_v58, %v59_v58  ;;  %v60_v63 = vcombine.high %v58_v59, %v58_v59  ;;  %v4751_v11 = vld [vmem:[%s7193_s1 + $0x184] ss:$8 sps:$4 sm:$0xff]   ;;  %v4750_v12 = vld [vmem:[%s7193_s1 + $0x80] ss:$8 sps:$4 sm:$0xff]   ;;  %v4756_v13 = vld [vmem:[%s7193_s1 + $0x274] ss:$8 sps:$4 sm:$0xff]   ;;  %v212_v18 = vpack.c.bf16 %v58_v59, %v58_v59 }
  0x17   :  { %3208 = vmatpush1.bf16.msra.mxu0 %v4690_v22  ;;  %v4753_v14 = vld [vmem:[%s7193_s1 + $0x180] ss:$8 sps:$4 sm:$0xff]   ;;  %v4760_v16 = vld [vmem:[%s7193_s1 + $0x374] ss:$8 sps:$4 sm:$0xff]   ;;  %v4754_v17 = vld [vmem:[%s7193_s1 + $0x270] ss:$8 sps:$4 sm:$0xff]  }
  0x18   :  { %3209 = vmatprep.subr.bf16.mxu0 %v4694_v23  ;;  %3249 = vmatpush1.bf16.msra.mxu1 %v4693_v24  ;;  %v213_v2 = vpack.c.bf16 %v60_v63, %v60_v63  ;;  %v4763_v19 = vld [vmem:[%s7193_s1 + $0x264] ss:$8 sps:$4 sm:$0xff]   ;;  %v4758_v20 = vld [vmem:[%s7193_s1 + $0x370] ss:$8 sps:$4 sm:$0xff]   ;;  %v4761_v22 = vld [vmem:[%s7193_s1 + $0x260] ss:$8 sps:$4 sm:$0xff]  }
  0x19   :  { %3250 = vmatprep.subr.bf16.mxu1 %v4697_v25  ;;  %3229 = vmatprep.mubr.bf16.mxu0 %v211_v62  ;;  %v4766_v21 = vld [vmem:[%s7193_s1 + $0x364] ss:$8 sps:$4 sm:$0xff]   ;;  %v4769_v23 = vld [vmem:[%s7193_s1 + $0x254] ss:$8 sps:$4 sm:$0xff]   ;;  %v4764_v24 = vld [vmem:[%s7193_s1 + $0x360] ss:$8 sps:$4 sm:$0xff]  }
  0x1a   :  { %3270 = vmatprep.mubr.bf16.mxu1 %v213_v2  ;;  %v4772_v25 = vld [vmem:[%s7193_s1 + $0x354] ss:$8 sps:$4 sm:$0xff]   ;;  %v4787_v35 = vld [vmem:[%s7193_s1 + $0x224] ss:$8 sps:$4 sm:$0xff]   ;;  %v4782_v36 = vld [vmem:[%s7193_s1 + $0x330] ss:$8 sps:$4 sm:$0xff]  }
  0x1b   :  { %3210 = vmatpush1.bf16.msra.mxu0 %v4696_v26  ;;  %v4767_v26 = vld [vmem:[%s7193_s1 + $0x250] ss:$8 sps:$4 sm:$0xff]   ;;  %v4790_v37 = vld [vmem:[%s7193_s1 + $0x324] ss:$8 sps:$4 sm:$0xff]   ;;  %v4796_v42 = vld [vmem:[%s7193_s1 + $0x314] ss:$8 sps:$4 sm:$0xff]  }
  0x1c   :  { %3211 = vmatprep.subr.bf16.mxu0 %v4700_v27  ;;  %3251 = vmatpush1.bf16.msra.mxu1 %v4699_v28  ;;  %v4775_v27 = vld [vmem:[%s7193_s1 + $0x244] ss:$8 sps:$4 sm:$0xff]   ;;  %v4770_v28 = vld [vmem:[%s7193_s1 + $0x350] ss:$8 sps:$4 sm:$0xff]   ;;  %v4797_v55 = vld [vmem:[%s7193_s1 + $0x200] ss:$8 sps:$4 sm:$0xff]  }
  0x1d   :  { %3252 = vmatprep.subr.bf16.mxu1 %v4703_v29  ;;  %v4778_v29 = vld [vmem:[%s7193_s1 + $0x344] ss:$8 sps:$4 sm:$0xff]   ;;  %v4800_v58 = vld [vmem:[%s7193_s1 + $0x300] ss:$8 sps:$4 sm:$0xff]   ;;  %v4808_v59 = vld [vmem:[%s7193_s1 + $0x3f4] ss:$8 sps:$4 sm:$0xff]  }
  0x1e   :  { %v4802_v52 = vld [vmem:[%s7193_s1 + $0x304] ss:$8 sps:$4 sm:$0xff]   ;;  %v4806_v62 = vld [vmem:[%s7193_s1 + $0x3f0] ss:$8 sps:$4 sm:$0xff]   ;;  %v4812_v2 = vld [vmem:[%s7193_s1 + $0x3e0] ss:$8 sps:$4 sm:$0xff]  }
  0x1f   :  { %3212 = vmatpush1.bf16.msra.mxu0 %v4702_v30  ;;  %v4773_v30 = vld [vmem:[%s7193_s1 + $0x240] ss:$8 sps:$4 sm:$0xff]   ;;  %v4814_v63 = vld [vmem:[%s7193_s1 + $0x3e4] ss:$8 sps:$4 sm:$0xff]  }
  0x20   :  { %3213 = vmatprep.subr.bf16.mxu0 %v4706_v31  ;;  %3253 = vmatpush1.bf16.msra.mxu1 %v4705_v32  ;;  %v4781_v31 = vld [vmem:[%s7193_s1 + $0x234] ss:$8 sps:$4 sm:$0xff]   ;;  %v4776_v32 = vld [vmem:[%s7193_s1 + $0x340] ss:$8 sps:$4 sm:$0xff]  }
  0x21   :  { %3254 = vmatprep.subr.bf16.mxu1 %v4709_v33  ;;  %v4784_v33 = vld [vmem:[%s7193_s1 + $0x334] ss:$8 sps:$4 sm:$0xff]  }
  0x23   :  { %3214 = vmatpush2.bf16.msra.mxu0 %v4708_v34  ;;  %v4779_v34 = vld [vmem:[%s7193_s1 + $0x230] ss:$8 sps:$4 sm:$0xff]  }
  0x24   :  { %3215 = vmatprep.subr.bf16.mxu0 %v4712_v38  ;;  %3255 = vmatpush2.bf16.msra.mxu1 %v4711_v39  ;;  %v4785_v38 = vld [vmem:[%s7193_s1 + $0x220] ss:$8 sps:$4 sm:$0xff]   ;;  %v4793_v39 = vld [vmem:[%s7193_s1 + $0x214] ss:$8 sps:$4 sm:$0xff]  }
  0x25   :  { %3256 = vmatprep.subr.bf16.mxu1 %v4715_v40  ;;  %v4788_v40 = vld [vmem:[%s7193_s1 + $0x320] ss:$8 sps:$4 sm:$0xff]  }
  0x27   :  { %3216 = vmatpush2.bf16.msra.mxu0 %v4714_v41  ;;  %v29_v41 = vld [vmem:[%s7192_s0 + $0x8] sm:$0xff] }
  0x28   :  { %3217 = vmatprep.subr.bf16.mxu0 %v4718_v44  ;;  %3257 = vmatpush2.bf16.msra.mxu1 %v4717_v45  ;;  %v5770_v44 = vrot.slane %v29_v41, %v5618_v48  ;;  %v61_v45 = vcombine.high %v29_v41, %v29_v41  ;;  %v4861_v41 = vld [vmem:[%s7193_s1 + $0x560] ss:$8 sps:$4 sm:$0xff]  }
  0x29   :  { %3258 = vmatprep.subr.bf16.mxu1 %v4721_v46  ;;  %v4791_v46 = vld [vmem:[%s7193_s1 + $0x210] ss:$8 sps:$4 sm:$0xff]  }
  0x2b   :  { %3218 = vmatpush2.bf16.msra.mxu0 %v4720_v47  ;;  %v4799_v47 = vld [vmem:[%s7193_s1 + $0x204] ss:$8 sps:$4 sm:$0xff]  }
  0x2c   :  { %3219 = vmatprep.subr.bf16.mxu0 %v4724_v49  ;;  %3259 = vmatpush2.bf16.msra.mxu1 %v4723_v50  ;;  %v76_v49 = vcombine.high %v5770_v44, %v5770_v44  ;;  %v5781_v50 = vrot.slane %v61_v45, %v5618_v48  ;;  %v4869_v45 = vld [vmem:[%s7193_s1 + $0x554] ss:$8 sps:$4 sm:$0xff]  }
  0x2d   :  { %3260 = vmatprep.subr.bf16.mxu1 %v4727_v51  ;;  %v4794_v51 = vld [vmem:[%s7193_s1 + $0x310] ss:$8 sps:$4 sm:$0xff]  }
  0x2e   :  { %v77_v54 = vcombine.high %v5781_v50, %v5781_v50 }
  0x2f   :  { %3220 = vmatpush2.bf16.msra.mxu0 %v4726_v53  ;;  %v215_v53 = vpack.c.bf16 %v76_v49, %v76_v49  ;;  %v4872_v49 = vld [vmem:[%s7193_s1 + $0x444] ss:$8 sps:$4 sm:$0xff]  }
  0x30   :  { %3221 = vmatprep.subr.bf16.mxu0 %v4730_v56  ;;  %3261 = vmatpush2.bf16.msra.mxu1 %v4729_v57  ;;  %v4805_v56 = vld [vmem:[%s7193_s1 + $0x2f4] ss:$8 sps:$4 sm:$0xff]   ;;  %v217_v57 = vpack.c.bf16 %v77_v54, %v77_v54  ;;  %v4873_v54 = vld [vmem:[%s7193_s1 + $0x540] ss:$8 sps:$4 sm:$0xff]  }
  0x31   :  { %3262 = vmatprep.subr.bf16.mxu1 %v4733_v60  ;;  %v4803_v60 = vld [vmem:[%s7193_s1 + $0x2f0] ss:$8 sps:$4 sm:$0xff]  }
  0x33   :  { %3222 = vmatpush2.bf16.msra.mxu0 %v4732_v61  ;;  %v4811_v61 = vld [vmem:[%s7193_s1 + $0x2e4] ss:$8 sps:$4 sm:$0xff]  }
  0x34   :  { %3223 = vmatprep.subr.bf16.mxu0 %v4736_v0  ;;  %3263 = vmatpush2.bf16.msra.mxu1 %v4735_v1  ;;  %v4809_v0 = vld [vmem:[%s7193_s1 + $0x2e0] ss:$8 sps:$4 sm:$0xff]   ;;  %v4817_v1 = vld [vmem:[%s7193_s1 + $0x2d4] ss:$8 sps:$4 sm:$0xff]  }
  0x35   :  { %3264 = vmatprep.subr.bf16.mxu1 %v4739_v3  ;;  %v4820_v3 = vld [vmem:[%s7193_s1 + $0x3d4] ss:$8 sps:$4 sm:$0xff]  }
  0x37   :  { %3224 = vmatpush2.bf16.msra.mxu0 %v4738_v4  ;;  %v4815_v4 = vld [vmem:[%s7193_s1 + $0x2d0] ss:$8 sps:$4 sm:$0xff]  }
  0x38   :  { %3225 = vmatprep.subr.bf16.mxu0 %v4742_v5  ;;  %3265 = vmatpush2.bf16.msra.mxu1 %v4741_v6  ;;  %v4823_v5 = vld [vmem:[%s7193_s1 + $0x2c4] ss:$8 sps:$4 sm:$0xff]   ;;  %v4818_v6 = vld [vmem:[%s7193_s1 + $0x3d0] ss:$8 sps:$4 sm:$0xff]  }
  0x39   :  { %3266 = vmatprep.subr.bf16.mxu1 %v4745_v7  ;;  %v4826_v7 = vld [vmem:[%s7193_s1 + $0x3c4] ss:$8 sps:$4 sm:$0xff]  }
  0x3b   :  { %3226 = vmatpush2.bf16.msra.mxu0 %v4744_v8  ;;  %v4821_v8 = vld [vmem:[%s7193_s1 + $0x2c0] ss:$8 sps:$4 sm:$0xff]  }
  0x3c   :  { %3227 = vmatprep.subr.bf16.mxu0 %v4748_v9  ;;  %3267 = vmatpush2.bf16.msra.mxu1 %v4747_v10  ;;  %v4829_v9 = vld [vmem:[%s7193_s1 + $0x2b4] ss:$8 sps:$4 sm:$0xff]   ;;  %v4824_v10 = vld [vmem:[%s7193_s1 + $0x3c0] ss:$8 sps:$4 sm:$0xff]  }
  0x3d   :  { %3268 = vmatprep.subr.bf16.mxu1 %v4751_v11  ;;  %v4832_v11 = vld [vmem:[%s7193_s1 + $0x3b4] ss:$8 sps:$4 sm:$0xff]  }
  0x3f   :  { %3228 = vmatpush2.bf16.msra.mxu0 %v4750_v12  ;;  %v4827_v12 = vld [vmem:[%s7193_s1 + $0x2b0] ss:$8 sps:$4 sm:$0xff]  }
  0x40   :  { %3279 = vmatprep.subr.bf16.mxu0 %v4756_v13  ;;  %3269 = vmatpush2.bf16.msra.mxu1 %v4753_v14  ;;  %v4835_v13 = vld [vmem:[%s7193_s1 + $0x2a4] ss:$8 sps:$4 sm:$0xff]   ;;  %v4830_v14 = vld [vmem:[%s7193_s1 + $0x3b0] ss:$8 sps:$4 sm:$0xff]  }
  0x41   :  { %3320 = vmatprep.subr.bf16.mxu1 %v4760_v16  ;;  %v4833_v16 = vld [vmem:[%s7193_s1 + $0x2a0] ss:$8 sps:$4 sm:$0xff]  }
  0x42   :  { %3230 = vmatmul.mubr.bf16.vlgmr.msra.gmra.mxu0 %v210_v15  ;;  %v4838_v15 = vld [vmem:[%s7193_s1 + $0x3a4] ss:$8 sps:$4 sm:$0xff]  }
  0x43   :  { %3280 = vmatpush1.bf16.msra.mxu0 %v4754_v17  ;;  %3271 = vmatmul.mubr.bf16.vlgmr.msra.gmra.mxu1 %v212_v18  ;;  %v4841_v17 = vld [vmem:[%s7193_s1 + $0x294] ss:$8 sps:$4 sm:$0xff]   ;;  %v4836_v18 = vld [vmem:[%s7193_s1 + $0x3a0] ss:$8 sps:$4 sm:$0xff]  }
  0x44   :  { %3281 = vmatprep.subr.bf16.mxu0 %v4763_v19  ;;  %3321 = vmatpush1.bf16.msra.mxu1 %v4758_v20  ;;  %v4844_v19 = vld [vmem:[%s7193_s1 + $0x394] ss:$8 sps:$4 sm:$0xff]   ;;  %v4839_v20 = vld [vmem:[%s7193_s1 + $0x290] ss:$8 sps:$4 sm:$0xff]  }
  0x45   :  { %3322 = vmatprep.subr.bf16.mxu1 %v4766_v21  ;;  %3311 = vmatprep.mubr.bf16.mxu0 %v215_v53  ;;  %v4847_v21 = vld [vmem:[%s7193_s1 + $0x284] ss:$8 sps:$4 sm:$0xff]   ;;  %v4878_v53 = vld [vmem:[%s7193_s1 + $0x434] ss:$8 sps:$4 sm:$0xff]  }
  0x46   :  { %3352 = vmatprep.mubr.bf16.mxu1 %v217_v57  ;;  %v4884_v57 = vld [vmem:[%s7193_s1 + $0x424] ss:$8 sps:$4 sm:$0xff]  }
  0x47   :  { %3282 = vmatpush1.bf16.msra.mxu0 %v4761_v22  ;;  %v4842_v22 = vld [vmem:[%s7193_s1 + $0x390] ss:$8 sps:$4 sm:$0xff]  }
  0x48   :  { %3283 = vmatprep.subr.bf16.mxu0 %v4769_v23  ;;  %3323 = vmatpush1.bf16.msra.mxu1 %v4764_v24  ;;  %v4850_v23 = vld [vmem:[%s7193_s1 + $0x384] ss:$8 sps:$4 sm:$0xff]   ;;  %v4845_v24 = vld [vmem:[%s7193_s1 + $0x280] ss:$8 sps:$4 sm:$0xff]  }
  0x49   :  { %3324 = vmatprep.subr.bf16.mxu1 %v4772_v25  ;;  %v4853_v25 = vld [vmem:[%s7193_s1 + $0x474] ss:$8 sps:$4 sm:$0xff]  }
  0x4b   :  { %3284 = vmatpush1.bf16.msra.mxu0 %v4767_v26  ;;  %v4848_v26 = vld [vmem:[%s7193_s1 + $0x380] ss:$8 sps:$4 sm:$0xff]  }
  0x4c   :  { %3285 = vmatprep.subr.bf16.mxu0 %v4775_v27  ;;  %3325 = vmatpush1.bf16.msra.mxu1 %v4770_v28  ;;  %v214_v27 = vpack.c.bf16 %v5770_v44, %v5770_v44  ;;  %v4857_v28 = vld [vmem:[%s7193_s1 + $0x574] ss:$8 sps:$4 sm:$0xff]  }
  0x4d   :  { %3326 = vmatprep.subr.bf16.mxu1 %v4778_v29  ;;  %v4851_v29 = vld [vmem:[%s7193_s1 + $0x470] ss:$8 sps:$4 sm:$0xff]  }
  0x4f   :  { %3286 = vmatpush1.bf16.msra.mxu0 %v4773_v30  ;;  %v216_v30 = vpack.c.bf16 %v5781_v50, %v5781_v50  ;;  %v4867_v50 = vld [vmem:[%s7193_s1 + $0x550] ss:$8 sps:$4 sm:$0xff]  }
  0x50   :  { %3287 = vmatprep.subr.bf16.mxu0 %v4781_v31  ;;  %3327 = vmatpush1.bf16.msra.mxu1 %v4776_v32  ;;  %v4860_v31 = vld [vmem:[%s7193_s1 + $0x464] ss:$8 sps:$4 sm:$0xff]   ;;  %v30_v32 = vld [vmem:[%s7192_s0 + $0x10] sm:$0xff] }
  0x51   :  { %3328 = vmatprep.subr.bf16.mxu1 %v4784_v33  ;;  %v4855_v33 = vld [vmem:[%s7193_s1 + $0x570] ss:$8 sps:$4 sm:$0xff]  }
  0x53   :  { %3288 = vmatpush1.bf16.msra.mxu0 %v4779_v34  ;;  %v5916_v34 = vrot.slane %v30_v32, %v5618_v48 }
  0x54   :  { %3289 = vmatprep.subr.bf16.mxu0 %v4787_v35  ;;  %3329 = vmatpush1.bf16.msra.mxu1 %v4782_v36  ;;  %v78_v35 = vcombine.high %v30_v32, %v30_v32  ;;  %v4863_v36 = vld [vmem:[%s7193_s1 + $0x564] ss:$8 sps:$4 sm:$0xff]  }
  0x55   :  { %3330 = vmatprep.subr.bf16.mxu1 %v4790_v37  ;;  %v4858_v37 = vld [vmem:[%s7193_s1 + $0x460] ss:$8 sps:$4 sm:$0xff]  }
  0x57   :  { %3290 = vmatpush1.bf16.msra.mxu0 %v4785_v38  ;;  %v93_v38 = vcombine.high %v5916_v34, %v5916_v34 }
  0x58   :  { %3291 = vmatprep.subr.bf16.mxu0 %v4793_v39  ;;  %3331 = vmatpush1.bf16.msra.mxu1 %v4788_v40  ;;  %v5927_v39 = vrot.slane %v78_v35, %v5618_v48  ;;  %v4866_v40 = vld [vmem:[%s7193_s1 + $0x454] ss:$8 sps:$4 sm:$0xff]   ;;  %v4936_v35 = vld [vmem:[%s7193_s1 + $0x490] ss:$8 sps:$4 sm:$0xff]  }
  0x59   :  { %3332 = vmatprep.subr.bf16.mxu1 %v4796_v42  ;;  %v219_v42 = vpack.c.bf16 %v93_v38, %v93_v38  ;;  %v4939_v38 = vld [vmem:[%s7193_s1 + $0x590] ss:$8 sps:$4 sm:$0xff]  }
  0x5a   :  { %v94_v44 = vcombine.high %v5927_v39, %v5927_v39 }
  0x5b   :  { %3292 = vmatpush1.bf16.msra.mxu0 %v4791_v46  ;;  %v4864_v46 = vld [vmem:[%s7193_s1 + $0x450] ss:$8 sps:$4 sm:$0xff]  }
  0x5c   :  { %3293 = vmatprep.subr.bf16.mxu0 %v4799_v47  ;;  %3333 = vmatpush1.bf16.msra.mxu1 %v4794_v51  ;;  %v221_v47 = vpack.c.bf16 %v94_v44, %v94_v44  ;;  %v4875_v51 = vld [vmem:[%s7193_s1 + $0x544] ss:$8 sps:$4 sm:$0xff]  }
  0x5d   :  { %3334 = vmatprep.subr.bf16.mxu1 %v4802_v52  ;;  %v4870_v52 = vld [vmem:[%s7193_s1 + $0x440] ss:$8 sps:$4 sm:$0xff]  }
  0x5f   :  { %3294 = vmatpush1.bf16.msra.mxu0 %v4797_v55  ;;  %v4881_v55 = vld [vmem:[%s7193_s1 + $0x534] ss:$8 sps:$4 sm:$0xff]  }
  0x60   :  { %3295 = vmatprep.subr.bf16.mxu0 %v4805_v56  ;;  %3335 = vmatpush1.bf16.msra.mxu1 %v4800_v58  ;;  %v4876_v56 = vld [vmem:[%s7193_s1 + $0x430] ss:$8 sps:$4 sm:$0xff]  }
  0x61   :  { %3336 = vmatprep.subr.bf16.mxu1 %v4808_v59  ;;  %v4879_v58 = vld [vmem:[%s7193_s1 + $0x530] ss:$8 sps:$4 sm:$0xff]   ;;  %v4887_v59 = vld [vmem:[%s7193_s1 + $0x524] ss:$8 sps:$4 sm:$0xff]  }
  0x63   :  { %3296 = vmatpush2.bf16.msra.mxu0 %v4803_v60  ;;  %v4882_v60 = vld [vmem:[%s7193_s1 + $0x420] ss:$8 sps:$4 sm:$0xff]  }
  0x64   :  { %3297 = vmatprep.subr.bf16.mxu0 %v4811_v61  ;;  %3337 = vmatpush2.bf16.msra.mxu1 %v4806_v62  ;;  %v4890_v61 = vld [vmem:[%s7193_s1 + $0x414] ss:$8 sps:$4 sm:$0xff]   ;;  %v4885_v62 = vld [vmem:[%s7193_s1 + $0x520] ss:$8 sps:$4 sm:$0xff]  }
  0x65   :  { %3338 = vmatprep.subr.bf16.mxu1 %v4814_v63  ;;  %v4893_v63 = vld [vmem:[%s7193_s1 + $0x514] ss:$8 sps:$4 sm:$0xff]  }
  0x67   :  { %3298 = vmatpush2.bf16.msra.mxu0 %v4809_v0  ;;  %v4888_v0 = vld [vmem:[%s7193_s1 + $0x410] ss:$8 sps:$4 sm:$0xff]  }
  0x68   :  { %3299 = vmatprep.subr.bf16.mxu0 %v4817_v1  ;;  %3339 = vmatpush2.bf16.msra.mxu1 %v4812_v2  ;;  %v4896_v1 = vld [vmem:[%s7193_s1 + $0x404] ss:$8 sps:$4 sm:$0xff]   ;;  %v4891_v2 = vld [vmem:[%s7193_s1 + $0x510] ss:$8 sps:$4 sm:$0xff]  }
  0x69   :  { %3340 = vmatprep.subr.bf16.mxu1 %v4820_v3  ;;  %v4899_v3 = vld [vmem:[%s7193_s1 + $0x504] ss:$8 sps:$4 sm:$0xff]  }
  0x6b   :  { %3300 = vmatpush2.bf16.msra.mxu0 %v4815_v4  ;;  %v4894_v4 = vld [vmem:[%s7193_s1 + $0x400] ss:$8 sps:$4 sm:$0xff]  }
  0x6c   :  { %3301 = vmatprep.subr.bf16.mxu0 %v4823_v5  ;;  %3341 = vmatpush2.bf16.msra.mxu1 %v4818_v6  ;;  %v4902_v5 = vld [vmem:[%s7193_s1 + $0x4f4] ss:$8 sps:$4 sm:$0xff]   ;;  %v4897_v6 = vld [vmem:[%s7193_s1 + $0x500] ss:$8 sps:$4 sm:$0xff]  }
  0x6d   :  { %3342 = vmatprep.subr.bf16.mxu1 %v4826_v7  ;;  %v4905_v7 = vld [vmem:[%s7193_s1 + $0x5f4] ss:$8 sps:$4 sm:$0xff]  }
  0x6f   :  { %3302 = vmatpush2.bf16.msra.mxu0 %v4821_v8  ;;  %v4900_v8 = vld [vmem:[%s7193_s1 + $0x4f0] ss:$8 sps:$4 sm:$0xff]  }
  0x70   :  { %3303 = vmatprep.subr.bf16.mxu0 %v4829_v9  ;;  %3343 = vmatpush2.bf16.msra.mxu1 %v4824_v10  ;;  %v4908_v9 = vld [vmem:[%s7193_s1 + $0x4e4] ss:$8 sps:$4 sm:$0xff]   ;;  %v4903_v10 = vld [vmem:[%s7193_s1 + $0x5f0] ss:$8 sps:$4 sm:$0xff]  }
  0x71   :  { %3344 = vmatprep.subr.bf16.mxu1 %v4832_v11  ;;  %v4911_v11 = vld [vmem:[%s7193_s1 + $0x5e4] ss:$8 sps:$4 sm:$0xff]  }
  0x73   :  { %3304 = vmatpush2.bf16.msra.mxu0 %v4827_v12  ;;  %v4906_v12 = vld [vmem:[%s7193_s1 + $0x4e0] ss:$8 sps:$4 sm:$0xff]  }
  0x74   :  { %3305 = vmatprep.subr.bf16.mxu0 %v4835_v13  ;;  %3345 = vmatpush2.bf16.msra.mxu1 %v4830_v14  ;;  %v4914_v13 = vld [vmem:[%s7193_s1 + $0x4d4] ss:$8 sps:$4 sm:$0xff]   ;;  %v4909_v14 = vld [vmem:[%s7193_s1 + $0x5e0] ss:$8 sps:$4 sm:$0xff]  }
  0x75   :  { %3346 = vmatprep.subr.bf16.mxu1 %v4838_v15  ;;  %v4917_v15 = vld [vmem:[%s7193_s1 + $0x5d4] ss:$8 sps:$4 sm:$0xff]  }
  0x77   :  { %3306 = vmatpush2.bf16.msra.mxu0 %v4833_v16  ;;  %v4912_v16 = vld [vmem:[%s7193_s1 + $0x4d0] ss:$8 sps:$4 sm:$0xff]  }
  0x78   :  { %3307 = vmatprep.subr.bf16.mxu0 %v4841_v17  ;;  %3347 = vmatpush2.bf16.msra.mxu1 %v4836_v18  ;;  %v4920_v17 = vld [vmem:[%s7193_s1 + $0x4c4] ss:$8 sps:$4 sm:$0xff]   ;;  %v4915_v18 = vld [vmem:[%s7193_s1 + $0x5d0] ss:$8 sps:$4 sm:$0xff]  }
  0x79   :  { %3348 = vmatprep.subr.bf16.mxu1 %v4844_v19  ;;  %v4923_v19 = vld [vmem:[%s7193_s1 + $0x5c4] ss:$8 sps:$4 sm:$0xff]  }
  0x7b   :  { %3308 = vmatpush2.bf16.msra.mxu0 %v4839_v20  ;;  %v4918_v20 = vld [vmem:[%s7193_s1 + $0x4c0] ss:$8 sps:$4 sm:$0xff]  }
  0x7c   :  { %3309 = vmatprep.subr.bf16.mxu0 %v4847_v21  ;;  %3349 = vmatpush2.bf16.msra.mxu1 %v4842_v22  ;;  %v4926_v21 = vld [vmem:[%s7193_s1 + $0x4b4] ss:$8 sps:$4 sm:$0xff]   ;;  %v4921_v22 = vld [vmem:[%s7193_s1 + $0x5c0] ss:$8 sps:$4 sm:$0xff]  }
  0x7d   :  { %3350 = vmatprep.subr.bf16.mxu1 %v4850_v23  ;;  %v4929_v23 = vld [vmem:[%s7193_s1 + $0x5b4] ss:$8 sps:$4 sm:$0xff]  }
  0x7f   :  { %3310 = vmatpush2.bf16.msra.mxu0 %v4845_v24  ;;  %v4924_v24 = vld [vmem:[%s7193_s1 + $0x4b0] ss:$8 sps:$4 sm:$0xff]  }
  0x80   :  { %3361 = vmatprep.subr.bf16.mxu0 %v4853_v25  ;;  %3351 = vmatpush2.bf16.msra.mxu1 %v4848_v26  ;;  %v4932_v25 = vld [vmem:[%s7193_s1 + $0x4a4] ss:$8 sps:$4 sm:$0xff]   ;;  %v4927_v26 = vld [vmem:[%s7193_s1 + $0x5b0] ss:$8 sps:$4 sm:$0xff]  }
  0x81   :  { %3402 = vmatprep.subr.bf16.mxu1 %v4857_v28  ;;  %v31_v28 = vld [vmem:[%s7192_s0 + $0x18] sm:$0xff] }
  0x82   :  { %3312 = vmatmul.mubr.bf16.vlgmr.msra.gmra.mxu0 %v214_v27  ;;  %v4935_v27 = vld [vmem:[%s7193_s1 + $0x5a4] ss:$8 sps:$4 sm:$0xff]   ;;  %v95_v32 = vcombine.high %v31_v28, %v31_v28 }
  0x83   :  { %3362 = vmatpush1.bf16.msra.mxu0 %v4851_v29  ;;  %3353 = vmatmul.mubr.bf16.vlgmr.msra.gmra.mxu1 %v216_v30  ;;  %v4930_v29 = vld [vmem:[%s7193_s1 + $0x4a0] ss:$8 sps:$4 sm:$0xff]   ;;  %v4938_v30 = vld [vmem:[%s7193_s1 + $0x494] ss:$8 sps:$4 sm:$0xff]  }
  0x84   :  { %3363 = vmatprep.subr.bf16.mxu0 %v4860_v31  ;;  %3403 = vmatpush1.bf16.msra.mxu1 %v4855_v33  ;;  %v4933_v31 = vld [vmem:[%s7193_s1 + $0x5a0] ss:$8 sps:$4 sm:$0xff]   ;;  %v4941_v33 = vld [vmem:[%s7193_s1 + $0x594] ss:$8 sps:$4 sm:$0xff]  }
  0x85   :  { %3404 = vmatprep.subr.bf16.mxu1 %v4863_v36  ;;  %3393 = vmatprep.mubr.bf16.mxu0 %v219_v42  ;;  %v6091_v36 = vrot.slane %v31_v28, %v5618_v48  ;;  %v4942_v42 = vld [vmem:[%s7193_s1 + $0x480] ss:$8 sps:$4 sm:$0xff]   ;;  %v5009_v28 = vld [vmem:[%s7193_s1 + $0x6d0] ss:$8 sps:$4 sm:$0xff]  }
  0x86   :  { %3434 = vmatprep.mubr.bf16.mxu1 %v221_v47 }
  0x87   :  { %3364 = vmatpush1.bf16.msra.mxu0 %v4858_v37  ;;  %v4944_v37 = vld [vmem:[%s7193_s1 + $0x484] ss:$8 sps:$4 sm:$0xff]   ;;  %v110_v44 = vcombine.high %v6091_v36, %v6091_v36 }
  0x88   :  { %3365 = vmatprep.subr.bf16.mxu0 %v4866_v40  ;;  %3405 = vmatpush1.bf16.msra.mxu1 %v4861_v41  ;;  %v6100_v40 = vrot.slane %v95_v32, %v5618_v48  ;;  %v4947_v41 = vld [vmem:[%s7193_s1 + $0x584] ss:$8 sps:$4 sm:$0xff]   ;;  %v5015_v32 = vld [vmem:[%s7193_s1 + $0x6c0] ss:$8 sps:$4 sm:$0xff]  }
  0x89   :  { %3406 = vmatprep.subr.bf16.mxu1 %v4869_v45  ;;  %v4950_v45 = vld [vmem:[%s7193_s1 + $0x674] ss:$8 sps:$4 sm:$0xff]  }
  0x8a   :  { %v111_v47 = vcombine.high %v6100_v40, %v6100_v40 }
  0x8b   :  { %3366 = vmatpush1.bf16.msra.mxu0 %v4864_v46  ;;  %v4945_v46 = vld [vmem:[%s7193_s1 + $0x580] ss:$8 sps:$4 sm:$0xff]  }
  0x8c   :  { %3367 = vmatprep.subr.bf16.mxu0 %v4872_v49  ;;  %3407 = vmatpush1.bf16.msra.mxu1 %v4867_v50  ;;  %v218_v49 = vpack.c.bf16 %v5916_v34, %v5916_v34  ;;  %v4954_v50 = vld [vmem:[%s7193_s1 + $0x774] ss:$8 sps:$4 sm:$0xff]   ;;  %v4952_v34 = vld [vmem:[%s7193_s1 + $0x770] ss:$8 sps:$4 sm:$0xff]  }
  0x8d   :  { %3408 = vmatprep.subr.bf16.mxu1 %v4875_v51  ;;  %v4948_v51 = vld [vmem:[%s7193_s1 + $0x670] ss:$8 sps:$4 sm:$0xff]  }
  0x8f   :  { %3368 = vmatpush1.bf16.msra.mxu0 %v4870_v52  ;;  %v223_v52 = vpack.c.bf16 %v110_v44, %v110_v44  ;;  %v5032_v44 = vld [vmem:[%s7193_s1 + $0x7a4] ss:$8 sps:$4 sm:$0xff]  }
  0x90   :  { %3369 = vmatprep.subr.bf16.mxu0 %v4878_v53  ;;  %3409 = vmatpush1.bf16.msra.mxu1 %v4873_v54  ;;  %v220_v53 = vpack.c.bf16 %v5927_v39, %v5927_v39  ;;  %v4957_v54 = vld [vmem:[%s7193_s1 + $0x664] ss:$8 sps:$4 sm:$0xff]   ;;  %v4955_v39 = vld [vmem:[%s7193_s1 + $0x660] ss:$8 sps:$4 sm:$0xff]  }
  0x91   :  { %3410 = vmatprep.subr.bf16.mxu1 %v4881_v55  ;;  %v225_v55 = vpack.c.bf16 %v111_v47, %v111_v47  ;;  %v5035_v47 = vld [vmem:[%s7193_s1 + $0x694] ss:$8 sps:$4 sm:$0xff]  }
  0x93   :  { %3370 = vmatpush1.bf16.msra.mxu0 %v4876_v56  ;;  %v4960_v56 = vld [vmem:[%s7193_s1 + $0x764] ss:$8 sps:$4 sm:$0xff]  }
  0x94   :  { %3371 = vmatprep.subr.bf16.mxu0 %v4884_v57  ;;  %3411 = vmatpush1.bf16.msra.mxu1 %v4879_v58  ;;  %v4963_v57 = vld [vmem:[%s7193_s1 + $0x654] ss:$8 sps:$4 sm:$0xff]   ;;  %v4958_v58 = vld [vmem:[%s7193_s1 + $0x760] ss:$8 sps:$4 sm:$0xff]  }
  0x95   :  { %3412 = vmatprep.subr.bf16.mxu1 %v4887_v59  ;;  %v4966_v59 = vld [vmem:[%s7193_s1 + $0x754] ss:$8 sps:$4 sm:$0xff]  }
  0x97   :  { %3372 = vmatpush1.bf16.msra.mxu0 %v4882_v60  ;;  %v4961_v60 = vld [vmem:[%s7193_s1 + $0x650] ss:$8 sps:$4 sm:$0xff]  }
  0x98   :  { %3373 = vmatprep.subr.bf16.mxu0 %v4890_v61  ;;  %3413 = vmatpush1.bf16.msra.mxu1 %v4885_v62  ;;  %v4969_v61 = vld [vmem:[%s7193_s1 + $0x644] ss:$8 sps:$4 sm:$0xff]   ;;  %v4964_v62 = vld [vmem:[%s7193_s1 + $0x750] ss:$8 sps:$4 sm:$0xff]  }
  0x99   :  { %3414 = vmatprep.subr.bf16.mxu1 %v4893_v63  ;;  %v4972_v63 = vld [vmem:[%s7193_s1 + $0x744] ss:$8 sps:$4 sm:$0xff]  }
  0x9b   :  { %3374 = vmatpush1.bf16.msra.mxu0 %v4888_v0  ;;  %v4967_v0 = vld [vmem:[%s7193_s1 + $0x640] ss:$8 sps:$4 sm:$0xff]  }
  0x9c   :  { %3375 = vmatprep.subr.bf16.mxu0 %v4896_v1  ;;  %3415 = vmatpush1.bf16.msra.mxu1 %v4891_v2  ;;  %v4975_v1 = vld [vmem:[%s7193_s1 + $0x634] ss:$8 sps:$4 sm:$0xff]   ;;  %v4970_v2 = vld [vmem:[%s7193_s1 + $0x740] ss:$8 sps:$4 sm:$0xff]  }
  0x9d   :  { %3416 = vmatprep.subr.bf16.mxu1 %v4899_v3  ;;  %v4978_v3 = vld [vmem:[%s7193_s1 + $0x734] ss:$8 sps:$4 sm:$0xff]  }
  0x9f   :  { %3376 = vmatpush1.bf16.msra.mxu0 %v4894_v4  ;;  %v4973_v4 = vld [vmem:[%s7193_s1 + $0x630] ss:$8 sps:$4 sm:$0xff]  }
  0xa0   :  { %3377 = vmatprep.subr.bf16.mxu0 %v4902_v5  ;;  %3417 = vmatpush1.bf16.msra.mxu1 %v4897_v6  ;;  %v4981_v5 = vld [vmem:[%s7193_s1 + $0x624] ss:$8 sps:$4 sm:$0xff]   ;;  %v4976_v6 = vld [vmem:[%s7193_s1 + $0x730] ss:$8 sps:$4 sm:$0xff]  }
  0xa1   :  { %3418 = vmatprep.subr.bf16.mxu1 %v4905_v7  ;;  %v4984_v7 = vld [vmem:[%s7193_s1 + $0x724] ss:$8 sps:$4 sm:$0xff]  }
  0xa3   :  { %3378 = vmatpush2.bf16.msra.mxu0 %v4900_v8  ;;  %v4979_v8 = vld [vmem:[%s7193_s1 + $0x620] ss:$8 sps:$4 sm:$0xff]  }
  0xa4   :  { %3379 = vmatprep.subr.bf16.mxu0 %v4908_v9  ;;  %3419 = vmatpush2.bf16.msra.mxu1 %v4903_v10  ;;  %v4987_v9 = vld [vmem:[%s7193_s1 + $0x614] ss:$8 sps:$4 sm:$0xff]   ;;  %v4982_v10 = vld [vmem:[%s7193_s1 + $0x720] ss:$8 sps:$4 sm:$0xff]  }
  0xa5   :  { %3420 = vmatprep.subr.bf16.mxu1 %v4911_v11  ;;  %v4990_v11 = vld [vmem:[%s7193_s1 + $0x714] ss:$8 sps:$4 sm:$0xff]  }
  0xa7   :  { %3380 = vmatpush2.bf16.msra.mxu0 %v4906_v12  ;;  %v4985_v12 = vld [vmem:[%s7193_s1 + $0x610] ss:$8 sps:$4 sm:$0xff]  }
  0xa8   :  { %3381 = vmatprep.subr.bf16.mxu0 %v4914_v13  ;;  %3421 = vmatpush2.bf16.msra.mxu1 %v4909_v14  ;;  %v4993_v13 = vld [vmem:[%s7193_s1 + $0x604] ss:$8 sps:$4 sm:$0xff]   ;;  %v4988_v14 = vld [vmem:[%s7193_s1 + $0x710] ss:$8 sps:$4 sm:$0xff]  }
  0xa9   :  { %3422 = vmatprep.subr.bf16.mxu1 %v4917_v15  ;;  %v4996_v15 = vld [vmem:[%s7193_s1 + $0x704] ss:$8 sps:$4 sm:$0xff]  }
  0xab   :  { %3382 = vmatpush2.bf16.msra.mxu0 %v4912_v16  ;;  %v4991_v16 = vld [vmem:[%s7193_s1 + $0x600] ss:$8 sps:$4 sm:$0xff]  }
  0xac   :  { %3383 = vmatprep.subr.bf16.mxu0 %v4920_v17  ;;  %3423 = vmatpush2.bf16.msra.mxu1 %v4915_v18  ;;  %v4999_v17 = vld [vmem:[%s7193_s1 + $0x6f4] ss:$8 sps:$4 sm:$0xff]   ;;  %v4994_v18 = vld [vmem:[%s7193_s1 + $0x700] ss:$8 sps:$4 sm:$0xff]  }
  0xad   :  { %3424 = vmatprep.subr.bf16.mxu1 %v4923_v19  ;;  %v5002_v19 = vld [vmem:[%s7193_s1 + $0x7f4] ss:$8 sps:$4 sm:$0xff]  }
  0xaf   :  { %3384 = vmatpush2.bf16.msra.mxu0 %v4918_v20  ;;  %v4997_v20 = vld [vmem:[%s7193_s1 + $0x6f0] ss:$8 sps:$4 sm:$0xff]  }
  0xb0   :  { %3385 = vmatprep.subr.bf16.mxu0 %v4926_v21  ;;  %3425 = vmatpush2.bf16.msra.mxu1 %v4921_v22  ;;  %v5005_v21 = vld [vmem:[%s7193_s1 + $0x6e4] ss:$8 sps:$4 sm:$0xff]   ;;  %v5000_v22 = vld [vmem:[%s7193_s1 + $0x7f0] ss:$8 sps:$4 sm:$0xff]  }
  0xb1   :  { %3426 = vmatprep.subr.bf16.mxu1 %v4929_v23  ;;  %v5008_v23 = vld [vmem:[%s7193_s1 + $0x7e4] ss:$8 sps:$4 sm:$0xff]  }
  0xb3   :  { %3386 = vmatpush2.bf16.msra.mxu0 %v4924_v24  ;;  %v5003_v24 = vld [vmem:[%s7193_s1 + $0x6e0] ss:$8 sps:$4 sm:$0xff]  }
  0xb4   :  { %3387 = vmatprep.subr.bf16.mxu0 %v4932_v25  ;;  %3427 = vmatpush2.bf16.msra.mxu1 %v4927_v26  ;;  %v5011_v25 = vld [vmem:[%s7193_s1 + $0x6d4] ss:$8 sps:$4 sm:$0xff]   ;;  %v5006_v26 = vld [vmem:[%s7193_s1 + $0x7e0] ss:$8 sps:$4 sm:$0xff]  }
  0xb5   :  { %3428 = vmatprep.subr.bf16.mxu1 %v4935_v27  ;;  %v5014_v27 = vld [vmem:[%s7193_s1 + $0x7d4] ss:$8 sps:$4 sm:$0xff]  }
  0xb7   :  { %3388 = vmatpush2.bf16.msra.mxu0 %v4930_v29  ;;  %v5017_v29 = vld [vmem:[%s7193_s1 + $0x6c4] ss:$8 sps:$4 sm:$0xff]  }
  0xb8   :  { %3389 = vmatprep.subr.bf16.mxu0 %v4938_v30  ;;  %3429 = vmatpush2.bf16.msra.mxu1 %v4933_v31  ;;  %v5012_v30 = vld [vmem:[%s7193_s1 + $0x7d0] ss:$8 sps:$4 sm:$0xff]   ;;  %v5020_v31 = vld [vmem:[%s7193_s1 + $0x7c4] ss:$8 sps:$4 sm:$0xff]  }
  0xb9   :  { %3430 = vmatprep.subr.bf16.mxu1 %v4941_v33  ;;  %v5023_v33 = vld [vmem:[%s7193_s1 + $0x6b4] ss:$8 sps:$4 sm:$0xff]  }
  0xbb   :  { %3390 = vmatpush2.bf16.msra.mxu0 %v4936_v35  ;;  %v5018_v35 = vld [vmem:[%s7193_s1 + $0x7c0] ss:$8 sps:$4 sm:$0xff]  }
  0xbc   :  { %3391 = vmatprep.subr.bf16.mxu0 %v4944_v37  ;;  %3431 = vmatpush2.bf16.msra.mxu1 %v4939_v38  ;;  %v5026_v37 = vld [vmem:[%s7193_s1 + $0x7b4] ss:$8 sps:$4 sm:$0xff]   ;;  %v5021_v38 = vld [vmem:[%s7193_s1 + $0x6b0] ss:$8 sps:$4 sm:$0xff]  }
  0xbd   :  { %3432 = vmatprep.subr.bf16.mxu1 %v4947_v41  ;;  %v5029_v41 = vld [vmem:[%s7193_s1 + $0x6a4] ss:$8 sps:$4 sm:$0xff]  }
  0xbf   :  { %3392 = vmatpush2.bf16.msra.mxu0 %v4942_v42  ;;  %v5024_v42 = vld [vmem:[%s7193_s1 + $0x7b0] ss:$8 sps:$4 sm:$0xff]  }
  0xc0   :  { %3443 = vmatprep.subr.bf16.mxu0 %v4950_v45  ;;  %3433 = vmatpush2.bf16.msra.mxu1 %v4945_v46  ;;  %v32_v45 = vld [vmem:[%s7192_s0 + $0x20] sm:$0xff] }
  0xc1   :  { %3484 = vmatprep.subr.bf16.mxu1 %v4954_v50  ;;  %v5027_v46 = vld [vmem:[%s7193_s1 + $0x6a0] ss:$8 sps:$4 sm:$0xff]   ;;  %v112_v50 = vcombine.high %v32_v45, %v32_v45 }
  0xc2   :  { %3394 = vmatmul.mubr.bf16.vlgmr.msra.gmra.mxu0 %v218_v49  ;;  %v5030_v49 = vld [vmem:[%s7193_s1 + $0x7a0] ss:$8 sps:$4 sm:$0xff]  }
  0xc3   :  { %3444 = vmatpush1.bf16.msra.mxu0 %v4948_v51  ;;  %3475 = vmatprep.mubr.bf16.mxu0 %v223_v52  ;;  %v5038_v51 = vld [vmem:[%s7193_s1 + $0x794] ss:$8 sps:$4 sm:$0xff]   ;;  %v5033_v52 = vld [vmem:[%s7193_s1 + $0x690] ss:$8 sps:$4 sm:$0xff]  }
  0xc4   :  { %3435 = vmatmul.mubr.bf16.vlgmr.msra.gmra.mxu1 %v220_v53  ;;  %3445 = vmatprep.subr.bf16.mxu0 %v4957_v54  ;;  %v6300_v53 = vrot.slane %v32_v45, %v5618_v48  ;;  %v5041_v54 = vld [vmem:[%s7193_s1 + $0x684] ss:$8 sps:$4 sm:$0xff]   ;;  %v5087_v45 = vld [vmem:[%s7193_s1 + $0x914] ss:$8 sps:$4 sm:$0xff]  }
  0xc5   :  { %3485 = vmatpush1.bf16.msra.mxu1 %v4952_v34  ;;  %3516 = vmatprep.mubr.bf16.mxu1 %v225_v55  ;;  %v5036_v34 = vld [vmem:[%s7193_s1 + $0x790] ss:$8 sps:$4 sm:$0xff]   ;;  %v6309_v55 = vrot.slane %v112_v50, %v5618_v48  ;;  %v5093_v50 = vld [vmem:[%s7193_s1 + $0x904] ss:$8 sps:$4 sm:$0xff]  }
  0xc6   :  { %3486 = vmatprep.subr.bf16.mxu1 %v4960_v56  ;;  %v5044_v56 = vld [vmem:[%s7193_s1 + $0x784] ss:$8 sps:$4 sm:$0xff]  }
  0xc7   :  { %3446 = vmatpush1.bf16.msra.mxu0 %v4955_v39  ;;  %v5039_v39 = vld [vmem:[%s7193_s1 + $0x680] ss:$8 sps:$4 sm:$0xff]  }
  0xc8   :  { %3447 = vmatprep.subr.bf16.mxu0 %v4963_v57  ;;  %v735_v57 = vsub.s32 0, %v5603_v43 }
  0xc9   :  { %3487 = vmatpush1.bf16.msra.mxu1 %v4958_v58  ;;  %v127_v58 = vcombine.high %v6300_v53, %v6300_v53 }
  0xca   :  { %3488 = vmatprep.subr.bf16.mxu1 %v4966_v59  ;;  %v731_v59 = vld [vmem:[%s7194_s2] sm:$0x3] }
  0xcb   :  { %3448 = vmatpush1.bf16.msra.mxu0 %v4961_v60  ;;  %v5047_v60 = vld [vmem:[%s7193_s1 + $0x874] ss:$8 sps:$4 sm:$0xff]  }
  0xcc   :  { %3449 = vmatprep.subr.bf16.mxu0 %v4969_v61  ;;  %v5042_v61 = vld [vmem:[%s7193_s1 + $0x780] ss:$8 sps:$4 sm:$0xff]  }
  0xcd   :  { %3489 = vmatpush1.bf16.msra.mxu1 %v4964_v62  ;;  %v739_v62 = vsub.s32 1, %v5603_v43  ;;  %v224_v43 = vpack.c.bf16 %v6100_v40, %v6100_v40  ;;  %v5052_v40 = vld [vmem:[%s7193_s1 + $0x860] ss:$8 sps:$4 sm:$0xff]  }
  0xce   :  { %3490 = vmatprep.subr.bf16.mxu1 %v4972_v63  ;;  %v128_v63 = vcombine.high %v6309_v55, %v6309_v55 }
  0xcf   :  { %3450 = vmatpush1.bf16.msra.mxu0 %v4967_v0  ;;  %v222_v0 = vpack.c.bf16 %v6091_v36, %v6091_v36  ;;  %v740_v36 = vrot.slane %v731_v59, %v739_v62  ;;  %v5111_v62 = vld [vmem:[%s7193_s1 + $0x9d4] ss:$8 sps:$4 sm:$0xff]  }
  0xd0   :  { %3451 = vmatprep.subr.bf16.mxu0 %v4975_v1  ;;  %v5051_v1 = vld [vmem:[%s7193_s1 + $0x974] ss:$8 sps:$4 sm:$0xff]  }
  0xd1   :  { %3491 = vmatpush1.bf16.msra.mxu1 %v4970_v2  ;;  %v736_v2 = vrot.slane %v731_v59, %v735_v57  ;;  %v5100_v57 = vld [vmem:[%s7193_s1 + $0x8e0] ss:$8 sps:$4 sm:$0xff]  }
  0xd2   :  { %3492 = vmatprep.subr.bf16.mxu1 %v4978_v3  ;;  %v5045_v3 = vld [vmem:[%s7193_s1 + $0x870] ss:$8 sps:$4 sm:$0xff]   ;;  %v5103_v59 = vld [vmem:[%s7193_s1 + $0x9e0] ss:$8 sps:$4 sm:$0xff]  }
  0xd3   :  { %3452 = vmatpush1.bf16.msra.mxu0 %v4973_v4  ;;  %v227_v4 = vpack.c.bf16 %v127_v58, %v127_v58  ;;  %v5105_v58 = vld [vmem:[%s7193_s1 + $0x9e4] ss:$8 sps:$4 sm:$0xff]  }
  0xd4   :  { %3453 = vmatprep.subr.bf16.mxu0 %v4981_v5  ;;  %v5054_v5 = vld [vmem:[%s7193_s1 + $0x864] ss:$8 sps:$4 sm:$0xff]  }
  0xd5   :  { %3493 = vmatpush1.bf16.msra.mxu1 %v4976_v6  ;;  %v5049_v6 = vld [vmem:[%s7193_s1 + $0x970] ss:$8 sps:$4 sm:$0xff]  }
  0xd6   :  { %3494 = vmatprep.subr.bf16.mxu1 %v4984_v7  ;;  %v229_v7 = vpack.c.bf16 %v128_v63, %v128_v63  ;;  %v5109_v63 = vld [vmem:[%s7193_s1 + $0x9d0] ss:$8 sps:$4 sm:$0xff]  }
  0xd7   :  { %3454 = vmatpush1.bf16.msra.mxu0 %v4979_v8 }
  0xd8   :  { %3455 = vmatprep.subr.bf16.mxu0 %v4987_v9  ;;  %v5057_v9 = vld [vmem:[%s7193_s1 + $0x964] ss:$8 sps:$4 sm:$0xff]  }
  0xd9   :  { %3495 = vmatpush1.bf16.msra.mxu1 %v4982_v10 }
  0xda   :  { %3496 = vmatprep.subr.bf16.mxu1 %v4990_v11 }
  0xdb   :  { %3456 = vmatpush1.bf16.msra.mxu0 %v4985_v12 }
  0xdc   :  { %3457 = vmatprep.subr.bf16.mxu0 %v4993_v13  ;;  %v5060_v13 = vld [vmem:[%s7193_s1 + $0x854] ss:$8 sps:$4 sm:$0xff]  }
  0xdd   :  { %3497 = vmatpush1.bf16.msra.mxu1 %v4988_v14 }
  0xde   :  { %3498 = vmatprep.subr.bf16.mxu1 %v4996_v15 }
  0xdf   :  { %3458 = vmatpush1.bf16.msra.mxu0 %v4991_v16  ;;  %v5055_v16 = vld [vmem:[%s7193_s1 + $0x960] ss:$8 sps:$4 sm:$0xff]  }
  0xe0   :  { %3459 = vmatprep.subr.bf16.mxu0 %v4999_v17 }
  0xe1   :  { %3499 = vmatpush1.bf16.msra.mxu1 %v4994_v18 }
  0xe2   :  { %3500 = vmatprep.subr.bf16.mxu1 %v5002_v19  ;;  %v5063_v19 = vld [vmem:[%s7193_s1 + $0x954] ss:$8 sps:$4 sm:$0xff]  }
  0xe3   :  { %3460 = vmatpush2.bf16.msra.mxu0 %v4997_v20 }
  0xe4   :  { %3461 = vmatprep.subr.bf16.mxu0 %v5005_v21  ;;  %v5058_v21 = vld [vmem:[%s7193_s1 + $0x850] ss:$8 sps:$4 sm:$0xff]  }
  0xe5   :  { %3501 = vmatpush2.bf16.msra.mxu1 %v5000_v22  ;;  %v5061_v22 = vld [vmem:[%s7193_s1 + $0x950] ss:$8 sps:$4 sm:$0xff]  }
  0xe6   :  { %3502 = vmatprep.subr.bf16.mxu1 %v5008_v23 }
  0xe7   :  { %3462 = vmatpush2.bf16.msra.mxu0 %v5003_v24  ;;  %v5066_v24 = vld [vmem:[%s7193_s1 + $0x844] ss:$8 sps:$4 sm:$0xff]  }
  0xe8   :  { %3463 = vmatprep.subr.bf16.mxu0 %v5011_v25 }
  0xe9   :  { %3503 = vmatpush2.bf16.msra.mxu1 %v5006_v26  ;;  %v5064_v26 = vld [vmem:[%s7193_s1 + $0x840] ss:$8 sps:$4 sm:$0xff]  }
  0xea   :  { %3504 = vmatprep.subr.bf16.mxu1 %v5014_v27  ;;  %v5069_v27 = vld [vmem:[%s7193_s1 + $0x944] ss:$8 sps:$4 sm:$0xff]  }
  0xeb   :  { %3464 = vmatpush2.bf16.msra.mxu0 %v5009_v28 }
  0xec   :  { %3465 = vmatprep.subr.bf16.mxu0 %v5017_v29  ;;  %v5067_v29 = vld [vmem:[%s7193_s1 + $0x940] ss:$8 sps:$4 sm:$0xff]  }
  0xed   :  { %3505 = vmatpush2.bf16.msra.mxu1 %v5012_v30  ;;  %v5072_v30 = vld [vmem:[%s7193_s1 + $0x834] ss:$8 sps:$4 sm:$0xff]  }
  0xee   :  { %3506 = vmatprep.subr.bf16.mxu1 %v5020_v31  ;;  %v5070_v31 = vld [vmem:[%s7193_s1 + $0x830] ss:$8 sps:$4 sm:$0xff]  }
  0xef   :  { %3466 = vmatpush2.bf16.msra.mxu0 %v5015_v32  ;;  %v5075_v32 = vld [vmem:[%s7193_s1 + $0x934] ss:$8 sps:$4 sm:$0xff]  }
  0xf0   :  { %3467 = vmatprep.subr.bf16.mxu0 %v5023_v33  ;;  %v5073_v33 = vld [vmem:[%s7193_s1 + $0x930] ss:$8 sps:$4 sm:$0xff]  }
  0xf1   :  { %3507 = vmatpush2.bf16.msra.mxu1 %v5018_v35  ;;  %v5078_v35 = vld [vmem:[%s7193_s1 + $0x824] ss:$8 sps:$4 sm:$0xff]  }
  0xf2   :  { %3508 = vmatprep.subr.bf16.mxu1 %v5026_v37  ;;  %v5076_v37 = vld [vmem:[%s7193_s1 + $0x820] ss:$8 sps:$4 sm:$0xff]  }
  0xf3   :  { %3468 = vmatpush2.bf16.msra.mxu0 %v5021_v38  ;;  %v5081_v38 = vld [vmem:[%s7193_s1 + $0x924] ss:$8 sps:$4 sm:$0xff]  }
  0xf4   :  { %3469 = vmatprep.subr.bf16.mxu0 %v5029_v41  ;;  %v5079_v41 = vld [vmem:[%s7193_s1 + $0x920] ss:$8 sps:$4 sm:$0xff]  }
  0xf5   :  { %3509 = vmatpush2.bf16.msra.mxu1 %v5024_v42  ;;  %v5084_v42 = vld [vmem:[%s7193_s1 + $0x814] ss:$8 sps:$4 sm:$0xff]  }
  0xf6   :  { %3510 = vmatprep.subr.bf16.mxu1 %v5032_v44  ;;  %v5082_v44 = vld [vmem:[%s7193_s1 + $0x810] ss:$8 sps:$4 sm:$0xff]  }
  0xf7   :  { %3470 = vmatpush2.bf16.msra.mxu0 %v5027_v46  ;;  %v5085_v46 = vld [vmem:[%s7193_s1 + $0x910] ss:$8 sps:$4 sm:$0xff]  }
  0xf8   :  { %3471 = vmatprep.subr.bf16.mxu0 %v5035_v47  ;;  %v5090_v47 = vld [vmem:[%s7193_s1 + $0x804] ss:$8 sps:$4 sm:$0xff]  }
  0xf9   :  { %3511 = vmatpush2.bf16.msra.mxu1 %v5030_v49  ;;  %v5088_v49 = vld [vmem:[%s7193_s1 + $0x800] ss:$8 sps:$4 sm:$0xff]  }
  0xfa   :  { %3512 = vmatprep.subr.bf16.mxu1 %v5038_v51  ;;  %v5091_v51 = vld [vmem:[%s7193_s1 + $0x900] ss:$8 sps:$4 sm:$0xff]  }
  0xfb   :  { %3472 = vmatpush2.bf16.msra.mxu0 %v5033_v52  ;;  %v5096_v52 = vld [vmem:[%s7193_s1 + $0x8f4] ss:$8 sps:$4 sm:$0xff]  }
  0xfc   :  { %3473 = vmatprep.subr.bf16.mxu0 %v5041_v54  ;;  %v5094_v54 = vld [vmem:[%s7193_s1 + $0x8f0] ss:$8 sps:$4 sm:$0xff]  }
  0xfd   :  { %3513 = vmatpush2.bf16.msra.mxu1 %v5036_v34  ;;  %v5099_v34 = vld [vmem:[%s7193_s1 + $0x9f4] ss:$8 sps:$4 sm:$0xff]  }
  0xfe   :  { %3514 = vmatprep.subr.bf16.mxu1 %v5044_v56  ;;  %v5097_v56 = vld [vmem:[%s7193_s1 + $0x9f0] ss:$8 sps:$4 sm:$0xff]  }
  0xff   :  { %3474 = vmatpush2.bf16.msra.mxu0 %v5039_v39  ;;  %v5102_v39 = vld [vmem:[%s7193_s1 + $0x8e4] ss:$8 sps:$4 sm:$0xff]  }
 0x100   :  { %3525 = vmatprep.subr.bf16.mxu0 %v5047_v60  ;;  %v5108_v60 = vld [vmem:[%s7193_s1 + $0x8d4] ss:$8 sps:$4 sm:$0xff]  }
 0x101   :  { %3515 = vmatpush2.bf16.msra.mxu1 %v5042_v61  ;;  %v5106_v61 = vld [vmem:[%s7193_s1 + $0x8d0] ss:$8 sps:$4 sm:$0xff]  }
 0x102   :  { %v3231_v8 = vpop.f32.mrf.mxu0  ;;  %3476 = vmatmul.mubr.bf16.vlgmr.msra.gmra.mxu0 %v222_v0  ;;  %3566 = vmatprep.subr.bf16.mxu1 %v5051_v1  ;;  %v5114_v0 = vld [vmem:[%s7193_s1 + $0x8c4] ss:$8 sps:$4 sm:$0xff]   ;;  %v5112_v1 = vld [vmem:[%s7193_s1 + $0x8c0] ss:$8 sps:$4 sm:$0xff]  }
 0x103   :  { %v3232_v10 = vadd.f32 %v3231_v8, %v736_v2  ;;  %3526 = vmatpush1.bf16.msra.mxu0 %v5045_v3  ;;  %3557 = vmatprep.mubr.bf16.mxu0 %v227_v4  ;;  %v3272_v12 = vpop.f32.mrf.mxu1  ;;  %v5117_v2 = vld [vmem:[%s7193_s1 + $0x9c4] ss:$8 sps:$4 sm:$0xff]   ;;  %v5115_v3 = vld [vmem:[%s7193_s1 + $0x9c0] ss:$8 sps:$4 sm:$0xff]   ;;  %v5120_v4 = vld [vmem:[%s7193_s1 + $0x8b4] ss:$8 sps:$4 sm:$0xff]  }
 0x104   :  { %v3233_v11 = vpop.f32.mrf.mxu0  ;;  %3517 = vmatmul.mubr.bf16.vlgmr.msra.gmra.mxu1 %v224_v43  ;;  %3527 = vmatprep.subr.bf16.mxu0 %v5054_v5  ;;  %v5118_v43 = vld [vmem:[%s7193_s1 + $0x8b0] ss:$8 sps:$4 sm:$0xff]   ;;  %v5123_v5 = vld [vmem:[%s7193_s1 + $0x9b4] ss:$8 sps:$4 sm:$0xff]   ;;  %v33_v8 = vld [vmem:[%s7192_s0 + $0x28] sm:$0xff] }
 0x105   :  { %v3234_v14 = vadd.f32 %v3233_v11, %v740_v36  ;;  %v6357_v15 = vadd.f32 %v3272_v12, %v3232_v10  ;;  %3567 = vmatpush1.bf16.msra.mxu1 %v5049_v6  ;;  %3598 = vmatprep.mubr.bf16.mxu1 %v229_v7  ;;  %v3274_v18 = vpop.f32.mrf.mxu1  ;;  %v5121_v36 = vld [vmem:[%s7193_s1 + $0x9b0] ss:$8 sps:$4 sm:$0xff]   ;;  %v5126_v6 = vld [vmem:[%s7193_s1 + $0x8a4] ss:$8 sps:$4 sm:$0xff]   ;;  %v5132_v10 = vld [vmem:[%s7193_s1 + $0x894] ss:$8 sps:$4 sm:$0xff]   ;;  %v129_v11 = vcombine.high %v33_v8, %v33_v8 }
 0x106   :  { %v3235_v17 = vpop.f32.mrf.mxu0  ;;  %3568 = vmatprep.subr.bf16.mxu1 %v5057_v9  ;;  %v5129_v7 = vld [vmem:[%s7193_s1 + $0x9a4] ss:$8 sps:$4 sm:$0xff]   ;;  %v5124_v9 = vld [vmem:[%s7193_s1 + $0x8a0] ss:$8 sps:$4 sm:$0xff]   ;;  %v5135_v12 = vld [vmem:[%s7193_s1 + $0x994] ss:$8 sps:$4 sm:$0xff]  }
 0x107   :  { %v6365_v20 = vadd.f32 %v3274_v18, %v3234_v14  ;;  %3528 = vmatpush1.bf16.msra.mxu0 %v5052_v40  ;;  %v3276_v25 = vpop.f32.mrf.mxu1  ;;  %v5127_v40 = vld [vmem:[%s7193_s1 + $0x9a0] ss:$8 sps:$4 sm:$0xff]   ;;  %v6518_v14 = vrot.slane %v33_v8, %v5618_v48  ;;  %v5133_v17 = vld [vmem:[%s7193_s1 + $0x990] ss:$8 sps:$4 sm:$0xff]   ;;  %v6527_v18 = vrot.slane %v129_v11, %v5618_v48 }
 0x108   :  { %v3236_v23 = vpop.f32.mrf.mxu0  ;;  %3529 = vmatprep.subr.bf16.mxu0 %v5060_v13  ;;  %v5130_v13 = vld [vmem:[%s7193_s1 + $0x890] ss:$8 sps:$4 sm:$0xff]  }
 0x109   :  { %3569 = vmatpush1.bf16.msra.mxu1 %v5055_v16  ;;  %v3277_v28 = vpop.f32.mrf.mxu1  ;;  %v5138_v16 = vld [vmem:[%s7193_s1 + $0x884] ss:$8 sps:$4 sm:$0xff]   ;;  %v144_v23 = vcombine.high %v6518_v14, %v6518_v14  ;;  %v5142_v25 = vld [vmem:[%s7193_s1 + $0xa70] ss:$8 sps:$4 sm:$0xff]  }
 0x10a   :  { %3570 = vmatprep.subr.bf16.mxu1 %v5063_v19  ;;  %v5136_v19 = vld [vmem:[%s7193_s1 + $0x880] ss:$8 sps:$4 sm:$0xff]   ;;  %v5148_v28 = vld [vmem:[%s7193_s1 + $0xb74] ss:$8 sps:$4 sm:$0xff]  }
 0x10b   :  { %3530 = vmatpush1.bf16.msra.mxu0 %v5058_v21  ;;  %v5141_v21 = vld [vmem:[%s7193_s1 + $0x984] ss:$8 sps:$4 sm:$0xff]  }
 0x10c   :  { %3531 = vmatprep.subr.bf16.mxu0 %v5066_v24  ;;  %v5144_v24 = vld [vmem:[%s7193_s1 + $0xa74] ss:$8 sps:$4 sm:$0xff]  }
 0x10d   :  { %3571 = vmatpush1.bf16.msra.mxu1 %v5061_v22  ;;  %v5139_v22 = vld [vmem:[%s7193_s1 + $0x980] ss:$8 sps:$4 sm:$0xff]  }
 0x10e   :  { %3572 = vmatprep.subr.bf16.mxu1 %v5069_v27  ;;  %v226_v27 = vpack.c.bf16 %v6300_v53, %v6300_v53  ;;  %v5149_v53 = vld [vmem:[%s7193_s1 + $0xa60] ss:$8 sps:$4 sm:$0xff]  }
 0x10f   :  { %3532 = vmatpush1.bf16.msra.mxu0 %v5064_v26  ;;  %v145_v26 = vcombine.high %v6527_v18, %v6527_v18 }
 0x110   :  { %3533 = vmatprep.subr.bf16.mxu0 %v5072_v30  ;;  %v231_v30 = vpack.c.bf16 %v144_v23, %v144_v23 }
 0x111   :  { %3573 = vmatpush1.bf16.msra.mxu1 %v5067_v29  ;;  %v5146_v29 = vld [vmem:[%s7193_s1 + $0xb70] ss:$8 sps:$4 sm:$0xff]  }
 0x112   :  { %3574 = vmatprep.subr.bf16.mxu1 %v5075_v32  ;;  %v5151_v32 = vld [vmem:[%s7193_s1 + $0xa64] ss:$8 sps:$4 sm:$0xff]  }
 0x113   :  { %3534 = vmatpush1.bf16.msra.mxu0 %v5070_v31  ;;  %v228_v31 = vpack.c.bf16 %v6309_v55, %v6309_v55  ;;  %v5152_v55 = vld [vmem:[%s7193_s1 + $0xb60] ss:$8 sps:$4 sm:$0xff]  }
 0x114   :  { %3535 = vmatprep.subr.bf16.mxu0 %v5078_v35  ;;  %v233_v35 = vpack.c.bf16 %v145_v26, %v145_v26 }
 0x115   :  { %3575 = vmatpush1.bf16.msra.mxu1 %v5073_v33  ;;  %v5154_v33 = vld [vmem:[%s7193_s1 + $0xb64] ss:$8 sps:$4 sm:$0xff]  }
 0x116   :  { %3576 = vmatprep.subr.bf16.mxu1 %v5081_v38 }
 0x117   :  { %3536 = vmatpush1.bf16.msra.mxu0 %v5076_v37 }
 0x118   :  { %3537 = vmatprep.subr.bf16.mxu0 %v5084_v42 }
 0x119   :  { %3577 = vmatpush1.bf16.msra.mxu1 %v5079_v41 }
 0x11a   :  { %3578 = vmatprep.subr.bf16.mxu1 %v5087_v45 }
 0x11b   :  { %3538 = vmatpush1.bf16.msra.mxu0 %v5082_v44  ;;  %v5157_v44 = vld [vmem:[%s7193_s1 + $0xa54] ss:$8 sps:$4 sm:$0xff]  }
 0x11c   :  { %3539 = vmatprep.subr.bf16.mxu0 %v5090_v47  ;;  %v5160_v47 = vld [vmem:[%s7193_s1 + $0xb54] ss:$8 sps:$4 sm:$0xff]  }
 0x11d   :  { %3579 = vmatpush1.bf16.msra.mxu1 %v5085_v46 }
 0x11e   :  { %3580 = vmatprep.subr.bf16.mxu1 %v5093_v50 }
 0x11f   :  { %3540 = vmatpush1.bf16.msra.mxu0 %v5088_v49 }
 0x120   :  { %3541 = vmatprep.subr.bf16.mxu0 %v5096_v52 }
 0x121   :  { %3581 = vmatpush1.bf16.msra.mxu1 %v5091_v51 }
 0x122   :  { %3582 = vmatprep.subr.bf16.mxu1 %v5099_v34  ;;  %v5158_v34 = vld [vmem:[%s7193_s1 + $0xb50] ss:$8 sps:$4 sm:$0xff]  }
 0x123   :  { %3542 = vmatpush2.bf16.msra.mxu0 %v5094_v54 }
 0x124   :  { %3543 = vmatprep.subr.bf16.mxu0 %v5102_v39 }
 0x125   :  { %3583 = vmatpush2.bf16.msra.mxu1 %v5097_v56 }
 0x126   :  { %3584 = vmatprep.subr.bf16.mxu1 %v5105_v58 }
 0x127   :  { %3544 = vmatpush2.bf16.msra.mxu0 %v5100_v57 }
 0x128   :  { %3545 = vmatprep.subr.bf16.mxu0 %v5108_v60 }
 0x129   :  { %3585 = vmatpush2.bf16.msra.mxu1 %v5103_v59 }
 0x12a   :  { %3586 = vmatprep.subr.bf16.mxu1 %v5111_v62 }
 0x12b   :  { %3546 = vmatpush2.bf16.msra.mxu0 %v5106_v61 }
 0x12c   :  { %3547 = vmatprep.subr.bf16.mxu0 %v5114_v0 }
 0x12d   :  { %3587 = vmatpush2.bf16.msra.mxu1 %v5109_v63 }
 0x12e   :  { %3588 = vmatprep.subr.bf16.mxu1 %v5117_v2 }
 0x12f   :  { %3548 = vmatpush2.bf16.msra.mxu0 %v5112_v1 }
 0x130   :  { %3549 = vmatprep.subr.bf16.mxu0 %v5120_v4 }
 0x131   :  { %3589 = vmatpush2.bf16.msra.mxu1 %v5115_v3 }
 0x132   :  { %3590 = vmatprep.subr.bf16.mxu1 %v5123_v5 }
 0x133   :  { %3550 = vmatpush2.bf16.msra.mxu0 %v5118_v43 }
 0x134   :  { %3551 = vmatprep.subr.bf16.mxu0 %v5126_v6 }
 0x135   :  { %3591 = vmatpush2.bf16.msra.mxu1 %v5121_v36 }
 0x136   :  { %3592 = vmatprep.subr.bf16.mxu1 %v5129_v7 }
 0x137   :  { %3552 = vmatpush2.bf16.msra.mxu0 %v5124_v9 }
 0x138   :  { %3553 = vmatprep.subr.bf16.mxu0 %v5132_v10 }
 0x139   :  { %3593 = vmatpush2.bf16.msra.mxu1 %v5127_v40 }
 0x13a   :  { %3594 = vmatprep.subr.bf16.mxu1 %v5135_v12 }
 0x13b   :  { %3554 = vmatpush2.bf16.msra.mxu0 %v5130_v13 }
 0x13c   :  { %3555 = vmatprep.subr.bf16.mxu0 %v5138_v16 }
 0x13d   :  { %3595 = vmatpush2.bf16.msra.mxu1 %v5133_v17 }
 0x13e   :  { %3596 = vmatprep.subr.bf16.mxu1 %v5141_v21 }
 0x13f   :  { %3556 = vmatpush2.bf16.msra.mxu0 %v5136_v19 }
 0x140   :  { %3607 = vmatprep.subr.bf16.mxu0 %v5144_v24 }
 0x141   :  { %3597 = vmatpush2.bf16.msra.mxu1 %v5139_v22 }
 0x142   :  { %v3313_v37 = vpop.f32.mrf.mxu0  ;;  %3558 = vmatmul.mubr.bf16.vlgmr.msra.gmra.mxu0 %v226_v27  ;;  %3648 = vmatprep.subr.bf16.mxu1 %v5148_v28 }
 0x143   :  { %v3314_v38 = vadd.f32 %v3313_v37, %v6357_v15  ;;  %3608 = vmatpush1.bf16.msra.mxu0 %v5142_v25  ;;  %3639 = vmatprep.mubr.bf16.mxu0 %v231_v30  ;;  %v3354_v42 = vpop.f32.mrf.mxu1  ;;  %v5155_v15 = vld [vmem:[%s7193_s1 + $0xa50] ss:$8 sps:$4 sm:$0xff]  }
 0x144   :  { %v3315_v41 = vpop.f32.mrf.mxu0  ;;  %3599 = vmatmul.mubr.bf16.vlgmr.msra.gmra.mxu1 %v228_v31  ;;  %3609 = vmatprep.subr.bf16.mxu0 %v5151_v32 }
 0x145   :  { %v3316_v45 = vadd.f32 %v3315_v41, %v6365_v20  ;;  %v6575_v46 = vadd.f32 %v3354_v42, %v3314_v38  ;;  %3649 = vmatpush1.bf16.msra.mxu1 %v5146_v29  ;;  %3680 = vmatprep.mubr.bf16.mxu1 %v233_v35  ;;  %v3356_v50 = vpop.f32.mrf.mxu1  ;;  %v5163_v20 = vld [vmem:[%s7193_s1 + $0xa44] ss:$8 sps:$4 sm:$0xff]  }
 0x146   :  { %v3317_v49 = vpop.f32.mrf.mxu0  ;;  %3650 = vmatprep.subr.bf16.mxu1 %v5154_v33 }
 0x147   :  { %v6583_v51 = vadd.f32 %v3356_v50, %v3316_v45  ;;  %3610 = vmatpush1.bf16.msra.mxu0 %v5149_v53  ;;  %v3358_v54 = vpop.f32.mrf.mxu1 }
 0x148   :  { %v3318_v52 = vpop.f32.mrf.mxu0  ;;  %3611 = vmatprep.subr.bf16.mxu0 %v5157_v44 }
 0x149   :  { %3651 = vmatpush1.bf16.msra.mxu1 %v5152_v55 }
 0x14a   :  { %12 = vsyncpa [#allocation3], 0  ;;  %3652 = vmatprep.subr.bf16.mxu1 %v5160_v47  ;;  %v5166_v56 = vld [vmem:[%s7193_s1 + $0xb44] ss:$8 sps:$4 sm:$0xff]   ;;  %v3359_v39 = vpop.f32.mrf.mxu1  ;;  %v5161_v57 = vld [vmem:[%s7193_s1 + $0xa40] ss:$8 sps:$4 sm:$0xff]  }
 0x14b   :  { %3612 = vmatpush1.bf16.msra.mxu0 %v5155_v15  ;;  %v5169_v58 = vld [vmem:[%s7193_s1 + $0xa34] ss:$8 sps:$4 sm:$0xff]   ;;  %v5164_v59 = vld [vmem:[%s7193_s1 + $0xb40] ss:$8 sps:$4 sm:$0xff]   ;;  %v5167_v61 = vld [vmem:[%s7193_s1 + $0xa30] ss:$8 sps:$4 sm:$0xff]  }
 0x14c   :  { %3613 = vmatprep.subr.bf16.mxu0 %v5163_v20  ;;  %v5172_v60 = vld [vmem:[%s7193_s1 + $0xb34] ss:$8 sps:$4 sm:$0xff]   ;;  %v5175_v62 = vld [vmem:[%s7193_s1 + $0xa24] ss:$8 sps:$4 sm:$0xff]   ;;  %v5170_v63 = vld [vmem:[%s7193_s1 + $0xb30] ss:$8 sps:$4 sm:$0xff]  }
 0x14d   :  { %3653 = vmatpush1.bf16.msra.mxu1 %v5158_v34  ;;  %v5178_v0 = vld [vmem:[%s7193_s1 + $0xb24] ss:$8 sps:$4 sm:$0xff]   ;;  %v5173_v1 = vld [vmem:[%s7193_s1 + $0xa20] ss:$8 sps:$4 sm:$0xff]   ;;  %v5181_v2 = vld [vmem:[%s7193_s1 + $0xa14] ss:$8 sps:$4 sm:$0xff]  }
 0x14e   :  { %3654 = vmatprep.subr.bf16.mxu1 %v5166_v56  ;;  %v5176_v3 = vld [vmem:[%s7193_s1 + $0xb20] ss:$8 sps:$4 sm:$0xff]   ;;  %v5184_v4 = vld [vmem:[%s7193_s1 + $0xb14] ss:$8 sps:$4 sm:$0xff]   ;;  %v5179_v43 = vld [vmem:[%s7193_s1 + $0xa10] ss:$8 sps:$4 sm:$0xff]   ;;  %v230_v56 = vpack.c.bf16 %v6518_v14, %v6518_v14 }
 0x14f   :  { %3614 = vmatpush1.bf16.msra.mxu0 %v5161_v57  ;;  %v5187_v5 = vld [vmem:[%s7193_s1 + $0xa04] ss:$8 sps:$4 sm:$0xff]   ;;  %v5182_v36 = vld [vmem:[%s7193_s1 + $0xb10] ss:$8 sps:$4 sm:$0xff]   ;;  %v5185_v7 = vld [vmem:[%s7193_s1 + $0xa00] ss:$8 sps:$4 sm:$0xff]  }
 0x150   :  { %3615 = vmatprep.subr.bf16.mxu0 %v5169_v58  ;;  %v5190_v6 = vld [vmem:[%s7193_s1 + $0xb04] ss:$8 sps:$4 sm:$0xff]   ;;  %v5193_v8 = vld [vmem:[%s7193_s1 + $0xaf4] ss:$8 sps:$4 sm:$0xff]   ;;  %v5188_v9 = vld [vmem:[%s7193_s1 + $0xb00] ss:$8 sps:$4 sm:$0xff]  }
 0x151   :  { %3655 = vmatpush1.bf16.msra.mxu1 %v5164_v59  ;;  %v5196_v10 = vld [vmem:[%s7193_s1 + $0xbf4] ss:$8 sps:$4 sm:$0xff]   ;;  %v5191_v40 = vld [vmem:[%s7193_s1 + $0xaf0] ss:$8 sps:$4 sm:$0xff]   ;;  %v5199_v11 = vld [vmem:[%s7193_s1 + $0xae4] ss:$8 sps:$4 sm:$0xff]   ;;  %v232_v59 = vpack.c.bf16 %v6527_v18, %v6527_v18 }
 0x152   :  { %3656 = vmatprep.subr.bf16.mxu1 %v5172_v60  ;;  %v5194_v12 = vld [vmem:[%s7193_s1 + $0xbf0] ss:$8 sps:$4 sm:$0xff]   ;;  %v5202_v13 = vld [vmem:[%s7193_s1 + $0xbe4] ss:$8 sps:$4 sm:$0xff]   ;;  %v5197_v16 = vld [vmem:[%s7193_s1 + $0xae0] ss:$8 sps:$4 sm:$0xff]  }
 0x153   :  { %3616 = vmatpush1.bf16.msra.mxu0 %v5167_v61  ;;  %v5205_v17 = vld [vmem:[%s7193_s1 + $0xad4] ss:$8 sps:$4 sm:$0xff]   ;;  %v5200_v19 = vld [vmem:[%s7193_s1 + $0xbe0] ss:$8 sps:$4 sm:$0xff]   ;;  %v5203_v22 = vld [vmem:[%s7193_s1 + $0xad0] ss:$8 sps:$4 sm:$0xff]  }
 0x154   :  { %3617 = vmatprep.subr.bf16.mxu0 %v5175_v62  ;;  %v5208_v21 = vld [vmem:[%s7193_s1 + $0xbd4] ss:$8 sps:$4 sm:$0xff]   ;;  %v5211_v23 = vld [vmem:[%s7193_s1 + $0xac4] ss:$8 sps:$4 sm:$0xff]   ;;  %v5206_v24 = vld [vmem:[%s7193_s1 + $0xbd0] ss:$8 sps:$4 sm:$0xff]  }
 0x155   :  { %3657 = vmatpush1.bf16.msra.mxu1 %v5170_v63  ;;  %v5214_v25 = vld [vmem:[%s7193_s1 + $0xbc4] ss:$8 sps:$4 sm:$0xff]   ;;  %v5209_v26 = vld [vmem:[%s7193_s1 + $0xac0] ss:$8 sps:$4 sm:$0xff]   ;;  %v5217_v27 = vld [vmem:[%s7193_s1 + $0xab4] ss:$8 sps:$4 sm:$0xff]  }
 0x156   :  { %3658 = vmatprep.subr.bf16.mxu1 %v5178_v0  ;;  %v5212_v28 = vld [vmem:[%s7193_s1 + $0xbc0] ss:$8 sps:$4 sm:$0xff]   ;;  %v5220_v29 = vld [vmem:[%s7193_s1 + $0xbb4] ss:$8 sps:$4 sm:$0xff]   ;;  %v5215_v30 = vld [vmem:[%s7193_s1 + $0xab0] ss:$8 sps:$4 sm:$0xff]  }
 0x157   :  { %3618 = vmatpush1.bf16.msra.mxu0 %v5173_v1  ;;  %v5223_v31 = vld [vmem:[%s7193_s1 + $0xaa4] ss:$8 sps:$4 sm:$0xff]   ;;  %v5218_v32 = vld [vmem:[%s7193_s1 + $0xbb0] ss:$8 sps:$4 sm:$0xff]   ;;  %v5221_v35 = vld [vmem:[%s7193_s1 + $0xaa0] ss:$8 sps:$4 sm:$0xff]  }
 0x158   :  { %3619 = vmatprep.subr.bf16.mxu0 %v5181_v2  ;;  %v5226_v53 = vld [vmem:[%s7193_s1 + $0xba4] ss:$8 sps:$4 sm:$0xff]   ;;  %v34_v33 = vld [vmem:[%s7192_s0 + $0x30] sm:$0xff]  ;;  %v5224_v38 = vld [vmem:[%s7193_s1 + $0xba0] ss:$8 sps:$4 sm:$0xff]   ;;  %vm3193_vm0 = vcmask 654336  }
 0x159   :  { %3659 = vmatpush1.bf16.msra.mxu1 %v5176_v3  ;;  %v5229_v37 = vld [vmem:[%s7193_s1 + $0xa94] ss:$8 sps:$4 sm:$0xff]   ;;  %v146_v55 = vcombine.high %v34_v33, %v34_v33  ;;  %v5227_v42 = vld [vmem:[%s7193_s1 + $0xa90] ss:$8 sps:$4 sm:$0xff]   ;;  %v6733_v44 = vrot.slane %v34_v33, %v5618_v48  ;;  %v5235_v45 = vld [vmem:[%s7193_s1 + $0xa84] ss:$8 sps:$4 sm:$0xff]  }
 0x15a   :  { %3660 = vmatprep.subr.bf16.mxu1 %v5184_v4  ;;  %v5232_v41 = vld [vmem:[%s7193_s1 + $0xb94] ss:$8 sps:$4 sm:$0xff]   ;;  %v5230_v15 = vld [vmem:[%s7193_s1 + $0xb90] ss:$8 sps:$4 sm:$0xff]   ;;  %v5238_v49 = vld [vmem:[%s7193_s1 + $0xb84] ss:$8 sps:$4 sm:$0xff]  }
 0x15b   :  { %3620 = vmatpush1.bf16.msra.mxu0 %v5179_v43  ;;  %v6742_v47 = vrot.slane %v146_v55, %v5618_v48  ;;  %v5233_v50 = vld [vmem:[%s7193_s1 + $0xa80] ss:$8 sps:$4 sm:$0xff]   ;;  %v161_v52 = vcombine.high %v6733_v44, %v6733_v44  ;;  %v5241_v20 = vld [vmem:[%s7193_s1 + $0xc74] ss:$8 sps:$4 sm:$0xff]   ;;  %v5239_v57 = vld [vmem:[%s7193_s1 + $0xc70] ss:$8 sps:$4 sm:$0xff]  }
 0x15c   :  { %3621 = vmatprep.subr.bf16.mxu0 %v5187_v5  ;;  %v5236_v54 = vld [vmem:[%s7193_s1 + $0xb80] ss:$8 sps:$4 sm:$0xff]   ;;  %v5245_v39 = vld [vmem:[%s7193_s1 + $0xd74] ss:$8 sps:$4 sm:$0xff]   ;;  %v5248_v60 = vld [vmem:[%s7193_s1 + $0xc64] ss:$8 sps:$4 sm:$0xff]  }
 0x15d   :  { %3661 = vmatpush1.bf16.msra.mxu1 %v5182_v36  ;;  %v162_v34 = vcombine.high %v6742_v47, %v6742_v47  ;;  %v235_v58 = vpack.c.bf16 %v161_v52, %v161_v52  ;;  %v5243_v14 = vld [vmem:[%s7193_s1 + $0xd70] ss:$8 sps:$4 sm:$0xff]   ;;  %v5251_v63 = vld [vmem:[%s7193_s1 + $0xd64] ss:$8 sps:$4 sm:$0xff]   ;;  %v5246_v18 = vld [vmem:[%s7193_s1 + $0xc60] ss:$8 sps:$4 sm:$0xff]  }
 0x15e   :  { %3662 = vmatprep.subr.bf16.mxu1 %v5190_v6  ;;  %v5254_v3 = vld [vmem:[%s7193_s1 + $0xc54] ss:$8 sps:$4 sm:$0xff]   ;;  %v5296_v55 = vld [vmem:[%s7193_s1 + $0xce4] ss:$8 sps:$4 sm:$0xff]   ;;  %v5300_v52 = vld [vmem:[%s7193_s1 + $0xcd0] ss:$8 sps:$4 sm:$0xff]  }
 0x15f   :  { %3622 = vmatpush1.bf16.msra.mxu0 %v5185_v7  ;;  %v237_v61 = vpack.c.bf16 %v162_v34, %v162_v34  ;;  %v5257_v6 = vld [vmem:[%s7193_s1 + $0xd54] ss:$8 sps:$4 sm:$0xff]   ;;  %v5311_v34 = vld [vmem:[%s7193_s1 + $0xdc4] ss:$8 sps:$4 sm:$0xff]   ;;  %vm3968_vm1 = vcmask 1043456   ;;  %vm3964_vm2 = vcmask 588800  }
 0x160   :  { %3623 = vmatprep.subr.bf16.mxu0 %v5193_v8  ;;  %v5290_v33 = vld [vmem:[%s7193_s1 + $0xcf4] ss:$8 sps:$4 sm:$0xff]   ;;  %vm5444_vm3 = vmmov 0   ;;  %vm4104_vm4 = vcmask 58368  }
 0x161   :  { %3663 = vmatpush1.bf16.msra.mxu1 %v5188_v9  ;;  %v5260_v9 = vld [vmem:[%s7193_s1 + $0xc44] ss:$8 sps:$4 sm:$0xff]  }
 0x162   :  { %3664 = vmatprep.subr.bf16.mxu1 %v5196_v10 }
 0x163   :  { %3624 = vmatpush2.bf16.msra.mxu0 %v5191_v40  ;;  %v5255_v40 = vld [vmem:[%s7193_s1 + $0xd50] ss:$8 sps:$4 sm:$0xff]  }
 0x164   :  { %3625 = vmatprep.subr.bf16.mxu0 %v5199_v11  ;;  %v5263_v11 = vld [vmem:[%s7193_s1 + $0xd44] ss:$8 sps:$4 sm:$0xff]  }
 0x165   :  { %3665 = vmatpush2.bf16.msra.mxu1 %v5194_v12 }
 0x166   :  { %3666 = vmatprep.subr.bf16.mxu1 %v5202_v13  ;;  %v5258_v13 = vld [vmem:[%s7193_s1 + $0xc40] ss:$8 sps:$4 sm:$0xff]  }
 0x167   :  { %3626 = vmatpush2.bf16.msra.mxu0 %v5197_v16  ;;  %v5266_v16 = vld [vmem:[%s7193_s1 + $0xc34] ss:$8 sps:$4 sm:$0xff]  }
 0x168   :  { %3627 = vmatprep.subr.bf16.mxu0 %v5205_v17  ;;  %v5261_v17 = vld [vmem:[%s7193_s1 + $0xd40] ss:$8 sps:$4 sm:$0xff]  }
 0x169   :  { %3667 = vmatpush2.bf16.msra.mxu1 %v5200_v19  ;;  %v5269_v19 = vld [vmem:[%s7193_s1 + $0xd34] ss:$8 sps:$4 sm:$0xff]  }
 0x16a   :  { %3668 = vmatprep.subr.bf16.mxu1 %v5208_v21  ;;  %v5264_v21 = vld [vmem:[%s7193_s1 + $0xc30] ss:$8 sps:$4 sm:$0xff]  }
 0x16b   :  { %3628 = vmatpush2.bf16.msra.mxu0 %v5203_v22  ;;  %v5272_v22 = vld [vmem:[%s7193_s1 + $0xc24] ss:$8 sps:$4 sm:$0xff]  }
 0x16c   :  { %3629 = vmatprep.subr.bf16.mxu0 %v5211_v23  ;;  %v5267_v23 = vld [vmem:[%s7193_s1 + $0xd30] ss:$8 sps:$4 sm:$0xff]  }
 0x16d   :  { %3669 = vmatpush2.bf16.msra.mxu1 %v5206_v24  ;;  %v5275_v24 = vld [vmem:[%s7193_s1 + $0xd24] ss:$8 sps:$4 sm:$0xff]  }
 0x16e   :  { %3670 = vmatprep.subr.bf16.mxu1 %v5214_v25  ;;  %v5270_v25 = vld [vmem:[%s7193_s1 + $0xc20] ss:$8 sps:$4 sm:$0xff]  }
 0x16f   :  { %3630 = vmatpush2.bf16.msra.mxu0 %v5209_v26  ;;  %v5278_v26 = vld [vmem:[%s7193_s1 + $0xc14] ss:$8 sps:$4 sm:$0xff]  }
 0x170   :  { %3631 = vmatprep.subr.bf16.mxu0 %v5217_v27  ;;  %v5273_v27 = vld [vmem:[%s7193_s1 + $0xd20] ss:$8 sps:$4 sm:$0xff]  }
 0x171   :  { %3671 = vmatpush2.bf16.msra.mxu1 %v5212_v28  ;;  %v5281_v28 = vld [vmem:[%s7193_s1 + $0xd14] ss:$8 sps:$4 sm:$0xff]  }
 0x172   :  { %3672 = vmatprep.subr.bf16.mxu1 %v5220_v29  ;;  %v5276_v29 = vld [vmem:[%s7193_s1 + $0xc10] ss:$8 sps:$4 sm:$0xff]  }
 0x173   :  { %3632 = vmatpush2.bf16.msra.mxu0 %v5215_v30  ;;  %v5284_v30 = vld [vmem:[%s7193_s1 + $0xc04] ss:$8 sps:$4 sm:$0xff]  }
 0x174   :  { %3633 = vmatprep.subr.bf16.mxu0 %v5223_v31  ;;  %v5279_v31 = vld [vmem:[%s7193_s1 + $0xd10] ss:$8 sps:$4 sm:$0xff]  }
 0x175   :  { %3673 = vmatpush2.bf16.msra.mxu1 %v5218_v32  ;;  %v5287_v32 = vld [vmem:[%s7193_s1 + $0xd04] ss:$8 sps:$4 sm:$0xff]  }
 0x176   :  { %3674 = vmatprep.subr.bf16.mxu1 %v5226_v53  ;;  %v5282_v53 = vld [vmem:[%s7193_s1 + $0xc00] ss:$8 sps:$4 sm:$0xff]  }
 0x177   :  { %3634 = vmatpush2.bf16.msra.mxu0 %v5221_v35  ;;  %v5285_v35 = vld [vmem:[%s7193_s1 + $0xd00] ss:$8 sps:$4 sm:$0xff]  }
 0x178   :  { %3635 = vmatprep.subr.bf16.mxu0 %v5229_v37  ;;  %v5293_v37 = vld [vmem:[%s7193_s1 + $0xdf4] ss:$8 sps:$4 sm:$0xff]  }
 0x179   :  { %3675 = vmatpush2.bf16.msra.mxu1 %v5224_v38  ;;  %v5288_v38 = vld [vmem:[%s7193_s1 + $0xcf0] ss:$8 sps:$4 sm:$0xff]  }
 0x17a   :  { %3676 = vmatprep.subr.bf16.mxu1 %v5232_v41  ;;  %v5291_v41 = vld [vmem:[%s7193_s1 + $0xdf0] ss:$8 sps:$4 sm:$0xff]  }
 0x17b   :  { %3636 = vmatpush2.bf16.msra.mxu0 %v5227_v42  ;;  %v5299_v42 = vld [vmem:[%s7193_s1 + $0xde4] ss:$8 sps:$4 sm:$0xff]  }
 0x17c   :  { %3637 = vmatprep.subr.bf16.mxu0 %v5235_v45  ;;  %v5294_v45 = vld [vmem:[%s7193_s1 + $0xce0] ss:$8 sps:$4 sm:$0xff]  }
 0x17d   :  { %3677 = vmatpush2.bf16.msra.mxu1 %v5230_v15  ;;  %v5302_v15 = vld [vmem:[%s7193_s1 + $0xcd4] ss:$8 sps:$4 sm:$0xff]  }
 0x17e   :  { %3678 = vmatprep.subr.bf16.mxu1 %v5238_v49  ;;  %v5297_v49 = vld [vmem:[%s7193_s1 + $0xde0] ss:$8 sps:$4 sm:$0xff]  }
 0x17f   :  { %3638 = vmatpush2.bf16.msra.mxu0 %v5233_v50  ;;  %v5305_v50 = vld [vmem:[%s7193_s1 + $0xdd4] ss:$8 sps:$4 sm:$0xff]  }
 0x180   :  { %3689 = vmatprep.subr.bf16.mxu0 %v5241_v20  ;;  %v5308_v20 = vld [vmem:[%s7193_s1 + $0xcc4] ss:$8 sps:$4 sm:$0xff]  }
 0x181   :  { %3679 = vmatpush2.bf16.msra.mxu1 %v5236_v54  ;;  %v5303_v54 = vld [vmem:[%s7193_s1 + $0xdd0] ss:$8 sps:$4 sm:$0xff]  }
 0x182   :  { %v3395_v62 = vpop.f32.mrf.mxu0  ;;  %3640 = vmatmul.mubr.bf16.vlgmr.msra.gmra.mxu0 %v230_v56  ;;  %3730 = vmatprep.subr.bf16.mxu1 %v5245_v39  ;;  %v5306_v56 = vld [vmem:[%s7193_s1 + $0xcc0] ss:$8 sps:$4 sm:$0xff]   ;;  %v5314_v39 = vld [vmem:[%s7193_s1 + $0xcb4] ss:$8 sps:$4 sm:$0xff]  }
 0x183   :  { %v3396_v0 = vadd.f32 %v3395_v62, %v6575_v46  ;;  %3690 = vmatpush1.bf16.msra.mxu0 %v5239_v57  ;;  %3721 = vmatprep.mubr.bf16.mxu0 %v235_v58  ;;  %v5249_v46 = vld [vmem:[%s7193_s1 + $0xd60] ss:$8 sps:$4 sm:$0xff]   ;;  %v5317_v58 = vld [vmem:[%s7193_s1 + $0xdb4] ss:$8 sps:$4 sm:$0xff]  }
 0x184   :  { %v3397_v1 = vpop.f32.mrf.mxu0  ;;  %v3436_v2 = vpop.f32.mrf.mxu1  ;;  %3681 = vmatmul.mubr.bf16.vlgmr.msra.gmra.mxu1 %v232_v59  ;;  %3691 = vmatprep.subr.bf16.mxu0 %v5248_v60  ;;  %v5309_v57 = vld [vmem:[%s7193_s1 + $0xdc0] ss:$8 sps:$4 sm:$0xff]   ;;  %v5312_v59 = vld [vmem:[%s7193_s1 + $0xcb0] ss:$8 sps:$4 sm:$0xff]   ;;  %v5320_v60 = vld [vmem:[%s7193_s1 + $0xca4] ss:$8 sps:$4 sm:$0xff]  }
 0x185   :  { %v3398_v4 = vadd.f32 %v3397_v1, %v6583_v51  ;;  %v6787_v43 = vadd.f32 %v3436_v2, %v3396_v0  ;;  %3731 = vmatpush1.bf16.msra.mxu1 %v5243_v14  ;;  %3762 = vmatprep.mubr.bf16.mxu1 %v237_v61  ;;  %v5252_v51 = vld [vmem:[%s7193_s1 + $0xc50] ss:$8 sps:$4 sm:$0xff]   ;;  %v5323_v61 = vld [vmem:[%s7193_s1 + $0xda4] ss:$8 sps:$4 sm:$0xff]   ;;  %v5318_v62 = vld [vmem:[%s7193_s1 + $0xca0] ss:$8 sps:$4 sm:$0xff]  }
 0x186   :  { %v3399_v5 = vpop.f32.mrf.mxu0  ;;  %v3438_v36 = vpop.f32.mrf.mxu1  ;;  %3732 = vmatprep.subr.bf16.mxu1 %v5251_v63  ;;  %v5315_v14 = vld [vmem:[%s7193_s1 + $0xdb0] ss:$8 sps:$4 sm:$0xff]   ;;  %v5326_v63 = vld [vmem:[%s7193_s1 + $0xc94] ss:$8 sps:$4 sm:$0xff]   ;;  %v5321_v0 = vld [vmem:[%s7193_s1 + $0xda0] ss:$8 sps:$4 sm:$0xff]  }
 0x187   :  { %v6795_v7 = vadd.f32 %v3438_v36, %v3398_v4  ;;  %3692 = vmatpush1.bf16.msra.mxu0 %v5246_v18  ;;  %v5329_v18 = vld [vmem:[%s7193_s1 + $0xd94] ss:$8 sps:$4 sm:$0xff]   ;;  %v5324_v2 = vld [vmem:[%s7193_s1 + $0xc90] ss:$8 sps:$4 sm:$0xff]   ;;  %v5332_v4 = vld [vmem:[%s7193_s1 + $0xc84] ss:$8 sps:$4 sm:$0xff]  }
 0x188   :  { %v3400_v8 = vpop.f32.mrf.mxu0  ;;  %3693 = vmatprep.subr.bf16.mxu0 %v5254_v3  ;;  %v3440_v10 = vpop.f32.mrf.mxu1  ;;  %v6944_v1 = vld [vmem:[%s7192_s0 + $0x38] sm:$0x3f]  ;;  %v5335_v5 = vld [vmem:[%s7193_s1 + $0xd84] ss:$8 sps:$4 sm:$0xff]   ;;  %v5330_v36 = vld [vmem:[%s7193_s1 + $0xc80] ss:$8 sps:$4 sm:$0xff]  }
 0x189   :  { %3733 = vmatpush1.bf16.msra.mxu1 %v5249_v46  ;;  %v6951_v3 = vrot.slane %v6944_v1, %v5618_v48  ;;  %v5327_v46 = vld [vmem:[%s7193_s1 + $0xd90] ss:$8 sps:$4 sm:$0xff]   ;;  %v5333_v8 = vld [vmem:[%s7193_s1 + $0xd80] ss:$8 sps:$4 sm:$0xff]   ;;  %v5372_v10 = vld [vmem:[%s7193_s1 + $0xf44] ss:$8 sps:$4 sm:$0xff]  }
 0x18a   :  { %3734 = vmatprep.subr.bf16.mxu1 %v5257_v6  ;;  %v3441_v12 = vpop.f32.mrf.mxu1 }
 0x18b   :  { %3694 = vmatpush1.bf16.msra.mxu0 %v5252_v51  ;;  %v178_v6 = vcombine.high %v6951_v3, %v6951_v3  ;;  %v5338_v51 = vld [vmem:[%s7193_s1 + $0xe74] ss:$8 sps:$4 sm:$0xff]   ;;  %v236_v12 = vpack.c.bf16 %v6742_v47, %v6742_v47  ;;  %v5340_v47 = vld [vmem:[%s7193_s1 + $0xe60] ss:$8 sps:$4 sm:$0xff]  }
 0x18c   :  { %3695 = vmatprep.subr.bf16.mxu0 %v5260_v9  ;;  %v234_v9 = vpack.c.bf16 %v6733_v44, %v6733_v44  ;;  %v5370_v44 = vld [vmem:[%s7193_s1 + $0xf40] ss:$8 sps:$4 sm:$0xff]  }
 0x18d   :  { %3735 = vmatpush1.bf16.msra.mxu1 %v5255_v40  ;;  %v5336_v40 = vld [vmem:[%s7193_s1 + $0xe70] ss:$8 sps:$4 sm:$0xff]  }
 0x18e   :  { %3736 = vmatprep.subr.bf16.mxu1 %v5263_v11  ;;  %v239_v11 = vpack.c.bf16 %v178_v6, %v178_v6  ;;  %v238_v6 = vpack.c.bf16 %v6951_v3, %v6951_v3 }
 0x18f   :  { %3696 = vmatpush1.bf16.msra.mxu0 %v5258_v13  ;;  %v5342_v13 = vld [vmem:[%s7193_s1 + $0xe64] ss:$8 sps:$4 sm:$0xff]  }
 0x190   :  { %3697 = vmatprep.subr.bf16.mxu0 %v5266_v16 }
 0x191   :  { %3737 = vmatpush1.bf16.msra.mxu1 %v5261_v17  ;;  %v5378_v17 = vld [vmem:[%s7193_s1 + $0xf34] ss:$8 sps:$4 sm:$0xff]  }
 0x192   :  { %3738 = vmatprep.subr.bf16.mxu1 %v5269_v19 }
 0x193   :  { %3698 = vmatpush1.bf16.msra.mxu0 %v5264_v21 }
 0x194   :  { %3699 = vmatprep.subr.bf16.mxu0 %v5272_v22 }
 0x195   :  { %3739 = vmatpush1.bf16.msra.mxu1 %v5267_v23  ;;  %v5345_v23 = vld [vmem:[%s7193_s1 + $0xe54] ss:$8 sps:$4 sm:$0xff]  }
 0x196   :  { %3740 = vmatprep.subr.bf16.mxu1 %v5275_v24 }
 0x197   :  { %3700 = vmatpush1.bf16.msra.mxu0 %v5270_v25 }
 0x198   :  { %3701 = vmatprep.subr.bf16.mxu0 %v5278_v26  ;;  %v5442_v26 = vmov 0  }
 0x199   :  { %3741 = vmatpush1.bf16.msra.mxu1 %v5273_v27 }
 0x19a   :  { %3742 = vmatprep.subr.bf16.mxu1 %v5281_v28 }
 0x19b   :  { %3702 = vmatpush1.bf16.msra.mxu0 %v5276_v29  ;;  %v5384_v29 = vld [vmem:[%s7193_s1 + $0xf24] ss:$8 sps:$4 sm:$0xff]  }
 0x19c   :  { %3703 = vmatprep.subr.bf16.mxu0 %v5284_v30 }
 0x19d   :  { %3743 = vmatpush1.bf16.msra.mxu1 %v5279_v31 }
 0x19e   :  { %3744 = vmatprep.subr.bf16.mxu1 %v5287_v32  ;;  %v5348_v32 = vld [vmem:[%s7193_s1 + $0xe44] ss:$8 sps:$4 sm:$0xff]  }
 0x19f   :  { %3704 = vmatpush1.bf16.msra.mxu0 %v5282_v53 }
 0x1a0   :  { %3705 = vmatprep.subr.bf16.mxu0 %v5290_v33  ;;  %v5382_v33 = vld [vmem:[%s7193_s1 + $0xf20] ss:$8 sps:$4 sm:$0xff]  }
 0x1a1   :  { %3745 = vmatpush1.bf16.msra.mxu1 %v5285_v35 }
 0x1a2   :  { %3746 = vmatprep.subr.bf16.mxu1 %v5293_v37  ;;  %v5390_v37 = vld [vmem:[%s7193_s1 + $0xf14] ss:$8 sps:$4 sm:$0xff]  }
 0x1a3   :  { %3706 = vmatpush2.bf16.msra.mxu0 %v5288_v38  ;;  %v5346_v38 = vld [vmem:[%s7193_s1 + $0xe40] ss:$8 sps:$4 sm:$0xff]  }
 0x1a4   :  { %3707 = vmatprep.subr.bf16.mxu0 %v5296_v55  ;;  %v5351_v55 = vld [vmem:[%s7193_s1 + $0xe34] ss:$8 sps:$4 sm:$0xff]  }
 0x1a5   :  { %3747 = vmatpush2.bf16.msra.mxu1 %v5291_v41  ;;  %v163_v41 = vcombine.high %v6944_v1, %v6944_v1  ;;  %v5387_v1 = vld [vmem:[%s7193_s1 + $0xea4] ss:$8 sps:$4 sm:$0xff]  }
 0x1a6   :  { %3748 = vmatprep.subr.bf16.mxu1 %v5299_v42  ;;  %v5388_v42 = vld [vmem:[%s7193_s1 + $0xf10] ss:$8 sps:$4 sm:$0xff]  }
 0x1a7   :  { %3708 = vmatpush2.bf16.msra.mxu0 %v5294_v45  ;;  %v5396_v45 = vld [vmem:[%s7193_s1 + $0xf04] ss:$8 sps:$4 sm:$0xff]  }
 0x1a8   :  { %3709 = vmatprep.subr.bf16.mxu0 %v5302_v15  ;;  %v5349_v15 = vld [vmem:[%s7193_s1 + $0xe30] ss:$8 sps:$4 sm:$0xff]  }
 0x1a9   :  { %3749 = vmatpush2.bf16.msra.mxu1 %v5297_v49  ;;  %v5354_v49 = vld [vmem:[%s7193_s1 + $0xe24] ss:$8 sps:$4 sm:$0xff]  }
 0x1aa   :  { %3750 = vmatprep.subr.bf16.mxu1 %v5305_v50  ;;  %v177_v50 = vrot.slane %v163_v41, %v5618_v48  ;;  %v5355_v48 = vld [vmem:[%s7193_s1 + $0xe10] ss:$8 sps:$4 sm:$0xff]  }
 0x1ab   :  { %3710 = vmatpush2.bf16.msra.mxu0 %v5300_v52  ;;  %v5394_v52 = vld [vmem:[%s7193_s1 + $0xf00] ss:$8 sps:$4 sm:$0xff]  }
 0x1ac   :  { %3711 = vmatprep.subr.bf16.mxu0 %v5308_v20  ;;  %v5352_v20 = vld [vmem:[%s7193_s1 + $0xe20] ss:$8 sps:$4 sm:$0xff]  }
 0x1ad   :  { %3751 = vmatpush2.bf16.msra.mxu1 %v5303_v54  ;;  %v5357_v54 = vld [vmem:[%s7193_s1 + $0xe14] ss:$8 sps:$4 sm:$0xff]  }
 0x1ae   :  { %3752 = vmatprep.subr.bf16.mxu1 %v5311_v34  ;;  %v240_v34 = vpack.c.bf16 %v177_v50, %v177_v50  ;;  %v5414_v50 = vld [vmem:[%s7197_s5 + $0x20] sm:$0xff]  }
 0x1af   :  { %3712 = vmatpush2.bf16.msra.mxu0 %v5306_v56  ;;  %v5360_v56 = vld [vmem:[%s7193_s1 + $0xe04] ss:$8 sps:$4 sm:$0xff]  }
 0x1b0   :  { %3713 = vmatprep.subr.bf16.mxu0 %v5314_v39  ;;  %v5358_v39 = vld [vmem:[%s7193_s1 + $0xe00] ss:$8 sps:$4 sm:$0xff]  }
 0x1b1   :  { %3753 = vmatpush2.bf16.msra.mxu1 %v5309_v57  ;;  %v5363_v57 = vld [vmem:[%s7193_s1 + $0xef4] ss:$8 sps:$4 sm:$0xff]  }
 0x1b2   :  { %3754 = vmatprep.subr.bf16.mxu1 %v5317_v58  ;;  %v5361_v58 = vld [vmem:[%s7193_s1 + $0xef0] ss:$8 sps:$4 sm:$0xff]  }
 0x1b3   :  { %3714 = vmatpush2.bf16.msra.mxu0 %v5312_v59  ;;  %v5366_v59 = vld [vmem:[%s7193_s1 + $0xee4] ss:$8 sps:$4 sm:$0xff]  }
 0x1b4   :  { %3715 = vmatprep.subr.bf16.mxu0 %v5320_v60  ;;  %v5364_v60 = vld [vmem:[%s7193_s1 + $0xee0] ss:$8 sps:$4 sm:$0xff]  }
 0x1b5   :  { %3755 = vmatpush2.bf16.msra.mxu1 %v5315_v14  ;;  %v5369_v14 = vld [vmem:[%s7193_s1 + $0xed4] ss:$8 sps:$4 sm:$0xff]  }
 0x1b6   :  { %3756 = vmatprep.subr.bf16.mxu1 %v5323_v61  ;;  %v5367_v61 = vld [vmem:[%s7193_s1 + $0xed0] ss:$8 sps:$4 sm:$0xff]  }
 0x1b7   :  { %3716 = vmatpush2.bf16.msra.mxu0 %v5318_v62  ;;  %v5375_v62 = vld [vmem:[%s7193_s1 + $0xec4] ss:$8 sps:$4 sm:$0xff]  }
 0x1b8   :  { %3717 = vmatprep.subr.bf16.mxu0 %v5326_v63  ;;  %v5373_v63 = vld [vmem:[%s7193_s1 + $0xec0] ss:$8 sps:$4 sm:$0xff]  }
 0x1b9   :  { %3757 = vmatpush2.bf16.msra.mxu1 %v5321_v0  ;;  %v5381_v0 = vld [vmem:[%s7193_s1 + $0xeb4] ss:$8 sps:$4 sm:$0xff]  }
 0x1ba   :  { %3758 = vmatprep.subr.bf16.mxu1 %v5329_v18  ;;  %v5379_v18 = vld [vmem:[%s7193_s1 + $0xeb0] ss:$8 sps:$4 sm:$0xff]  }
 0x1bb   :  { %3718 = vmatpush2.bf16.msra.mxu0 %v5324_v2  ;;  %v5385_v2 = vld [vmem:[%s7193_s1 + $0xea0] ss:$8 sps:$4 sm:$0xff]  }
 0x1bc   :  { %3719 = vmatprep.subr.bf16.mxu0 %v5332_v4  ;;  %v5393_v4 = vld [vmem:[%s7193_s1 + $0xe94] ss:$8 sps:$4 sm:$0xff]  }
 0x1bd   :  { %3759 = vmatpush2.bf16.msra.mxu1 %v5327_v46  ;;  %v5391_v46 = vld [vmem:[%s7193_s1 + $0xe90] ss:$8 sps:$4 sm:$0xff]  }
 0x1be   :  { %3760 = vmatprep.subr.bf16.mxu1 %v5335_v5  ;;  %v5399_v5 = vld [vmem:[%s7193_s1 + $0xe84] ss:$8 sps:$4 sm:$0xff]  }
 0x1bf   :  { %3720 = vmatpush2.bf16.msra.mxu0 %v5330_v36  ;;  %v5397_v36 = vld [vmem:[%s7193_s1 + $0xe80] ss:$8 sps:$4 sm:$0xff]  }
 0x1c0   :  { %3771 = vmatprep.subr.bf16.mxu0 %v5338_v51 }
 0x1c1   :  { %3761 = vmatpush2.bf16.msra.mxu1 %v5333_v8 }
 0x1c2   :  { %v3477_v16 = vpop.f32.mrf.mxu0  ;;  %3722 = vmatmul.mubr.bf16.vlgmr.msra.gmra.mxu0 %v234_v9  ;;  %3818 = vmatprep.subr.bf16.mxu1 %v5372_v10 }
 0x1c3   :  { %v3478_v19 = vadd.f32 %v3477_v16, %v6787_v43  ;;  %3772 = vmatpush1.bf16.msra.mxu0 %v5336_v40  ;;  %3803 = vmatprep.mubr.bf16.mxu0 %v239_v11  ;;  %v5376_v43 = vld [vmem:[%s7193_s1 + $0xf30] ss:$8 sps:$4 sm:$0xff]  }
 0x1c4   :  { %v3479_v21 = vpop.f32.mrf.mxu0  ;;  %v3518_v22 = vpop.f32.mrf.mxu1  ;;  %3763 = vmatmul.mubr.bf16.vlgmr.msra.gmra.mxu1 %v236_v12  ;;  %3773 = vmatprep.subr.bf16.mxu0 %v5342_v13 }
 0x1c5   :  { %v3480_v24 = vadd.f32 %v3479_v21, %v6795_v7  ;;  %v7000_v25 = vadd.f32 %v3518_v22, %v3478_v19  ;;  %3819 = vmatpush1.bf16.msra.mxu1 %v5370_v44  ;;  %3844 = vmatprep.mubr.bf16.mxu1 %v5442_v26  ;;  %v5343_v7 = vld [vmem:[%s7193_s1 + $0xe50] ss:$8 sps:$4 sm:$0xff]   ;;  %v5403_v21 = vld [vmem:[%s7195_s3 + $0x28] sm:$0xff]   ;;  %v5404_v22 = vld [vmem:[%s7195_s3 + $0x20] sm:$0xff]  }
 0x1c6   :  { %v3481_v27 = vpop.f32.mrf.mxu0  ;;  %v3520_v28 = vpop.f32.mrf.mxu1  ;;  %3820 = vmatprep.subr.bf16.mxu1 %v5378_v17  ;;  %v5401_v19 = vld [vmem:[%s7195_s3 + $0x38] sm:$0xff]  }
 0x1c7   :  { %v7009_v30 = vadd.f32 %v3520_v28, %v3480_v24  ;;  %3774 = vmatpush1.bf16.msra.mxu0 %v5340_v47  ;;  %v5402_v47 = vld [vmem:[%s7195_s3 + $0x30] sm:$0xff]   ;;  %v5409_v27 = vld [vmem:[%s7195_s3 + $0x60] ss:$0 sps:$4 sm:$0xff]  }
 0x1c8   :  { %v3482_v31 = vpop.f32.mrf.mxu0  ;;  %3775 = vmatprep.subr.bf16.mxu0 %v5345_v23  ;;  %v3522_v53 = vpop.f32.mrf.mxu1  ;;  %v5405_v23 = vld [vmem:[%s7195_s3 + $0x18] sm:$0xff]   ;;  %v5406_v24 = vld [vmem:[%s7195_s3 + $0x10] sm:$0xff]   ;;  %v3970_v28 = vsel %vm3968_vm1, %v5409_v27, 0 }
 0x1c9   :  { %3821 = vmatpush1.bf16.msra.mxu1 %v5376_v43  ;;  %v5408_v43 = vld [vmem:[%s7195_s3] sm:$0xff]  }
 0x1ca   :  { %v3523_v35 = vpop.f32.mrf.mxu1  ;;  %3822 = vmatprep.subr.bf16.mxu1 %v5384_v29  ;;  %v5410_v29 = vld [vmem:[%s7195_s3 + $0x58] sm:$0xff]  }
 0x1cb   :  { %3776 = vmatpush1.bf16.msra.mxu0 %v5343_v7 }
 0x1cc   :  { %3777 = vmatprep.subr.bf16.mxu0 %v5348_v32 }
 0x1cd   :  { %3823 = vmatpush1.bf16.msra.mxu1 %v5382_v33 }
 0x1ce   :  { %3824 = vmatprep.subr.bf16.mxu1 %v5390_v37  ;;  %v5412_v37 = vld [vmem:[%s7195_s3 + $0x48] sm:$0xff]  }
 0x1cf   :  { %3778 = vmatpush1.bf16.msra.mxu0 %v5346_v38 }
 0x1d0   :  { %3779 = vmatprep.subr.bf16.mxu0 %v5351_v55 }
 0x1d1   :  { %3825 = vmatpush1.bf16.msra.mxu1 %v5388_v42 }
 0x1d2   :  { %3826 = vmatprep.subr.bf16.mxu1 %v5396_v45 }
 0x1d3   :  { %3780 = vmatpush1.bf16.msra.mxu0 %v5349_v15  ;;  %v5413_v15 = vld [vmem:[%s7195_s3 + $0x40] sm:$0xff]  }
 0x1d4   :  { %3781 = vmatprep.subr.bf16.mxu0 %v5354_v49 }
 0x1d5   :  { %3827 = vmatpush1.bf16.msra.mxu1 %v5394_v52  ;;  %v5443_v52 = vmov 0.0  }
 0x1d6   :  { %3972 = vmatprep.subr.bf16.mxu1 %v5442_v26 }
 0x1d7   :  { %3782 = vmatpush1.bf16.msra.mxu0 %v5352_v20  ;;  %v5415_v20 = vld [vmem:[%s7197_s5 + $0x18] sm:$0xff]  }
 0x1d8   :  { %3783 = vmatprep.subr.bf16.mxu0 %v5357_v54  ;;  %4610 = vmatmul.mubr.msk.bf16.vlgmr.msra.gmra.mxu1 %vm3193_vm0, %v240_v34 }
 0x1d9   :  { %3973 = vmatpush1.bf16.msra.mxu1 %v5401_v19 }
 0x1da   :  { %3974 = vmatprep.subr.bf16.mxu1 %v5442_v26 }
 0x1db   :  { %3784 = vmatpush1.bf16.msra.mxu0 %v5355_v48 }
 0x1dc   :  { %3785 = vmatprep.subr.bf16.mxu0 %v5360_v56 }
 0x1dd   :  { %3975 = vmatpush1.bf16.msra.mxu1 %v5402_v47 }
 0x1de   :  { %3976 = vmatprep.subr.bf16.mxu1 %v5442_v26 }
 0x1df   :  { %3786 = vmatpush1.bf16.msra.mxu0 %v5358_v39 }
 0x1e0   :  { %3787 = vmatprep.subr.bf16.mxu0 %v5363_v57 }
 0x1e1   :  { %3977 = vmatpush1.bf16.msra.mxu1 %v5403_v21 }
 0x1e2   :  { %3978 = vmatprep.subr.bf16.mxu1 %v5442_v26 }
 0x1e3   :  { %3788 = vmatpush2.bf16.msra.mxu0 %v5361_v58 }
 0x1e4   :  { %3789 = vmatprep.subr.bf16.mxu0 %v5366_v59 }
 0x1e5   :  { %3979 = vmatpush1.bf16.msra.mxu1 %v5404_v22 }
 0x1e6   :  { %3980 = vmatprep.subr.bf16.mxu1 %v5442_v26 }
 0x1e7   :  { %3790 = vmatpush2.bf16.msra.mxu0 %v5364_v60 }
 0x1e8   :  { %3791 = vmatprep.subr.bf16.mxu0 %v5369_v14 }
 0x1e9   :  { %3981 = vmatpush1.bf16.msra.mxu1 %v5405_v23  ;;  %v4626_v23 = vld [vmem:[%s7198_s6] ss:$0 sm:$0xff] }
 0x1ea   :  { %3982 = vmatprep.subr.bf16.mxu1 %v5442_v26 }
 0x1eb   :  { %3792 = vmatpush2.bf16.msra.mxu0 %v5367_v61 }
 0x1ec   :  { %3793 = vmatprep.subr.bf16.mxu0 %v5375_v62 }
 0x1ed   :  { %3983 = vmatpush1.bf16.msra.mxu1 %v5406_v24 }
 0x1ee   :  { %3984 = vmatprep.subr.bf16.mxu1 %v5442_v26 }
 0x1ef   :  { %3794 = vmatpush2.bf16.msra.mxu0 %v5373_v63 }
 0x1f0   :  { %3795 = vmatprep.subr.bf16.mxu0 %v5381_v0 }
 0x1f3   :  { %3796 = vmatpush2.bf16.msra.mxu0 %v5379_v18 }
 0x1f4   :  { %3797 = vmatprep.subr.bf16.mxu0 %v5387_v1 }
 0x1f7   :  { %3798 = vmatpush2.bf16.msra.mxu0 %v5385_v2 }
 0x1f8   :  { %3799 = vmatprep.subr.bf16.mxu0 %v5393_v4 }
 0x1fb   :  { %3800 = vmatpush2.bf16.msra.mxu0 %v5391_v46 }
 0x1fc   :  { %3801 = vmatprep.subr.bf16.mxu0 %v5399_v5 }
 0x1ff   :  { %3802 = vmatpush2.bf16.msra.mxu0 %v5397_v36 }
 0x200   :  { %4639 = vmatprep.subr.bf16.mxu0 %v5443_v52 }
 0x202   :  { %v3559_v51 = vpop.f32.mrf.mxu0  ;;  %3804 = vmatmul.mubr.bf16.vlgmr.msra.gmra.mxu0 %v238_v6 }
 0x203   :  { %v3560_v8 = vadd.f32 %v3559_v51, %v7000_v25  ;;  %v5407_v25 = vld [vmem:[%s7195_s3 + $0x8] sm:$0xff]   ;;  %4640 = vmatpush3.bf16.msra.mxu0 %v5414_v50  ;;  %4649 = vmatprep.mubr.msk.bf16.mxu0 %vm5444_vm3, %v5443_v52 }
 0x204   :  { %v3561_v9 = vpop.f32.mrf.mxu0  ;;  %v3600_v10 = vpop.f32.mrf.mxu1  ;;  %3985 = vmatpush1.bf16.msra.mxu1 %v5407_v25  ;;  %4641 = vmatprep.subr.bf16.mxu0 %v5443_v52 }
 0x205   :  { %v3562_v40 = vadd.f32 %v3561_v9, %v7009_v30  ;;  %v3601_v11 = vadd.f32 %v3600_v10, %v3560_v8  ;;  %3986 = vmatprep.subr.bf16.mxu1 %v5442_v26  ;;  %v5411_v30 = vld [vmem:[%s7195_s3 + $0x50] sm:$0xff]  }
 0x206   :  { %v3563_v12 = vpop.f32.mrf.mxu0  ;;  %v3602_v13 = vpop.f32.mrf.mxu1 }
 0x207   :  { %v3603_v44 = vadd.f32 %v3602_v13, %v3562_v40  ;;  %4642 = vmatpush3.bf16.msra.mxu0 %v5415_v20  ;;  %v5417_v12 = vld [vmem:[%s7197_s5 + $0x8] sm:$0xff]   ;;  %v5418_v13 = vld [vmem:[%s7197_s5] sm:$0xff]  }
 0x208   :  { %v3564_v16 = vpop.f32.mrf.mxu0  ;;  %v3604_v17 = vpop.f32.mrf.mxu1  ;;  %3987 = vmatpush1.bf16.msra.mxu1 %v5408_v43  ;;  %4643 = vmatprep.subr.bf16.mxu0 %v5443_v52 }
 0x209   :  { %3994 = vmatprep.subr.bf16.mxu1 %v5442_v26 }
 0x20a   :  { %v3605_v3 = vpop.f32.mrf.mxu1 }
 0x20c   :  { %3995 = vmatpush2.bf16.msra.mxu1 %v3970_v28 }
 0x20d   :  { %3996 = vmatprep.subr.bf16.mxu1 %v5442_v26 }
 0x210   :  { %3997 = vmatpush2.bf16.msra.mxu1 %v5410_v29 }
 0x211   :  { %3998 = vmatprep.subr.bf16.mxu1 %v5442_v26 }
 0x214   :  { %3999 = vmatpush2.bf16.msra.mxu1 %v5411_v30 }
 0x215   :  { %4000 = vmatprep.subr.bf16.mxu1 %v5442_v26 }
 0x218   :  { %4001 = vmatpush2.bf16.msra.mxu1 %v5412_v37 }
 0x219   :  { %4002 = vmatprep.subr.bf16.mxu1 %v5442_v26  ;;  %v5416_v26 = vld [vmem:[%s7197_s5 + $0x10] sm:$0xff]   ;;  %s5445_s5 = smov [#allocation2]  }
 0x21a   :  { %4644 = vmatpush3.bf16.msra.mxu0 %v5416_v26  ;;  %s4112_s20 = sshll.u32 %s5445_s5, 4  ;;  %s4113_s20 = int_to_ptr.vmem [resolvable:$true] %s4112_s20 }
 0x21b   :  { %4645 = vmatprep.subr.bf16.mxu0 %v5443_v52  ;;  %p5424_p1 = scmp.lt.s32.totalorder %s4113_s20, %s4113_s20 }
 0x21c   :  { %4003 = vmatpush2.bf16.msra.mxu1 %v5413_v15 }
 0x21e   :  { %4646 = vmatpush3.bf16.msra.mxu0 %v5417_v12 }
 0x21f   :  { %4647 = vmatprep.subr.bf16.mxu0 %v5443_v52 }
 0x222   :  { %4648 = vmatpush3.bf16.msra.mxu0 %v5418_v13 }
 0x242   :  { %v3641_v7 = vpop.f32.mrf.mxu0 }
 0x243   :  { %v3642_v31 = vadd.f32 %v3641_v7, %v3601_v11 }
 0x244   :  { %v3643_v32 = vpop.f32.mrf.mxu0  ;;  %v3682_v53 = vpop.f32.mrf.mxu1 }
 0x245   :  { %v3644_v33 = vadd.f32 %v3643_v32, %v3603_v44  ;;  %v3683_v35 = vadd.f32 %v3682_v53, %v3642_v31  ;;  %v4611_v44 = vld [vmem:[%s7196_s4] ss:$0 sm:$0xff]  ;;  %s5419_s4 = scalar_lea.vmem %s4113_s20, 32 }
 0x246   :  { %v3645_v38 = vpop.f32.mrf.mxu0  ;;  %v3684_v55 = vpop.f32.mrf.mxu1  ;;  %p5420_p0 = scmp.ne.s32.totalorder %s4113_s20, %s5419_s4  ;;  %p5425_p2 = scmp.lt.s32.totalorder %s5419_s4, %s5419_s4 }
 0x247   :  { %v3685_v41 = vadd.f32 %v3684_v55, %v3644_v33 }
 0x248   :  { %v3646_v42 = vpop.f32.mrf.mxu0  ;;  %v3686_v45 = vpop.f32.mrf.mxu1  ;;  %p5426_p3 = por %p5425_p2, %p5424_p1 }
 0x24a   :  { %v3687_v49 = vpop.f32.mrf.mxu1  ;;  %p5427_p4 = pnand %p5426_p3, %p5420_p0 }
 0x282   :  { %v3723_v54 = vpop.f32.mrf.mxu0 }
 0x283   :  { %v3724_v63 = vadd.f32 %v3723_v54, %v3683_v35 }
 0x284   :  { %v3725_v34 = vpop.f32.mrf.mxu0  ;;  %v3764_v48 = vpop.f32.mrf.mxu1 }
 0x285   :  { %v3726_v0 = vadd.f32 %v3725_v34, %v3685_v41  ;;  %v3765_v18 = vadd.f32 %v3764_v48, %v3724_v63 }
 0x286   :  { %v3727_v56 = vpop.f32.mrf.mxu0  ;;  %v3766_v39 = vpop.f32.mrf.mxu1 }
 0x287   :  { %v3767_v2 = vadd.f32 %v3766_v39, %v3726_v0 }
 0x288   :  { %v3728_v57 = vpop.f32.mrf.mxu0  ;;  %v3768_v58 = vpop.f32.mrf.mxu1 }
 0x28a   :  { %v3769_v59 = vpop.f32.mrf.mxu1 }
 0x298   :  { %v3846_v60 = vpop.f32.mrf.mxu1 }
 0x29a   :  { %v3848_v14 = vpop.f32.mrf.mxu1 }
 0x29c   :  { %v3850_v61 = vpop.f32.mrf.mxu1 }
 0x29e   :  { %v3851_v62 = vpop.f32.mrf.mxu1 }
 0x2c2   :  { %v3805_v1 = vpop.f32.mrf.mxu0 }
 0x2c3   :  { %v3806_v4 = vadd.f32 %v3805_v1, %v3765_v18 }
 0x2c4   :  { %v3807_v46 = vpop.f32.mrf.mxu0 }
 0x2c5   :  { %v3847_v5 = vadd.f32 %v3846_v60, %v3806_v4  ;;  %v3808_v36 = vadd.f32 %v3807_v46, %v3767_v2 }
 0x2c6   :  { %v3809_v6 = vpop.f32.mrf.mxu0 }
 0x2c7   :  { %v3849_v51 = vadd.f32 %v3848_v14, %v3808_v36  ;;  %v3853_v8 = vmax.f32 %v3847_v5, 0.0 }
 0x2c8   :  { %v3810_v9 = vpop.f32.mrf.mxu0 }
 0x2c9   :  { %v3854_v10 = vmax.f32 %v3849_v51, 0.0  ;;  %v3855_v11 = vpack.c.bf16 %v3853_v8, %v3853_v8 }
 0x2cb   :  { %v3856_v40 = vpack.c.bf16 %v3854_v10, %v3854_v10 }
 0x2cd   :  { %4625 = vmatprep.mubr.msk.bf16.mxu1 %vm3964_vm2, %v3856_v40 }
 0x2ce   :  { %4005 = vmatmul.mubr.bf16.vlgmr.msra.gmra.mxu1 %v3855_v11 }
 0x38e   :  { %v4006_v16 = vpop.f32.mrf.mxu1 }
 0x38f   :  { %v4007_v17 = vadd.f32 %v4611_v44, %v4006_v16 }
 0x390   :  { %v4008_v19 = vpop.f32.mrf.mxu1 }
 0x391   :  { %v4012_v3 = vmax.f32 %v4007_v17, 0.0 }
 0x392   :  { %v4009_v47 = vpop.f32.mrf.mxu1 }
 0x393   :  { %v4013_v21 = vpack.c.bf16 %v4012_v3, %v4012_v3 }
 0x394   :  { %v4010_v22 = vpop.f32.mrf.mxu1 }
 0x395   :  { %4650 = vmatmul.mubr.msk.bf16.vlgmr.msra.gmra.mxu0 %vm3193_vm0, %v4013_v21 }
 0x455   :  { %v4098_v24 = vpop.f32.mrf.mxu0 }
 0x456   :  { %v4099_v25 = vadd.f32 %v4626_v23, %v4098_v24 }
 0x457   :  { %v4651_v43 = vpop.f32.mrf.mxu0 }
 0x458   :  { %4105 = vst.msk [vmem:[#allocation2] sm:$0x3] %vm4104_vm4, %v4099_v25 }
 0x459   :  { %v4101_v27 = vpop.f32.mrf.mxu0 }
 0x45a   :  { %5430 = shalt.err (!%p5427_p4)
}
 0x45b   :  { %4115 = dma.vmem_to_hbm [thread:$0]  %s4113_s20, 32, %s7199_s7, [#allocation3]   ;;  %v4652_v28 = vpop.f32.mrf.mxu0 }
 0x45c   :  { %5439 = dma.done.wait [#allocation3], 32  }
 0x45d   :  { %5440 = vsyncadd [#allocation3], 4294967264 }
 0x45e   :  { %4119 = vsyncpa [#allocation3], 1 }

// kernel: net7_forward.2
= control target key start
LH: loop header
LB: loop body
LE: loop exit
PB: predicated region body
PF: predicated region fallthrough
CT: control target
= control target key end

     0   :  { %s13549_s27 = smov 0   ;;  %s18960_s0 = inlined_call_operand.vmem [shape: f32[2,64,64], index: 0, kind: input, shape index: {}]   ;;  %s18961_s1 = inlined_call_operand.vmem [shape: bf16[5,64,600], index: 1, kind: input, shape index: {}]   ;;  %s18962_s2 = inlined_call_operand.vmem [shape: f32[1,600], index: 2, kind: input, shape index: {}]   ;;  %s18963_s3 = inlined_call_operand.vmem [shape: bf16[3,599,560], index: 3, kind: input, shape index: {}]   ;;  %s18964_s4 = inlined_call_operand.vmem [shape: f32[1,560], index: 4, kind: input, shape index: {}]   ;;  %s18965_s5 = inlined_call_operand.vmem [shape: f32[1,560], index: 5, kind: input, shape index: {}]   ;;  %s18966_s6 = inlined_call_operand.vmem [shape: bf16[14,53], index: 6, kind: input, shape index: {}]   ;;  %s18967_s7 = inlined_call_operand.vmem [shape: bf16[559,280], index: 7, kind: input, shape index: {}]   ;;  %s18968_s8 = inlined_call_operand.vmem [shape: f32[2,14,280], index: 8, kind: output, shape index: {}]  }
   0x1 LB: > { %s10265_s28 = sadd.s32 4294967295, %s13497_s27   ;;  %p10269_p0 = scmp.ge.s32.totalorder %s13497_s27, 1  ;;  %s13497_s27 = sphi %s13549_s27, %s18_s27  }
   0x2   : > { %p262_p1 = scmp.lt.s32.totalorder %s13497_s27, 3 }
   0x4   : > { %p263_p2 = pnand %p10269_p0, %p262_p1 }
   0x6   : > { %266 = sbr.rel (%p263_p2) target bundleno = 1980 (0x7bc), region = 52 }
   0xb   : > { %v12418_v0 = vld [vmem:[%s18961_s1 + $0x11c] ss:$20 sps:$4 sm:$0xff]   ;;  %p296_p3 = scmp.lt.s32.totalorder %s10265_s28, 1  ;;  %v12420_v1 = vld [vmem:[%s18961_s1 + $0x124] ss:$20 sps:$4 sm:$0xff]   ;;  %v18969_v2 = vmov 0  }
   0xc   : > { %549 = vmatprep.mubr.bf16.mxu0 %v18969_v2  ;;  %622 = vmatprep.mubr.bf16.mxu1 %v18969_v2  ;;  %v12422_v3 = vld [vmem:[%s18961_s1 + $0x118] ss:$20 sps:$4 sm:$0xff]   ;;  %v12423_v4 = vld [vmem:[%s18961_s1 + $0x120] ss:$20 sps:$4 sm:$0xff]   ;;  %v12426_v6 = vld [vmem:[%s18961_s1 + $0xfc] ss:$20 sps:$4 sm:$0xff]  }
   0xd   : > { %525 = vmatprep.subr.bf16.mxu0 %v12418_v0  ;;  %s19486_s28 = smov (!%p296_p3, %s10265_s28), 1  ;;  %598 = vmatprep.subr.bf16.mxu1 %v12420_v1  ;;  %v12424_v5 = vld [vmem:[%s18961_s1 + $0xf4] ss:$20 sps:$4 sm:$0xff]   ;;  %v12428_v7 = vld [vmem:[%s18961_s1 + $0xf0] ss:$20 sps:$4 sm:$0xff]   ;;  %vm504_vm1 = vcmask 523264  }
   0xe   : > { %526 = vmatpush1.bf16.msra.mxu0 %v12422_v3  ;;  %599 = vmatpush1.bf16.msra.mxu1 %v12423_v4  ;;  %s11698_s21 = sshll.u32 %s19486_s28, 6  ;;  %v12429_v8 = vld [vmem:[%s18961_s1 + $0xf8] ss:$20 sps:$4 sm:$0xff]   ;;  %v12432_v10 = vld [vmem:[%s18961_s1 + $0xd4] ss:$20 sps:$4 sm:$0xff]   ;;  %vm1080_vm3 = vcmask 1046528  }
   0xf   : > { %527 = vmatprep.subr.bf16.mxu0 %v12424_v5  ;;  %600 = vmatprep.subr.bf16.mxu1 %v12426_v6  ;;  %v12430_v9 = vld [vmem:[%s18961_s1 + $0xcc] ss:$20 sps:$4 sm:$0xff]   ;;  %v12434_v11 = vld [vmem:[%s18961_s1 + $0xc8] ss:$20 sps:$4 sm:$0xff]   ;;  %v12435_v12 = vld [vmem:[%s18961_s1 + $0xd0] ss:$20 sps:$4 sm:$0xff]   ;;  %s300_s14 = scalar_lea.vmem %s18960_s0, %s11698_s21 }
  0x10   : > { %v12436_v13 = vld [vmem:[%s18961_s1 + $0xa4] ss:$20 sps:$4 sm:$0xff]   ;;  %v12438_v14 = vld [vmem:[%s18961_s1 + $0xac] ss:$20 sps:$4 sm:$0xff]   ;;  %v12441_v16 = vld [vmem:[%s18961_s1 + $0xa8] ss:$20 sps:$4 sm:$0xff]  }
  0x11   : > { %v12440_v15 = vld [vmem:[%s18961_s1 + $0xa0] ss:$20 sps:$4 sm:$0xff]   ;;  %v308_v18 = vld [vmem:[%s300_s14 + $0x8] sm:$0xff]  ;;  %v310_v20 = vld [vmem:[%s300_s14 + $0x18] sm:$0xff]  ;;  %vm368_vm0 = vsmask.f32 7424 }
  0x12   : > { %528 = vmatpush1.bf16.msra.mxu0 %v12428_v7  ;;  %601 = vmatpush1.bf16.msra.mxu1 %v12429_v8  ;;  %v307_v17 = vld [vmem:[%s300_s14] sm:$0xff]  ;;  %v309_v19 = vld [vmem:[%s300_s14 + $0x10] sm:$0xff]  ;;  %v312_v24 = vld [vmem:[%s300_s14 + $0x28] sm:$0xff]  ;;  %vm1480_vm2 = vsmask.f32 6400  ;;  %vm1888_vm4 = vcmask 1045504  }
  0x13   : > { %529 = vmatprep.subr.bf16.mxu0 %v12430_v9  ;;  %602 = vmatprep.subr.bf16.mxu1 %v12432_v10  ;;  %v13613_v21 = vpack.c.bf16 %v308_v18, %v307_v17  ;;  %v13615_v22 = vpack.c.bf16 %v310_v20, %v309_v19  ;;  %v311_v23 = vld [vmem:[%s300_s14 + $0x20] sm:$0xff]  ;;  %v12442_v26 = vld [vmem:[%s18961_s1 + $0x128] ss:$20 sps:$4 sm:$0xff]   ;;  %v313_v27 = vld [vmem:[%s300_s14 + $0x30] sm:$0xff]  ;;  %s13500_s22 = smov 127   ;;  %vm4334_vm5 = vcmask 1042432  }
  0x14   : > { %v13617_v25 = vpack.c.bf16 %v312_v24, %v311_v23  ;;  %v314_v31 = vld [vmem:[%s300_s14 + $0x38] sm:$0xff]  ;;  %v12446_v48 = vld [vmem:[%s18961_s1 + $0x100] ss:$20 sps:$4 sm:$0xff]   ;;  %v12447_v58 = vld [vmem:[%s18961_s1 + $0x50] ss:$20 sps:$4 sm:$0xff]   ;;  %vm4335_vm6 = vcmask 1043456  }
  0x15   : > { %v370_v28 = vshrl.u32 %v13613_v21, 16  ;;  %v372_v29 = vshll.u32 %v13613_v21, 16  ;;  %v377_v30 = vshll.u32 %v13615_v22, 16  ;;  %v381_v32 = vshrl.u32 %v13615_v22, 16  ;;  %v12445_v38 = vld [vmem:[%s18961_s1 + $0x7c] ss:$20 sps:$4 sm:$0xff]  }
  0x16   : > { %530 = vmatpush1.bf16.msra.mxu0 %v12434_v11  ;;  %603 = vmatpush1.bf16.msra.mxu1 %v12435_v12  ;;  %v13626_v33 = vpack.c.bf16 %v314_v31, %v313_v27  ;;  %v385_v40 = vshll.u32 %v13617_v25, 16  ;;  %v12443_v44 = vld [vmem:[%s18961_s1 + $0x78] ss:$20 sps:$4 sm:$0xff]   ;;  %v12449_v49 = vld [vmem:[%s18961_s1 + $0x54] ss:$20 sps:$4 sm:$0xff]   ;;  %v389_v57 = vshrl.u32 %v13617_v25, 16 }
  0x17   : > { %531 = vmatprep.subr.bf16.mxu0 %v12436_v13  ;;  %604 = vmatprep.subr.bf16.mxu1 %v12438_v14  ;;  %v374_v34 = vrot.slane %v372_v29, 1  ;;  %v379_v35 = vrot.slane %v377_v30, 1  ;;  %v1481_v36 = vrot.slane %v370_v28, 1  ;;  %v1482_v37 = vrot.slane %v372_v29, 2  ;;  %v12450_v59 = vld [vmem:[%s18961_s1 + $0xd8] ss:$20 sps:$4 sm:$0xff]  }
  0x18   : > { %v1485_v39 = vrot.slane %v377_v30, 2  ;;  %v1484_v41 = vrot.slane %v381_v32, 1  ;;  %v393_v42 = vshll.u32 %v13626_v33, 16  ;;  %v397_v45 = vshrl.u32 %v13626_v33, 16  ;;  %v12453_v60 = vld [vmem:[%s18961_s1 + $0x2c] ss:$20 sps:$4 sm:$0xff]  }
  0x19   : > { %v375_v43 = vor.u32 %v374_v34, %v370_v28  ;;  %v1483_v46 = vor.u32 %v1482_v37, %v1481_v36  ;;  %v383_v54 = vor.u32 %v381_v32, %v379_v35  ;;  %v387_v55 = vrot.slane %v385_v40, 1  ;;  %v12451_v0 = vld [vmem:[%s18961_s1 + $0x28] ss:$20 sps:$4 sm:$0xff]   ;;  %v12454_v1 = vld [vmem:[%s18961_s1 + $0xb0] ss:$20 sps:$4 sm:$0xff]   ;;  %s12224_s13 = smul.u32 48, %s19486_s28 }
  0x1a   : > { %532 = vmatpush1.bf16.msra.mxu0 %v12440_v15  ;;  %605 = vmatpush1.bf16.msra.mxu1 %v12441_v16  ;;  %v1493_v47 = vrot.slane %v393_v42, 2  ;;  %v1486_v50 = vor.u32 %v1485_v39, %v1484_v41  ;;  %v1492_v52 = vrot.slane %v397_v45, 1  ;;  %v1488_v61 = vrot.slane %v389_v57, 1  ;;  %v12457_v3 = vld [vmem:[%s18961_s1 + $0x4] ss:$20 sps:$4 sm:$0xff]  }
  0x1b   : > { %12062 = vmatprep.subr.bf16.mxu0 %v12442_v26  ;;  %848 = vmatprep.subr.bf16.mxu1 %v12445_v38  ;;  %v380_v51 = vsel %vm368_vm0, %v375_v43, %v379_v35  ;;  %v388_v62 = vsel %vm368_vm0, %v383_v54, %v387_v55  ;;  %v1489_v63 = vrot.slane %v385_v40, 2  ;;  %v395_v5 = vrot.slane %v393_v42, 1  ;;  %v12455_v7 = vld [vmem:[%s18961_s1] ss:$20 sps:$4 sm:$0xff]   ;;  %v12460_v10 = vld [vmem:[%s18961_s1 + $0x84] ss:$20 sps:$4 sm:$0xff]   ;;  %s18949_s16 = scalar_lea.vmem %s18968_s8, %s12224_s13 }
  0x1c   : > { %v13647_v53 = vsel %vm1480_vm2, %v1483_v46, %v1486_v50  ;;  %v13651_v56 = vor.u32 %v1493_v47, %v1492_v52  ;;  %v391_v6 = vor.u32 %v389_v57, %v387_v55  ;;  %v12470_v11 = vld [vmem:[%s18961_s1 + $0x88] ss:$20 sps:$4 sm:$0xff]   ;;  %v12458_v14 = vld [vmem:[%s18961_s1 + $0x80] ss:$20 sps:$4 sm:$0xff]   ;;  %v12461_v17 = vld [vmem:[%s18961_s1 + $0x58] ss:$20 sps:$4 sm:$0xff]  }
  0x1d   : > { %10317 = vmatmul.mubr.msk.bf16.vlgmr.msra.gmra.mxu0 %vm504_vm1, %v380_v51  ;;  %10321 = vmatmul.mubr.msk.bf16.vlgmr.msra.gmra.mxu1 %vm504_vm1, %v380_v51  ;;  %v1490_v4 = vor.u32 %v1489_v63, %v1488_v61  ;;  %v399_v13 = vor.u32 %v397_v45, %v395_v5  ;;  %v12463_v15 = vld [vmem:[%s18961_s1 + $0x5c] ss:$20 sps:$4 sm:$0xff]   ;;  %v12471_v16 = vld [vmem:[%s18961_s1 + $0x60] ss:$20 sps:$4 sm:$0xff]   ;;  %v12472_v23 = vld [vmem:[%s18961_s1 + $0x38] ss:$20 sps:$4 sm:$0xff]  }
  0x1e   : > { %559 = vmatprep.mubr.bf16.mxu0 %v18969_v2  ;;  %632 = vmatprep.mubr.bf16.mxu1 %v18969_v2  ;;  %v396_v12 = vsel %vm368_vm0, %v391_v6, %v395_v5  ;;  %v12466_v18 = vld [vmem:[%s18961_s1 + $0x34] ss:$20 sps:$4 sm:$0xff]   ;;  %v12464_v19 = vld [vmem:[%s18961_s1 + $0x30] ss:$20 sps:$4 sm:$0xff]   ;;  %v12469_v20 = vld [vmem:[%s18961_s1 + $0xc] ss:$20 sps:$4 sm:$0xff]  }
  0x1f   : > { %12063 = vmatpush3.bf16.msra.mxu0 %v12442_v26  ;;  %849 = vmatpush1.bf16.msra.mxu1 %v12443_v44  ;;  %v13681_v8 = vsel %vm1480_vm2, %v1486_v50, %v1490_v4  ;;  %v13685_v9 = vsel %vm1480_vm2, %v1490_v4, %v13651_v56  ;;  %v12467_v24 = vld [vmem:[%s18961_s1 + $0x8] ss:$20 sps:$4 sm:$0xff]   ;;  %v12473_v26 = vld [vmem:[%s18961_s1 + $0x10] ss:$20 sps:$4 sm:$0xff]   ;;  %v12474_v28 = vld [vmem:[%s18961_s1 + $0x1b8] ss:$20 sps:$4 sm:$0xff]  }
  0x20   : > { %12064 = vmatprep.subr.bf16.mxu0 %v12446_v48  ;;  %850 = vmatprep.subr.bf16.mxu1 %v12449_v49  ;;  %v12476_v27 = vld [vmem:[%s18961_s1 + $0x1bc] ss:$20 sps:$4 sm:$0xff]   ;;  %v12479_v29 = vld [vmem:[%s18961_s1 + $0x1c4] ss:$20 sps:$4 sm:$0xff]   ;;  %v12482_v30 = vld [vmem:[%s18961_s1 + $0x194] ss:$20 sps:$4 sm:$0xff]  }
  0x21   : > { %v12480_v31 = vld [vmem:[%s18961_s1 + $0x190] ss:$20 sps:$4 sm:$0xff]   ;;  %v12488_v32 = vld [vmem:[%s18961_s1 + $0x16c] ss:$20 sps:$4 sm:$0xff]   ;;  %v12486_v34 = vld [vmem:[%s18961_s1 + $0x168] ss:$20 sps:$4 sm:$0xff]  }
  0x22   : > { %v12494_v35 = vld [vmem:[%s18961_s1 + $0x144] ss:$20 sps:$4 sm:$0xff]   ;;  %v12492_v36 = vld [vmem:[%s18961_s1 + $0x140] ss:$20 sps:$4 sm:$0xff]   ;;  %v12498_v37 = vld [vmem:[%s18961_s1 + $0x1c8] ss:$20 sps:$4 sm:$0xff]  }
  0x23   : > { %12065 = vmatpush3.bf16.msra.mxu0 %v12446_v48  ;;  %851 = vmatpush1.bf16.msra.mxu1 %v12447_v58  ;;  %v12477_v38 = vld [vmem:[%s18961_s1 + $0x1c0] ss:$20 sps:$4 sm:$0xff]   ;;  %v12485_v39 = vld [vmem:[%s18961_s1 + $0x19c] ss:$20 sps:$4 sm:$0xff]   ;;  %v12483_v40 = vld [vmem:[%s18961_s1 + $0x198] ss:$20 sps:$4 sm:$0xff]  }
  0x24   : > { %12066 = vmatprep.subr.bf16.mxu0 %v12450_v59  ;;  %852 = vmatprep.subr.bf16.mxu1 %v12453_v60  ;;  %v12491_v41 = vld [vmem:[%s18961_s1 + $0x174] ss:$20 sps:$4 sm:$0xff]   ;;  %v12489_v42 = vld [vmem:[%s18961_s1 + $0x170] ss:$20 sps:$4 sm:$0xff]   ;;  %v12497_v43 = vld [vmem:[%s18961_s1 + $0x14c] ss:$20 sps:$4 sm:$0xff]  }
  0x25   : > { %10318 = vmatmul.mubr.msk.bf16.gmra.mxu0 %vm504_vm1, %v388_v62  ;;  %10322 = vmatmul.mubr.msk.bf16.gmra.mxu1 %vm504_vm1, %v388_v62  ;;  %v12495_v44 = vld [vmem:[%s18961_s1 + $0x148] ss:$20 sps:$4 sm:$0xff]   ;;  %v1081_v46 = vrot.slane %v13613_v21, 1  ;;  %v1082_v47 = vrot.slane %v13615_v22, 1  ;;  %v12499_v48 = vld [vmem:[%s18961_s1 + $0x258] ss:$20 sps:$4 sm:$0xff]  }
  0x26   : > { %569 = vmatprep.mubr.bf16.mxu0 %v18969_v2  ;;  %642 = vmatprep.mubr.bf16.mxu1 %v18969_v2  ;;  %v12501_v45 = vld [vmem:[%s18961_s1 + $0x25c] ss:$20 sps:$4 sm:$0xff]   ;;  %v12502_v50 = vld [vmem:[%s18961_s1 + $0x1a0] ss:$20 sps:$4 sm:$0xff]   ;;  %v1084_v54 = vrot.slane %v13617_v25, 1  ;;  %v1086_v63 = vrot.slane %v13626_v33, 1 }
  0x27   : > { %12067 = vmatpush3.bf16.msra.mxu0 %v12450_v59  ;;  %853 = vmatpush1.bf16.msra.mxu1 %v12451_v0  ;;  %v1083_v49 = vsel %vm1080_vm3, %v1081_v46, %v1082_v47  ;;  %v12503_v52 = vld [vmem:[%s18961_s1 + $0x230] ss:$20 sps:$4 sm:$0xff]   ;;  %v12506_v55 = vld [vmem:[%s18961_s1 + $0x178] ss:$20 sps:$4 sm:$0xff]   ;;  %v12507_v58 = vld [vmem:[%s18961_s1 + $0x208] ss:$20 sps:$4 sm:$0xff]  }
  0x28   : > { %12068 = vmatprep.subr.bf16.mxu0 %v12454_v1  ;;  %854 = vmatprep.subr.bf16.mxu1 %v12457_v3  ;;  %v12509_v57 = vld [vmem:[%s18961_s1 + $0x20c] ss:$20 sps:$4 sm:$0xff]   ;;  %v1085_v59 = vsel %vm1080_vm3, %v1082_v47, %v1084_v54  ;;  %v12510_v60 = vld [vmem:[%s18961_s1 + $0x150] ss:$20 sps:$4 sm:$0xff]   ;;  %v1087_v3 = vsel %vm1080_vm3, %v1084_v54, %v1086_v63  ;;  %vm2490_vm7 = vcmask 1039360   ;;  %vm4321_vm8 = vcmask 711680  }
  0x29   : > { %v12513_v61 = vld [vmem:[%s18961_s1 + $0x1e4] ss:$20 sps:$4 sm:$0xff]   ;;  %v12514_v4 = vld [vmem:[%s18961_s1 + $0x260] ss:$20 sps:$4 sm:$0xff]   ;;  %v12519_v5 = vld [vmem:[%s18961_s1 + $0x23c] ss:$20 sps:$4 sm:$0xff]  }
  0x2a   : > { %v12516_v0 = vld [vmem:[%s18961_s1 + $0x264] ss:$20 sps:$4 sm:$0xff]   ;;  %v12527_v6 = vld [vmem:[%s18961_s1 + $0x240] ss:$20 sps:$4 sm:$0xff]   ;;  %vm9087_vm9 = vcmask 1041408   ;;  %vm9083_vm10 = vcmask 433152  }
  0x2b   : > { %12069 = vmatpush3.bf16.msra.mxu0 %v12454_v1  ;;  %855 = vmatpush1.bf16.msra.mxu1 %v12455_v7  ;;  %v12526_v1 = vld [vmem:[%s18961_s1 + $0x268] ss:$20 sps:$4 sm:$0xff]   ;;  %v12517_v7 = vld [vmem:[%s18961_s1 + $0x238] ss:$20 sps:$4 sm:$0xff]   ;;  %vm13503_vm11 = vmmov 0   ;;  %vm9938_vm12 = vcmask 1047552  }
  0x2c   : > { %921 = vmatprep.subr.bf16.mxu0 %v12460_v10  ;;  %12078 = vmatprep.subr.bf16.mxu1 %v12470_v11  ;;  %v12522_v10 = vld [vmem:[%s18961_s1 + $0x214] ss:$20 sps:$4 sm:$0xff]   ;;  %vm9934_vm13 = vcmask 384000   ;;  %vm10204_vm14 = vcmask 195584   ;;  %vm10208_vm15 = vcmask 193536  }
  0x2d   : > { %10319 = vmatmul.mubr.msk.bf16.gmra.mxu0 %vm504_vm1, %v396_v12  ;;  %10323 = vmatmul.mubr.msk.bf16.gmra.mxu1 %vm504_vm1, %v396_v12 }
  0x2e   : > { %579 = vmatprep.mubr.bf16.mxu0 %v18969_v2  ;;  %652 = vmatprep.mubr.bf16.mxu1 %v18969_v2 }
  0x35   : > { %10320 = vmatmul.mubr.msk.bf16.gmra.mxu0 %vm504_vm1, %v399_v13  ;;  %10324 = vmatmul.mubr.msk.bf16.gmra.mxu1 %vm504_vm1, %v399_v13 }
  0x36   : > { %12070 = vmatprep.mubr.msk.bf16.mxu0 %vm504_vm1, %v380_v51  ;;  %872 = vmatprep.mubr.bf16.mxu1 %v18969_v2  ;;  %v12505_v51 = vld [vmem:[%s18961_s1 + $0x234] ss:$20 sps:$4 sm:$0xff]  }
  0x3d   : > { %12071 = vmatmul.mubr.msk.bf16.vlgmr.msra.gmra.mxu0 %vm504_vm1, %v388_v62  ;;  %10349 = vmatmul.mubr.msk.bf16.vlgmr.msra.gmra.mxu1 %vm504_vm1, %v13613_v21  ;;  %v12511_v62 = vld [vmem:[%s18961_s1 + $0x1e0] ss:$20 sps:$4 sm:$0xff]  }
  0x3e   : > { %922 = vmatpush1.bf16.msra.mxu0 %v12458_v14  ;;  %12074 = vmatprep.mubr.msk.bf16.mxu0 %vm504_vm1, %v396_v12  ;;  %v12525_v12 = vld [vmem:[%s18961_s1 + $0x1ec] ss:$20 sps:$4 sm:$0xff]   ;;  %v12523_v14 = vld [vmem:[%s18961_s1 + $0x1e8] ss:$20 sps:$4 sm:$0xff]  }
  0x3f   : > { %923 = vmatprep.subr.bf16.mxu0 %v12463_v15  ;;  %882 = vmatprep.mubr.bf16.mxu1 %v18969_v2  ;;  %v12529_v15 = vld [vmem:[%s18961_s1 + $0x1f0] ss:$20 sps:$4 sm:$0xff]  }
  0x40   : > { %12079 = vmatpush3.bf16.msra.mxu1 %v12470_v11  ;;  %v12520_v11 = vld [vmem:[%s18961_s1 + $0x210] ss:$20 sps:$4 sm:$0xff]  }
  0x41   : > { %12080 = vmatprep.subr.bf16.mxu1 %v12471_v16 }
  0x42   : > { %924 = vmatpush1.bf16.msra.mxu0 %v12461_v17  ;;  %v12530_v17 = vld [vmem:[%s18961_s1 + $0x2f8] ss:$20 sps:$4 sm:$0xff]  }
  0x43   : > { %925 = vmatprep.subr.bf16.mxu0 %v12466_v18  ;;  %v12535_v18 = vld [vmem:[%s18961_s1 + $0x304] ss:$20 sps:$4 sm:$0xff]  }
  0x44   : > { %12081 = vmatpush3.bf16.msra.mxu1 %v12471_v16  ;;  %v12532_v16 = vld [vmem:[%s18961_s1 + $0x2fc] ss:$20 sps:$4 sm:$0xff]  }
  0x45   : > { %12075 = vmatmul.mubr.msk.bf16.gmra.mxu0 %vm504_vm1, %v399_v13  ;;  %10350 = vmatmul.mubr.msk.bf16.gmra.mxu1 %vm504_vm1, %v13615_v22  ;;  %v12528_v13 = vld [vmem:[%s18961_s1 + $0x218] ss:$20 sps:$4 sm:$0xff]  }
  0x46   : > { %926 = vmatpush1.bf16.msra.mxu0 %v12464_v19  ;;  %892 = vmatprep.mubr.bf16.mxu1 %v18969_v2  ;;  %v12538_v19 = vld [vmem:[%s18961_s1 + $0x2d4] ss:$20 sps:$4 sm:$0xff]  }
  0x47   : > { %927 = vmatprep.subr.bf16.mxu0 %v12469_v20  ;;  %945 = vmatprep.mubr.bf16.mxu0 %v18969_v2  ;;  %v12536_v20 = vld [vmem:[%s18961_s1 + $0x2d0] ss:$20 sps:$4 sm:$0xff]  }
  0x48   : > { %12082 = vmatprep.subr.bf16.mxu1 %v12472_v23 }
  0x49   : > { %12083 = vmatpush3.bf16.msra.mxu1 %v12472_v23  ;;  %v12544_v23 = vld [vmem:[%s18961_s1 + $0x2ac] ss:$20 sps:$4 sm:$0xff]  }
  0x4a   : > { %928 = vmatpush1.bf16.msra.mxu0 %v12467_v24  ;;  %12084 = vmatprep.subr.bf16.mxu1 %v12473_v26  ;;  %v12542_v24 = vld [vmem:[%s18961_s1 + $0x2a8] ss:$20 sps:$4 sm:$0xff]  }
  0x4b   : > { %1212 = vmatprep.subr.bf16.mxu0 %v12476_v27  ;;  %v12548_v27 = vld [vmem:[%s18961_s1 + $0x280] ss:$20 sps:$4 sm:$0xff]  }
  0x4d   : > { %10351 = vmatmul.mubr.msk.bf16.gmra.mxu1 %vm504_vm1, %v13617_v25  ;;  %10353 = vmatmul.mubr.msk.bf16.vlgmr.msra.gmra.mxu0 %vm504_vm1, %v13613_v21 }
  0x4e   : > { %902 = vmatprep.mubr.bf16.mxu1 %v18969_v2  ;;  %955 = vmatprep.mubr.bf16.mxu0 %v18969_v2 }
  0x4f   : > { %12085 = vmatpush3.bf16.msra.mxu1 %v12473_v26  ;;  %1213 = vmatpush1.bf16.msra.mxu0 %v12474_v28  ;;  %v12550_v26 = vld [vmem:[%s18961_s1 + $0x284] ss:$20 sps:$4 sm:$0xff]   ;;  %v12554_v28 = vld [vmem:[%s18961_s1 + $0x308] ss:$20 sps:$4 sm:$0xff]  }
  0x50   : > { %1285 = vmatprep.subr.bf16.mxu1 %v12479_v29  ;;  %1214 = vmatprep.subr.bf16.mxu0 %v12482_v30  ;;  %v12533_v29 = vld [vmem:[%s18961_s1 + $0x300] ss:$20 sps:$4 sm:$0xff]   ;;  %v12541_v30 = vld [vmem:[%s18961_s1 + $0x2dc] ss:$20 sps:$4 sm:$0xff]  }
  0x53   : > { %1215 = vmatpush1.bf16.msra.mxu0 %v12480_v31  ;;  %v12539_v31 = vld [vmem:[%s18961_s1 + $0x2d8] ss:$20 sps:$4 sm:$0xff]  }
  0x54   : > { %1216 = vmatprep.subr.bf16.mxu0 %v12488_v32  ;;  %v12545_v32 = vld [vmem:[%s18961_s1 + $0x2b0] ss:$20 sps:$4 sm:$0xff]  }
  0x55   : > { %10352 = vmatmul.mubr.msk.bf16.gmra.mxu1 %vm504_vm1, %v13626_v33  ;;  %10354 = vmatmul.mubr.msk.bf16.gmra.mxu0 %vm504_vm1, %v13615_v22 }
  0x56   : > { %965 = vmatprep.mubr.bf16.mxu0 %v18969_v2  ;;  %12086 = vmatprep.mubr.msk.bf16.mxu1 %vm504_vm1, %v13613_v21 }
  0x57   : > { %1217 = vmatpush1.bf16.msra.mxu0 %v12486_v34  ;;  %v12553_v34 = vld [vmem:[%s18961_s1 + $0x28c] ss:$20 sps:$4 sm:$0xff]  }
  0x58   : > { %1218 = vmatprep.subr.bf16.mxu0 %v12494_v35  ;;  %v1890_v35 = vrot.slane %v13615_v22, 2 }
  0x5b   : > { %1219 = vmatpush1.bf16.msra.mxu0 %v12492_v36 }
  0x5c   : > { %12094 = vmatprep.subr.bf16.mxu0 %v12498_v37 }
  0x5d   : > { %10355 = vmatmul.mubr.msk.bf16.gmra.mxu0 %vm504_vm1, %v13617_v25  ;;  %12087 = vmatmul.mubr.msk.bf16.vlgmr.msra.gmra.mxu1 %vm504_vm1, %v13615_v22  ;;  %v12556_v22 = vld [vmem:[%s18961_s1 + $0x2b8] ss:$20 sps:$4 sm:$0xff]  }
  0x5e   : > { %1286 = vmatpush1.bf16.msra.mxu1 %v12477_v38  ;;  %975 = vmatprep.mubr.bf16.mxu0 %v18969_v2  ;;  %v12557_v38 = vld [vmem:[%s18961_s1 + $0x290] ss:$20 sps:$4 sm:$0xff]  }
  0x5f   : > { %1287 = vmatprep.subr.bf16.mxu1 %v12485_v39  ;;  %12090 = vmatprep.mubr.msk.bf16.mxu1 %vm504_vm1, %v13617_v25 }
  0x62   : > { %1288 = vmatpush1.bf16.msra.mxu1 %v12483_v40 }
  0x63   : > { %1289 = vmatprep.subr.bf16.mxu1 %v12491_v41 }
  0x65   : > { %10356 = vmatmul.mubr.msk.bf16.gmra.mxu0 %vm504_vm1, %v13626_v33  ;;  %12091 = vmatmul.mubr.msk.bf16.gmra.mxu1 %vm504_vm1, %v13626_v33 }
  0x66   : > { %1290 = vmatpush1.bf16.msra.mxu1 %v12489_v42  ;;  %1236 = vmatprep.mubr.bf16.mxu0 %v18969_v2 }
  0x67   : > { %1291 = vmatprep.subr.bf16.mxu1 %v12497_v43  ;;  %1309 = vmatprep.mubr.bf16.mxu1 %v18969_v2 }
  0x6a   : > { %1292 = vmatpush1.bf16.msra.mxu1 %v12495_v44 }
  0x6b   : > { %1620 = vmatprep.subr.bf16.mxu1 %v12501_v45 }
  0x6d   : > { %10405 = vmatmul.mubr.msk.bf16.vlgmr.msra.gmra.mxu0 %vm504_vm1, %v1083_v49  ;;  %10409 = vmatmul.mubr.msk.bf16.vlgmr.msra.gmra.mxu1 %vm504_vm1, %v1083_v49 }
  0x6e   : > { %1246 = vmatprep.mubr.bf16.mxu0 %v18969_v2  ;;  %1319 = vmatprep.mubr.bf16.mxu1 %v18969_v2 }
  0x6f   : > { %12095 = vmatpush3.bf16.msra.mxu0 %v12498_v37  ;;  %1621 = vmatpush1.bf16.msra.mxu1 %v12499_v48  ;;  %v12555_v37 = vld [vmem:[%s18961_s1 + $0x2e0] ss:$20 sps:$4 sm:$0xff]  }
  0x70   : > { %12096 = vmatprep.subr.bf16.mxu0 %v12502_v50  ;;  %1622 = vmatprep.subr.bf16.mxu1 %v12505_v51 }
  0x73   : > { %12097 = vmatpush3.bf16.msra.mxu0 %v12502_v50  ;;  %1623 = vmatpush1.bf16.msra.mxu1 %v12503_v52 }
  0x74   : > { %12098 = vmatprep.subr.bf16.mxu0 %v12506_v55  ;;  %1624 = vmatprep.subr.bf16.mxu1 %v12509_v57 }
  0x75   : > { %10406 = vmatmul.mubr.msk.bf16.gmra.mxu0 %vm504_vm1, %v1085_v59  ;;  %10410 = vmatmul.mubr.msk.bf16.gmra.mxu1 %vm504_vm1, %v1085_v59 }
  0x76   : > { %1256 = vmatprep.mubr.bf16.mxu0 %v18969_v2  ;;  %1329 = vmatprep.mubr.bf16.mxu1 %v18969_v2 }
  0x77   : > { %12099 = vmatpush3.bf16.msra.mxu0 %v12506_v55  ;;  %1625 = vmatpush1.bf16.msra.mxu1 %v12507_v58 }
  0x78   : > { %12100 = vmatprep.subr.bf16.mxu0 %v12510_v60  ;;  %1626 = vmatprep.subr.bf16.mxu1 %v12513_v61 }
  0x7b   : > { %12101 = vmatpush3.bf16.msra.mxu0 %v12510_v60  ;;  %1627 = vmatpush1.bf16.msra.mxu1 %v12511_v62 }
  0x7c   : > { %1693 = vmatprep.subr.bf16.mxu0 %v12516_v0  ;;  %12110 = vmatprep.subr.bf16.mxu1 %v12526_v1 }
  0x7d   : > { %10407 = vmatmul.mubr.msk.bf16.gmra.mxu0 %vm504_vm1, %v1087_v3  ;;  %10411 = vmatmul.mubr.msk.bf16.gmra.mxu1 %vm504_vm1, %v1087_v3 }
  0x7e   : > { %1266 = vmatprep.mubr.bf16.mxu0 %v18969_v2  ;;  %1339 = vmatprep.mubr.bf16.mxu1 %v18969_v2 }
  0x85   : > { %10408 = vmatmul.mubr.msk.bf16.gmra.mxu0 %vm504_vm1, %v1086_v63  ;;  %10412 = vmatmul.mubr.msk.bf16.gmra.mxu1 %vm504_vm1, %v1086_v63 }
  0x86   : > { %12102 = vmatprep.mubr.msk.bf16.mxu0 %vm504_vm1, %v1083_v49  ;;  %1644 = vmatprep.mubr.bf16.mxu1 %v18969_v2 }
  0x8d   : > { %12103 = vmatmul.mubr.msk.bf16.vlgmr.msra.gmra.mxu0 %vm504_vm1, %v1085_v59  ;;  %10461 = vmatmul.mubr.msk.bf16.vlgmr.msra.gmra.mxu1 %vm504_vm1, %v13647_v53 }
  0x8e   : > { %1694 = vmatpush1.bf16.msra.mxu0 %v12514_v4  ;;  %12106 = vmatprep.mubr.msk.bf16.mxu0 %vm504_vm1, %v1087_v3 }
  0x8f   : > { %1695 = vmatprep.subr.bf16.mxu0 %v12519_v5  ;;  %1654 = vmatprep.mubr.bf16.mxu1 %v18969_v2 }
  0x90   : > { %12111 = vmatpush3.bf16.msra.mxu1 %v12526_v1 }
  0x91   : > { %12112 = vmatprep.subr.bf16.mxu1 %v12527_v6 }
  0x92   : > { %1696 = vmatpush1.bf16.msra.mxu0 %v12517_v7 }
  0x93   : > { %1697 = vmatprep.subr.bf16.mxu0 %v12522_v10 }
  0x94   : > { %12113 = vmatpush3.bf16.msra.mxu1 %v12527_v6 }
  0x95   : > { %12107 = vmatmul.mubr.msk.bf16.gmra.mxu0 %vm504_vm1, %v1086_v63  ;;  %10462 = vmatmul.mubr.msk.bf16.gmra.mxu1 %vm504_vm1, %v13681_v8 }
  0x96   : > { %1698 = vmatpush1.bf16.msra.mxu0 %v12520_v11  ;;  %1664 = vmatprep.mubr.bf16.mxu1 %v18969_v2 }
  0x97   : > { %1699 = vmatprep.subr.bf16.mxu0 %v12525_v12  ;;  %1717 = vmatprep.mubr.bf16.mxu0 %v18969_v2 }
  0x98   : > { %12114 = vmatprep.subr.bf16.mxu1 %v12528_v13 }
  0x99   : > { %12115 = vmatpush3.bf16.msra.mxu1 %v12528_v13 }
  0x9a   : > { %1700 = vmatpush1.bf16.msra.mxu0 %v12523_v14  ;;  %12116 = vmatprep.subr.bf16.mxu1 %v12529_v15 }
  0x9b   : > { %2020 = vmatprep.subr.bf16.mxu0 %v12532_v16 }
  0x9d   : > { %10463 = vmatmul.mubr.msk.bf16.gmra.mxu1 %vm504_vm1, %v13685_v9  ;;  %10465 = vmatmul.mubr.msk.bf16.vlgmr.msra.gmra.mxu0 %vm504_vm1, %v13647_v53 }
  0x9e   : > { %1674 = vmatprep.mubr.bf16.mxu1 %v18969_v2  ;;  %1727 = vmatprep.mubr.bf16.mxu0 %v18969_v2 }
  0x9f   : > { %12117 = vmatpush3.bf16.msra.mxu1 %v12529_v15  ;;  %2021 = vmatpush1.bf16.msra.mxu0 %v12530_v17 }
  0xa0   : > { %2093 = vmatprep.subr.bf16.mxu1 %v12535_v18  ;;  %2022 = vmatprep.subr.bf16.mxu0 %v12538_v19 }
  0xa3   : > { %2023 = vmatpush1.bf16.msra.mxu0 %v12536_v20 }
  0xa4   : > { %2024 = vmatprep.subr.bf16.mxu0 %v12544_v23 }
  0xa5   : > { %10464 = vmatmul.mubr.msk.bf16.gmra.mxu1 %vm504_vm1, %v13651_v56  ;;  %10466 = vmatmul.mubr.msk.bf16.gmra.mxu0 %vm504_vm1, %v13681_v8 }
  0xa6   : > { %1737 = vmatprep.mubr.bf16.mxu0 %v18969_v2  ;;  %12118 = vmatprep.mubr.msk.bf16.mxu1 %vm504_vm1, %v13647_v53  ;;  %v12547_v53 = vld [vmem:[%s18961_s1 + $0x2b4] ss:$20 sps:$4 sm:$0xff]  }
  0xa7   : > { %2025 = vmatpush1.bf16.msra.mxu0 %v12542_v24 }
  0xa8   : > { %2026 = vmatprep.subr.bf16.mxu0 %v12550_v26 }
  0xab   : > { %2027 = vmatpush1.bf16.msra.mxu0 %v12548_v27 }
  0xac   : > { %12126 = vmatprep.subr.bf16.mxu0 %v12554_v28 }
  0xad   : > { %10467 = vmatmul.mubr.msk.bf16.gmra.mxu0 %vm504_vm1, %v13685_v9  ;;  %12119 = vmatmul.mubr.msk.bf16.vlgmr.msra.gmra.mxu1 %vm504_vm1, %v13681_v8  ;;  %v12551_v8 = vld [vmem:[%s18961_s1 + $0x288] ss:$20 sps:$4 sm:$0xff]  }
  0xae   : > { %2094 = vmatpush1.bf16.msra.mxu1 %v12533_v29  ;;  %1747 = vmatprep.mubr.bf16.mxu0 %v18969_v2 }
  0xaf   : > { %2095 = vmatprep.subr.bf16.mxu1 %v12541_v30  ;;  %12122 = vmatprep.mubr.msk.bf16.mxu1 %vm504_vm1, %v13685_v9  ;;  %v1889_v9 = vrot.slane %v13613_v21, 2  ;;  %v1892_v21 = vrot.slane %v13617_v25, 2  ;;  %v1894_v25 = vrot.slane %v13626_v33, 2 }
  0xb1   : > { %v1891_v36 = vsel %vm1888_vm4, %v1889_v9, %v1890_v35  ;;  %v1895_v39 = vsel %vm1888_vm4, %v1892_v21, %v1894_v25 }
  0xb2   : > { %2096 = vmatpush1.bf16.msra.mxu1 %v12539_v31 }
  0xb3   : > { %2097 = vmatprep.subr.bf16.mxu1 %v12547_v53 }
  0xb5   : > { %10468 = vmatmul.mubr.msk.bf16.gmra.mxu0 %vm504_vm1, %v13651_v56  ;;  %12123 = vmatmul.mubr.msk.bf16.gmra.mxu1 %vm504_vm1, %v13651_v56  ;;  %v1893_v56 = vsel %vm1888_vm4, %v1890_v35, %v1892_v21 }
  0xb6   : > { %2098 = vmatpush1.bf16.msra.mxu1 %v12545_v32  ;;  %2044 = vmatprep.mubr.bf16.mxu0 %v18969_v2 }
  0xb7   : > { %2099 = vmatprep.subr.bf16.mxu1 %v12553_v34  ;;  %2117 = vmatprep.mubr.bf16.mxu1 %v18969_v2 }
  0xba   : > { %2100 = vmatpush1.bf16.msra.mxu1 %v12551_v8 }
  0xbd   : > { %10517 = vmatmul.mubr.msk.bf16.vlgmr.msra.gmra.mxu0 %vm504_vm1, %v1891_v36  ;;  %10521 = vmatmul.mubr.msk.bf16.vlgmr.msra.gmra.mxu1 %vm504_vm1, %v1891_v36 }
  0xbe   : > { %2054 = vmatprep.mubr.bf16.mxu0 %v18969_v2  ;;  %2127 = vmatprep.mubr.bf16.mxu1 %v18969_v2 }
  0xbf   : > { %12127 = vmatpush3.bf16.msra.mxu0 %v12554_v28 }
  0xc0   : > { %12128 = vmatprep.subr.bf16.mxu0 %v12555_v37 }
  0xc3   : > { %12129 = vmatpush3.bf16.msra.mxu0 %v12555_v37 }
  0xc4   : > { %12130 = vmatprep.subr.bf16.mxu0 %v12556_v22 }
  0xc5   : > { %10518 = vmatmul.mubr.msk.bf16.gmra.mxu0 %vm504_vm1, %v1893_v56  ;;  %10522 = vmatmul.mubr.msk.bf16.gmra.mxu1 %vm504_vm1, %v1893_v56 }
  0xc6   : > { %2064 = vmatprep.mubr.bf16.mxu0 %v18969_v2  ;;  %2137 = vmatprep.mubr.bf16.mxu1 %v18969_v2 }
  0xc7   : > { %12131 = vmatpush3.bf16.msra.mxu0 %v12556_v22 }
  0xc8   : > { %12132 = vmatprep.subr.bf16.mxu0 %v12557_v38 }
  0xcb   : > { %12133 = vmatpush3.bf16.msra.mxu0 %v12557_v38 }
  0xcd   : > { %10519 = vmatmul.mubr.msk.bf16.gmra.mxu0 %vm504_vm1, %v1895_v39  ;;  %10523 = vmatmul.mubr.msk.bf16.gmra.mxu1 %vm504_vm1, %v1895_v39 }
  0xce   : > { %2074 = vmatprep.mubr.bf16.mxu0 %v18969_v2  ;;  %2147 = vmatprep.mubr.bf16.mxu1 %v18969_v2 }
  0xd5   : > { %10520 = vmatmul.mubr.msk.bf16.gmra.mxu0 %vm504_vm1, %v1894_v25  ;;  %10524 = vmatmul.mubr.msk.bf16.gmra.mxu1 %vm504_vm1, %v1894_v25 }
  0xd6   : > { %12134 = vmatprep.mubr.msk.bf16.mxu0 %vm504_vm1, %v1891_v36 }
  0xdd   : > { %v551_v33 = vpop.f32.mrf.mxu0  ;;  %v624_v40 = vpop.f32.mrf.mxu1  ;;  %12135 = vmatmul.mubr.msk.bf16.vlgmr.msra.gmra.mxu0 %vm504_vm1, %v1893_v56 }
  0xde   : > { %12138 = vmatprep.mubr.msk.bf16.mxu0 %vm504_vm1, %v1895_v39 }
  0xdf   : > { %v553_v41 = vpop.f32.mrf.mxu0  ;;  %v626_v42 = vpop.f32.mrf.mxu1 }
  0xe1   : > { %v555_v43 = vpop.f32.mrf.mxu0  ;;  %v628_v44 = vpop.f32.mrf.mxu1 }
  0xe3   : > { %v14031_v45 = vpop.f32.mrf.mxu0  ;;  %v14033_v46 = vpop.f32.mrf.mxu1 }
  0xe5   : > { %v561_v47 = vpop.f32.mrf.mxu0  ;;  %v14035_v48 = vpop.f32.mrf.mxu1  ;;  %12139 = vmatmul.mubr.msk.bf16.gmra.mxu0 %vm504_vm1, %v1894_v25 }
  0xe7   : > { %v563_v49 = vpop.f32.mrf.mxu0  ;;  %v14038_v50 = vpop.f32.mrf.mxu1 }
  0xe9   : > { %v565_v51 = vpop.f32.mrf.mxu0  ;;  %v14040_v52 = vpop.f32.mrf.mxu1 }
  0xeb   : > { %v14042_v54 = vpop.f32.mrf.mxu0  ;;  %v14044_v55 = vpop.f32.mrf.mxu1 }
  0xed   : > { %v571_v57 = vpop.f32.mrf.mxu0  ;;  %v14046_v58 = vpop.f32.mrf.mxu1 }
  0xef   : > { %v573_v59 = vpop.f32.mrf.mxu0  ;;  %v14048_v60 = vpop.f32.mrf.mxu1 }
  0xf1   : > { %v575_v61 = vpop.f32.mrf.mxu0  ;;  %v14050_v62 = vpop.f32.mrf.mxu1 }
  0xf3   : > { %v14052_v63 = vpop.f32.mrf.mxu0  ;;  %v14054_v0 = vpop.f32.mrf.mxu1 }
  0xf5   : > { %v581_v1 = vpop.f32.mrf.mxu0  ;;  %v14056_v3 = vpop.f32.mrf.mxu1 }
  0xf7   : > { %v583_v4 = vpop.f32.mrf.mxu0  ;;  %v14058_v5 = vpop.f32.mrf.mxu1 }
  0xf9   : > { %v585_v6 = vpop.f32.mrf.mxu0  ;;  %v14060_v7 = vpop.f32.mrf.mxu1 }
  0xfb   : > { %v14062_v10 = vpop.f32.mrf.mxu0  ;;  %v14064_v11 = vpop.f32.mrf.mxu1 }
  0xfc   : > { %19099 = vst [vmem:[#allocation2_spill] sm:$0xff] %v14064_v11 }
  0xfd   : > { %v12072_v12 = vpop.f32.mrf.mxu0  ;;  %v874_v13 = vpop.f32.mrf.mxu1 }
  0xfe   : > { %v14066_v14 = vadd.f32 %v874_v13, %v551_v33 }
  0xff   : > { %v697_v15 = vpop.f32.mrf.mxu0  ;;  %v876_v16 = vpop.f32.mrf.mxu1 }
 0x100   : > { %v14068_v17 = vadd.f32 %v876_v16, %v553_v41 }
 0x101   : > { %v12073_v18 = vpop.f32.mrf.mxu0  ;;  %v878_v19 = vpop.f32.mrf.mxu1 }
 0x102   : > { %v14070_v20 = vadd.f32 %v878_v19, %v555_v43 }
 0x103   : > { %v14072_v23 = vpop.f32.mrf.mxu0  ;;  %v14074_v24 = vpop.f32.mrf.mxu1 }
 0x104   : > { %19100 = vst [vmem:[#allocation3_spill] sm:$0xff] %v14072_v23 }
 0x105   : > { %v12076_v26 = vpop.f32.mrf.mxu0  ;;  %v884_v27 = vpop.f32.mrf.mxu1 }
 0x106   : > { %v14076_v28 = vadd.f32 %v884_v27, %v561_v47 }
 0x107   : > { %v713_v29 = vpop.f32.mrf.mxu0  ;;  %v886_v30 = vpop.f32.mrf.mxu1 }
 0x108   : > { %v14078_v31 = vadd.f32 %v886_v30, %v563_v49 }
 0x109   : > { %v12077_v53 = vpop.f32.mrf.mxu0  ;;  %v888_v32 = vpop.f32.mrf.mxu1 }
 0x10a   : > { %v14080_v34 = vadd.f32 %v888_v32, %v565_v51 }
 0x10b   : > { %v14082_v8 = vpop.f32.mrf.mxu0  ;;  %v14084_v9 = vpop.f32.mrf.mxu1 }
 0x10c   : > { %19101 = vst [vmem:[#allocation4_spill] sm:$0xff] %v14082_v8  ;;  %v12588_v8 = vld [vmem:[%s18963_s3 + $0x924] ss:$20 sps:$4 sm:$0xff]  }
 0x10d   : > { %v894_v35 = vpop.f32.mrf.mxu1  ;;  %v947_v36 = vpop.f32.mrf.mxu0 }
 0x10e   : > { %v14086_v37 = vadd.f32 %v894_v35, %v571_v57  ;;  %v948_v21 = vadd.f32 %v947_v36, %v624_v40 }
 0x10f   : > { %v896_v22 = vpop.f32.mrf.mxu1  ;;  %v949_v56 = vpop.f32.mrf.mxu0 }
 0x110   : > { %v14088_v38 = vadd.f32 %v896_v22, %v573_v59  ;;  %v950_v25 = vadd.f32 %v949_v56, %v626_v42 }
 0x111   : > { %v898_v39 = vpop.f32.mrf.mxu1  ;;  %v951_v33 = vpop.f32.mrf.mxu0 }
 0x112   : > { %v14090_v41 = vadd.f32 %v898_v39, %v575_v61  ;;  %v952_v43 = vadd.f32 %v951_v33, %v628_v44 }
 0x113   : > { %v14092_v47 = vpop.f32.mrf.mxu1  ;;  %v14094_v49 = vpop.f32.mrf.mxu0 }
 0x115   : > { %v904_v51 = vpop.f32.mrf.mxu1  ;;  %v957_v13 = vpop.f32.mrf.mxu0 }
 0x116   : > { %v14096_v16 = vadd.f32 %v904_v51, %v581_v1  ;;  %v958_v40 = vadd.f32 %v957_v13, %v14035_v48 }
 0x117   : > { %v906_v57 = vpop.f32.mrf.mxu1  ;;  %v959_v19 = vpop.f32.mrf.mxu0 }
 0x118   : > { %v14099_v59 = vadd.f32 %v906_v57, %v583_v4  ;;  %v960_v42 = vadd.f32 %v959_v19, %v14038_v50 }
 0x119   : > { %v908_v27 = vpop.f32.mrf.mxu1  ;;  %v961_v61 = vpop.f32.mrf.mxu0 }
 0x11a   : > { %v14102_v30 = vadd.f32 %v908_v27, %v585_v6  ;;  %v962_v44 = vadd.f32 %v961_v61, %v14040_v52 }
 0x11b   : > { %v14105_v32 = vpop.f32.mrf.mxu1  ;;  %v14107_v35 = vpop.f32.mrf.mxu0 }
 0x11d   : > { %v967_v1 = vpop.f32.mrf.mxu0  ;;  %v12088_v36 = vpop.f32.mrf.mxu1 }
 0x11e   : > { %v968_v48 = vadd.f32 %v967_v1, %v14046_v58  ;;  %v14110_v22 = vadd.f32 %v12088_v36, %v12072_v12 }
 0x11f   : > { %v969_v4 = vpop.f32.mrf.mxu0  ;;  %v1020_v56 = vpop.f32.mrf.mxu1 }
 0x120   : > { %v14113_v50 = vadd.f32 %v969_v4, %v14048_v60  ;;  %v14115_v39 = vadd.f32 %v1020_v56, %v697_v15 }
 0x121   : > { %v971_v6 = vpop.f32.mrf.mxu0  ;;  %v12089_v33 = vpop.f32.mrf.mxu1 }
 0x122   : > { %v14118_v52 = vadd.f32 %v971_v6, %v14050_v62  ;;  %v14120_v51 = vadd.f32 %v12089_v33, %v12073_v18 }
 0x123   : > { %v14122_v13 = vpop.f32.mrf.mxu0  ;;  %v14124_v57 = vpop.f32.mrf.mxu1 }
 0x124   : > { %19102 = vst [vmem:[#allocation5_spill] sm:$0xff] %v14124_v57 }
 0x125   : > { %v977_v58 = vpop.f32.mrf.mxu0  ;;  %v12092_v12 = vpop.f32.mrf.mxu1 }
 0x126   : > { %v14127_v19 = vadd.f32 %v977_v58, %v14056_v3  ;;  %v14129_v60 = vadd.f32 %v12092_v12, %v12076_v26 }
 0x127   : > { %v979_v15 = vpop.f32.mrf.mxu0  ;;  %v1036_v27 = vpop.f32.mrf.mxu1 }
 0x128   : > { %v14132_v61 = vadd.f32 %v979_v15, %v14058_v5  ;;  %v14134_v62 = vadd.f32 %v1036_v27, %v713_v29 }
 0x129   : > { %v981_v18 = vpop.f32.mrf.mxu0  ;;  %v12093_v1 = vpop.f32.mrf.mxu1 }
 0x12a   : > { %v14137_v36 = vadd.f32 %v981_v18, %v14060_v7  ;;  %v14139_v4 = vadd.f32 %v12093_v1, %v12077_v53 }
 0x12b   : > { %v14141_v56 = vpop.f32.mrf.mxu0  ;;  %v14143_v3 = vpop.f32.mrf.mxu1 }
 0x12c   : > { %19103 = vst [vmem:[#allocation6_spill] sm:$0xff] %v14141_v56  ;;  %19104 = vst [vmem:[#allocation7_spill] sm:$0xff] %v14143_v3 }
 0x12d   : > { %v1238_v26 = vpop.f32.mrf.mxu0  ;;  %v1311_v6 = vpop.f32.mrf.mxu1 }
 0x12e   : > { %v14146_v33 = vadd.f32 %v1238_v26, %v14066_v14  ;;  %v14148_v5 = vadd.f32 %v1311_v6, %v948_v21 }
 0x12f   : > { %v1240_v29 = vpop.f32.mrf.mxu0  ;;  %v1313_v58 = vpop.f32.mrf.mxu1 }
 0x130   : > { %v14151_v12 = vadd.f32 %v1240_v29, %v14068_v17  ;;  %v14153_v7 = vadd.f32 %v1313_v58, %v950_v25 }
 0x131   : > { %v1242_v53 = vpop.f32.mrf.mxu0  ;;  %v1315_v15 = vpop.f32.mrf.mxu1 }
 0x132   : > { %v14156_v27 = vadd.f32 %v1242_v53, %v14070_v20  ;;  %v14158_v18 = vadd.f32 %v1315_v15, %v952_v43 }
 0x133   : > { %v14160_v1 = vpop.f32.mrf.mxu0  ;;  %v14162_v14 = vpop.f32.mrf.mxu1 }
 0x135   : > { %v1248_v21 = vpop.f32.mrf.mxu0  ;;  %v1321_v26 = vpop.f32.mrf.mxu1 }
 0x136   : > { %v14165_v6 = vadd.f32 %v1248_v21, %v14076_v28  ;;  %v14167_v17 = vadd.f32 %v1321_v26, %v958_v40  ;;  %v12558_v40 = vld [vmem:[%s18963_s3 + $0x6f4] ss:$20 sps:$4 sm:$0xff]  }
 0x137   : > { %v1250_v25 = vpop.f32.mrf.mxu0  ;;  %v1323_v29 = vpop.f32.mrf.mxu1 }
 0x138   : > { %v14170_v58 = vadd.f32 %v1250_v25, %v14078_v31  ;;  %v14172_v20 = vadd.f32 %v1323_v29, %v960_v42  ;;  %v12560_v31 = vld [vmem:[%s18963_s3 + $0x6f8] ss:$20 sps:$4 sm:$0xff]  }
 0x139   : > { %v1252_v43 = vpop.f32.mrf.mxu0  ;;  %v1325_v53 = vpop.f32.mrf.mxu1  ;;  %4353 = vmatprep.subr.bf16.mxu1 %v12560_v31 }
 0x13a   : > { %19105 = vst [vmem:[#allocation8_spill] sm:$0xff] %v14172_v20  ;;  %v14175_v15 = vadd.f32 %v1252_v43, %v14080_v34  ;;  %v14177_v2 = vadd.f32 %v1325_v53, %v962_v44  ;;  %v12563_v34 = vld [vmem:[%s18963_s3 + $0x6d0] ss:$20 sps:$4 sm:$0xff]   ;;  %4354 = vmatpush1.bf16.msra.mxu1 %v12558_v40  ;;  %v12561_v43 = vld [vmem:[%s18963_s3 + $0x6cc] ss:$20 sps:$4 sm:$0xff]  }
 0x13b   : > { %v14179_v3 = vpop.f32.mrf.mxu0  ;;  %v14181_v28 = vpop.f32.mrf.mxu1  ;;  %4355 = vmatprep.subr.bf16.mxu1 %v12563_v34  ;;  %v12578_v40 = vld [vmem:[%s18963_s3 + $0x978] ss:$20 sps:$4 sm:$0xff]  }
 0x13c   : > { %19106 = vst [vmem:[#allocation9_spill] sm:$0xff] %v14181_v28  ;;  %v12564_v34 = vld [vmem:[%s18963_s3 + $0x6a4] ss:$20 sps:$4 sm:$0xff]   ;;  %4424 = vmatprep.subr.bf16.mxu0 %v12578_v40  ;;  %v12567_v40 = vld [vmem:[%s18963_s3 + $0x67c] ss:$20 sps:$4 sm:$0xff]  }
 0x13d   : > { %v1258_v42 = vpop.f32.mrf.mxu0  ;;  %v1331_v21 = vpop.f32.mrf.mxu1 }
 0x13e   : > { %v14193_v44 = vadd.f32 %v1258_v42, %v14086_v37  ;;  %v14195_v26 = vadd.f32 %v1331_v21, %v968_v48  ;;  %v12566_v37 = vld [vmem:[%s18963_s3 + $0x6a8] ss:$20 sps:$4 sm:$0xff]   ;;  %4356 = vmatpush1.bf16.msra.mxu1 %v12561_v43 }
 0x13f   : > { %v1260_v25 = vpop.f32.mrf.mxu0  ;;  %v1333_v29 = vpop.f32.mrf.mxu1  ;;  %v12576_v48 = vld [vmem:[%s18963_s3 + $0x974] ss:$20 sps:$4 sm:$0xff]   ;;  %4357 = vmatprep.subr.bf16.mxu1 %v12566_v37  ;;  %v12572_v37 = vld [vmem:[%s18963_s3 + $0x658] ss:$20 sps:$4 sm:$0xff]  }
 0x140   : > { %v14201_v53 = vadd.f32 %v1260_v25, %v14088_v38  ;;  %v14204_v20 = vadd.f32 %v1333_v29, %v14113_v50  ;;  %v12584_v38 = vld [vmem:[%s18963_s3 + $0x950] ss:$20 sps:$4 sm:$0xff]   ;;  %v12569_v25 = vld [vmem:[%s18963_s3 + $0x680] ss:$20 sps:$4 sm:$0xff]   ;;  %4425 = vmatpush1.bf16.msra.mxu0 %v12576_v48 }
 0x141   : > { %v1262_v31 = vpop.f32.mrf.mxu0  ;;  %v1335_v42 = vpop.f32.mrf.mxu1  ;;  %v12582_v29 = vld [vmem:[%s18963_s3 + $0x94c] ss:$20 sps:$4 sm:$0xff]   ;;  %4426 = vmatprep.subr.bf16.mxu0 %v12584_v38 }
 0x142   : > { %19107 = vst [vmem:[#allocation10_spill] sm:$0xff] %v14204_v20  ;;  %v14219_v50 = vadd.f32 %v1262_v31, %v14090_v41  ;;  %v14222_v21 = vadd.f32 %v1335_v42, %v14118_v52  ;;  %v12590_v52 = vld [vmem:[%s18963_s3 + $0x928] ss:$20 sps:$4 sm:$0xff]   ;;  %4358 = vmatpush1.bf16.msra.mxu1 %v12564_v34 }
 0x143   : > { %v14233_v20 = vpop.f32.mrf.mxu0  ;;  %v14235_v41 = vpop.f32.mrf.mxu1  ;;  %4359 = vmatprep.subr.bf16.mxu1 %v12569_v25 }
 0x144   : > { %19108 = vst [vmem:[#allocation11_spill] sm:$0xff] %v14222_v21  ;;  %19109 = vst [vmem:[#allocation12_spill] sm:$0xff] %v14235_v41  ;;  %4427 = vmatpush1.bf16.msra.mxu0 %v12582_v29 }
 0x145   : > { %v1268_v31 = vpop.f32.mrf.mxu0  ;;  %v1341_v42 = vpop.f32.mrf.mxu1  ;;  %4428 = vmatprep.subr.bf16.mxu0 %v12590_v52 }
 0x146   : > { %v14247_v41 = vadd.f32 %v1268_v31, %v14096_v16  ;;  %v14250_v43 = vadd.f32 %v1341_v42, %v14127_v19  ;;  %v12570_v19 = vld [vmem:[%s18963_s3 + $0x654] ss:$20 sps:$4 sm:$0xff]   ;;  %4360 = vmatpush1.bf16.msra.mxu1 %v12567_v40 }
 0x147   : > { %v1270_v48 = vpop.f32.mrf.mxu0  ;;  %v1343_v38 = vpop.f32.mrf.mxu1  ;;  %4361 = vmatprep.subr.bf16.mxu1 %v12572_v37 }
 0x148   : > { %19110 = vst [vmem:[#allocation13_spill] sm:$0xff] %v14247_v41  ;;  %19111 = vst [vmem:[#allocation14_spill] sm:$0xff] %v14250_v43  ;;  %v14256_v56 = vadd.f32 %v1270_v48, %v14099_v59  ;;  %v14259_v11 = vadd.f32 %v1343_v38, %v14132_v61  ;;  %v12575_v59 = vld [vmem:[%s18963_s3 + $0x630] ss:$20 sps:$4 sm:$0xff]   ;;  %4429 = vmatpush1.bf16.msra.mxu0 %v12588_v8  ;;  %v12581_v48 = vld [vmem:[%s18963_s3 + $0x608] ss:$20 sps:$4 sm:$0xff]  }
 0x149   : > { %v1272_v16 = vpop.f32.mrf.mxu0  ;;  %v1345_v31 = vpop.f32.mrf.mxu1 }
 0x14a   : > { %19112 = vst [vmem:[#allocation15_spill] sm:$0xff] %v14256_v56  ;;  %19113 = vst [vmem:[#allocation16_spill] sm:$0xff] %v14259_v11  ;;  %v14265_v42 = vadd.f32 %v1272_v16, %v14102_v30  ;;  %v14268_v34 = vadd.f32 %v1345_v31, %v14137_v36  ;;  %v12573_v30 = vld [vmem:[%s18963_s3 + $0x62c] ss:$20 sps:$4 sm:$0xff]   ;;  %4362 = vmatpush1.bf16.msra.mxu1 %v12570_v19 }
 0x14b   : > { %v14273_v61 = vpop.f32.mrf.mxu0  ;;  %v14275_v25 = vpop.f32.mrf.mxu1  ;;  %4363 = vmatprep.subr.bf16.mxu1 %v12575_v59 }
 0x14c   : > { %19114 = vst [vmem:[#allocation17_spill] sm:$0xff] %v14265_v42  ;;  %19115 = vst [vmem:[#allocation18_spill] sm:$0xff] %v14268_v34 }
 0x14d   : > { %19116 = vst [vmem:[#allocation19_spill] sm:$0xff] %v14273_v61  ;;  %19117 = vst [vmem:[#allocation20_spill] sm:$0xff] %v14275_v25  ;;  %v12104_v29 = vpop.f32.mrf.mxu0  ;;  %v14277_v52 = vpop.f32.mrf.mxu1 }
 0x14e   : > { %v14283_v36 = vadd.f32 %v12104_v29, %v14110_v22  ;;  %v12579_v22 = vld [vmem:[%s18963_s3 + $0x604] ss:$20 sps:$4 sm:$0xff]   ;;  %v12587_v29 = vld [vmem:[%s18963_s3 + $0x5e0] ss:$20 sps:$4 sm:$0xff]   ;;  %4364 = vmatpush1.bf16.msra.mxu1 %v12573_v30 }
 0x14f   : > { %v1384_v38 = vpop.f32.mrf.mxu0  ;;  %v14288_v16 = vpop.f32.mrf.mxu1  ;;  %4365 = vmatprep.subr.bf16.mxu1 %v12581_v48 }
 0x150   : > { %19118 = vst [vmem:[#allocation21_spill] sm:$0xff] %v14283_v36  ;;  %v14291_v8 = vadd.f32 %v1384_v38, %v14115_v39  ;;  %v12585_v38 = vld [vmem:[%s18963_s3 + $0x5dc] ss:$20 sps:$4 sm:$0xff]  }
 0x151   : > { %v12105_v40 = vpop.f32.mrf.mxu0  ;;  %v14293_v37 = vpop.f32.mrf.mxu1 }
 0x152   : > { %19119 = vst [vmem:[#allocation22_spill] sm:$0xff] %v14291_v8  ;;  %v14299_v31 = vadd.f32 %v12105_v40, %v14120_v51  ;;  %4366 = vmatpush1.bf16.msra.mxu1 %v12579_v22 }
 0x153   : > { %v14304_v25 = vpop.f32.mrf.mxu0  ;;  %v14306_v19 = vpop.f32.mrf.mxu1  ;;  %4367 = vmatprep.subr.bf16.mxu1 %v12587_v29 }
 0x154   : > { %19120 = vst [vmem:[#allocation23_spill] sm:$0xff] %v14299_v31  ;;  %19121 = vst [vmem:[#allocation24_spill] sm:$0xff] %v14304_v25 }
 0x155   : > { %v12108_v39 = vpop.f32.mrf.mxu0  ;;  %v14308_v59 = vpop.f32.mrf.mxu1 }
 0x156   : > { %v14314_v51 = vadd.f32 %v12108_v39, %v14129_v60  ;;  %4368 = vmatpush1.bf16.msra.mxu1 %v12585_v38 }
 0x157   : > { %v1400_v40 = vpop.f32.mrf.mxu0  ;;  %v14316_v34 = vpop.f32.mrf.mxu1 }
 0x158   : > { %19122 = vst [vmem:[#allocation25_spill] sm:$0xff] %v14314_v51  ;;  %v14319_v11 = vadd.f32 %v1400_v40, %v14134_v62 }
 0x159   : > { %v12109_v30 = vpop.f32.mrf.mxu0  ;;  %v14321_v48 = vpop.f32.mrf.mxu1 }
 0x15a   : > { %19123 = vst [vmem:[#allocation26_spill] sm:$0xff] %v14319_v11  ;;  %v14324_v42 = vadd.f32 %v12109_v30, %v14139_v4 }
 0x15b   : > { %v14326_v31 = vpop.f32.mrf.mxu0  ;;  %v14328_v61 = vpop.f32.mrf.mxu1 }
 0x15c   : > { %19124 = vst [vmem:[#allocation27_spill] sm:$0xff] %v14324_v42  ;;  %19125 = vst [vmem:[#allocation28_spill] sm:$0xff] %v14326_v31 }
 0x15d   : > { %v14330_v60 = vpop.f32.mrf.mxu1  ;;  %v1719_v39 = vpop.f32.mrf.mxu0 }
 0x15f   : > { %v14332_v51 = vpop.f32.mrf.mxu1  ;;  %v14334_v22 = vpop.f32.mrf.mxu0 }
 0x161   : > { %v14336_v62 = vpop.f32.mrf.mxu1  ;;  %v1723_v29 = vpop.f32.mrf.mxu0 }
 0x162   : > { %19126 = vst [vmem:[#allocation29_spill] sm:$0xff] %v14336_v62 }
 0x163   : > { %v14338_v40 = vpop.f32.mrf.mxu1  ;;  %v14340_v11 = vpop.f32.mrf.mxu0 }
 0x164   : > { %19127 = vst [vmem:[#allocation30_spill] sm:$0xff] %v14338_v40  ;;  %19128 = vst [vmem:[#allocation31_spill] sm:$0xff] %v14340_v11  ;;  %v12594_v40 = vld [vmem:[%s18963_s3 + $0x8fc] ss:$20 sps:$4 sm:$0xff]  }
 0x165   : > { %v14342_v4 = vpop.f32.mrf.mxu1  ;;  %v14344_v30 = vpop.f32.mrf.mxu0 }
 0x166   : > { %19129 = vst [vmem:[#allocation32_spill] sm:$0xff] %v14342_v4 }
 0x167   : > { %v14346_v42 = vpop.f32.mrf.mxu1  ;;  %v14348_v38 = vpop.f32.mrf.mxu0 }
 0x168   : > { %19130 = vst [vmem:[#allocation33_spill] sm:$0xff] %v14346_v42  ;;  %19131 = vst [vmem:[#allocation34_spill] sm:$0xff] %v14348_v38  ;;  %v2265_v38 = vlaneseq }
 0x169   : > { %v14350_v31 = vpop.f32.mrf.mxu1  ;;  %v14352_v25 = vpop.f32.mrf.mxu0 }
 0x16a   : > { %19132 = vst [vmem:[#allocation35_spill] sm:$0xff] %v14350_v31  ;;  %v14378_v21 = vshrl.u32 %v2265_v38, 7 }
 0x16b   : > { %v14354_v8 = vpop.f32.mrf.mxu1  ;;  %v14356_v36 = vpop.f32.mrf.mxu0 }
 0x16c   : > { %19133 = vst [vmem:[#allocation36_spill] sm:$0xff] %v14354_v8  ;;  %19134 = vst [vmem:[#allocation37_spill] sm:$0xff] %v14356_v36  ;;  %v14414_v41 = vsub.s32 3, %v14378_v21 }
 0x16d   : > { %v14358_v57 = vpop.f32.mrf.mxu0  ;;  %v14360_v23 = vpop.f32.mrf.mxu1 }
 0x16e   : > { %19135 = vst [vmem:[#allocation38_spill] sm:$0xff] %v14360_v23  ;;  %19153 = vst [vmem:[#allocation56_spill] sm:$0xff] %v14414_v41 }
 0x16f   : > { %v14362_v11 = vpop.f32.mrf.mxu0  ;;  %v14364_v56 = vpop.f32.mrf.mxu1 }
 0x170   : > { %19136 = vst [vmem:[#allocation39_spill] sm:$0xff] %v14362_v11  ;;  %19137 = vst [vmem:[#allocation40_spill] sm:$0xff] %v14364_v56 }
 0x171   : > { %v14366_v28 = vpop.f32.mrf.mxu0  ;;  %v14368_v42 = vpop.f32.mrf.mxu1 }
 0x172   : > { %19138 = vst [vmem:[#allocation41_spill] sm:$0xff] %v14366_v28  ;;  %19139 = vst [vmem:[#allocation42_spill] sm:$0xff] %v14368_v42  ;;  %v14389_v42 = vsub.s32 2, %v14378_v21 }
 0x173   : > { %v14370_v31 = vpop.f32.mrf.mxu0  ;;  %v14372_v43 = vpop.f32.mrf.mxu1 }
 0x174   : > { %19140 = vst [vmem:[#allocation43_spill] sm:$0xff] %v14370_v31  ;;  %19141 = vst [vmem:[#allocation44_spill] sm:$0xff] %v14372_v43  ;;  %v14394_v31 = vld [vmem:[%s18962_s2] sm:$0x1f] }
 0x175   : > { %v14374_v8 = vpop.f32.mrf.mxu0  ;;  %v14376_v36 = vpop.f32.mrf.mxu1  ;;  %19148 = vst [vmem:[#allocation51_spill] sm:$0xff] %v14389_v42  ;;  %v14411_v4 = vrot.slane %v14394_v31, %v14389_v42 }
 0x176   : > { %19142 = vst [vmem:[#allocation45_spill] sm:$0xff] %v14374_v8  ;;  %19143 = vst [vmem:[#allocation46_spill] sm:$0xff] %v14376_v36  ;;  %v14397_v36 = vsub.s32 1, %v14378_v21 }
 0x177   : > { %v14380_v23 = vpop.f32.mrf.mxu0  ;;  %v14382_v11 = vpop.f32.mrf.mxu1 }
 0x178   : > { %19144 = vst [vmem:[#allocation47_spill] sm:$0xff] %v14380_v23  ;;  %19145 = vst [vmem:[#allocation48_spill] sm:$0xff] %v14382_v11  ;;  %v14404_v11 = vsub.s32 0, %v14378_v21  ;;  %v14428_v42 = vrot.slane %v14394_v31, %v14397_v36 }
 0x179   : > { %v14384_v56 = vpop.f32.mrf.mxu0  ;;  %v14386_v28 = vpop.f32.mrf.mxu1  ;;  %19149 = vst [vmem:[#allocation52_spill] sm:$0xff] %v14397_v36  ;;  %v1830_v36 = vadd.f32 %v1723_v29, %v14158_v18  ;;  %v14461_v18 = vrot.slane %v14394_v31, %v14414_v41  ;;  %v12600_v29 = vld [vmem:[%s18963_s3 + $0x8d4] ss:$20 sps:$4 sm:$0xff]  }
 0x17a   : > { %19146 = vst [vmem:[#allocation49_spill] sm:$0xff] %v14384_v56  ;;  %19147 = vst [vmem:[#allocation50_spill] sm:$0xff] %v14386_v28  ;;  %v1825_v28 = vadd.f32 %v1719_v39, %v14148_v5  ;;  %v1823_v56 = vadd.f32 %v14277_v52, %v14146_v33  ;;  %v12596_v5 = vld [vmem:[%s18963_s3 + $0x900] ss:$20 sps:$4 sm:$0xff]   ;;  %v881_v33 = vadd.f32 %v14074_v24, %v14031_v45 }
 0x17b   : > { %v14399_v38 = vpop.f32.mrf.mxu0  ;;  %v14401_v23 = vpop.f32.mrf.mxu1  ;;  %19152 = vst [vmem:[#allocation55_spill] sm:$0xff] %v14404_v11  ;;  %v1824_v52 = vadd.f32 %v14288_v16, %v14151_v12  ;;  %v14438_v45 = vrot.slane %v14394_v31, %v14404_v11  ;;  %4430 = vmatprep.subr.bf16.mxu0 %v12596_v5 }
 0x17c   : > { %19150 = vst [vmem:[#allocation53_spill] sm:$0xff] %v14399_v38  ;;  %19151 = vst [vmem:[#allocation54_spill] sm:$0xff] %v14401_v23  ;;  %v12593_v38 = vld [vmem:[%s18963_s3 + $0x838] ss:$20 sps:$4 sm:$0xff]   ;;  %v12591_v23 = vld [vmem:[%s18963_s3 + $0x834] ss:$20 sps:$4 sm:$0xff]   ;;  %4431 = vmatpush1.bf16.msra.mxu0 %v12594_v40 }
 0x17d   : > { %v2046_v43 = vpop.f32.mrf.mxu0  ;;  %v2119_v8 = vpop.f32.mrf.mxu1  ;;  %4369 = vmatprep.subr.bf16.mxu1 %v12593_v38  ;;  %v12599_v38 = vld [vmem:[%s18963_s3 + $0x810] ss:$20 sps:$4 sm:$0xff]  }
 0x17e   : > { %v2225_v39 = vadd.f32 %v2119_v8, %v1825_v28  ;;  %v2223_v62 = vadd.f32 %v2046_v43, %v1823_v56  ;;  %v1421_v28 = vadd.f32 %v14160_v1, %v881_v33  ;;  %4370 = vmatpush2.bf16.msra.mxu1 %v12591_v23  ;;  %v1828_v8 = vadd.f32 %v14293_v37, %v14156_v27  ;;  %v12602_v1 = vld [vmem:[%s18963_s3 + $0x8d8] ss:$20 sps:$4 sm:$0xff]  }
 0x17f   : > { %v2048_v24 = vpop.f32.mrf.mxu0  ;;  %v14440_v12 = vpop.f32.mrf.mxu1  ;;  %v12597_v37 = vld [vmem:[%s18963_s3 + $0x80c] ss:$20 sps:$4 sm:$0xff]   ;;  %4371 = vmatprep.subr.bf16.mxu1 %v12599_v38  ;;  %4432 = vmatprep.subr.bf16.mxu0 %v12602_v1  ;;  %v12603_v1 = vld [vmem:[%s18963_s3 + $0x7e4] ss:$20 sps:$4 sm:$0xff]  }
 0x180   : > { %v2224_v16 = vadd.f32 %v2048_v24, %v1824_v52  ;;  %v14447_v56 = vadd.f32 %v14411_v4, %v2225_v39  ;;  %v1829_v23 = vadd.f32 %v14306_v19, %v1421_v28  ;;  %v14470_v40 = vadd.f32 %v14438_v45, %v2223_v62  ;;  %4433 = vmatpush1.bf16.msra.mxu0 %v12600_v29 }
 0x181   : > { %v2050_v43 = vpop.f32.mrf.mxu0  ;;  %v2123_v11 = vpop.f32.mrf.mxu1  ;;  %v891_v39 = vadd.f32 %v14084_v9, %v14042_v54  ;;  %v1835_v24 = vadd.f32 %v14344_v30, %v14167_v17  ;;  %v1833_v62 = vadd.f32 %v14308_v59, %v14165_v6  ;;  %v12605_v9 = vld [vmem:[%s18963_s3 + $0x7e8] ss:$20 sps:$4 sm:$0xff]   ;;  %v12608_v17 = vld [vmem:[%s18963_s3 + $0x8b0] ss:$20 sps:$4 sm:$0xff]   ;;  %v14496_v6 = vadd.f32 %v14092_v47, %v14052_v63 }
 0x182   : > { %v14457_v27 = vadd.f32 %v14428_v42, %v2224_v16  ;;  %v2228_v5 = vadd.f32 %v2050_v43, %v1828_v8  ;;  %v2230_v19 = vadd.f32 %v2123_v11, %v1830_v36  ;;  %4372 = vmatpush2.bf16.msra.mxu1 %v12597_v37  ;;  %v18979_v11 = vmax.f32 %v14447_v56, 0.0  ;;  %4434 = vmatprep.subr.bf16.mxu0 %v12608_v17  ;;  %v12614_v17 = vld [vmem:[%s18963_s3 + $0x888] ss:$20 sps:$4 sm:$0xff]  }
 0x183   : > { %v2052_v33 = vpop.f32.mrf.mxu0  ;;  %v14472_v52 = vpop.f32.mrf.mxu1  ;;  %v1834_v59 = vadd.f32 %v14316_v34, %v14170_v58  ;;  %v18986_v37 = vmax.f32 %v14470_v40, 0.0  ;;  %4373 = vmatprep.subr.bf16.mxu1 %v12605_v9  ;;  %v1431_v34 = vadd.f32 %v14179_v3, %v891_v39  ;;  %v14534_v39 = vsub.s32 4, %v14378_v21  ;;  %v12611_v9 = vld [vmem:[%s18963_s3 + $0x7c0] ss:$20 sps:$4 sm:$0xff]  }
 0x184   : > { %v18990_v28 = vmax.f32 %v14457_v27, 0.0  ;;  %v2229_v16 = vadd.f32 %v2052_v33, %v1829_v23  ;;  %v14483_v36 = vadd.f32 %v14438_v45, %v2228_v5  ;;  %v14486_v8 = vadd.f32 %v14411_v4, %v2230_v19  ;;  %v12606_v23 = vld [vmem:[%s18963_s3 + $0x8ac] ss:$20 sps:$4 sm:$0xff]  }
 0x185   : > { %v2056_v43 = vpop.f32.mrf.mxu0  ;;  %v2129_v54 = vpop.f32.mrf.mxu1  ;;  %v1838_v19 = vadd.f32 %v14321_v48, %v14175_v15  ;;  %v1840_v33 = vadd.f32 %v14352_v25, %v14177_v2  ;;  %4435 = vmatpush1.bf16.msra.mxu0 %v12606_v23  ;;  %v1839_v2 = vadd.f32 %v14328_v61, %v1431_v34  ;;  %19154 = vst [vmem:[#allocation57_spill] sm:$0xff] %v14534_v39 }
 0x186   : > { %v14501_v30 = vadd.f32 %v14428_v42, %v2229_v16  ;;  %v2235_v38 = vadd.f32 %v2129_v54, %v1835_v24  ;;  %v18985_v63 = vmax.f32 %v14483_v36, 0.0  ;;  %v2233_v47 = vadd.f32 %v2056_v43, %v1833_v62  ;;  %4374 = vmatpush2.bf16.msra.mxu1 %v12603_v1  ;;  %4436 = vmatprep.subr.bf16.mxu0 %v12614_v17  ;;  %v12618_v17 = vld [vmem:[%s18963_s3 + $0x85c] ss:$20 sps:$4 sm:$0xff]  }
 0x187   : > { %v2058_v29 = vpop.f32.mrf.mxu0  ;;  %v14511_v5 = vpop.f32.mrf.mxu1  ;;  %v12238_v58 = vpack.i.bf16 %v18979_v11, %v18990_v28  ;;  %v18980_v16 = vmax.f32 %v14486_v8, 0.0  ;;  %4375 = vmatprep.subr.bf16.mxu1 %v12611_v9  ;;  %v12615_v9 = vld [vmem:[%s18963_s3 + $0x794] ss:$20 sps:$4 sm:$0xff]  }
 0x188   : > { %v18993_v24 = vmax.f32 %v14501_v30, 0.0  ;;  %v14525_v62 = vadd.f32 %v14411_v4, %v2235_v38  ;;  %v2234_v43 = vadd.f32 %v2058_v29, %v1834_v59  ;;  %v12243_v15 = vpack.i.bf16 %v18985_v63, %v18986_v37  ;;  %v19176_v63 = vld [vmem:[#allocation21_spill] sm:$0xff]  ;;  %v19177_v37 = vld [vmem:[#allocation38_spill] sm:$0xff] }
 0x189   : > { %12239 = vrot.lane.b32.xlu0 %v12238_v58, %s13500_s22  ;;  %v2060_v54 = vpop.f32.mrf.mxu0  ;;  %v2133_v3 = vpop.f32.mrf.mxu1  ;;  %v954_v59 = vadd.f32 %v14094_v49, %v14033_v46  ;;  %v14545_v38 = vadd.f32 %v14438_v45, %v2233_v47  ;;  %v12609_v46 = vld [vmem:[%s18963_s3 + $0x7bc] ss:$20 sps:$4 sm:$0xff]   ;;  %v12612_v49 = vld [vmem:[%s18963_s3 + $0x884] ss:$20 sps:$4 sm:$0xff]   ;;  %v14565_v47 = vadd.f32 %v14105_v32, %v14062_v10  ;;  %v14569_v29 = vadd.f32 %v14107_v35, %v14044_v55 }
 0x18a   : > { %v2238_v25 = vadd.f32 %v2060_v54, %v1838_v19  ;;  %v2240_v48 = vadd.f32 %v2133_v3, %v1840_v33  ;;  %v14548_v61 = vadd.f32 %v14428_v42, %v2234_v43  ;;  %12244 = vrot.lane.b32.xlu1 %v12243_v15, %s13500_s22  ;;  %v12248_v23 = vpack.i.bf16 %v18980_v16, %v18993_v24  ;;  %v12620_v15 = vld [vmem:[%s18963_s3 + $0x860] ss:$20 sps:$4 sm:$0xff]  }
 0x18b   : > { %v2062_v21 = vpop.f32.mrf.mxu0  ;;  %v14551_v1 = vpop.f32.mrf.mxu1  ;;  %v1845_v19 = vadd.f32 %v14358_v57, %v14195_v26  ;;  %v18977_v33 = vmax.f32 %v14525_v62, 0.0  ;;  %v1844_v32 = vadd.f32 %v14332_v51, %v14201_v53  ;;  %v14590_v57 = vrot.slane %v14394_v31, %v14534_v39  ;;  %4376 = vmatpush2.bf16.msra.mxu1 %v12609_v46  ;;  %4437 = vmatpush1.bf16.msra.mxu0 %v12612_v49  ;;  %v12617_v26 = vld [vmem:[%s18963_s3 + $0x798] ss:$20 sps:$4 sm:$0xff]  }
 0x18c   : > { %v14572_v58 = vadd.f32 %v14438_v45, %v2238_v25  ;;  %v2239_v34 = vadd.f32 %v2062_v21, %v1839_v2  ;;  %v18998_v43 = vmax.f32 %v14548_v61, 0.0  ;;  %v14579_v54 = vadd.f32 %v14411_v4, %v2240_v48  ;;  %4377 = vmatprep.subr.bf16.mxu1 %v12617_v26  ;;  %4438 = vmatprep.subr.bf16.mxu0 %v12620_v15  ;;  %v12623_v26 = vld [vmem:[%s18963_s3 + $0x770] ss:$20 sps:$4 sm:$0xff]   ;;  %v12626_v15 = vld [vmem:[%s18963_s3 + $0xab8] ss:$20 sps:$4 sm:$0xff]  }
 0x18d   : > { %12249 = vrot.lane.b32.xlu0 %v12248_v23, %s13500_s22  ;;  %v2066_v10 = vpop.f32.mrf.mxu0  ;;  %v2139_v55 = vpop.f32.mrf.mxu1  ;;  %v1843_v53 = vadd.f32 %v14330_v60, %v14193_v44  ;;  %v18982_v51 = vmax.f32 %v14545_v38, 0.0  ;;  %v1441_v44 = vadd.f32 %v14233_v20, %v14496_v6  ;;  %v1826_v60 = vadd.f32 %v14334_v22, %v14153_v7  ;;  %v19155_v6 = vld [vmem:[#allocation29_spill] sm:$0xff] }
 0x18e   : > { %v18981_v35 = vmax.f32 %v14572_v58, 0.0  ;;  %v14586_v3 = vadd.f32 %v14428_v42, %v2239_v34  ;;  %v2245_v2 = vadd.f32 %v2139_v55, %v1845_v19  ;;  %v12253_v31 = vpack.i.bf16 %v18977_v33, %v18998_v43 }
 0x18f   : > { %v2068_v25 = vpop.f32.mrf.mxu0  ;;  %v14601_v48 = vpop.f32.mrf.mxu1  ;;  %v18978_v46 = vmax.f32 %v14579_v54, 0.0  ;;  %v2243_v49 = vadd.f32 %v2066_v10, %v1843_v53  ;;  %v14629_v20 = vadd.f32 %v14122_v13, %v14054_v0  ;;  %v1423_v22 = vadd.f32 %v14162_v14, %v954_v59  ;;  %4378 = vmatpush2.bf16.msra.mxu1 %v12615_v9  ;;  %v19156_v53 = vld [vmem:[#allocation30_spill] sm:$0xff]  ;;  %4439 = vmatpush1.bf16.msra.mxu0 %v12618_v17 }
 0x190   : > { %v18987_v21 = vmax.f32 %v14586_v3, 0.0  ;;  %v2244_v23 = vadd.f32 %v2068_v25, %v1844_v32  ;;  %v14620_v34 = vadd.f32 %v14411_v4, %v2245_v2  ;;  %12254 = vrot.lane.b32.xlu1 %v12253_v31, %s13500_s22  ;;  %v12258_v7 = vpack.i.bf16 %v18981_v35, %v18982_v51  ;;  %v12621_v2 = vld [vmem:[%s18963_s3 + $0x76c] ss:$20 sps:$4 sm:$0xff]   ;;  %v12624_v25 = vld [vmem:[%s18963_s3 + $0xab4] ss:$20 sps:$4 sm:$0xff]   ;;  %4379 = vmatprep.subr.bf16.mxu1 %v12623_v26 }
 0x191   : > { %v2070_v19 = vpop.f32.mrf.mxu0  ;;  %v2143_v55 = vpop.f32.mrf.mxu1  ;;  %v1848_v10 = vadd.f32 %v19155_v6, %v14219_v50  ;;  %v1849_v0 = vadd.f32 %v19156_v53, %v1441_v44  ;;  %v2226_v13 = vadd.f32 %v14440_v12, %v1826_v60  ;;  %v19157_v12 = vld [vmem:[#allocation13_spill] sm:$0xff]  ;;  %v19158_v31 = vld [vmem:[#allocation32_spill] sm:$0xff]  ;;  %v19159_v44 = vld [vmem:[#allocation11_spill] sm:$0xff]  ;;  %4440 = vmatprep.subr.bf16.mxu0 %v12626_v15  ;;  %v14666_v17 = vadd.f32 %v14438_v45, %v2243_v49 }
 0x192   : > { %v14635_v32 = vadd.f32 %v14428_v42, %v2244_v23  ;;  %12259 = vrot.lane.b32.xlu0 %v12258_v7, %s13500_s22  ;;  %v12263_v59 = vpack.i.bf16 %v18978_v46, %v18987_v21  ;;  %v1853_v9 = vadd.f32 %v19158_v31, %v19157_v12  ;;  %v19160_v60 = vld [vmem:[#allocation41_spill] sm:$0xff]  ;;  %v19161_v7 = vld [vmem:[#allocation14_spill] sm:$0xff]  ;;  %v18983_v46 = vmax.f32 %v14620_v34, 0.0  ;;  %v19164_v35 = vld [vmem:[#allocation15_spill] sm:$0xff] }
 0x193   : > { %v2072_v14 = vpop.f32.mrf.mxu0  ;;  %v14646_v50 = vpop.f32.mrf.mxu1  ;;  %v1850_v23 = vadd.f32 %v19160_v60, %v19159_v44  ;;  %v19162_v6 = vld [vmem:[#allocation45_spill] sm:$0xff]  ;;  %v2248_v11 = vadd.f32 %v2070_v19, %v1848_v10  ;;  %4380 = vmatpush2.bf16.msra.mxu1 %v12621_v2  ;;  %v12632_v19 = vld [vmem:[%s18963_s3 + $0xa90] ss:$20 sps:$4 sm:$0xff]   ;;  %v14681_v10 = vadd.f32 %v14461_v18, %v2226_v13  ;;  %4441 = vmatpush2.bf16.msra.mxu0 %v12624_v25  ;;  %v12630_v13 = vld [vmem:[%s18963_s3 + $0xa8c] ss:$20 sps:$4 sm:$0xff]  }
 0x194   : > { %v1855_v53 = vadd.f32 %v19162_v6, %v19161_v7  ;;  %v18984_v33 = vmax.f32 %v14635_v32, 0.0  ;;  %v2249_v16 = vadd.f32 %v2072_v14, %v1849_v0  ;;  %12264 = vrot.lane.b32.xlu1 %v12263_v59, %s13500_s22  ;;  %v19163_v44 = vld [vmem:[#allocation9_spill] sm:$0xff]  ;;  %4442 = vmatprep.subr.bf16.mxu0 %v12632_v19  ;;  %v1837_v21 = vadd.f32 %v19177_v37, %v19176_v63  ;;  %v19178_v63 = vld [vmem:[#allocation12_spill] sm:$0xff] }
 0x195   : > { %v2076_v12 = vpop.f32.mrf.mxu0  ;;  %v2149_v31 = vpop.f32.mrf.mxu1  ;;  %v1433_v60 = vadd.f32 %v19163_v44, %v14569_v29  ;;  %v19165_v7 = vld [vmem:[#allocation33_spill] sm:$0xff]  ;;  %v2250_v15 = vadd.f32 %v2143_v55, %v1850_v23  ;;  %v19167_v23 = vld [vmem:[#allocation3_spill] sm:$0xff] }
 0x196   : > { %v1854_v6 = vadd.f32 %v19165_v7, %v19164_v35  ;;  %v2253_v51 = vadd.f32 %v2076_v12, %v1853_v9  ;;  %v2255_v26 = vadd.f32 %v2149_v31, %v1855_v53  ;;  %v12629_v49 = vld [vmem:[%s18963_s3 + $0x748] ss:$20 sps:$4 sm:$0xff]   ;;  %v14684_v29 = vadd.f32 %v14428_v42, %v2249_v16  ;;  %v12627_v14 = vld [vmem:[%s18963_s3 + $0x744] ss:$20 sps:$4 sm:$0xff]  }
 0x197   : > { %v2078_v0 = vpop.f32.mrf.mxu0  ;;  %v12268_v35 = vpack.i.bf16 %v18983_v46, %v18984_v33  ;;  %v19166_v59 = vld [vmem:[#allocation37_spill] sm:$0xff]  ;;  %4381 = vmatprep.subr.bf16.mxu1 %v12629_v49  ;;  %v18989_v12 = vmax.f32 %v14666_v17, 0.0  ;;  %v14707_v31 = vadd.f32 %v14438_v45, %v2248_v11  ;;  %v12635_v11 = vld [vmem:[%s18963_s3 + $0x720] ss:$20 sps:$4 sm:$0xff]   ;;  %4443 = vmatpush2.bf16.msra.mxu0 %v12630_v13 }
 0x198   : > { %v1841_v55 = vadd.f32 %v19166_v59, %v1433_v60  ;;  %v14698_v16 = vadd.f32 %v14438_v45, %v2253_v51  ;;  %v14701_v2 = vadd.f32 %v14411_v4, %v2255_v26  ;;  %v2254_v9 = vadd.f32 %v2078_v0, %v1854_v6  ;;  %v19168_v25 = vld [vmem:[#allocation5_spill] sm:$0xff]  ;;  %v19169_v51 = vld [vmem:[#allocation31_spill] sm:$0xff]  ;;  %4382 = vmatpush2.bf16.msra.mxu1 %v12627_v14  ;;  %v19170_v59 = vld [vmem:[#allocation2_spill] sm:$0xff] }
 0x199   : > { %v1024_v53 = vadd.f32 %v19168_v25, %v19167_v23  ;;  %v18988_v44 = vmax.f32 %v14684_v29, 0.0  ;;  %12269 = vrot.lane.b32.xlu0 %v12268_v35, %s13500_s22  ;;  %v14711_v60 = vpop.f32.mrf.mxu0  ;;  %v1831_v7 = vadd.f32 %v19169_v51, %v1423_v22  ;;  %v18991_v0 = vmax.f32 %v14681_v10, 0.0  ;;  %v12633_v14 = vld [vmem:[%s18963_s3 + $0x71c] ss:$20 sps:$4 sm:$0xff]   ;;  %v19173_v23 = vld [vmem:[#allocation7_spill] sm:$0xff]  ;;  %v19175_v46 = vld [vmem:[#allocation34_spill] sm:$0xff]  ;;  %4383 = vmatprep.subr.bf16.mxu1 %v12635_v11 }
 0x19a   : > { %v2241_v6 = vadd.f32 %v14551_v1, %v1841_v55  ;;  %v18992_v26 = vmax.f32 %v14698_v16, 0.0  ;;  %v14717_v49 = vadd.f32 %v14428_v42, %v2254_v9  ;;  %v14724_v35 = vadd.f32 %v14411_v4, %v2250_v15  ;;  %v19171_v55 = vld [vmem:[#allocation6_spill] sm:$0xff]  ;;  %v19172_v15 = vld [vmem:[#allocation4_spill] sm:$0xff]  ;;  %v12638_v13 = vld [vmem:[%s18963_s3 + $0xa68] ss:$20 sps:$4 sm:$0xff]  }
 0x19b   : > { %v18994_v19 = vmax.f32 %v14701_v2, 0.0  ;;  %v14727_v22 = vpop.f32.mrf.mxu0  ;;  %v12273_v1 = vpack.i.bf16 %v18988_v44, %v18989_v12  ;;  %v14738_v9 = vadd.f32 %v19171_v55, %v19170_v59  ;;  %v1040_v25 = vadd.f32 %v19173_v23, %v19172_v15  ;;  %v19174_v51 = vld [vmem:[#allocation8_spill] sm:$0xff]  ;;  %v12636_v37 = vld [vmem:[%s18963_s3 + $0xa64] ss:$20 sps:$4 sm:$0xff]   ;;  %4444 = vmatprep.subr.bf16.mxu0 %v12638_v13 }
 0x19c   : > { %v1836_v33 = vadd.f32 %v19175_v46, %v19174_v51  ;;  %v2231_v44 = vadd.f32 %v14472_v52, %v1831_v7  ;;  %v18996_v12 = vmax.f32 %v14707_v31, 0.0  ;;  %v18997_v59 = vmax.f32 %v14717_v49, 0.0  ;;  %v19179_v52 = vld [vmem:[#allocation22_spill] sm:$0xff]  ;;  %v19180_v7 = vld [vmem:[#allocation40_spill] sm:$0xff]  ;;  %4384 = vmatpush2.bf16.msra.mxu1 %v12633_v14  ;;  %4445 = vmatpush2.bf16.msra.mxu0 %v12636_v37 }
 0x19d   : > { %12274 = vrot.lane.b32.xlu1 %v12273_v1, %s13500_s22  ;;  %v12136_v55 = vpop.f32.mrf.mxu0  ;;  %v12283_v46 = vpack.i.bf16 %v18991_v0, %v18992_v26  ;;  %v14762_v11 = vadd.f32 %v19178_v63, %v14629_v20  ;;  %v1827_v15 = vadd.f32 %v19180_v7, %v19179_v52  ;;  %v14767_v23 = vadd.f32 %v14461_v18, %v2241_v6  ;;  %v19181_v51 = vld [vmem:[#allocation24_spill] sm:$0xff]  ;;  %v19182_v6 = vld [vmem:[#allocation19_spill] sm:$0xff]  ;;  %v19184_v13 = vld [vmem:[#allocation42_spill] sm:$0xff] }
 0x19e   : > { %v2237_v1 = vadd.f32 %v12136_v55, %v1837_v21  ;;  %v1424_v28 = vadd.f32 %v19181_v51, %v1024_v53  ;;  %v2236_v0 = vadd.f32 %v14511_v5, %v1836_v33  ;;  %v18995_v26 = vmax.f32 %v14724_v35, 0.0  ;;  %v19183_v21 = vld [vmem:[#allocation23_spill] sm:$0xff]  ;;  %v2151_v53 = vpop.f32.mrf.mxu1  ;;  %v19185_v52 = vld [vmem:[#allocation10_spill] sm:$0xff]  ;;  %v19187_v14 = vld [vmem:[#allocation44_spill] sm:$0xff] }
 0x19f   : > { %12284 = vrot.lane.b32.xlu0 %v12283_v46, %s13500_s22  ;;  %v2192_v24 = vpop.f32.mrf.mxu0  ;;  %v12278_v20 = vpack.i.bf16 %v18996_v12, %v18994_v19  ;;  %v1451_v63 = vadd.f32 %v19182_v6, %v14565_v47  ;;  %v1842_v55 = vadd.f32 %v19184_v13, %v19183_v21  ;;  %v12641_v46 = vld [vmem:[%s18963_s3 + $0xa40] ss:$20 sps:$4 sm:$0xff]   ;;  %v19186_v7 = vld [vmem:[#allocation39_spill] sm:$0xff]  ;;  %v14791_v47 = vadd.f32 %v14461_v18, %v2231_v44  ;;  %v12639_v37 = vld [vmem:[%s18963_s3 + $0xa3c] ss:$20 sps:$4 sm:$0xff]  }
 0x1a0   : > { %v14782_v5 = vadd.f32 %v14590_v57, %v2237_v1  ;;  %v2227_v33 = vadd.f32 %v2192_v24, %v1827_v15  ;;  %v1846_v51 = vadd.f32 %v19186_v7, %v19185_v52  ;;  %v1832_v19 = vadd.f32 %v19187_v14, %v1424_v28  ;;  %4446 = vmatprep.subr.bf16.mxu0 %v12641_v46  ;;  %v19190_v13 = vld [vmem:[#allocation17_spill] sm:$0xff]  ;;  %v19191_v52 = vld [vmem:[#allocation35_spill] sm:$0xff]  ;;  %v2153_v15 = vpop.f32.mrf.mxu1 }
 0x1a1   : > { %12279 = vrot.lane.b32.xlu1 %v12278_v20, %s13500_s22  ;;  %v12137_v6 = vpop.f32.mrf.mxu0  ;;  %v12288_v24 = vpack.i.bf16 %v18997_v59, %v18995_v26  ;;  %v19189_v20 = vld [vmem:[#allocation28_spill] sm:$0xff]  ;;  %v1858_v7 = vadd.f32 %v19191_v52, %v19190_v13  ;;  %v14810_v14 = vadd.f32 %v14461_v18, %v2236_v0  ;;  %4447 = vmatpush2.bf16.msra.mxu0 %v12639_v37  ;;  %v19195_v0 = vld [vmem:[#allocation46_spill] sm:$0xff] }
 0x1a2   : > { %v19017_v1 = vmax.f32 %v14782_v5, 0.0  ;;  %v14804_v28 = vadd.f32 %v14590_v57, %v2227_v33  ;;  %v2242_v44 = vadd.f32 %v12137_v6, %v1842_v55  ;;  %v1444_v21 = vadd.f32 %v19189_v20, %v1040_v25  ;;  %v19192_v59 = vld [vmem:[#allocation36_spill] sm:$0xff]  ;;  %v19194_v6 = vld [vmem:[#allocation25_spill] sm:$0xff] }
 0x1a3   : > { %v2246_v26 = vadd.f32 %v14601_v48, %v1846_v51  ;;  %12289 = vrot.lane.b32.xlu0 %v12288_v24, %s13500_s22  ;;  %v2195_v12 = vpop.f32.mrf.mxu0  ;;  %v1859_v43 = vadd.f32 %v19192_v59, %v1451_v63  ;;  %v19193_v25 = vmax.f32 %v14767_v23, 0.0  ;;  %v1857_v20 = vadd.f32 %v19195_v0, %v19194_v6  ;;  %v19196_v13 = vld [vmem:[#allocation16_spill] sm:$0xff]  ;;  %v19197_v48 = vld [vmem:[#allocation47_spill] sm:$0xff]  ;;  %v19198_v24 = vld [vmem:[#allocation26_spill] sm:$0xff] }
 0x1a4   : > { %19188 = vst [vmem:[#allocation29_spill] sm:$0xff] %v14804_v28  ;;  %v2232_v55 = vadd.f32 %v2195_v12, %v1832_v19  ;;  %v1856_v51 = vadd.f32 %v19197_v48, %v19196_v13  ;;  %v19199_v52 = vld [vmem:[#allocation48_spill] sm:$0xff]  ;;  %v19200_v59 = vld [vmem:[#allocation18_spill] sm:$0xff]  ;;  %v19201_v63 = vld [vmem:[#allocation49_spill] sm:$0xff]  ;;  %v19018_v12 = vmax.f32 %v14791_v47, 0.0  ;;  %v19020_v6 = vmax.f32 %v14810_v14, 0.0 }
 0x1a5   : > { %v12293_v46 = vpack.i.bf16 %v19193_v25, %v19017_v1  ;;  %v1847_v39 = vadd.f32 %v19199_v52, %v19198_v24  ;;  %v1860_v41 = vadd.f32 %v19201_v63, %v19200_v59  ;;  %v12140_v33 = vpop.f32.mrf.mxu0  ;;  %v2259_v19 = vadd.f32 %v14727_v22, %v1859_v43 }
 0x1a6   : > { %v14831_v25 = vadd.f32 %v14590_v57, %v2242_v44  ;;  %v14834_v37 = vadd.f32 %v14590_v57, %v2232_v55  ;;  %v14839_v0 = vadd.f32 %v14461_v18, %v2246_v26  ;;  %v2258_v13 = vadd.f32 %v14711_v60, %v1858_v7  ;;  %v19205_v26 = vld [vmem:[#allocation20_spill] sm:$0xff]  ;;  %v19206_v60 = vld [vmem:[#allocation43_spill] sm:$0xff] }
 0x1a7   : > { %12294 = vrot.lane.b32.xlu1 %v12293_v46, %s13500_s22  ;;  %v2260_v48 = vadd.f32 %v2153_v15, %v1860_v41  ;;  %v2208_v24 = vpop.f32.mrf.mxu0  ;;  %v2257_v43 = vadd.f32 %v12140_v33, %v1857_v20  ;;  %v19204_v44 = vmax.f32 %v14804_v28, 0.0  ;;  %v12644_v46 = vld [vmem:[%s18963_s3 + $0xa18] ss:$20 sps:$4 sm:$0xff]   ;;  %v1453_v59 = vadd.f32 %v19205_v26, %v14738_v9  ;;  %v19207_v15 = vld [vmem:[#allocation54_spill] sm:$0xff] }
 0x1a8   : > { %19202 = vst [vmem:[#allocation30_spill] sm:$0xff] %v14831_v25  ;;  %19203 = vst [vmem:[#allocation13_spill] sm:$0xff] %v14834_v37  ;;  %v19011_v52 = vmax.f32 %v14834_v37, 0.0  ;;  %v2247_v22 = vadd.f32 %v2208_v24, %v1847_v39  ;;  %v1851_v41 = vadd.f32 %v19206_v60, %v14762_v11  ;;  %v1852_v7 = vadd.f32 %v19207_v15, %v1444_v21  ;;  %v12642_v39 = vld [vmem:[%s18963_s3 + $0xa14] ss:$20 sps:$4 sm:$0xff]   ;;  %v19213_v15 = vld [vmem:[#allocation53_spill] sm:$0xff] }
 0x1a9   : > { %v12298_v55 = vpack.i.bf16 %v19018_v12, %v19204_v44  ;;  %v2256_v63 = vadd.f32 %v2151_v53, %v1856_v51  ;;  %v12141_v33 = vpop.f32.mrf.mxu0  ;;  %v14859_v20 = vadd.f32 %v14428_v42, %v2259_v19  ;;  %v19012_v24 = vmax.f32 %v14831_v25, 0.0  ;;  %4448 = vmatprep.subr.bf16.mxu0 %v12644_v46  ;;  %v19209_v11 = vld [vmem:[#allocation27_spill] sm:$0xff]  ;;  %v19210_v53 = vld [vmem:[#allocation50_spill] sm:$0xff] }
 0x1aa   : > { %v14863_v44 = vadd.f32 %v14590_v57, %v2247_v22  ;;  %v12303_v9 = vpack.i.bf16 %v19020_v6, %v19011_v52  ;;  %v1862_v21 = vadd.f32 %v19210_v53, %v19209_v11  ;;  %v19019_v51 = vmax.f32 %v14839_v0, 0.0  ;;  %4449 = vmatpush2.bf16.msra.mxu0 %v12642_v39 }
 0x1ab   : > { %12299 = vrot.lane.b32.xlu1 %v12298_v55, %s13500_s22  ;;  %v2251_v42 = vadd.f32 %v14646_v50, %v1851_v41  ;;  %v14875_v19 = vadd.f32 %v14438_v45, %v2258_v13  ;;  %v2211_v22 = vpop.f32.mrf.mxu0  ;;  %v14878_v55 = vadd.f32 %v14411_v4, %v2260_v48  ;;  %v14881_v26 = vadd.f32 %v14590_v57, %v2257_v43  ;;  %v2155_v45 = vpop.f32.mrf.mxu1  ;;  %v12647_v43 = vld [vmem:[%s18963_s3 + $0x9f0] ss:$20 sps:$4 sm:$0xff]  }
 0x1ac   : > { %19208 = vst [vmem:[#allocation32_spill] sm:$0xff] %v14863_v44  ;;  %v19010_v46 = vmax.f32 %v14863_v44, 0.0  ;;  %v2252_v60 = vadd.f32 %v2211_v22, %v1852_v7  ;;  %12304 = vrot.lane.b32.xlu0 %v12303_v9, %s13500_s22  ;;  %v1861_v11 = vadd.f32 %v19213_v15, %v1453_v59  ;;  %v14887_v50 = vadd.f32 %v14461_v18, %v2256_v63  ;;  %v12645_v7 = vld [vmem:[%s18963_s3 + $0x9ec] ss:$20 sps:$4 sm:$0xff]  }
 0x1ad   : > { %19211 = vst [vmem:[#allocation11_spill] sm:$0xff] %v14878_v55  ;;  %19212 = vst [vmem:[#allocation41_spill] sm:$0xff] %v14881_v26  ;;  %v19015_v13 = vmax.f32 %v14859_v20, 0.0  ;;  %v2262_v41 = vadd.f32 %v12141_v33, %v1862_v21  ;;  %v12308_v48 = vpack.i.bf16 %v19019_v51, %v19012_v24  ;;  %v14904_v59 = vadd.f32 %v14461_v18, %v2251_v42 }
 0x1ae   : > { %v14891_v4 = vadd.f32 %v14590_v57, %v2252_v60  ;;  %v19016_v63 = vmax.f32 %v14875_v19, 0.0  ;;  %v19009_v33 = vmax.f32 %v14878_v55, 0.0  ;;  %v2261_v39 = vadd.f32 %v2155_v45, %v1861_v11  ;;  %4450 = vmatprep.subr.bf16.mxu0 %v12647_v43  ;;  %v14951_v43 = vld [vmem:[%s18963_s3 + $0xba4] sm:$0xff] }
 0x1af   : > { %2458 = vrot.lane.b32.xlu1 %v19010_v46, %s13500_s22  ;;  %v19003_v9 = vmax.f32 %v14881_v26, 0.0  ;;  %4451 = vmatpush2.bf16.msra.mxu0 %v12645_v7  ;;  %v19014_v53 = vmax.f32 %v14887_v50, 0.0  ;;  %v14915_v21 = vadd.f32 %v14590_v57, %v2262_v41  ;;  %v19013_v60 = vmax.f32 %v14904_v59, 0.0 }
 0x1b0   : > { %19214 = vst [vmem:[#allocation14_spill] sm:$0xff] %v14891_v4  ;;  %12309 = vrot.lane.b32.xlu0 %v12308_v48, %s13500_s22  ;;  %v19007_v42 = vmax.f32 %v14891_v4, 0.0  ;;  %v12313_v22 = vpack.i.bf16 %v19009_v33, %v19015_v13  ;;  %v14927_v15 = vadd.f32 %v14461_v18, %v2261_v39  ;;  %v12650_v18 = vld [vmem:[%s18963_s3 + $0x9c8] ss:$20 sps:$4 sm:$0xff]   ;;  %v12648_v48 = vld [vmem:[%s18963_s3 + $0x9c4] ss:$20 sps:$4 sm:$0xff]   ;;  %v10940_v39 = vcombine.high %v14951_v43, %v14951_v43 }
 0x1b1   : > { %19215 = vst [vmem:[#allocation45_spill] sm:$0xff] %v14915_v21  ;;  %v12323_v57 = vpack.i.bf16 %v19003_v9, %v19014_v53  ;;  %v19004_v11 = vmax.f32 %v14915_v21, 0.0  ;;  %4452 = vmatprep.subr.bf16.mxu0 %v12650_v18  ;;  %v12653_v9 = vld [vmem:[%s18963_s3 + $0x9a0] ss:$20 sps:$4 sm:$0xff]   ;;  %v12651_v18 = vld [vmem:[%s18963_s3 + $0x99c] ss:$20 sps:$4 sm:$0xff]  }
 0x1b2   : > { %19216 = vst [vmem:[#allocation9_spill] sm:$0xff] %v14927_v15  ;;  %v12318_v45 = vpack.i.bf16 %v19007_v42, %v19013_v60  ;;  %v19008_v41 = vmax.f32 %v14927_v15, 0.0  ;;  %v19218_v6 = vmax.f32 %v14501_v30, 0.0  ;;  %v19229_v37 = vmax.f32 %v14698_v16, 0.0 }
 0x1b3   : > { %2480 = vrot.lane.b32.xlu1 %v19016_v63, %s13500_s22  ;;  %4453 = vmatpush2.bf16.msra.mxu0 %v12648_v48  ;;  %v12661_v48 = vld [vmem:[%s18963_s3 + $0x700] ss:$20 sps:$4 sm:$0xff]   ;;  %v19217_v63 = vmax.f32 %v14548_v61, 0.0 }
 0x1b4   : > { %12314 = vrot.lane.b32.xlu0 %v12313_v22, %s13500_s22  ;;  %v12328_v7 = vpack.i.bf16 %v19004_v11, %v19008_v41  ;;  %v19005_v22 = vmov 65535   ;;  %4454 = vmatprep.subr.bf16.mxu0 %v12653_v9 }
 0x1b7   : > { %12324 = vrot.lane.b32.xlu1 %v12323_v57, %s13500_s22  ;;  %v4336_v57 = vsel %vm4334_vm5, 4294967295, %v19005_v22  ;;  %4455 = vmatpush2.bf16.msra.mxu0 %v12651_v18 }
 0x1b8   : > { %12319 = vrot.lane.b32.xlu0 %v12318_v45, %s13500_s22  ;;  %v14961_v45 = vsel %vm4335_vm6, %v4336_v57, 0  ;;  %4566 = vmatprep.subr.bf16.mxu0 %v12661_v48 }
 0x1b9   : > { %v4342_v11 = vand.u32 %v10940_v39, %v14961_v45 }
 0x1bb   : > { %4499 = vmatprep.subr.bf16.mxu1 %v4342_v11 }
 0x1bc   : > { %12329 = vrot.lane.b32.xlu0 %v12328_v7, %s13500_s22 }
 0x1fb   : > { %v14974_v57 = vpop.permute.xlu0 %12239 }
 0x1fc   : > { %v12245_v7 = vpop.permute.xlu1 %12244  ;;  %v19026_v41 = vunpack.i.h.bf16 %v14974_v57  ;;  %v12241_v9 = vunpack.i.l.bf16 %v14974_v57 }
 0x1fd   : > { %v12246_v60 = vunpack.i.l.bf16 %v12245_v7  ;;  %v12247_v51 = vunpack.i.h.bf16 %v12245_v7 }
 0x1fe   : > { %v2492_v24 = vsel %vm2490_vm7, %v12241_v9, %v19026_v41 }
 0x1ff   : > { %v14976_v22 = vpop.permute.xlu0 %12249  ;;  %v2491_v41 = vsel %vm2490_vm7, %v12246_v60, %v12241_v9  ;;  %v19222_v60 = vmax.f32 %v14483_v36, 0.0 }
 0x200   : > { %v19021_v42 = vunpack.i.h.bf16 %v14976_v22  ;;  %v12251_v39 = vunpack.i.l.bf16 %v14976_v22 }
 0x202   : > { %v14982_v11 = vpop.permute.xlu1 %12254  ;;  %v2496_v46 = vsel %vm2490_vm7, %v12251_v39, %v19021_v42  ;;  %v2495_v28 = vsel %vm2490_vm7, %v12247_v51, %v12251_v39  ;;  %v19221_v51 = vmax.f32 %v14470_v40, 0.0 }
 0x203   : > { %v19023_v18 = vunpack.i.h.bf16 %v14982_v11  ;;  %v12256_v48 = vunpack.i.l.bf16 %v14982_v11  ;;  %v2569_v42 = vmax.f32 %v19218_v6, %v2496_v46  ;;  %v19220_v46 = vmax.f32 %v14586_v3, 0.0 }
 0x204   : > { %v12260_v33 = vpop.permute.xlu0 %12259  ;;  %v15024_v7 = vmax.f32 %v19222_v60, %v2495_v28  ;;  %v19224_v3 = vmax.f32 %v14572_v58, 0.0 }
 0x205   : > { %v2500_v52 = vsel %vm2490_vm7, %v12256_v48, %v19023_v18  ;;  %v12261_v53 = vunpack.i.l.bf16 %v12260_v33  ;;  %v19219_v18 = vmax.f32 %v14457_v27, 0.0  ;;  %v12262_v4 = vunpack.i.h.bf16 %v12260_v33 }
 0x206   : > { %v14995_v13 = vpop.permute.xlu1 %12264  ;;  %v2574_v1 = vmax.f32 %v19217_v63, %v2500_v52  ;;  %v2648_v63 = vrot.slane %v2569_v42, 1 }
 0x207   : > { %v19030_v12 = vunpack.i.h.bf16 %v14995_v13  ;;  %v12266_v21 = vunpack.i.l.bf16 %v14995_v13  ;;  %v2564_v26 = vmax.f32 %v19219_v18, %v2492_v24  ;;  %v2499_v15 = vsel %vm2490_vm7, %v12261_v53, %v12256_v48 }
 0x208   : > { %v2661_v30 = vrot.slane %v2574_v1, 1  ;;  %v15020_v53 = vmax.f32 %v19221_v51, %v2491_v41  ;;  %v19225_v41 = vmax.f32 %v14635_v32, 0.0 }
 0x209   : > { %v2504_v61 = vsel %vm2490_vm7, %v12266_v21, %v19030_v12  ;;  %v2503_v6 = vsel %vm2490_vm7, %v12262_v4, %v12266_v21  ;;  %v2647_v9 = vrot.slane %v2564_v26, 1  ;;  %v19223_v4 = vmax.f32 %v14545_v38, 0.0 }
 0x20a   : > { %v2579_v27 = vmax.f32 %v19220_v46, %v2504_v61  ;;  %v2578_v18 = vmax.f32 %v19224_v3, %v2503_v6  ;;  %v2662_v40 = vsel %vm1080_vm3, %v2648_v63, %v2661_v30  ;;  %v2644_v58 = vrot.slane %v15020_v53, 1 }
 0x20b   : > { %v15011_v52 = vpop.permute.xlu0 %12269  ;;  %v2573_v21 = vmax.f32 %v19223_v4, %v2499_v15  ;;  %v2649_v28 = vsel %vm1080_vm3, %v2647_v9, %v2648_v63  ;;  %v2645_v6 = vrot.slane %v15024_v7, 1  ;;  %v2765_v60 = vmax.f32 %v2569_v42, %v2662_v40 }
 0x20c   : > { %v19029_v24 = vunpack.i.h.bf16 %v15011_v52  ;;  %v12271_v33 = vunpack.i.l.bf16 %v15011_v52  ;;  %v2671_v39 = vrot.slane %v2579_v27, 1  ;;  %v2669_v3 = vrot.slane %v2578_v18, 1 }
 0x20d   : > { %v2659_v4 = vrot.slane %v2573_v21, 1  ;;  %v19226_v9 = vmax.f32 %v14666_v17, 0.0 }
 0x20e   : > { %v2508_v48 = vsel %vm2490_vm7, %v12271_v33, %v19029_v24  ;;  %v2672_v46 = vsel %vm1080_vm3, %v2661_v30, %v2671_v39 }
 0x20f   : > { %v12275_v61 = vpop.permute.xlu1 %12274  ;;  %v15036_v36 = vmax.f32 %v19225_v41, %v2508_v48  ;;  %v2760_v41 = vmax.f32 %v2564_v26, %v2649_v28  ;;  %v2770_v63 = vmax.f32 %v2574_v1, %v2672_v46  ;;  %v2660_v17 = vsel %vm1080_vm3, %v2645_v6, %v2659_v4 }
 0x210   : > { %v12276_v38 = vunpack.i.l.bf16 %v12275_v61  ;;  %v12277_v55 = vunpack.i.h.bf16 %v12275_v61 }
 0x211   : > { %v15040_v15 = vpop.permute.xlu0 %12284  ;;  %v2681_v51 = vrot.slane %v15036_v36, 1 }
 0x212   : > { %v2507_v32 = vsel %vm2490_vm7, %v12276_v38, %v12271_v33  ;;  %v12286_v44 = vunpack.i.l.bf16 %v15040_v15 }
 0x213   : > { %v15046_v48 = vpop.permute.xlu1 %12279  ;;  %v2682_v30 = vsel %vm1080_vm3, %v2671_v39, %v2681_v51  ;;  %v15051_v24 = vmax.f32 %v19226_v9, %v2507_v32  ;;  %v15061_v39 = vpack.c.bf16 %v2765_v60, %v2760_v41 }
 0x214   : > { %v2775_v12 = vmax.f32 %v2579_v27, %v2682_v30  ;;  %v12282_v42 = vunpack.i.h.bf16 %v15046_v48  ;;  %v19033_v38 = vunpack.i.l.bf16 %v15046_v48  ;;  %v2670_v27 = vsel %vm1080_vm3, %v2659_v4, %v2669_v3 }
 0x215   : > { %v15055_v40 = vpop.permute.xlu0 %12289  ;;  %v2679_v33 = vrot.slane %v15051_v24, 1 }
 0x216   : > { %v12292_v1 = vunpack.i.h.bf16 %v15055_v40  ;;  %v19036_v26 = vunpack.i.l.bf16 %v15055_v40  ;;  %v15065_v61 = vpack.c.bf16 %v2775_v12, %v2770_v63  ;;  %v2511_v9 = vsel %vm2490_vm7, %v12282_v42, %v12277_v55 }
 0x217   : > { %v2680_v28 = vsel %vm1080_vm3, %v2669_v3, %v2679_v33  ;;  %v19227_v12 = vmax.f32 %v14717_v49, 0.0  ;;  %v19228_v3 = vmax.f32 %v14684_v29, 0.0  ;;  %v19230_v49 = vmax.f32 %v14707_v31, 0.0 }
 0x218   : > { %v2516_v46 = vsel %vm2490_vm7, %v12292_v1, %v19033_v38  ;;  %v2512_v32 = vsel %vm2490_vm7, %v12277_v55, %v19036_v26  ;;  %v2515_v30 = vsel %vm2490_vm7, %v12286_v44, %v12292_v1  ;;  %v2774_v41 = vmax.f32 %v2578_v18, %v2680_v28 }
 0x219   : > { %v15075_v60 = vpop.permute.xlu1 %12294  ;;  %v15080_v4 = vmax.f32 %v19227_v12, %v2516_v46  ;;  %v2589_v63 = vmax.f32 %v19228_v3, %v2512_v32  ;;  %v2646_v38 = vsel %vm1080_vm3, %v2644_v58, %v2645_v6  ;;  %v15087_v25 = vmax.f32 %v19229_v37, %v2515_v30 }
 0x21a   : > { %v3299_v44 = vrot.slane %v15065_v61, 1  ;;  %v2764_v1 = vmax.f32 %v15024_v7, %v2660_v17  ;;  %v2769_v18 = vmax.f32 %v2573_v21, %v2670_v27  ;;  %v3298_v55 = vrot.slane %v15061_v39, 1 }
 0x21b   : > { %v2588_v42 = vmax.f32 %v19230_v49, %v2511_v9  ;;  %v19037_v28 = vrot.slane %v15080_v4, 1  ;;  %v2691_v29 = vrot.slane %v2589_v63, 1  ;;  %v2759_v58 = vmax.f32 %v15020_v53, %v2646_v38 }
 0x21c   : > { %v15098_v16 = vpack.c.bf16 %v2774_v41, %v2769_v18  ;;  %v15103_v37 = vsel %vm1080_vm3, %v3298_v55, %v3299_v44  ;;  %v19043_v7 = vrot.slane %v15087_v25, 1  ;;  %v12287_v6 = vunpack.i.h.bf16 %v15040_v15 }
 0x21d   : > { %v15095_v46 = vpop.permute.xlu1 %12299  ;;  %4385 = vmatprep.mubr.bf16.mxu1 %v15103_v37  ;;  %v15109_v21 = vpack.c.bf16 %v2764_v1, %v2759_v58  ;;  %v10939_v53 = vcombine.low %v14951_v43, %v14951_v43  ;;  %v2689_v38 = vrot.slane %v2588_v42, 1  ;;  %v2692_v17 = vsel %vm1080_vm3, %v2681_v51, %v2691_v29 }
 0x21e   : > { %v15107_v31 = vpop.permute.xlu0 %12304  ;;  %v2702_v27 = vsel %vm1080_vm3, %v2691_v29, %v19037_v28  ;;  %v12302_v32 = vunpack.i.h.bf16 %v15095_v46  ;;  %v12297_v30 = vunpack.i.h.bf16 %v15075_v60  ;;  %v3296_v41 = vrot.slane %v15098_v16, 1 }
 0x21f   : > { %v2700_v15 = vsel %vm1080_vm3, %v2689_v38, %v19043_v7  ;;  %v12307_v9 = vunpack.i.h.bf16 %v15107_v31  ;;  %v2780_v51 = vmax.f32 %v15036_v36, %v2692_v17  ;;  %v2785_v12 = vmax.f32 %v2589_v63, %v2702_v27  ;;  %v12658_v36 = vld [vmem:[%s18963_s3 + $0xb80] ss:$20 sps:$4 sm:$0xff]  }
 0x220   : > { %v3295_v3 = vrot.slane %v15109_v21, 1  ;;  %v4339_v18 = vand.u32 %v10939_v53, %v14961_v45  ;;  %v19231_v55 = vunpack.i.h.bf16 %v14974_v57  ;;  %v2690_v29 = vsel %vm1080_vm3, %v2679_v33, %v2689_v38 }
 0x221   : > { %v15125_v43 = vpop.permute.xlu1 %2458  ;;  %v12296_v58 = vunpack.i.l.bf16 %v15075_v60  ;;  %v19232_v26 = vunpack.i.h.bf16 %v14976_v22  ;;  %v2784_v63 = vmax.f32 %v2588_v42, %v2700_v15  ;;  %v19233_v17 = vunpack.i.h.bf16 %v14995_v13 }
 0x222   : > { %v15129_v1 = vpop.permute.xlu0 %12309  ;;  %v2493_v49 = vsel %vm2490_vm7, %v19231_v55, %v12287_v6  ;;  %v19040_v57 = vunpack.i.l.bf16 %v15107_v31  ;;  %v15150_v33 = vsel %vm1080_vm3, %v3295_v3, %v3296_v41  ;;  %v19039_v22 = vunpack.i.l.bf16 %v15095_v46 }
 0x223   : > { %v2497_v28 = vsel %vm2490_vm7, %v19232_v26, %v12302_v32  ;;  %v2505_v53 = vsel %vm2490_vm7, %v19233_v17, %v12297_v30  ;;  %v19234_v26 = vunpack.i.h.bf16 %v14982_v11  ;;  %4386 = vmatmul.mubr.bf16.vlgmr.msra.gmra.mxu1 %v15150_v33  ;;  %v12312_v42 = vunpack.i.h.bf16 %v15129_v1  ;;  %v12656_v11 = vld [vmem:[%s18963_s3 + $0xb7c] ss:$20 sps:$4 sm:$0xff]  }
 0x224   : > { %v2779_v13 = vmax.f32 %v15051_v24, %v2690_v29  ;;  %v15159_v27 = vpack.c.bf16 %v2785_v12, %v2780_v51  ;;  %v19235_v15 = vmax.f32 %v14486_v8, 0.0  ;;  %v2502_v3 = vsel %vm2490_vm7, %v12307_v9, %v12296_v58  ;;  %4500 = vmatpush1.bf16.msra.mxu1 %v4339_v18 }
 0x225   : > { %v2501_v38 = vsel %vm2490_vm7, %v19234_v26, %v12307_v9  ;;  %v19236_v17 = vmax.f32 %v14447_v56, 0.0  ;;  %v19237_v24 = vmax.f32 %v14579_v54, 0.0  ;;  %v2481_v8 = vpop.permute.xlu1 %2480  ;;  %4501 = vmatprep.subr.bf16.mxu1 %v12658_v36  ;;  %v19238_v12 = vmax.f32 %v14525_v62, 0.0 }
 0x226   : > { %v15163_v55 = vmax.f32 %v19235_v15, %v2497_v28  ;;  %v12664_v28 = vld [vmem:[%s18963_s3 + $0xb58] ss:$20 sps:$4 sm:$0xff]   ;;  %v15182_v9 = vpack.c.bf16 %v2784_v63, %v2779_v13  ;;  %v2498_v56 = vsel %vm2490_vm7, %v12302_v32, %v19040_v57  ;;  %v2494_v54 = vsel %vm2490_vm7, %v12287_v6, %v19039_v22  ;;  %v12662_v15 = vld [vmem:[%s18963_s3 + $0xb54] ss:$20 sps:$4 sm:$0xff]  }
 0x227   : > { %v15173_v26 = vmax.f32 %v19236_v17, %v2493_v49  ;;  %v15177_v51 = vmax.f32 %v19237_v24, %v2505_v53  ;;  %v15186_v18 = vmax.f32 %v19238_v12, %v2501_v38  ;;  %v19239_v49 = vmax.f32 %v14810_v14, 0.0  ;;  %v15210_v14 = vpop.permute.xlu0 %12314 }
 0x228   : > { %v2510_v36 = vsel %vm2490_vm7, %v12312_v42, %v15125_v43  ;;  %v19041_v63 = vunpack.i.l.bf16 %v15129_v1  ;;  %v2651_v62 = vrot.slane %v15163_v55, 1  ;;  %v19240_v53 = vmax.f32 %v14839_v0, 0.0  ;;  %4502 = vmatpush1.bf16.msra.mxu1 %v12656_v11 }
 0x229   : > { %v15196_v29 = vmax.f32 %v19239_v49, %v2502_v3  ;;  %v19241_v32 = vunpack.i.h.bf16 %v15011_v52  ;;  %v19038_v6 = vrot.slane %v15159_v27, 1  ;;  %v2650_v3 = vrot.slane %v15173_v26, 1  ;;  %4503 = vmatprep.subr.bf16.mxu1 %v12664_v28 }
 0x22a   : > { %v15204_v38 = vmax.f32 %v19240_v53, %v2510_v36  ;;  %v2673_v17 = vrot.slane %v15177_v51, 1  ;;  %v19242_v0 = vmax.f32 %v14791_v47, 0.0  ;;  %v2506_v52 = vsel %vm2490_vm7, %v12297_v30, %v19041_v63 }
 0x22b   : > { %v2509_v13 = vsel %vm2490_vm7, %v19241_v32, %v12312_v42  ;;  %v12670_v42 = vld [vmem:[%s18963_s3 + $0xb30] ss:$20 sps:$4 sm:$0xff]   ;;  %v2663_v11 = vrot.slane %v15186_v18, 1  ;;  %v19243_v12 = vmax.f32 %v14767_v23, 0.0  ;;  %v19244_v36 = vmax.f32 %v14620_v34, 0.0  ;;  %v15251_v32 = vpop.permute.xlu1 %12324 }
 0x22c   : > { %v15219_v24 = vmax.f32 %v19242_v0, %v2498_v56  ;;  %v15241_v30 = vsel %vm1080_vm3, %v3299_v44, %v19038_v6  ;;  %v19245_v28 = vmax.f32 %v14681_v10, 0.0  ;;  %v2665_v53 = vrot.slane %v15196_v29, 1  ;;  %4504 = vmatpush1.bf16.msra.mxu1 %v12662_v15 }
 0x22d   : > { %v15230_v49 = vmax.f32 %v19243_v12, %v2506_v52  ;;  %v15234_v47 = vmax.f32 %v19244_v36, %v2509_v13  ;;  %4395 = vmatprep.mubr.bf16.mxu1 %v15241_v30  ;;  %v19042_v23 = vunpack.i.h.bf16 %v15210_v14  ;;  %v12316_v34 = vunpack.i.l.bf16 %v15210_v14  ;;  %4505 = vmatprep.subr.bf16.mxu1 %v12670_v42 }
 0x22e   : > { %v15245_v56 = vmax.f32 %v19245_v28, %v2494_v54  ;;  %v2652_v13 = vsel %vm1080_vm3, %v2650_v3, %v2651_v62  ;;  %v2685_v0 = vrot.slane %v15204_v38, 1  ;;  %v19044_v10 = vrot.slane %v15182_v9, 1  ;;  %v12668_v54 = vld [vmem:[%s18963_s3 + $0xb2c] ss:$20 sps:$4 sm:$0xff]  }
 0x22f   : > { %v2675_v44 = vrot.slane %v15230_v49, 1  ;;  %v2654_v52 = vrot.slane %v15219_v24, 1  ;;  %v2683_v12 = vrot.slane %v15234_v47, 1  ;;  %v2519_v36 = vsel %vm2490_vm7, %v2481_v8, %v12316_v34  ;;  %v12676_v8 = vld [vmem:[%s18963_s3 + $0xb08] ss:$20 sps:$4 sm:$0xff]  }
 0x230   : > { %v2520_v3 = vsel %vm2490_vm7, %v12316_v34, %v19042_v23  ;;  %v19246_v28 = vmax.f32 %v14782_v5, 0.0  ;;  %v2664_v6 = vsel %vm1080_vm3, %v2651_v62, %v2663_v11  ;;  %v12327_v22 = vunpack.i.h.bf16 %v15251_v32  ;;  %4506 = vmatpush1.bf16.msra.mxu1 %v12668_v54 }
 0x231   : > { %v12326_v57 = vunpack.i.l.bf16 %v15251_v32  ;;  %v2653_v63 = vrot.slane %v15245_v56, 1  ;;  %v2761_v42 = vmax.f32 %v15173_v26, %v2652_v13  ;;  %v2674_v60 = vsel %vm1080_vm3, %v2663_v11, %v2673_v17  ;;  %v12674_v11 = vld [vmem:[%s18963_s3 + $0xb04] ss:$20 sps:$4 sm:$0xff]   ;;  %4507 = vmatprep.subr.bf16.mxu1 %v12676_v8  ;;  %v12679_v32 = vld [vmem:[%s18963_s3 + $0x688] ss:$20 sps:$4 sm:$0xff]  }
 0x232   : > { %v15270_v15 = vmax.f32 %v19246_v28, %v12296_v58  ;;  %v2676_v5 = vsel %vm1080_vm3, %v2665_v53, %v2675_v44  ;;  %v15282_v58 = vpop.permute.xlu0 %12319  ;;  %v2686_v62 = vsel %vm1080_vm3, %v2675_v44, %v2685_v0  ;;  %v19247_v34 = vmax.f32 %v14875_v19, 0.0 }
 0x233   : > { %v19248_v23 = vmax.f32 %v14859_v20, 0.0  ;;  %v15296_v26 = vsel %vm1080_vm3, %v3296_v41, %v19044_v10  ;;  %v2655_v13 = vsel %vm1080_vm3, %v2653_v63, %v2654_v52  ;;  %v2666_v19 = vsel %vm1080_vm3, %v2654_v52, %v2665_v53  ;;  %v12682_v41 = vld [vmem:[%s18963_s3 + $0xae0] ss:$20 sps:$4 sm:$0xff]  }
 0x234   : > { %v2598_v28 = vmax.f32 %v19247_v34, %v2519_v36  ;;  %v2766_v44 = vmax.f32 %v15163_v55, %v2664_v6  ;;  %v2684_v20 = vsel %vm1080_vm3, %v2673_v17, %v2683_v12  ;;  %4396 = vmatmul.mubr.bf16.gmra.mxu1 %v15296_v26  ;;  %v19249_v36 = vunpack.i.l.bf16 %v15046_v48 }
 0x235   : > { %v2599_v7 = vmax.f32 %v19248_v23, %v2520_v3  ;;  %v2518_v55 = vsel %vm2490_vm7, %v12326_v57, %v12327_v22  ;;  %v2772_v6 = vmax.f32 %v15196_v29, %v2676_v5  ;;  %v2777_v17 = vmax.f32 %v15230_v49, %v2686_v62  ;;  %4508 = vmatpush1.bf16.msra.mxu1 %v12674_v11  ;;  %v12691_v11 = vld [vmem:[%s18963_s3 + $0x980] ss:$20 sps:$4 sm:$0xff]  }
 0x236   : > { %v2709_v23 = vrot.slane %v2598_v28, 1  ;;  %v2517_v63 = vsel %vm2490_vm7, %v19249_v36, %v12326_v57  ;;  %v12322_v53 = vunpack.i.h.bf16 %v15282_v58  ;;  %v12321_v52 = vunpack.i.l.bf16 %v15282_v58  ;;  %v12680_v57 = vld [vmem:[%s18963_s3 + $0xadc] ss:$20 sps:$4 sm:$0xff]   ;;  %v15342_v62 = vpop.permute.xlu0 %12329  ;;  %4509 = vmatprep.subr.bf16.mxu1 %v12682_v41 }
 0x237   : > { %v2711_v54 = vrot.slane %v2599_v7, 1  ;;  %v2762_v3 = vmax.f32 %v15245_v56, %v2655_v13  ;;  %v2767_v34 = vmax.f32 %v15219_v24, %v2666_v19  ;;  %v2776_v48 = vmax.f32 %v15177_v51, %v2684_v20 }
 0x238   : > { %v19250_v36 = vrot.slane %v15087_v25, 1  ;;  %v2771_v29 = vmax.f32 %v15186_v18, %v2674_v60  ;;  %v19251_v49 = vrot.slane %v15080_v4, 1  ;;  %v19252_v56 = vmax.f32 %v14701_v2, 0.0 }
 0x239   : > { %v19253_v51 = vmax.f32 %v14887_v50, 0.0  ;;  %v2794_v60 = vmax.f32 %v2598_v28, %v2709_v23  ;;  %v19254_v13 = vunpack.i.l.bf16 %v15055_v40  ;;  %v2514_v50 = vsel %vm2490_vm7, %v12321_v52, %v12322_v53  ;;  %v19258_v28 = vld [vmem:[#allocation30_spill] sm:$0xff]  ;;  %4510 = vmatpush1.bf16.msra.mxu1 %v12680_v57 }
 0x23a   : > { %v2710_v10 = vsel %vm1080_vm3, %v19250_v36, %v2709_v23  ;;  %v2712_v8 = vsel %vm1080_vm3, %v19251_v49, %v2711_v54  ;;  %v15336_v24 = vmax.f32 %v19252_v56, %v2517_v63  ;;  %v15356_v19 = vpack.c.bf16 %v2766_v44, %v2761_v42  ;;  %4637 = vmatprep.subr.bf16.mxu1 %v12691_v11 }
 0x23b   : > { %v15340_v5 = vmax.f32 %v19253_v51, %v2518_v55  ;;  %v15348_v18 = vmax.f32 %v15087_v25, %v2710_v10  ;;  %v2513_v2 = vsel %vm2490_vm7, %v19254_v13, %v12321_v52  ;;  %v15358_v20 = vpack.c.bf16 %v2777_v17, %v2772_v6 }
 0x23c   : > { %v19255_v41 = vmax.f32 %v14724_v35, 0.0  ;;  %v19256_v55 = vmax.f32 %v14904_v59, 0.0  ;;  %v15364_v10 = vpack.c.bf16 %v2767_v34, %v2762_v3  ;;  %v19257_v40 = vunpack.i.l.bf16 %v15129_v1 }
 0x23d   : > { %v19259_v23 = vmax.f32 %v19258_v28, 0.0  ;;  %v15372_v49 = vpack.c.bf16 %v2776_v48, %v2771_v29  ;;  %v12331_v42 = vunpack.i.l.bf16 %v15342_v62  ;;  %v15376_v44 = vmax.f32 %v15080_v4, %v2712_v8 }
 0x23e   : > { %v2590_v63 = vmax.f32 %v19255_v41, %v2513_v2  ;;  %v2591_v25 = vmax.f32 %v19256_v55, %v2514_v50  ;;  %v2795_v35 = vmax.f32 %v2599_v7, %v2711_v54  ;;  %v15379_v17 = vpack.c.bf16 %v2794_v60, %v15348_v18  ;;  %v19262_v60 = vld [vmem:[#allocation13_spill] sm:$0xff]  ;;  %v19264_v50 = vld [vmem:[#allocation32_spill] sm:$0xff] }
 0x23f   : > { %v15370_v36 = vmax.f32 %v19259_v23, %v19257_v40  ;;  %v2703_v1 = vrot.slane %v15336_v24, 1  ;;  %v2705_v52 = vrot.slane %v15340_v5, 1  ;;  %v12332_v3 = vunpack.i.h.bf16 %v15342_v62 }
 0x240   : > { %v2693_v6 = vrot.slane %v2590_v63, 1  ;;  %v2695_v59 = vrot.slane %v2591_v25, 1  ;;  %v19260_v7 = vunpack.i.h.bf16 %v15210_v14  ;;  %v3305_v48 = vrot.slane %v15358_v20, 1 }
 0x241   : > { %v19261_v14 = vunpack.i.l.bf16 %v15107_v31  ;;  %v19263_v13 = vmax.f32 %v19262_v60, 0.0  ;;  %v19265_v41 = vmax.f32 %v19264_v50, 0.0  ;;  %v2677_v40 = vrot.slane %v15370_v36, 1  ;;  %v19268_v31 = vld [vmem:[#allocation9_spill] sm:$0xff] }
 0x242   : > { %v2694_v34 = vsel %vm1080_vm3, %v2683_v12, %v2693_v6  ;;  %v2696_v4 = vsel %vm1080_vm3, %v2685_v0, %v2695_v59  ;;  %v2521_v54 = vsel %vm2490_vm7, %v19260_v7, %v12331_v42  ;;  %v2704_v57 = vsel %vm1080_vm3, %v2693_v6, %v2703_v1  ;;  %v12659_v7 = vld [vmem:[%s18963_s3 + $0x6fc] ss:$20 sps:$4 sm:$0xff]  }
 0x243   : > { %v2706_v29 = vsel %vm1080_vm3, %v2695_v59, %v2705_v52  ;;  %v2781_v8 = vmax.f32 %v15234_v47, %v2694_v34  ;;  %v2782_v56 = vmax.f32 %v15204_v38, %v2696_v4  ;;  %v15399_v12 = vpack.c.bf16 %v2795_v35, %v15376_v44  ;;  %v19266_v47 = vld [vmem:[#allocation11_spill] sm:$0xff] }
 0x244   : > { %v2786_v51 = vmax.f32 %v2590_v63, %v2704_v57  ;;  %v2787_v11 = vmax.f32 %v2591_v25, %v2706_v29  ;;  %v3304_v0 = vrot.slane %v15364_v10, 1  ;;  %v15406_v2 = vmax.f32 %v19263_v13, %v19261_v14  ;;  %v12667_v13 = vld [vmem:[%s18963_s3 + $0x6d8] ss:$20 sps:$4 sm:$0xff]  }
 0x245   : > { %v15411_v55 = vmax.f32 %v19265_v41, %v15125_v43  ;;  %v2522_v38 = vsel %vm2490_vm7, %v12331_v42, %v12332_v3  ;;  %v19267_v63 = vmax.f32 %v19266_v47, 0.0  ;;  %v19269_v23 = vmax.f32 %v19268_v31, 0.0 }
 0x246   : > { %v15419_v28 = vpack.c.bf16 %v2787_v11, %v2782_v56  ;;  %v15424_v6 = vsel %vm1080_vm3, %v3304_v0, %v3305_v48  ;;  %v15426_v59 = vpack.c.bf16 %v2786_v51, %v2781_v8  ;;  %v3301_v42 = vrot.slane %v15356_v19, 1  ;;  %v19271_v51 = vld [vmem:[#allocation29_spill] sm:$0xff] }
 0x247   : > { %v2600_v25 = vmax.f32 %v19267_v63, %v2521_v54  ;;  %v2601_v35 = vmax.f32 %v19269_v23, %v2522_v38  ;;  %4456 = vmatprep.mubr.bf16.mxu0 %v15424_v6  ;;  %v3302_v34 = vrot.slane %v15372_v49, 1  ;;  %v15435_v54 = vrot.slane %v15399_v12, 1 }
 0x248   : > { %v15438_v57 = vrot.slane %v15379_v17, 1  ;;  %v3316_v29 = vrot.slane %v15419_v28, 1  ;;  %v2667_v8 = vrot.slane %v15270_v15, 1  ;;  %v19270_v56 = vunpack.i.l.bf16 %v15095_v46 }
 0x249   : > { %v2713_v43 = vrot.slane %v2600_v25, 1  ;;  %v2715_v4 = vrot.slane %v2601_v35, 1  ;;  %v19272_v11 = vmax.f32 %v19271_v51, 0.0  ;;  %v2657_v14 = vrot.slane %v15406_v2, 1  ;;  %v19275_v51 = vld [vmem:[#allocation14_spill] sm:$0xff] }
 0x24a   : > { %v2687_v60 = vrot.slane %v15411_v55, 1  ;;  %v15454_v47 = vsel %vm1080_vm3, %v3301_v42, %v3302_v34  ;;  %v19273_v63 = vrot.slane %v15159_v27, 1  ;;  %v15473_v23 = vsel %vm1080_vm3, %v3305_v48, %v3316_v29 }
 0x24b   : > { %v2567_v0 = vmax.f32 %v19272_v11, %v19270_v56  ;;  %v2714_v50 = vsel %vm1080_vm3, %v2703_v1, %v2713_v43  ;;  %v2716_v41 = vsel %vm1080_vm3, %v2705_v52, %v2715_v4  ;;  %v2797_v38 = vmax.f32 %v2601_v35, %v2715_v4  ;;  %4457 = vmatmul.mubr.bf16.vlgmr.msra.gmra.mxu0 %v15454_v47  ;;  %v12665_v35 = vld [vmem:[%s18963_s3 + $0x6d4] ss:$20 sps:$4 sm:$0xff]  }
 0x24c   : > { %v15457_v46 = vmax.f32 %v15340_v5, %v2716_v41  ;;  %v15464_v31 = vsel %vm1080_vm3, %v19273_v63, %v15435_v54  ;;  %v19274_v1 = vrot.slane %v15182_v9, 1  ;;  %v2678_v5 = vsel %vm1080_vm3, %v2667_v8, %v2677_v40  ;;  %4567 = vmatpush1.bf16.msra.mxu0 %v12659_v7  ;;  %v12673_v7 = vld [vmem:[%s18963_s3 + $0x6b0] ss:$20 sps:$4 sm:$0xff]   ;;  %4466 = vmatprep.mubr.bf16.mxu0 %v15473_v23 }
 0x24d   : > { %4405 = vmatprep.mubr.bf16.mxu1 %v15464_v31  ;;  %v3314_v42 = vrot.slane %v15426_v59, 1  ;;  %v2656_v4 = vrot.slane %v2567_v0, 1  ;;  %v2688_v56 = vsel %vm1080_vm3, %v2677_v40, %v2687_v60  ;;  %v19276_v11 = vmax.f32 %v19275_v51, 0.0  ;;  %4568 = vmatprep.subr.bf16.mxu0 %v12667_v13  ;;  %v19277_v40 = vld [vmem:[#allocation41_spill] sm:$0xff] }
 0x24e   : > { %v15470_v52 = vsel %vm1080_vm3, %v19274_v1, %v15438_v57  ;;  %v15487_v41 = vpack.c.bf16 %v2797_v38, %v15457_v46  ;;  %v15494_v63 = vmax.f32 %v15336_v24, %v2714_v50  ;;  %v2796_v1 = vmax.f32 %v2600_v25, %v2713_v43  ;;  %v12671_v43 = vld [vmem:[%s18963_s3 + $0x6ac] ss:$20 sps:$4 sm:$0xff]  }
 0x24f   : > { %v2592_v48 = vmax.f32 %v19276_v11, %v12322_v53  ;;  %4406 = vmatmul.mubr.bf16.gmra.mxu1 %v15470_v52  ;;  %v2658_v58 = vsel %vm1080_vm3, %v2656_v4, %v2657_v14  ;;  %v2668_v53 = vsel %vm1080_vm3, %v2657_v14, %v2667_v8  ;;  %v19278_v13 = vmax.f32 %v19277_v40, 0.0  ;;  %v12685_v11 = vld [vmem:[%s18963_s3 + $0x660] ss:$20 sps:$4 sm:$0xff]  }
 0x250   : > { %4415 = vmatprep.mubr.bf16.mxu1 %v15435_v54  ;;  %v15505_v51 = vrot.slane %v15487_v41, 1  ;;  %v2773_v24 = vmax.f32 %v15270_v15, %v2678_v5  ;;  %v2778_v25 = vmax.f32 %v15370_v36, %v2688_v56  ;;  %4569 = vmatpush1.bf16.msra.mxu0 %v12665_v35  ;;  %v15513_v50 = vsel %vm1080_vm3, %v3302_v34, %v3314_v42 }
 0x251   : > { %v2597_v38 = vmax.f32 %v19278_v13, %v12327_v22  ;;  %v2697_v8 = vrot.slane %v2592_v48, 1  ;;  %4570 = vmatprep.subr.bf16.mxu0 %v12673_v7  ;;  %v2763_v15 = vmax.f32 %v2567_v0, %v2658_v58  ;;  %v2768_v36 = vmax.f32 %v15406_v2, %v2668_v53  ;;  %v19279_v2 = vld [vmem:[#allocation45_spill] sm:$0xff] }
 0x252   : > { %v15517_v22 = vsel %vm1080_vm3, %v3316_v29, %v15505_v51  ;;  %v15524_v14 = vpack.c.bf16 %v2796_v1, %v15494_v63  ;;  %v15527_v34 = vpack.c.bf16 %v2778_v25, %v2773_v24  ;;  %v12677_v29 = vld [vmem:[%s18963_s3 + $0x684] ss:$20 sps:$4 sm:$0xff]   ;;  %v19280_v4 = vmax.f32 %v19279_v2, 0.0 }
 0x253   : > { %v2707_v5 = vrot.slane %v2597_v38, 1  ;;  %4467 = vmatmul.mubr.bf16.gmra.mxu0 %v15513_v50  ;;  %v2698_v35 = vsel %vm1080_vm3, %v2687_v60, %v2697_v8  ;;  %v15543_v7 = vpack.c.bf16 %v2768_v36, %v2763_v15  ;;  %v19281_v60 = vmov 0   ;;  %v12688_v13 = vld [vmem:[%s18963_s3 + $0x638] ss:$20 sps:$4 sm:$0xff]   ;;  %v12694_v15 = vld [vmem:[%s18963_s3 + $0x610] ss:$20 sps:$4 sm:$0xff]  }
 0x254   : > { %4571 = vmatpush1.bf16.msra.mxu0 %v12671_v43  ;;  %4476 = vmatprep.mubr.bf16.mxu0 %v15517_v22  ;;  %v2602_v56 = vmax.f32 %v19280_v4, %v12332_v3  ;;  %v15546_v1 = vrot.slane %v15524_v14, 1  ;;  %v2783_v58 = vmax.f32 %v15411_v55, %v2698_v35  ;;  %v12683_v3 = vld [vmem:[%s18963_s3 + $0x65c] ss:$20 sps:$4 sm:$0xff]   ;;  %v3308_v53 = vrot.slane %v15527_v34, 1  ;;  %v12697_v25 = vld [vmem:[%s18963_s3 + $0x958] ss:$20 sps:$4 sm:$0xff]  }
 0x255   : > { %v2708_v0 = vsel %vm1080_vm3, %v2697_v8, %v2707_v5  ;;  %4572 = vmatprep.subr.bf16.mxu0 %v12679_v32  ;;  %v12689_v55 = vld [vmem:[%s18963_s3 + $0x97c] ss:$20 sps:$4 sm:$0xff]   ;;  %v12695_v36 = vld [vmem:[%s18963_s3 + $0x954] ss:$20 sps:$4 sm:$0xff]  }
 0x256   : > { %v2788_v62 = vmax.f32 %v2592_v48, %v2708_v0  ;;  %v2717_v40 = vrot.slane %v2602_v56, 1  ;;  %v15559_v24 = vsel %vm1080_vm3, %v3314_v42, %v15546_v1  ;;  %v3307_v48 = vrot.slane %v15543_v7, 1  ;;  %v12686_v42 = vld [vmem:[%s18963_s3 + $0x634] ss:$20 sps:$4 sm:$0xff]   ;;  %v12692_v0 = vld [vmem:[%s18963_s3 + $0x60c] ss:$20 sps:$4 sm:$0xff]  }
 0x257   : > { %4416 = vmatmul.mubr.bf16.gmra.mxu1 %v15438_v57  ;;  %v12700_v4 = vld [vmem:[%s18963_s3 + $0x5e8] ss:$20 sps:$4 sm:$0xff]  }
 0x258   : > { %4527 = vmatprep.mubr.bf16.mxu1 %v19281_v60  ;;  %4573 = vmatpush1.bf16.msra.mxu0 %v12677_v29  ;;  %v15569_v43 = vpack.c.bf16 %v2788_v62, %v2783_v58  ;;  %v15576_v8 = vsel %vm1080_vm3, %v3307_v48, %v3308_v53  ;;  %v2718_v32 = vsel %vm1080_vm3, %v2707_v5, %v2717_v40  ;;  %v12703_v5 = vld [vmem:[%s18963_s3 + $0x930] ss:$20 sps:$4 sm:$0xff]   ;;  %v12712_v48 = vld [vmem:[%s18963_s3 + $0x818] ss:$20 sps:$4 sm:$0xff]  }
 0x259   : > { %4574 = vmatprep.subr.bf16.mxu0 %v12685_v11  ;;  %v15591_v29 = vmax.f32 %v2597_v38, %v2718_v32  ;;  %v2798_v35 = vmax.f32 %v2602_v56, %v2717_v40  ;;  %v12701_v11 = vld [vmem:[%s18963_s3 + $0x92c] ss:$20 sps:$4 sm:$0xff]   ;;  %v12709_v38 = vld [vmem:[%s18963_s3 + $0x908] ss:$20 sps:$4 sm:$0xff]   ;;  %v12698_v58 = vld [vmem:[%s18963_s3 + $0x5e4] ss:$20 sps:$4 sm:$0xff]  }
 0x25a   : > { %v3318_v2 = vrot.slane %v15569_v43, 1  ;;  %v12707_v40 = vld [vmem:[%s18963_s3 + $0x904] ss:$20 sps:$4 sm:$0xff]   ;;  %v12710_v32 = vld [vmem:[%s18963_s3 + $0x814] ss:$20 sps:$4 sm:$0xff]  }
 0x25b   : > { %4477 = vmatmul.mubr.bf16.gmra.mxu0 %v15559_v24  ;;  %v15608_v56 = vpack.c.bf16 %v2798_v35, %v15591_v29  ;;  %v12727_v35 = vld [vmem:[%s18963_s3 + $0x890] ss:$20 sps:$4 sm:$0xff]  }
 0x25c   : > { %4575 = vmatpush1.bf16.msra.mxu0 %v12683_v3  ;;  %4486 = vmatprep.mubr.bf16.mxu0 %v15505_v51  ;;  %v15615_v62 = vsel %vm1080_vm3, %v3308_v53, %v3318_v2  ;;  %v12706_v3 = vld [vmem:[%s18963_s3 + $0x840] ss:$20 sps:$4 sm:$0xff]  }
 0x25d   : > { %4576 = vmatprep.subr.bf16.mxu0 %v12688_v13  ;;  %v12715_v53 = vld [vmem:[%s18963_s3 + $0x8e0] ss:$20 sps:$4 sm:$0xff]   ;;  %v15630_v13 = vrot.slane %v15608_v56, 1 }
 0x25f   : > { %10944 = vmatmul.mubr.msk.bf16.vlgmr.msra.gmra.mxu1 %vm4321_vm8, %v15576_v8 }
 0x260   : > { %4638 = vmatpush1.bf16.msra.mxu1 %v12689_v55  ;;  %4537 = vmatprep.mubr.bf16.mxu1 %v19281_v60  ;;  %v12704_v55 = vld [vmem:[%s18963_s3 + $0x83c] ss:$20 sps:$4 sm:$0xff]  }
 0x261   : > { %4639 = vmatprep.subr.bf16.mxu1 %v12697_v25  ;;  %4577 = vmatpush1.bf16.msra.mxu0 %v12686_v42  ;;  %v12713_v25 = vld [vmem:[%s18963_s3 + $0x8dc] ss:$20 sps:$4 sm:$0xff]   ;;  %v12721_v42 = vld [vmem:[%s18963_s3 + $0x8b8] ss:$20 sps:$4 sm:$0xff]  }
 0x262   : > { %4578 = vmatprep.subr.bf16.mxu0 %v12694_v15  ;;  %v15649_v15 = vsel %vm1080_vm3, %v3318_v2, %v15630_v13  ;;  %v12724_v2 = vld [vmem:[%s18963_s3 + $0x7c8] ss:$20 sps:$4 sm:$0xff]  }
 0x263   : > { %4487 = vmatmul.mubr.bf16.gmra.mxu0 %v15546_v1 }
 0x264   : > { %4640 = vmatpush1.bf16.msra.mxu1 %v12695_v36  ;;  %4598 = vmatprep.mubr.bf16.mxu0 %v15103_v37  ;;  %v12718_v36 = vld [vmem:[%s18963_s3 + $0x7f0] ss:$20 sps:$4 sm:$0xff]  }
 0x265   : > { %4641 = vmatprep.subr.bf16.mxu1 %v12703_v5  ;;  %4579 = vmatpush1.bf16.msra.mxu0 %v12692_v0  ;;  %v12719_v5 = vld [vmem:[%s18963_s3 + $0x8b4] ss:$20 sps:$4 sm:$0xff]   ;;  %v12716_v0 = vld [vmem:[%s18963_s3 + $0x7ec] ss:$20 sps:$4 sm:$0xff]  }
 0x266   : > { %4580 = vmatprep.subr.bf16.mxu0 %v12700_v4  ;;  %v12725_v4 = vld [vmem:[%s18963_s3 + $0x88c] ss:$20 sps:$4 sm:$0xff]  }
 0x267   : > { %10945 = vmatmul.mubr.msk.bf16.gmra.mxu1 %vm4321_vm8, %v15615_v62 }
 0x268   : > { %4642 = vmatpush1.bf16.msra.mxu1 %v12701_v11  ;;  %4547 = vmatprep.mubr.bf16.mxu1 %v19281_v60  ;;  %v12733_v11 = vld [vmem:[%s18963_s3 + $0x868] ss:$20 sps:$4 sm:$0xff]  }
 0x269   : > { %4643 = vmatprep.subr.bf16.mxu1 %v12709_v38  ;;  %4581 = vmatpush1.bf16.msra.mxu0 %v12698_v58  ;;  %v12722_v38 = vld [vmem:[%s18963_s3 + $0x7c4] ss:$20 sps:$4 sm:$0xff]   ;;  %v12730_v58 = vld [vmem:[%s18963_s3 + $0x7a0] ss:$20 sps:$4 sm:$0xff]  }
 0x26a   : > { %4582 = vmatprep.subr.bf16.mxu0 %v12706_v3  ;;  %v12731_v3 = vld [vmem:[%s18963_s3 + $0x864] ss:$20 sps:$4 sm:$0xff]  }
 0x26c   : > { %4644 = vmatpush1.bf16.msra.mxu1 %v12707_v40  ;;  %v12739_v40 = vld [vmem:[%s18963_s3 + $0xac0] ss:$20 sps:$4 sm:$0xff]  }
 0x26d   : > { %4645 = vmatprep.subr.bf16.mxu1 %v12715_v53  ;;  %4583 = vmatpush2.bf16.msra.mxu0 %v12704_v55  ;;  %v12728_v53 = vld [vmem:[%s18963_s3 + $0x79c] ss:$20 sps:$4 sm:$0xff]   ;;  %v12736_v55 = vld [vmem:[%s18963_s3 + $0x778] ss:$20 sps:$4 sm:$0xff]  }
 0x26e   : > { %4584 = vmatprep.subr.bf16.mxu0 %v12712_v48  ;;  %v12737_v48 = vld [vmem:[%s18963_s3 + $0xabc] ss:$20 sps:$4 sm:$0xff]  }
 0x26f   : > { %10946 = vmatmul.mubr.msk.bf16.gmra.mxu1 %vm4321_vm8, %v15649_v15 }
 0x270   : > { %4646 = vmatpush1.bf16.msra.mxu1 %v12713_v25  ;;  %4557 = vmatprep.mubr.bf16.mxu1 %v19281_v60  ;;  %v12745_v25 = vld [vmem:[%s18963_s3 + $0xa98] ss:$20 sps:$4 sm:$0xff]  }
 0x271   : > { %4647 = vmatprep.subr.bf16.mxu1 %v12721_v42  ;;  %4585 = vmatpush2.bf16.msra.mxu0 %v12710_v32  ;;  %v12734_v42 = vld [vmem:[%s18963_s3 + $0x774] ss:$20 sps:$4 sm:$0xff]   ;;  %v12742_v32 = vld [vmem:[%s18963_s3 + $0x750] ss:$20 sps:$4 sm:$0xff]  }
 0x272   : > { %4586 = vmatprep.subr.bf16.mxu0 %v12718_v36  ;;  %v12743_v36 = vld [vmem:[%s18963_s3 + $0xa94] ss:$20 sps:$4 sm:$0xff]  }
 0x274   : > { %4648 = vmatpush1.bf16.msra.mxu1 %v12719_v5  ;;  %v10752_v5 = vld [vmem:[%s18963_s3 + $0xbac] sm:$0xff] }
 0x275   : > { %4649 = vmatprep.subr.bf16.mxu1 %v12727_v35  ;;  %4587 = vmatpush2.bf16.msra.mxu0 %v12716_v0  ;;  %v12751_v35 = vld [vmem:[%s18963_s3 + $0xa70] ss:$20 sps:$4 sm:$0xff]   ;;  %v12740_v0 = vld [vmem:[%s18963_s3 + $0x74c] ss:$20 sps:$4 sm:$0xff]  }
 0x276   : > { %4588 = vmatprep.subr.bf16.mxu0 %v12724_v2  ;;  %v12748_v2 = vld [vmem:[%s18963_s3 + $0x728] ss:$20 sps:$4 sm:$0xff]  }
 0x277   : > { %10947 = vmatmul.mubr.msk.bf16.gmra.mxu1 %vm4321_vm8, %v15630_v13 }
 0x278   : > { %4650 = vmatpush1.bf16.msra.mxu1 %v12725_v4  ;;  %4669 = vmatprep.mubr.bf16.mxu1 %v15424_v6  ;;  %v10942_v4 = vcombine.high %v10752_v5, %v10752_v5 }
 0x279   : > { %4651 = vmatprep.subr.bf16.mxu1 %v12733_v11  ;;  %4589 = vmatpush2.bf16.msra.mxu0 %v12722_v38  ;;  %v12749_v11 = vld [vmem:[%s18963_s3 + $0xa6c] ss:$20 sps:$4 sm:$0xff]   ;;  %v12754_v38 = vld [vmem:[%s18963_s3 + $0xa48] ss:$20 sps:$4 sm:$0xff]  }
 0x27a   : > { %4590 = vmatprep.subr.bf16.mxu0 %v12730_v58  ;;  %v12746_v58 = vld [vmem:[%s18963_s3 + $0x724] ss:$20 sps:$4 sm:$0xff]  }
 0x27c   : > { %4652 = vmatpush1.bf16.msra.mxu1 %v12731_v3  ;;  %v10941_v3 = vcombine.low %v10752_v5, %v10752_v5  ;;  %v12771_v5 = vld [vmem:[%s18963_s3 + $0xb60] ss:$20 sps:$4 sm:$0xff]  }
 0x27d   : > { %4653 = vmatprep.subr.bf16.mxu1 %v12739_v40  ;;  %4591 = vmatpush2.bf16.msra.mxu0 %v12728_v53  ;;  %v4348_v40 = vand.u32 %v10942_v4, %v14961_v45  ;;  %v12752_v53 = vld [vmem:[%s18963_s3 + $0xa44] ss:$20 sps:$4 sm:$0xff]  }
 0x27e   : > { %4592 = vmatprep.subr.bf16.mxu0 %v12736_v55  ;;  %v12757_v55 = vld [vmem:[%s18963_s3 + $0xa20] ss:$20 sps:$4 sm:$0xff]   ;;  %v12777_v4 = vld [vmem:[%s18963_s3 + $0xb38] ss:$20 sps:$4 sm:$0xff]  }
 0x280   : > { %4654 = vmatpush2.bf16.msra.mxu1 %v12737_v48  ;;  %v4345_v48 = vand.u32 %v10941_v3, %v14961_v45  ;;  %v12782_v3 = vld [vmem:[%s18963_s3 + $0xb10] ss:$20 sps:$4 sm:$0xff]  }
 0x281   : > { %4655 = vmatprep.subr.bf16.mxu1 %v12745_v25  ;;  %4593 = vmatpush2.bf16.msra.mxu0 %v12734_v42  ;;  %v12765_v25 = vld [vmem:[%s18963_s3 + $0xb88] ss:$20 sps:$4 sm:$0xff]  }
 0x282   : > { %4594 = vmatprep.subr.bf16.mxu0 %v12742_v32  ;;  %v12755_v42 = vld [vmem:[%s18963_s3 + $0xa1c] ss:$20 sps:$4 sm:$0xff]   ;;  %v12762_v32 = vld [vmem:[%s18963_s3 + $0x9f8] ss:$20 sps:$4 sm:$0xff]  }
 0x284   : > { %4656 = vmatpush2.bf16.msra.mxu1 %v12743_v36  ;;  %v12763_v36 = vld [vmem:[%s18963_s3 + $0xb84] ss:$20 sps:$4 sm:$0xff]  }
 0x285   : > { %4657 = vmatprep.subr.bf16.mxu1 %v12751_v35  ;;  %4595 = vmatpush2.bf16.msra.mxu0 %v12740_v0  ;;  %v12760_v35 = vld [vmem:[%s18963_s3 + $0x9f4] ss:$20 sps:$4 sm:$0xff]   ;;  %v12768_v0 = vld [vmem:[%s18963_s3 + $0x9d0] ss:$20 sps:$4 sm:$0xff]  }
 0x286   : > { %4596 = vmatprep.subr.bf16.mxu0 %v12748_v2  ;;  %v12769_v2 = vld [vmem:[%s18963_s3 + $0xb5c] ss:$20 sps:$4 sm:$0xff]  }
 0x288   : > { %4658 = vmatpush2.bf16.msra.mxu1 %v12749_v11  ;;  %v12766_v11 = vld [vmem:[%s18963_s3 + $0x9cc] ss:$20 sps:$4 sm:$0xff]  }
 0x289   : > { %4659 = vmatprep.subr.bf16.mxu1 %v12754_v38  ;;  %4597 = vmatpush2.bf16.msra.mxu0 %v12746_v58  ;;  %v12774_v38 = vld [vmem:[%s18963_s3 + $0x9a8] ss:$20 sps:$4 sm:$0xff]  }
 0x28a   : > { %4712 = vmatprep.subr.bf16.mxu0 %v4348_v40  ;;  %v12775_v58 = vld [vmem:[%s18963_s3 + $0xb34] ss:$20 sps:$4 sm:$0xff]   ;;  %v12772_v40 = vld [vmem:[%s18963_s3 + $0x9a4] ss:$20 sps:$4 sm:$0xff]  }
 0x28c   : > { %4660 = vmatpush2.bf16.msra.mxu1 %v12752_v53  ;;  %4599 = vmatmul.mubr.bf16.vlgmr.msra.gmra.mxu0 %v15150_v33  ;;  %v12778_v53 = vld [vmem:[%s18963_s3 + $0x844] ss:$20 sps:$4 sm:$0xff]  }
 0x28d   : > { %4661 = vmatprep.subr.bf16.mxu1 %v12757_v55  ;;  %4608 = vmatprep.mubr.bf16.mxu0 %v15241_v30  ;;  %v12780_v55 = vld [vmem:[%s18963_s3 + $0xb0c] ss:$20 sps:$4 sm:$0xff]  }
 0x28e   : > { %4713 = vmatpush1.bf16.msra.mxu0 %v4345_v48  ;;  %v12787_v48 = vld [vmem:[%s18963_s3 + $0xae8] ss:$20 sps:$4 sm:$0xff]  }
 0x28f   : > { %4714 = vmatprep.subr.bf16.mxu0 %v12765_v25  ;;  %v12779_v25 = vld [vmem:[%s18963_s3 + $0x704] ss:$20 sps:$4 sm:$0xff]  }
 0x290   : > { %4662 = vmatpush2.bf16.msra.mxu1 %v12755_v42  ;;  %v12783_v42 = vld [vmem:[%s18963_s3 + $0x81c] ss:$20 sps:$4 sm:$0xff]  }
 0x291   : > { %4663 = vmatprep.subr.bf16.mxu1 %v12762_v32  ;;  %v12785_v32 = vld [vmem:[%s18963_s3 + $0xae4] ss:$20 sps:$4 sm:$0xff]  }
 0x292   : > { %4715 = vmatpush1.bf16.msra.mxu0 %v12763_v36  ;;  %v12790_v36 = vld [vmem:[%s18963_s3 + $0xac4] ss:$20 sps:$4 sm:$0xff]  }
 0x293   : > { %4716 = vmatprep.subr.bf16.mxu0 %v12771_v5  ;;  %v12784_v5 = vld [vmem:[%s18963_s3 + $0x6dc] ss:$20 sps:$4 sm:$0xff]  }
 0x294   : > { %4664 = vmatpush2.bf16.msra.mxu1 %v12760_v35  ;;  %4609 = vmatmul.mubr.bf16.gmra.mxu0 %v15296_v26  ;;  %v12788_v35 = vld [vmem:[%s18963_s3 + $0x7f4] ss:$20 sps:$4 sm:$0xff]  }
 0x295   : > { %4665 = vmatprep.subr.bf16.mxu1 %v12768_v0  ;;  %4618 = vmatprep.mubr.bf16.mxu0 %v15464_v31  ;;  %v12789_v0 = vld [vmem:[%s18963_s3 + $0x6b4] ss:$20 sps:$4 sm:$0xff]  }
 0x296   : > { %4717 = vmatpush1.bf16.msra.mxu0 %v12769_v2  ;;  %v12791_v2 = vld [vmem:[%s18963_s3 + $0x7cc] ss:$20 sps:$4 sm:$0xff]  }
 0x297   : > { %4718 = vmatprep.subr.bf16.mxu0 %v12777_v4  ;;  %v12793_v4 = vld [vmem:[%s18963_s3 + $0x68c] ss:$20 sps:$4 sm:$0xff]  }
 0x298   : > { %4666 = vmatpush2.bf16.msra.mxu1 %v12766_v11  ;;  %v12795_v11 = vld [vmem:[%s18963_s3 + $0x7a4] ss:$20 sps:$4 sm:$0xff]  }
 0x299   : > { %4667 = vmatprep.subr.bf16.mxu1 %v12774_v38  ;;  %v12792_v38 = vld [vmem:[%s18963_s3 + $0x984] ss:$20 sps:$4 sm:$0xff]  }
 0x29a   : > { %4719 = vmatpush1.bf16.msra.mxu0 %v12775_v58  ;;  %v12794_v58 = vld [vmem:[%s18963_s3 + $0xa9c] ss:$20 sps:$4 sm:$0xff]  }
 0x29b   : > { %4720 = vmatprep.subr.bf16.mxu0 %v12782_v3  ;;  %v12797_v3 = vld [vmem:[%s18963_s3 + $0x664] ss:$20 sps:$4 sm:$0xff]  }
 0x29c   : > { %4668 = vmatpush2.bf16.msra.mxu1 %v12772_v40  ;;  %4619 = vmatmul.mubr.bf16.gmra.mxu0 %v15470_v52  ;;  %v12799_v40 = vld [vmem:[%s18963_s3 + $0x77c] ss:$20 sps:$4 sm:$0xff]  }
 0x29d   : > { %11739 = vmatprep.subr.bf16.mxu1 %v12778_v53  ;;  %4628 = vmatprep.mubr.bf16.mxu0 %v15435_v54  ;;  %v12796_v53 = vld [vmem:[%s18963_s3 + $0x95c] ss:$20 sps:$4 sm:$0xff]  }
 0x29e   : > { %4721 = vmatpush1.bf16.msra.mxu0 %v12780_v55  ;;  %v12798_v55 = vld [vmem:[%s18963_s3 + $0xa74] ss:$20 sps:$4 sm:$0xff]  }
 0x29f   : > { %4670 = vmatmul.mubr.bf16.vlgmr.msra.gmra.mxu1 %v15454_v47  ;;  %4722 = vmatprep.subr.bf16.mxu0 %v12787_v48  ;;  %v12801_v48 = vld [vmem:[%s18963_s3 + $0x63c] ss:$20 sps:$4 sm:$0xff]  }
 0x2a0   : > { %4679 = vmatprep.mubr.bf16.mxu1 %v15473_v23  ;;  %11740 = vmatpush3.bf16.msra.mxu1 %v12779_v25  ;;  %v12803_v25 = vld [vmem:[%s18963_s3 + $0x754] ss:$20 sps:$4 sm:$0xff]  }
 0x2a1   : > { %11741 = vmatprep.subr.bf16.mxu1 %v12783_v42  ;;  %v12800_v42 = vld [vmem:[%s18963_s3 + $0x934] ss:$20 sps:$4 sm:$0xff]  }
 0x2a2   : > { %4723 = vmatpush1.bf16.msra.mxu0 %v12785_v32  ;;  %v12802_v32 = vld [vmem:[%s18963_s3 + $0xa4c] ss:$20 sps:$4 sm:$0xff]  }
 0x2a3   : > { %11779 = vmatprep.subr.bf16.mxu0 %v12790_v36  ;;  %v12805_v36 = vld [vmem:[%s18963_s3 + $0x614] ss:$20 sps:$4 sm:$0xff]  }
 0x2a4   : > { %11742 = vmatpush3.bf16.msra.mxu1 %v12784_v5  ;;  %4629 = vmatmul.mubr.bf16.gmra.mxu0 %v15438_v57  ;;  %v12807_v5 = vld [vmem:[%s18963_s3 + $0x72c] ss:$20 sps:$4 sm:$0xff]  }
 0x2a5   : > { %11743 = vmatprep.subr.bf16.mxu1 %v12788_v35  ;;  %4740 = vmatprep.mubr.bf16.mxu0 %v19281_v60  ;;  %v12815_v35 = vld [vmem:[%s18963_s3 + $0xbb4] ss:$0 sps:$4 sm:$0xff]  }
 0x2a7   : > { %4680 = vmatmul.mubr.bf16.gmra.mxu1 %v15513_v50 }
 0x2a8   : > { %4689 = vmatprep.mubr.bf16.mxu1 %v15517_v22  ;;  %11744 = vmatpush3.bf16.msra.mxu1 %v12789_v0  ;;  %v12804_v0 = vld [vmem:[%s18963_s3 + $0x90c] ss:$20 sps:$4 sm:$0xff]  }
 0x2a9   : > { %11745 = vmatprep.subr.bf16.mxu1 %v12791_v2  ;;  %v12806_v2 = vld [vmem:[%s18963_s3 + $0xa24] ss:$20 sps:$4 sm:$0xff]  }
 0x2ac   : > { %11746 = vmatpush3.bf16.msra.mxu1 %v12793_v4  ;;  %10948 = vmatmul.mubr.msk.bf16.vlgmr.msra.gmra.mxu0 %vm4321_vm8, %v15576_v8  ;;  %v12809_v4 = vld [vmem:[%s18963_s3 + $0x5ec] ss:$20 sps:$4 sm:$0xff]  }
 0x2ad   : > { %11747 = vmatprep.subr.bf16.mxu1 %v12795_v11  ;;  %11780 = vmatpush3.bf16.msra.mxu0 %v12792_v38  ;;  %v4351_v11 = vand.u32 %v12815_v35, %v14961_v45  ;;  %v12808_v38 = vld [vmem:[%s18963_s3 + $0x8e4] ss:$20 sps:$4 sm:$0xff]  }
 0x2ae   : > { %4750 = vmatprep.mubr.bf16.mxu0 %v19281_v60  ;;  %11781 = vmatprep.subr.bf16.mxu0 %v12794_v58  ;;  %v12810_v58 = vld [vmem:[%s18963_s3 + $0x9fc] ss:$20 sps:$4 sm:$0xff]  }
 0x2af   : > { %4690 = vmatmul.mubr.bf16.gmra.mxu1 %v15559_v24  ;;  %v12837_v35 = vld [vmem:[%s18963_s3 + $0x50] ss:$20 sps:$4 sm:$0xff]  }
 0x2b0   : > { %4699 = vmatprep.mubr.bf16.mxu1 %v15505_v51  ;;  %11748 = vmatpush3.bf16.msra.mxu1 %v12797_v3  ;;  %v12811_v3 = vld [vmem:[%s18963_s3 + $0x8bc] ss:$20 sps:$4 sm:$0xff]  }
 0x2b1   : > { %11749 = vmatprep.subr.bf16.mxu1 %v12799_v40  ;;  %11782 = vmatpush3.bf16.msra.mxu0 %v12796_v53  ;;  %v12812_v40 = vld [vmem:[%s18963_s3 + $0x9d4] ss:$20 sps:$4 sm:$0xff]   ;;  %v12821_v53 = vld [vmem:[%s18963_s3 + $0xb64] ss:$20 sps:$4 sm:$0xff]  }
 0x2b2   : > { %11783 = vmatprep.subr.bf16.mxu0 %v12798_v55  ;;  %v12813_v55 = vld [vmem:[%s18963_s3 + $0x894] ss:$20 sps:$4 sm:$0xff]  }
 0x2b4   : > { %11750 = vmatpush3.bf16.msra.mxu1 %v12801_v48  ;;  %10949 = vmatmul.mubr.msk.bf16.gmra.mxu0 %vm4321_vm8, %v15615_v62  ;;  %v12816_v48 = vld [vmem:[%s18963_s3 + $0x86c] ss:$20 sps:$4 sm:$0xff]  }
 0x2b5   : > { %11751 = vmatprep.subr.bf16.mxu1 %v12803_v25  ;;  %11784 = vmatpush3.bf16.msra.mxu0 %v12800_v42  ;;  %v12820_v25 = vld [vmem:[%s18963_s3 + $0x11c] ss:$20 sps:$4 sm:$0xff]   ;;  %v12829_v42 = vld [vmem:[%s18963_s3 + $0xb14] ss:$20 sps:$4 sm:$0xff]  }
 0x2b6   : > { %4760 = vmatprep.mubr.bf16.mxu0 %v19281_v60  ;;  %11785 = vmatprep.subr.bf16.mxu0 %v12802_v32  ;;  %v12822_v32 = vld [vmem:[%s18963_s3 + $0xf0] ss:$20 sps:$4 sm:$0xff]  }
 0x2b7   : > { %4700 = vmatmul.mubr.bf16.gmra.mxu1 %v15546_v1 }
 0x2b8   : > { %11752 = vmatpush3.bf16.msra.mxu1 %v12805_v36  ;;  %4811 = vmatprep.mubr.bf16.mxu1 %v15103_v37  ;;  %v12817_v37 = vld [vmem:[%s18963_s3 + $0xb8c] ss:$20 sps:$4 sm:$0xff]  }
 0x2b9   : > { %11753 = vmatprep.subr.bf16.mxu1 %v12807_v5  ;;  %11786 = vmatpush3.bf16.msra.mxu0 %v12804_v0  ;;  %v12828_v36 = vld [vmem:[%s18963_s3 + $0xcc] ss:$20 sps:$4 sm:$0xff]   ;;  %v12836_v5 = vld [vmem:[%s18963_s3 + $0x7c] ss:$20 sps:$4 sm:$0xff]  }
 0x2ba   : > { %11787 = vmatprep.subr.bf16.mxu0 %v12806_v2  ;;  %v12845_v0 = vld [vmem:[%s18963_s3 + $0x2c] ss:$20 sps:$4 sm:$0xff]   ;;  %v12851_v2 = vld [vmem:[%s18963_s3 + $0x4] ss:$20 sps:$4 sm:$0xff]  }
 0x2bc   : > { %11754 = vmatpush3.bf16.msra.mxu1 %v12809_v4  ;;  %10950 = vmatmul.mubr.msk.bf16.gmra.mxu0 %vm4321_vm8, %v15649_v15  ;;  %v12860_v4 = vld [vmem:[%s18963_s3 + $0x324] ss:$20 sps:$4 sm:$0xff]  }
 0x2bd   : > { %12142 = vmatprep.subr.bf16.mxu1 %v4351_v11  ;;  %11788 = vmatpush3.bf16.msra.mxu0 %v12808_v38  ;;  %v12858_v38 = vld [vmem:[%s18963_s3 + $0x320] ss:$20 sps:$4 sm:$0xff]  }
 0x2be   : > { %4770 = vmatprep.mubr.bf16.mxu0 %v19281_v60  ;;  %11789 = vmatprep.subr.bf16.mxu0 %v12810_v58  ;;  %v12866_v58 = vld [vmem:[%s18963_s3 + $0x2fc] ss:$20 sps:$4 sm:$0xff]  }
 0x2bf   : > { %4812 = vmatmul.mubr.bf16.vlgmr.msra.gmra.mxu1 %v15150_v33  ;;  %v12814_v33 = vld [vmem:[%s18963_s3 + $0x9ac] ss:$20 sps:$4 sm:$0xff]  }
 0x2c0   : > { %4819 = vmatprep.mubr.bf16.mxu1 %v15241_v30  ;;  %12143 = vmatpush3.bf16.msra.mxu1 %v4351_v11  ;;  %v12825_v30 = vld [vmem:[%s18963_s3 + $0xb3c] ss:$20 sps:$4 sm:$0xff]   ;;  %v12849_v11 = vld [vmem:[%s18963_s3] ss:$20 sps:$4 sm:$0xff]  }
 0x2c1   : > { %12144 = vmatprep.subr.bf16.mxu1 %v12817_v37  ;;  %11790 = vmatpush3.bf16.msra.mxu0 %v12811_v3  ;;  %v12864_v3 = vld [vmem:[%s18963_s3 + $0x2f8] ss:$20 sps:$4 sm:$0xff]  }
 0x2c2   : > { %11791 = vmatprep.subr.bf16.mxu0 %v12812_v40  ;;  %v12872_v40 = vld [vmem:[%s18963_s3 + $0x2d4] ss:$20 sps:$4 sm:$0xff]  }
 0x2c4   : > { %12145 = vmatpush3.bf16.msra.mxu1 %v12817_v37  ;;  %10951 = vmatmul.mubr.msk.bf16.gmra.mxu0 %vm4321_vm8, %v15630_v13  ;;  %v12863_v37 = vld [vmem:[%s18963_s3 + $0x234] ss:$20 sps:$4 sm:$0xff]  }
 0x2c5   : > { %12146 = vmatprep.subr.bf16.mxu1 %v12821_v53  ;;  %11792 = vmatpush3.bf16.msra.mxu0 %v12813_v55  ;;  %v12869_v55 = vld [vmem:[%s18963_s3 + $0x20c] ss:$20 sps:$4 sm:$0xff]  }
 0x2c6   : > { %4875 = vmatprep.mubr.bf16.mxu0 %v15424_v6  ;;  %11793 = vmatprep.subr.bf16.mxu0 %v12814_v33  ;;  %v12818_v6 = vld [vmem:[%s18963_s3 + $0x118] ss:$20 sps:$4 sm:$0xff]   ;;  %v12870_v33 = vld [vmem:[%s18963_s3 + $0x2d0] ss:$20 sps:$4 sm:$0xff]  }
 0x2c7   : > { %4820 = vmatmul.mubr.bf16.gmra.mxu1 %v15296_v26  ;;  %v12824_v26 = vld [vmem:[%s18963_s3 + $0xf4] ss:$20 sps:$4 sm:$0xff]  }
 0x2c8   : > { %4827 = vmatprep.mubr.bf16.mxu1 %v15464_v31  ;;  %12147 = vmatpush3.bf16.msra.mxu1 %v12821_v53  ;;  %v12833_v31 = vld [vmem:[%s18963_s3 + $0xaec] ss:$20 sps:$4 sm:$0xff]   ;;  %v12861_v53 = vld [vmem:[%s18963_s3 + $0x230] ss:$20 sps:$4 sm:$0xff]  }
 0x2c9   : > { %12148 = vmatprep.subr.bf16.mxu1 %v12825_v30  ;;  %11794 = vmatpush3.bf16.msra.mxu0 %v12816_v48 }
 0x2ca   : > { %5973 = vmatprep.subr.bf16.mxu0 %v12820_v25  ;;  %v12867_v25 = vld [vmem:[%s18963_s3 + $0x208] ss:$20 sps:$4 sm:$0xff]  }
 0x2cc   : > { %12149 = vmatpush3.bf16.msra.mxu1 %v12825_v30  ;;  %4876 = vmatmul.mubr.bf16.vlgmr.msra.gmra.mxu0 %v15454_v47  ;;  %v12842_v47 = vld [vmem:[%s18963_s3 + $0x39c] ss:$20 sps:$4 sm:$0xff]   ;;  %v12878_v30 = vld [vmem:[%s18963_s3 + $0x2ac] ss:$20 sps:$4 sm:$0xff]  }
 0x2cd   : > { %12150 = vmatprep.subr.bf16.mxu1 %v12829_v42  ;;  %5974 = vmatpush1.bf16.msra.mxu0 %v12818_v6  ;;  %v12876_v6 = vld [vmem:[%s18963_s3 + $0x2a8] ss:$20 sps:$4 sm:$0xff]  }
 0x2ce   : > { %4883 = vmatprep.mubr.bf16.mxu0 %v15473_v23  ;;  %5975 = vmatprep.subr.bf16.mxu0 %v12824_v26  ;;  %v12826_v23 = vld [vmem:[%s18963_s3 + $0xc8] ss:$20 sps:$4 sm:$0xff]  }
 0x2cf   : > { %4828 = vmatmul.mubr.bf16.gmra.mxu1 %v15470_v52  ;;  %v12832_v52 = vld [vmem:[%s18963_s3 + $0xa4] ss:$20 sps:$4 sm:$0xff]  }
 0x2d0   : > { %4835 = vmatprep.mubr.bf16.mxu1 %v15435_v54  ;;  %12151 = vmatpush3.bf16.msra.mxu1 %v12829_v42  ;;  %v12830_v54 = vld [vmem:[%s18963_s3 + $0xa0] ss:$20 sps:$4 sm:$0xff]   ;;  %v12875_v42 = vld [vmem:[%s18963_s3 + $0x1e4] ss:$20 sps:$4 sm:$0xff]  }
 0x2d1   : > { %12152 = vmatprep.subr.bf16.mxu1 %v12833_v31  ;;  %5976 = vmatpush1.bf16.msra.mxu0 %v12822_v32  ;;  %v12873_v32 = vld [vmem:[%s18963_s3 + $0x1e0] ss:$20 sps:$4 sm:$0xff]  }
 0x2d2   : > { %5977 = vmatprep.subr.bf16.mxu0 %v12828_v36  ;;  %v12881_v36 = vld [vmem:[%s18963_s3 + $0x1bc] ss:$20 sps:$4 sm:$0xff]  }
 0x2d4   : > { %12153 = vmatpush3.bf16.msra.mxu1 %v12833_v31  ;;  %4884 = vmatmul.mubr.bf16.gmra.mxu0 %v15513_v50  ;;  %v12834_v50 = vld [vmem:[%s18963_s3 + $0x78] ss:$20 sps:$4 sm:$0xff]  }
 0x2d5   : > { %6044 = vmatprep.subr.bf16.mxu1 %v12842_v47  ;;  %5978 = vmatpush1.bf16.msra.mxu0 %v12826_v23  ;;  %v12884_v31 = vld [vmem:[%s18963_s3 + $0x284] ss:$20 sps:$4 sm:$0xff]   ;;  %v12882_v47 = vld [vmem:[%s18963_s3 + $0x280] ss:$20 sps:$4 sm:$0xff]  }
 0x2d6   : > { %4891 = vmatprep.mubr.bf16.mxu0 %v15517_v22  ;;  %5979 = vmatprep.subr.bf16.mxu0 %v12832_v52  ;;  %v12839_v22 = vld [vmem:[%s18963_s3 + $0x54] ss:$20 sps:$4 sm:$0xff]   ;;  %v12890_v52 = vld [vmem:[%s18963_s3 + $0x4dc] ss:$20 sps:$4 sm:$0xff]  }
 0x2d7   : > { %4836 = vmatmul.mubr.bf16.gmra.mxu1 %v15438_v57  ;;  %v12840_v57 = vld [vmem:[%s18963_s3 + $0x398] ss:$20 sps:$4 sm:$0xff]  }
 0x2d8   : > { %12154 = vmatprep.mubr.msk.bf16.mxu1 %vm4321_vm8, %v15576_v8  ;;  %v12848_v8 = vld [vmem:[%s18963_s3 + $0x374] ss:$20 sps:$4 sm:$0xff]  }
 0x2d9   : > { %5980 = vmatpush1.bf16.msra.mxu0 %v12830_v54  ;;  %v12879_v54 = vld [vmem:[%s18963_s3 + $0x1b8] ss:$20 sps:$4 sm:$0xff]  }
 0x2da   : > { %5981 = vmatprep.subr.bf16.mxu0 %v12836_v5  ;;  %v12887_v5 = vld [vmem:[%s18963_s3 + $0x194] ss:$20 sps:$4 sm:$0xff]  }
 0x2dc   : > { %4892 = vmatmul.mubr.bf16.gmra.mxu0 %v15559_v24  ;;  %v12854_v24 = vld [vmem:[%s18963_s3 + $0x34c] ss:$20 sps:$4 sm:$0xff]  }
 0x2dd   : > { %5982 = vmatpush1.bf16.msra.mxu0 %v12834_v50  ;;  %4899 = vmatprep.mubr.bf16.mxu0 %v15505_v51  ;;  %v12846_v51 = vld [vmem:[%s18963_s3 + $0x370] ss:$20 sps:$4 sm:$0xff]   ;;  %v12888_v50 = vld [vmem:[%s18963_s3 + $0x4d8] ss:$20 sps:$4 sm:$0xff]  }
 0x2de   : > { %5983 = vmatprep.subr.bf16.mxu0 %v12839_v22 }
 0x2df   : > { %12155 = vmatmul.mubr.msk.bf16.vlgmr.msra.gmra.mxu1 %vm4321_vm8, %v15615_v62  ;;  %v12843_v62 = vld [vmem:[%s18963_s3 + $0x28] ss:$20 sps:$4 sm:$0xff]  }
 0x2e0   : > { %6045 = vmatpush1.bf16.msra.mxu1 %v12840_v57  ;;  %12158 = vmatprep.mubr.msk.bf16.mxu1 %vm4321_vm8, %v15649_v15  ;;  %v12852_v15 = vld [vmem:[%s18963_s3 + $0x348] ss:$20 sps:$4 sm:$0xff]  }
 0x2e1   : > { %6046 = vmatprep.subr.bf16.mxu1 %v12848_v8  ;;  %5984 = vmatpush1.bf16.msra.mxu0 %v12837_v35  ;;  %v12896_v57 = vld [vmem:[%s18963_s3 + $0x4b4] ss:$20 sps:$4 sm:$0xff]   ;;  %v12885_v8 = vld [vmem:[%s18963_s3 + $0x190] ss:$20 sps:$4 sm:$0xff]   ;;  %v12893_v35 = vld [vmem:[%s18963_s3 + $0x16c] ss:$20 sps:$4 sm:$0xff]  }
 0x2e2   : > { %5985 = vmatprep.subr.bf16.mxu0 %v12845_v0  ;;  %v12894_v0 = vld [vmem:[%s18963_s3 + $0x4b0] ss:$20 sps:$4 sm:$0xff]  }
 0x2e3   : > { %v16060_v48 = vpop.f32.mrf.mxu1 }
 0x2e4   : > { %6047 = vmatpush1.bf16.msra.mxu1 %v12846_v51  ;;  %4900 = vmatmul.mubr.bf16.gmra.mxu0 %v15546_v1  ;;  %v12857_v1 = vld [vmem:[%s18963_s3 + $0x25c] ss:$20 sps:$4 sm:$0xff]   ;;  %v3041_v51 = vld [vmem:[%s18963_s3 + $0x5c8] sm:$0xff] }
 0x2e5   : > { %6048 = vmatprep.subr.bf16.mxu1 %v12854_v24  ;;  %5986 = vmatpush1.bf16.msra.mxu0 %v12843_v62  ;;  %v16071_v26 = vpop.f32.mrf.mxu1  ;;  %v12902_v62 = vld [vmem:[%s18963_s3 + $0x48c] ss:$20 sps:$4 sm:$0xff]  }
 0x2e6   : > { %6005 = vmatprep.mubr.bf16.mxu0 %v15061_v39  ;;  %5987 = vmatprep.subr.bf16.mxu0 %v12851_v2  ;;  %v12891_v2 = vld [vmem:[%s18963_s3 + $0x168] ss:$20 sps:$4 sm:$0xff]  }
 0x2e7   : > { %12159 = vmatmul.mubr.msk.bf16.gmra.mxu1 %vm4321_vm8, %v15630_v13  ;;  %v12855_v13 = vld [vmem:[%s18963_s3 + $0x258] ss:$20 sps:$4 sm:$0xff]   ;;  %v16085_v23 = vpop.f32.mrf.mxu1 }
 0x2e8   : > { %6049 = vmatpush1.bf16.msra.mxu1 %v12852_v15  ;;  %6076 = vmatprep.mubr.bf16.mxu1 %v15364_v10  ;;  %v12899_v15 = vld [vmem:[%s18963_s3 + $0x144] ss:$20 sps:$4 sm:$0xff]  }
 0x2e9   : > { %6050 = vmatprep.subr.bf16.mxu1 %v12860_v4  ;;  %5988 = vmatpush1.bf16.msra.mxu0 %v12849_v11  ;;  %v16099_v22 = vpop.f32.mrf.mxu1  ;;  %v11142_v4 = vcombine.high %v3041_v51, %v3041_v51  ;;  %v12900_v11 = vld [vmem:[%s18963_s3 + $0x488] ss:$20 sps:$4 sm:$0xff]  }
 0x2ea   : > { %5989 = vmatprep.subr.bf16.mxu0 %v12857_v1  ;;  %19282 = vst [vmem:[#allocation15_spill] sm:$0xff] %v16099_v22 }
 0x2ec   : > { %6051 = vmatpush1.bf16.msra.mxu1 %v12858_v38  ;;  %v12905_v38 = vld [vmem:[%s18963_s3 + $0x464] ss:$20 sps:$4 sm:$0xff]  }
 0x2ed   : > { %6052 = vmatprep.subr.bf16.mxu1 %v12866_v58  ;;  %5990 = vmatpush2.bf16.msra.mxu0 %v12855_v13  ;;  %v12897_v58 = vld [vmem:[%s18963_s3 + $0x140] ss:$20 sps:$4 sm:$0xff]   ;;  %v11141_v13 = vcombine.low %v3041_v51, %v3041_v51 }
 0x2ee   : > { %5991 = vmatprep.subr.bf16.mxu0 %v12863_v37  ;;  %v5962_v37 = vand.u32 %v11142_v4, %v14961_v45  ;;  %v12928_v51 = vld [vmem:[%s18963_s3 + $0x554] ss:$20 sps:$4 sm:$0xff]  }
 0x2f0   : > { %6053 = vmatpush1.bf16.msra.mxu1 %v12864_v3  ;;  %v12903_v3 = vld [vmem:[%s18963_s3 + $0x460] ss:$20 sps:$4 sm:$0xff]  }
 0x2f1   : > { %6054 = vmatprep.subr.bf16.mxu1 %v12872_v40  ;;  %5992 = vmatpush2.bf16.msra.mxu0 %v12861_v53  ;;  %v12908_v53 = vld [vmem:[%s18963_s3 + $0x43c] ss:$20 sps:$4 sm:$0xff]  }
 0x2f2   : > { %5993 = vmatprep.subr.bf16.mxu0 %v12869_v55  ;;  %v5959_v55 = vand.u32 %v11141_v13, %v14961_v45  ;;  %v12934_v13 = vld [vmem:[%s18963_s3 + $0x52c] ss:$20 sps:$4 sm:$0xff]  }
 0x2f4   : > { %6055 = vmatpush1.bf16.msra.mxu1 %v12870_v33  ;;  %v16116_v24 = vpop.f32.mrf.mxu1  ;;  %v12916_v33 = vld [vmem:[%s18963_s3 + $0x5a4] ss:$20 sps:$4 sm:$0xff]  }
 0x2f5   : > { %6056 = vmatprep.subr.bf16.mxu1 %v12878_v30  ;;  %5994 = vmatpush2.bf16.msra.mxu0 %v12867_v25  ;;  %v12906_v30 = vld [vmem:[%s18963_s3 + $0x438] ss:$20 sps:$4 sm:$0xff]  }
 0x2f6   : > { %5995 = vmatprep.subr.bf16.mxu0 %v12875_v42  ;;  %v4399_v1 = vpop.f32.mrf.mxu1 }
 0x2f8   : > { %6057 = vmatpush1.bf16.msra.mxu1 %v12876_v6  ;;  %v4401_v40 = vpop.f32.mrf.mxu1  ;;  %v12913_v6 = vld [vmem:[%s18963_s3 + $0x414] ss:$20 sps:$4 sm:$0xff]  }
 0x2f9   : > { %6058 = vmatprep.subr.bf16.mxu1 %v12884_v31  ;;  %5996 = vmatpush2.bf16.msra.mxu0 %v12873_v32  ;;  %v12914_v32 = vld [vmem:[%s18963_s3 + $0x5a0] ss:$20 sps:$4 sm:$0xff]  }
 0x2fa   : > { %5997 = vmatprep.subr.bf16.mxu0 %v12881_v36  ;;  %v16150_v25 = vpop.f32.mrf.mxu1 }
 0x2fb   : > { %19283 = vst [vmem:[#allocation33_spill] sm:$0xff] %v16150_v25  ;;  %v13030_v25 = vld [vmem:[%s18963_s3 + $0x3cc] ss:$20 sps:$4 sm:$0xff]  }
 0x2fc   : > { %6059 = vmatpush1.bf16.msra.mxu1 %v12882_v47 }
 0x2fd   : > { %6060 = vmatprep.subr.bf16.mxu1 %v12890_v52  ;;  %5998 = vmatpush2.bf16.msra.mxu0 %v12879_v54  ;;  %v12922_v52 = vld [vmem:[%s18963_s3 + $0x57c] ss:$20 sps:$4 sm:$0xff]  }
 0x2fe   : > { %5999 = vmatprep.subr.bf16.mxu0 %v12887_v5 }
 0x300   : > { %6061 = vmatpush2.bf16.msra.mxu1 %v12888_v50 }
 0x301   : > { %6062 = vmatprep.subr.bf16.mxu1 %v12896_v57  ;;  %6000 = vmatpush2.bf16.msra.mxu0 %v12885_v8  ;;  %v12919_v57 = vld [vmem:[%s18963_s3 + $0x3ec] ss:$20 sps:$4 sm:$0xff]  }
 0x302   : > { %6001 = vmatprep.subr.bf16.mxu0 %v12893_v35 }
 0x304   : > { %6063 = vmatpush2.bf16.msra.mxu1 %v12894_v0 }
 0x305   : > { %6064 = vmatprep.subr.bf16.mxu1 %v12902_v62  ;;  %6002 = vmatpush2.bf16.msra.mxu0 %v12891_v2  ;;  %v12917_v62 = vld [vmem:[%s18963_s3 + $0x3e8] ss:$20 sps:$4 sm:$0xff]  }
 0x306   : > { %6003 = vmatprep.subr.bf16.mxu0 %v12899_v15  ;;  %v12925_v15 = vld [vmem:[%s18963_s3 + $0x3c4] ss:$20 sps:$4 sm:$0xff]  }
 0x308   : > { %6065 = vmatpush2.bf16.msra.mxu1 %v12900_v11  ;;  %v12926_v11 = vld [vmem:[%s18963_s3 + $0x550] ss:$20 sps:$4 sm:$0xff]  }
 0x309   : > { %6066 = vmatprep.subr.bf16.mxu1 %v12905_v38  ;;  %6004 = vmatpush2.bf16.msra.mxu0 %v12897_v58 }
 0x30a   : > { %6119 = vmatprep.subr.bf16.mxu0 %v5962_v37 }
 0x30b   : > { %v4458_v42 = vpop.f32.mrf.mxu0 }
 0x30c   : > { %6067 = vmatpush2.bf16.msra.mxu1 %v12903_v3  ;;  %6006 = vmatmul.mubr.bf16.vlgmr.msra.gmra.mxu0 %v15109_v21  ;;  %v16158_v31 = vadd.f32 %v4458_v42, %v16060_v48  ;;  %v12911_v48 = vld [vmem:[%s18963_s3 + $0x410] ss:$20 sps:$4 sm:$0xff]  }
 0x30d   : > { %6068 = vmatprep.subr.bf16.mxu1 %v12908_v53  ;;  %6015 = vmatprep.mubr.bf16.mxu0 %v15065_v61  ;;  %v4460_v36 = vpop.f32.mrf.mxu0 }
 0x30e   : > { %6120 = vmatpush1.bf16.msra.mxu0 %v5959_v55  ;;  %v16167_v54 = vadd.f32 %v4460_v36, %v16071_v26  ;;  %v12920_v26 = vld [vmem:[%s18963_s3 + $0x578] ss:$20 sps:$4 sm:$0xff]  }
 0x30f   : > { %v4407_v47 = vpop.f32.mrf.mxu1  ;;  %6121 = vmatprep.subr.bf16.mxu0 %v12916_v33  ;;  %v4462_v5 = vpop.f32.mrf.mxu0  ;;  %v12931_v55 = vld [vmem:[%s18963_s3 + $0x124] ss:$20 sps:$4 sm:$0xff]  }
 0x310   : > { %6069 = vmatpush2.bf16.msra.mxu1 %v12906_v30  ;;  %v16176_v8 = vadd.f32 %v4462_v5, %v16085_v23 }
 0x311   : > { %v4409_v50 = vpop.f32.mrf.mxu1  ;;  %6070 = vmatprep.subr.bf16.mxu1 %v12913_v6  ;;  %v16181_v35 = vpop.f32.mrf.mxu0  ;;  %v12940_v6 = vld [vmem:[%s18963_s3 + $0x504] ss:$20 sps:$4 sm:$0xff]  }
 0x312   : > { %6122 = vmatpush1.bf16.msra.mxu0 %v12914_v32  ;;  %19284 = vst [vmem:[#allocation37_spill] sm:$0xff] %v16181_v35  ;;  %v16225_v32 = vpack.c.bf16 %v15376_v44, %v15376_v44  ;;  %v12938_v44 = vld [vmem:[%s18963_s3 + $0x500] ss:$20 sps:$4 sm:$0xff]   ;;  %v13074_v35 = vld [vmem:[%s18963_s3 + $0x5d8] ss:$0 sps:$4 sm:$0xff]  }
 0x313   : > { %v4411_v0 = vpop.f32.mrf.mxu1  ;;  %6123 = vmatprep.subr.bf16.mxu0 %v12922_v52  ;;  %v4468_v23 = vpop.f32.mrf.mxu0 }
 0x314   : > { %6071 = vmatpush2.bf16.msra.mxu1 %v12911_v48  ;;  %6016 = vmatmul.mubr.bf16.gmra.mxu0 %v15098_v16  ;;  %v16197_v4 = vadd.f32 %v4468_v23, %v16116_v24  ;;  %v12923_v24 = vld [vmem:[%s18963_s3 + $0x3c0] ss:$20 sps:$4 sm:$0xff]   ;;  %v12937_v48 = vld [vmem:[%s18963_s3 + $0xfc] ss:$20 sps:$4 sm:$0xff]   ;;  %v12935_v23 = vld [vmem:[%s18963_s3 + $0xf8] ss:$20 sps:$4 sm:$0xff]  }
 0x315   : > { %v16190_v2 = vpop.f32.mrf.mxu1  ;;  %6072 = vmatprep.subr.bf16.mxu1 %v12919_v57  ;;  %6025 = vmatprep.mubr.bf16.mxu0 %v15159_v27  ;;  %v4470_v38 = vpop.f32.mrf.mxu0 }
 0x316   : > { %19285 = vst [vmem:[#allocation3_spill] sm:$0xff] %v16190_v2  ;;  %6124 = vmatpush1.bf16.msra.mxu0 %v12920_v26  ;;  %v16205_v37 = vadd.f32 %v4470_v38, %v4399_v1  ;;  %v12932_v1 = vld [vmem:[%s18963_s3 + $0x528] ss:$20 sps:$4 sm:$0xff]  }
 0x317   : > { %v4417_v58 = vpop.f32.mrf.mxu1  ;;  %6125 = vmatprep.subr.bf16.mxu0 %v12928_v51  ;;  %v4472_v3 = vpop.f32.mrf.mxu0  ;;  %v12946_v51 = vld [vmem:[%s18963_s3 + $0x3a4] ss:$20 sps:$4 sm:$0xff]   ;;  %v12943_v38 = vld [vmem:[%s18963_s3 + $0xd4] ss:$20 sps:$4 sm:$0xff]  }
 0x318   : > { %6073 = vmatpush2.bf16.msra.mxu1 %v12917_v62  ;;  %v16213_v33 = vadd.f32 %v4472_v3, %v4401_v40  ;;  %v12929_v40 = vld [vmem:[%s18963_s3 + $0x120] ss:$20 sps:$4 sm:$0xff]  }
 0x319   : > { %v4419_v53 = vpop.f32.mrf.mxu1  ;;  %6074 = vmatprep.subr.bf16.mxu1 %v12925_v15  ;;  %v16218_v30 = vpop.f32.mrf.mxu0 }
 0x31a   : > { %6126 = vmatpush1.bf16.msra.mxu0 %v12926_v11  ;;  %19286 = vst [vmem:[#allocation5_spill] sm:$0xff] %v16218_v30 }
 0x31b   : > { %v4421_v42 = vpop.f32.mrf.mxu1  ;;  %6127 = vmatprep.subr.bf16.mxu0 %v12934_v13  ;;  %v4478_v36 = vpop.f32.mrf.mxu0 }
 0x31c   : > { %6075 = vmatpush2.bf16.msra.mxu1 %v12923_v24  ;;  %6026 = vmatmul.mubr.bf16.gmra.mxu0 %v15182_v9  ;;  %v16235_v5 = vadd.f32 %v4478_v36, %v4407_v47 }
 0x31d   : > { %v4422_v52 = vpop.f32.mrf.mxu1  ;;  %6186 = vmatprep.subr.bf16.mxu1 %v12931_v55  ;;  %6035 = vmatprep.mubr.bf16.mxu0 %v16225_v32  ;;  %v4480_v57 = vpop.f32.mrf.mxu0 }
 0x31e   : > { %6128 = vmatpush1.bf16.msra.mxu0 %v12932_v1  ;;  %v16244_v62 = vadd.f32 %v4480_v57, %v4409_v50  ;;  %v12947_v52 = vld [vmem:[%s18963_s3 + $0xa8] ss:$20 sps:$4 sm:$0xff]  }
 0x31f   : > { %6077 = vmatmul.mubr.bf16.vlgmr.msra.gmra.mxu1 %v15356_v19  ;;  %v4529_v26 = vpop.f32.mrf.mxu1  ;;  %6129 = vmatprep.subr.bf16.mxu0 %v12940_v6  ;;  %v4482_v15 = vpop.f32.mrf.mxu0 }
 0x320   : > { %6086 = vmatprep.mubr.bf16.mxu1 %v15358_v20  ;;  %6187 = vmatpush1.bf16.msra.mxu1 %v12929_v40  ;;  %v16248_v47 = vadd.f32 %v4529_v26, %v16158_v31  ;;  %v16256_v13 = vadd.f32 %v4482_v15, %v4411_v0  ;;  %v16265_v31 = vpack.c.bf16 %v15348_v18, %v15348_v18  ;;  %v12941_v0 = vld [vmem:[%s18963_s3 + $0xd0] ss:$20 sps:$4 sm:$0xff]   ;;  %v12949_v18 = vld [vmem:[%s18963_s3 + $0xac] ss:$20 sps:$4 sm:$0xff]  }
 0x321   : > { %v4531_v11 = vpop.f32.mrf.mxu1  ;;  %6188 = vmatprep.subr.bf16.mxu1 %v12937_v48  ;;  %v16261_v24 = vpop.f32.mrf.mxu0  ;;  %v12953_v15 = vld [vmem:[%s18963_s3 + $0x80] ss:$20 sps:$4 sm:$0xff]  }
 0x322   : > { %v16259_v50 = vadd.f32 %v4531_v11, %v16167_v54  ;;  %6130 = vmatpush1.bf16.msra.mxu0 %v12938_v44  ;;  %19287 = vst [vmem:[#allocation31_spill] sm:$0xff] %v16261_v24  ;;  %v12955_v44 = vld [vmem:[%s18963_s3 + $0x84] ss:$20 sps:$4 sm:$0xff]  }
 0x323   : > { %v4533_v3 = vpop.f32.mrf.mxu1  ;;  %6257 = vmatprep.subr.bf16.mxu0 %v12946_v51  ;;  %v4488_v54 = vpop.f32.mrf.mxu0  ;;  %v12952_v51 = vld [vmem:[%s18963_s3 + $0x37c] ss:$20 sps:$4 sm:$0xff]  }
 0x324   : > { %6189 = vmatpush1.bf16.msra.mxu1 %v12935_v23  ;;  %v16268_v55 = vadd.f32 %v4533_v3, %v16176_v8  ;;  %6036 = vmatmul.mubr.bf16.gmra.mxu0 %v16265_v31  ;;  %v16279_v42 = vadd.f32 %v4488_v54, %v4417_v58 }
 0x325   : > { %v16274_v1 = vpop.f32.mrf.mxu1  ;;  %6190 = vmatprep.subr.bf16.mxu1 %v12943_v38  ;;  %6147 = vmatprep.mubr.bf16.mxu0 %v19281_v60  ;;  %v4490_v8 = vpop.f32.mrf.mxu0  ;;  %v16322_v38 = vpack.c.bf16 %v15457_v46, %v15457_v46  ;;  %v12959_v46 = vld [vmem:[%s18963_s3 + $0x58] ss:$20 sps:$4 sm:$0xff]  }
 0x326   : > { %19288 = vst [vmem:[#allocation2_spill] sm:$0xff] %v16274_v1  ;;  %v16283_v40 = vadd.f32 %v4490_v8, %v4419_v53  ;;  %v12944_v53 = vld [vmem:[%s18963_s3 + $0x3a0] ss:$20 sps:$4 sm:$0xff]  }
 0x327   : > { %6087 = vmatmul.mubr.bf16.gmra.mxu1 %v15372_v49  ;;  %v4539_v6 = vpop.f32.mrf.mxu1  ;;  %v4492_v58 = vpop.f32.mrf.mxu0  ;;  %v12967_v8 = vld [vmem:[%s18963_s3 + $0x34] ss:$20 sps:$4 sm:$0xff]  }
 0x328   : > { %6096 = vmatprep.mubr.bf16.mxu1 %v15419_v28  ;;  %6191 = vmatpush1.bf16.msra.mxu1 %v12941_v0  ;;  %v16287_v36 = vadd.f32 %v4539_v6, %v16197_v4  ;;  %v12958_v0 = vld [vmem:[%s18963_s3 + $0x354] ss:$20 sps:$4 sm:$0xff]   ;;  %v12956_v6 = vld [vmem:[%s18963_s3 + $0x350] ss:$20 sps:$4 sm:$0xff]   ;;  %v12964_v58 = vld [vmem:[%s18963_s3 + $0x32c] ss:$20 sps:$4 sm:$0xff]  }
 0x329   : > { %v4541_v48 = vpop.f32.mrf.mxu1  ;;  %6192 = vmatprep.subr.bf16.mxu1 %v12949_v18  ;;  %v4493_v4 = vpop.f32.mrf.mxu0 }
 0x32a   : > { %v16299_v57 = vadd.f32 %v4541_v48, %v16205_v37  ;;  %v12961_v37 = vld [vmem:[%s18963_s3 + $0x5c] ss:$20 sps:$4 sm:$0xff]   ;;  %v12973_v4 = vld [vmem:[%s18963_s3 + $0xc] ss:$20 sps:$4 sm:$0xff]  }
 0x32b   : > { %v4543_v26 = vpop.f32.mrf.mxu1 }
 0x32c   : > { %6193 = vmatpush1.bf16.msra.mxu1 %v12947_v52  ;;  %v16305_v23 = vadd.f32 %v4543_v26, %v16213_v33  ;;  %11146 = vmatmul.mubr.msk.bf16.vlgmr.msra.gmra.mxu0 %vm4321_vm8, %v15543_v7  ;;  %v12950_v33 = vld [vmem:[%s18963_s3 + $0x378] ss:$20 sps:$4 sm:$0xff]  }
 0x32d   : > { %v16312_v11 = vpop.f32.mrf.mxu1  ;;  %6194 = vmatprep.subr.bf16.mxu1 %v12955_v44  ;;  %6258 = vmatpush1.bf16.msra.mxu0 %v12944_v53  ;;  %v12965_v44 = vld [vmem:[%s18963_s3 + $0x30] ss:$20 sps:$4 sm:$0xff]  }
 0x32e   : > { %19289 = vst [vmem:[#allocation6_spill] sm:$0xff] %v16312_v11  ;;  %6157 = vmatprep.mubr.bf16.mxu0 %v19281_v60  ;;  %6259 = vmatprep.subr.bf16.mxu0 %v12952_v51 }
 0x32f   : > { %6097 = vmatmul.mubr.bf16.gmra.mxu1 %v15426_v59  ;;  %v4549_v3 = vpop.f32.mrf.mxu1 }
 0x330   : > { %6106 = vmatprep.mubr.bf16.mxu1 %v16322_v38  ;;  %6195 = vmatpush1.bf16.msra.mxu1 %v12953_v15  ;;  %v16331_v54 = vadd.f32 %v4549_v3, %v16235_v5  ;;  %v12971_v15 = vld [vmem:[%s18963_s3 + $0x8] ss:$20 sps:$4 sm:$0xff]   ;;  %v12968_v3 = vld [vmem:[%s18963_s3 + $0x300] ss:$20 sps:$4 sm:$0xff]  }
 0x331   : > { %v4551_v18 = vpop.f32.mrf.mxu1  ;;  %6196 = vmatprep.subr.bf16.mxu1 %v12961_v37  ;;  %6260 = vmatpush1.bf16.msra.mxu0 %v12950_v33  ;;  %v12979_v33 = vld [vmem:[%s18963_s3 + $0x264] ss:$20 sps:$4 sm:$0xff]  }
 0x332   : > { %v16343_v52 = vadd.f32 %v4551_v18, %v16244_v62  ;;  %6261 = vmatprep.subr.bf16.mxu0 %v12958_v0  ;;  %v16360_v62 = vpack.c.bf16 %v15494_v63, %v15494_v63  ;;  %v12970_v63 = vld [vmem:[%s18963_s3 + $0x304] ss:$20 sps:$4 sm:$0xff]   ;;  %v12977_v18 = vld [vmem:[%s18963_s3 + $0x260] ss:$20 sps:$4 sm:$0xff]  }
 0x333   : > { %v4553_v5 = vpop.f32.mrf.mxu1 }
 0x334   : > { %6197 = vmatpush1.bf16.msra.mxu1 %v12959_v46  ;;  %v16349_v48 = vadd.f32 %v4553_v5, %v16256_v13  ;;  %11147 = vmatmul.mubr.msk.bf16.gmra.mxu0 %vm4321_vm8, %v15527_v34  ;;  %v12962_v13 = vld [vmem:[%s18963_s3 + $0x328] ss:$20 sps:$4 sm:$0xff]  }
 0x335   : > { %v16356_v53 = vpop.f32.mrf.mxu1  ;;  %6198 = vmatprep.subr.bf16.mxu1 %v12967_v8  ;;  %6262 = vmatpush1.bf16.msra.mxu0 %v12956_v6  ;;  %v12976_v46 = vld [vmem:[%s18963_s3 + $0x2dc] ss:$20 sps:$4 sm:$0xff]   ;;  %v12974_v6 = vld [vmem:[%s18963_s3 + $0x2d8] ss:$20 sps:$4 sm:$0xff]   ;;  %v12982_v5 = vld [vmem:[%s18963_s3 + $0x2b4] ss:$20 sps:$4 sm:$0xff]  }
 0x336   : > { %19290 = vst [vmem:[#allocation4_spill] sm:$0xff] %v16356_v53  ;;  %6167 = vmatprep.mubr.bf16.mxu0 %v19281_v60  ;;  %6263 = vmatprep.subr.bf16.mxu0 %v12964_v58  ;;  %v12983_v58 = vld [vmem:[%s18963_s3 + $0x238] ss:$20 sps:$4 sm:$0xff]  }
 0x337   : > { %6107 = vmatmul.mubr.bf16.gmra.mxu1 %v16360_v62  ;;  %v4559_v26 = vpop.f32.mrf.mxu1 }
 0x338   : > { %6199 = vmatpush1.bf16.msra.mxu1 %v12965_v44  ;;  %6218 = vmatprep.mubr.bf16.mxu1 %v15061_v39  ;;  %v16375_v51 = vadd.f32 %v4559_v26, %v16279_v42  ;;  %v12991_v44 = vld [vmem:[%s18963_s3 + $0x214] ss:$20 sps:$4 sm:$0xff]   ;;  %v12988_v26 = vld [vmem:[%s18963_s3 + $0x28c] ss:$20 sps:$4 sm:$0xff]  }
 0x339   : > { %v4561_v37 = vpop.f32.mrf.mxu1  ;;  %6200 = vmatprep.subr.bf16.mxu1 %v12973_v4  ;;  %6264 = vmatpush1.bf16.msra.mxu0 %v12962_v13  ;;  %v12980_v4 = vld [vmem:[%s18963_s3 + $0x2b0] ss:$20 sps:$4 sm:$0xff]   ;;  %v16418_v13 = vpack.c.bf16 %v15591_v29, %v15591_v29  ;;  %v12986_v29 = vld [vmem:[%s18963_s3 + $0x288] ss:$20 sps:$4 sm:$0xff]  }
 0x33a   : > { %v16387_v0 = vadd.f32 %v4561_v37, %v16283_v40  ;;  %6265 = vmatprep.subr.bf16.mxu0 %v12970_v63  ;;  %v12985_v40 = vld [vmem:[%s18963_s3 + $0x23c] ss:$20 sps:$4 sm:$0xff]   ;;  %v12994_v37 = vld [vmem:[%s18963_s3 + $0x4e4] ss:$20 sps:$4 sm:$0xff]  }
 0x33b   : > { %v4563_v42 = vpop.f32.mrf.mxu1  ;;  %v12989_v63 = vld [vmem:[%s18963_s3 + $0x210] ss:$20 sps:$4 sm:$0xff]  }
 0x33c   : > { %6201 = vmatpush1.bf16.msra.mxu1 %v12971_v15  ;;  %11148 = vmatmul.mubr.msk.bf16.gmra.mxu0 %vm4321_vm8, %v15569_v43  ;;  %v12997_v15 = vld [vmem:[%s18963_s3 + $0x1ec] ss:$20 sps:$4 sm:$0xff]  }
 0x33d   : > { %v4564_v8 = vpop.f32.mrf.mxu1  ;;  %6202 = vmatprep.subr.bf16.mxu1 %v12979_v33  ;;  %6266 = vmatpush1.bf16.msra.mxu0 %v12968_v3  ;;  %v12995_v33 = vld [vmem:[%s18963_s3 + $0x1e8] ss:$20 sps:$4 sm:$0xff]   ;;  %v13003_v3 = vld [vmem:[%s18963_s3 + $0x1c4] ss:$20 sps:$4 sm:$0xff]   ;;  %v12992_v42 = vld [vmem:[%s18963_s3 + $0x4e0] ss:$20 sps:$4 sm:$0xff]  }
 0x33e   : > { %6177 = vmatprep.mubr.bf16.mxu0 %v19281_v60  ;;  %6267 = vmatprep.subr.bf16.mxu0 %v12976_v46  ;;  %v13000_v46 = vld [vmem:[%s18963_s3 + $0x4bc] ss:$20 sps:$4 sm:$0xff]  }
 0x340   : > { %6203 = vmatpush2.bf16.msra.mxu1 %v12977_v18  ;;  %v13001_v18 = vld [vmem:[%s18963_s3 + $0x1c0] ss:$20 sps:$4 sm:$0xff]  }
 0x341   : > { %6204 = vmatprep.subr.bf16.mxu1 %v12985_v40  ;;  %6268 = vmatpush1.bf16.msra.mxu0 %v12974_v6  ;;  %v13009_v40 = vld [vmem:[%s18963_s3 + $0x19c] ss:$20 sps:$4 sm:$0xff]   ;;  %v12998_v6 = vld [vmem:[%s18963_s3 + $0x4b8] ss:$20 sps:$4 sm:$0xff]  }
 0x342   : > { %6269 = vmatprep.subr.bf16.mxu0 %v12982_v5 }
 0x344   : > { %6205 = vmatpush2.bf16.msra.mxu1 %v12983_v58  ;;  %11149 = vmatmul.mubr.msk.bf16.gmra.mxu0 %vm4321_vm8, %v16418_v13  ;;  %v13006_v58 = vld [vmem:[%s18963_s3 + $0x494] ss:$20 sps:$4 sm:$0xff]  }
 0x345   : > { %6206 = vmatprep.subr.bf16.mxu1 %v12991_v44  ;;  %6270 = vmatpush1.bf16.msra.mxu0 %v12980_v4  ;;  %v13007_v44 = vld [vmem:[%s18963_s3 + $0x198] ss:$20 sps:$4 sm:$0xff]  }
 0x346   : > { %6289 = vmatprep.mubr.bf16.mxu0 %v15364_v10  ;;  %6271 = vmatprep.subr.bf16.mxu0 %v12988_v26  ;;  %v13015_v26 = vld [vmem:[%s18963_s3 + $0x174] ss:$20 sps:$4 sm:$0xff]  }
 0x348   : > { %6207 = vmatpush2.bf16.msra.mxu1 %v12989_v63  ;;  %v13004_v63 = vld [vmem:[%s18963_s3 + $0x490] ss:$20 sps:$4 sm:$0xff]  }
 0x349   : > { %6208 = vmatprep.subr.bf16.mxu1 %v12997_v15  ;;  %6272 = vmatpush1.bf16.msra.mxu0 %v12986_v29  ;;  %v3042_v15 = vld [vmem:[%s18963_s3 + $0x5d0] sm:$0xff] }
 0x34a   : > { %6273 = vmatprep.subr.bf16.mxu0 %v12994_v37  ;;  %v13012_v37 = vld [vmem:[%s18963_s3 + $0x46c] ss:$20 sps:$4 sm:$0xff]  }
 0x34c   : > { %6209 = vmatpush2.bf16.msra.mxu1 %v12995_v33  ;;  %v4600_v8 = vpop.f32.mrf.mxu0  ;;  %v13013_v33 = vld [vmem:[%s18963_s3 + $0x170] ss:$20 sps:$4 sm:$0xff]  }
 0x34d   : > { %6210 = vmatprep.subr.bf16.mxu1 %v13003_v3  ;;  %6274 = vmatpush2.bf16.msra.mxu0 %v12992_v42  ;;  %v13021_v42 = vld [vmem:[%s18963_s3 + $0x14c] ss:$20 sps:$4 sm:$0xff]  }
 0x34e   : > { %v4602_v5 = vpop.f32.mrf.mxu0  ;;  %6275 = vmatprep.subr.bf16.mxu0 %v13000_v46  ;;  %v11144_v46 = vcombine.high %v3042_v15, %v3042_v15 }
 0x350   : > { %6211 = vmatpush2.bf16.msra.mxu1 %v13001_v18  ;;  %v4604_v4 = vpop.f32.mrf.mxu0  ;;  %v13010_v18 = vld [vmem:[%s18963_s3 + $0x468] ss:$20 sps:$4 sm:$0xff]  }
 0x351   : > { %6212 = vmatprep.subr.bf16.mxu1 %v13009_v40  ;;  %6276 = vmatpush2.bf16.msra.mxu0 %v12998_v6  ;;  %v13018_v6 = vld [vmem:[%s18963_s3 + $0x444] ss:$20 sps:$4 sm:$0xff]  }
 0x352   : > { %v16474_v29 = vpop.f32.mrf.mxu0  ;;  %6277 = vmatprep.subr.bf16.mxu0 %v13006_v58  ;;  %v13019_v58 = vld [vmem:[%s18963_s3 + $0x148] ss:$20 sps:$4 sm:$0xff]  }
 0x353   : > { %19291 = vst [vmem:[#allocation7_spill] sm:$0xff] %v16474_v29 }
 0x354   : > { %6213 = vmatpush2.bf16.msra.mxu1 %v13007_v44  ;;  %v4610_v3 = vpop.f32.mrf.mxu0  ;;  %v11143_v44 = vcombine.low %v3042_v15, %v3042_v15 }
 0x355   : > { %6214 = vmatprep.subr.bf16.mxu1 %v13015_v26  ;;  %6278 = vmatpush2.bf16.msra.mxu0 %v13004_v63  ;;  %v5968_v63 = vand.u32 %v11144_v46, %v14961_v45  ;;  %v13022_v46 = vld [vmem:[%s18963_s3 + $0x418] ss:$20 sps:$4 sm:$0xff]  }
 0x356   : > { %v16488_v40 = vpop.f32.mrf.mxu0  ;;  %6279 = vmatprep.subr.bf16.mxu0 %v13012_v37  ;;  %v13016_v37 = vld [vmem:[%s18963_s3 + $0x440] ss:$20 sps:$4 sm:$0xff]   ;;  %v5965_v15 = vand.u32 %v11143_v44, %v14961_v45 }
 0x358   : > { %6215 = vmatpush2.bf16.msra.mxu1 %v13013_v33  ;;  %v16496_v26 = vpop.f32.mrf.mxu0  ;;  %v13024_v33 = vld [vmem:[%s18963_s3 + $0x41c] ss:$20 sps:$4 sm:$0xff]  }
 0x359   : > { %6216 = vmatprep.subr.bf16.mxu1 %v13021_v42  ;;  %6280 = vmatpush2.bf16.msra.mxu0 %v13010_v18  ;;  %v13035_v42 = vld [vmem:[%s18963_s3 + $0x5ac] ss:$20 sps:$4 sm:$0xff]  }
 0x35a   : > { %v16502_v29 = vpop.f32.mrf.mxu0  ;;  %6281 = vmatprep.subr.bf16.mxu0 %v13018_v6 }
 0x35b   : > { %19292 = vst [vmem:[#allocation8_spill] sm:$0xff] %v16502_v29 }
 0x35c   : > { %6217 = vmatpush2.bf16.msra.mxu1 %v13019_v58  ;;  %v16508_v11 = vpop.f32.mrf.mxu0  ;;  %v13027_v58 = vld [vmem:[%s18963_s3 + $0x3f4] ss:$20 sps:$4 sm:$0xff]  }
 0x35d   : > { %6332 = vmatprep.subr.bf16.mxu1 %v5968_v63  ;;  %6282 = vmatpush2.bf16.msra.mxu0 %v13016_v37  ;;  %v13033_v63 = vld [vmem:[%s18963_s3 + $0x5a8] ss:$20 sps:$4 sm:$0xff]  }
 0x35e   : > { %v16516_v18 = vpop.f32.mrf.mxu0  ;;  %6283 = vmatprep.subr.bf16.mxu0 %v13024_v33  ;;  %v13040_v33 = vld [vmem:[%s18963_s3 + $0x584] ss:$20 sps:$4 sm:$0xff]  }
 0x35f   : > { %6219 = vmatmul.mubr.bf16.vlgmr.msra.gmra.mxu1 %v15109_v21  ;;  %v4671_v6 = vpop.f32.mrf.mxu1 }
 0x360   : > { %v4672_v44 = vadd.f32 %v4671_v6, %v4600_v8  ;;  %6228 = vmatprep.mubr.bf16.mxu1 %v15065_v61  ;;  %6333 = vmatpush1.bf16.msra.mxu1 %v5965_v15  ;;  %v16526_v37 = vpop.f32.mrf.mxu0  ;;  %v13025_v8 = vld [vmem:[%s18963_s3 + $0x3f0] ss:$20 sps:$4 sm:$0xff]  }
 0x361   : > { %v4673_v29 = vpop.f32.mrf.mxu1  ;;  %6334 = vmatprep.subr.bf16.mxu1 %v13035_v42  ;;  %6284 = vmatpush2.bf16.msra.mxu0 %v13022_v46  ;;  %v13038_v42 = vld [vmem:[%s18963_s3 + $0x580] ss:$20 sps:$4 sm:$0xff]  }
 0x362   : > { %v4674_v30 = vadd.f32 %v4673_v29, %v4602_v5  ;;  %v16534_v6 = vpop.f32.mrf.mxu0  ;;  %6285 = vmatprep.subr.bf16.mxu0 %v13027_v58  ;;  %v13045_v29 = vld [vmem:[%s18963_s3 + $0x55c] ss:$20 sps:$4 sm:$0xff]  }
 0x363   : > { %19293 = vst [vmem:[#allocation34_spill] sm:$0xff] %v16534_v6  ;;  %v4675_v15 = vpop.f32.mrf.mxu1  ;;  %v13028_v58 = vld [vmem:[%s18963_s3 + $0x3c8] ss:$20 sps:$4 sm:$0xff]  }
 0x364   : > { %v4676_v53 = vadd.f32 %v4675_v15, %v4604_v4  ;;  %6335 = vmatpush1.bf16.msra.mxu1 %v13033_v63  ;;  %v16542_v46 = vpop.f32.mrf.mxu0  ;;  %v13036_v15 = vld [vmem:[%s18963_s3 + $0x268] ss:$20 sps:$4 sm:$0xff]  }
 0x365   : > { %v16544_v5 = vpop.f32.mrf.mxu1  ;;  %6336 = vmatprep.subr.bf16.mxu1 %v13040_v33  ;;  %6286 = vmatpush2.bf16.msra.mxu0 %v13025_v8  ;;  %v13043_v8 = vld [vmem:[%s18963_s3 + $0x558] ss:$20 sps:$4 sm:$0xff]  }
 0x366   : > { %19294 = vst [vmem:[#allocation21_spill] sm:$0xff] %v16544_v5  ;;  %v16552_v4 = vpop.f32.mrf.mxu0  ;;  %6287 = vmatprep.subr.bf16.mxu0 %v13030_v25  ;;  %v13050_v25 = vld [vmem:[%s18963_s3 + $0x534] ss:$20 sps:$4 sm:$0xff]  }
 0x367   : > { %6229 = vmatmul.mubr.bf16.gmra.mxu1 %v15098_v16  ;;  %v4681_v63 = vpop.f32.mrf.mxu1 }
 0x368   : > { %v4682_v33 = vadd.f32 %v4681_v63, %v4610_v3  ;;  %6238 = vmatprep.mubr.bf16.mxu1 %v15159_v27  ;;  %6337 = vmatpush1.bf16.msra.mxu1 %v13038_v42  ;;  %v4634_v5 = vpop.f32.mrf.mxu0  ;;  %v13037_v3 = vld [vmem:[%s18963_s3 + $0x128] ss:$20 sps:$4 sm:$0xff]  }
 0x369   : > { %v4683_v6 = vpop.f32.mrf.mxu1  ;;  %6338 = vmatprep.subr.bf16.mxu1 %v13045_v29  ;;  %6288 = vmatpush2.bf16.msra.mxu0 %v13028_v58  ;;  %v13041_v5 = vld [vmem:[%s18963_s3 + $0x240] ss:$20 sps:$4 sm:$0xff]   ;;  %v13048_v58 = vld [vmem:[%s18963_s3 + $0x530] ss:$20 sps:$4 sm:$0xff]  }
 0x36a   : > { %v4684_v24 = vadd.f32 %v4683_v6, %v16488_v40  ;;  %v4635_v63 = vpop.f32.mrf.mxu0  ;;  %11829 = vmatprep.subr.bf16.mxu0 %v13036_v15  ;;  %v13055_v15 = vld [vmem:[%s18963_s3 + $0x50c] ss:$20 sps:$4 sm:$0xff]  }
 0x36b   : > { %v4685_v42 = vpop.f32.mrf.mxu1 }
 0x36c   : > { %v4686_v29 = vadd.f32 %v4685_v42, %v16496_v26  ;;  %6339 = vmatpush1.bf16.msra.mxu1 %v13043_v8  ;;  %6290 = vmatmul.mubr.bf16.vlgmr.msra.gmra.mxu0 %v15356_v19  ;;  %v4742_v40 = vpop.f32.mrf.mxu0  ;;  %v13042_v26 = vld [vmem:[%s18963_s3 + $0x100] ss:$20 sps:$4 sm:$0xff]  }
 0x36d   : > { %v16577_v6 = vpop.f32.mrf.mxu1  ;;  %6340 = vmatprep.subr.bf16.mxu1 %v13050_v25  ;;  %6299 = vmatprep.mubr.bf16.mxu0 %v15358_v20  ;;  %v16583_v63 = vadd.f32 %v4742_v40, %v4672_v44  ;;  %v13046_v25 = vld [vmem:[%s18963_s3 + $0x218] ss:$20 sps:$4 sm:$0xff]   ;;  %v13053_v44 = vld [vmem:[%s18963_s3 + $0x508] ss:$20 sps:$4 sm:$0xff]  }
 0x36e   : > { %19295 = vst [vmem:[#allocation38_spill] sm:$0xff] %v16577_v6  ;;  %11830 = vmatpush3.bf16.msra.mxu0 %v13037_v3  ;;  %v4744_v8 = vpop.f32.mrf.mxu0  ;;  %v13059_v40 = vld [vmem:[%s18963_s3 + $0x4e8] ss:$20 sps:$4 sm:$0xff]  }
 0x36f   : > { %11831 = vmatprep.subr.bf16.mxu0 %v13041_v5  ;;  %6239 = vmatmul.mubr.bf16.gmra.mxu1 %v15182_v9  ;;  %v4691_v42 = vpop.f32.mrf.mxu1  ;;  %v16592_v6 = vadd.f32 %v4744_v8, %v4674_v30 }
 0x370   : > { %v4692_v2 = vadd.f32 %v4691_v42, %v16508_v11  ;;  %6248 = vmatprep.mubr.bf16.mxu1 %v16225_v32  ;;  %6341 = vmatpush1.bf16.msra.mxu1 %v13048_v58  ;;  %v4746_v3 = vpop.f32.mrf.mxu0  ;;  %v13047_v11 = vld [vmem:[%s18963_s3 + $0xd8] ss:$20 sps:$4 sm:$0xff]  }
 0x371   : > { %v4693_v5 = vpop.f32.mrf.mxu1  ;;  %6342 = vmatprep.subr.bf16.mxu1 %v13055_v15  ;;  %v16602_v1 = vadd.f32 %v4746_v3, %v4676_v53  ;;  %v13051_v15 = vld [vmem:[%s18963_s3 + $0x1f0] ss:$20 sps:$4 sm:$0xff]  }
 0x372   : > { %11832 = vmatpush3.bf16.msra.mxu0 %v13042_v26  ;;  %v4694_v30 = vadd.f32 %v4693_v5, %v16516_v18  ;;  %v16608_v58 = vpop.f32.mrf.mxu0 }
 0x373   : > { %19296 = vst [vmem:[#allocation12_spill] sm:$0xff] %v16608_v58  ;;  %11833 = vmatprep.subr.bf16.mxu0 %v13046_v25  ;;  %v4695_v8 = vpop.f32.mrf.mxu1  ;;  %v13052_v25 = vld [vmem:[%s18963_s3 + $0xb0] ss:$20 sps:$4 sm:$0xff]  }
 0x374   : > { %v4696_v42 = vadd.f32 %v4695_v8, %v16526_v37  ;;  %6343 = vmatpush1.bf16.msra.mxu1 %v13053_v44  ;;  %6300 = vmatmul.mubr.bf16.gmra.mxu0 %v15372_v49  ;;  %v4752_v53 = vpop.f32.mrf.mxu0  ;;  %v13056_v44 = vld [vmem:[%s18963_s3 + $0x1c8] ss:$20 sps:$4 sm:$0xff]  }
 0x375   : > { %v16615_v26 = vpop.f32.mrf.mxu1  ;;  %11869 = vmatprep.subr.bf16.mxu1 %v13059_v40  ;;  %6309 = vmatprep.mubr.bf16.mxu0 %v15419_v28  ;;  %v16618_v18 = vadd.f32 %v4752_v53, %v4682_v33  ;;  %v13057_v53 = vld [vmem:[%s18963_s3 + $0x88] ss:$20 sps:$4 sm:$0xff]  }
 0x376   : > { %19297 = vst [vmem:[#allocation22_spill] sm:$0xff] %v16615_v26  ;;  %11834 = vmatpush3.bf16.msra.mxu0 %v13047_v11  ;;  %v4754_v3 = vpop.f32.mrf.mxu0 }
 0x377   : > { %19298 = vst [vmem:[#allocation40_spill] sm:$0xff] %v16618_v18  ;;  %11835 = vmatprep.subr.bf16.mxu0 %v13051_v15  ;;  %6249 = vmatmul.mubr.bf16.gmra.mxu1 %v16265_v31  ;;  %v4701_v37 = vpop.f32.mrf.mxu1  ;;  %v16627_v5 = vadd.f32 %v4754_v3, %v4684_v24  ;;  %v13063_v3 = vld [vmem:[%s18963_s3 + $0x4c0] ss:$20 sps:$4 sm:$0xff]  }
 0x378   : > { %v4702_v40 = vadd.f32 %v4701_v37, %v16542_v46  ;;  %6360 = vmatprep.mubr.bf16.mxu1 %v19281_v60  ;;  %v4756_v33 = vpop.f32.mrf.mxu0  ;;  %v13058_v46 = vld [vmem:[%s18963_s3 + $0x1a0] ss:$20 sps:$4 sm:$0xff]  }
 0x379   : > { %19299 = vst [vmem:[#allocation24_spill] sm:$0xff] %v16627_v5  ;;  %v4703_v11 = vpop.f32.mrf.mxu1  ;;  %v16631_v8 = vadd.f32 %v4756_v33, %v4686_v29 }
 0x37a   : > { %11836 = vmatpush3.bf16.msra.mxu0 %v13052_v25  ;;  %v4704_v15 = vadd.f32 %v4703_v11, %v16552_v4  ;;  %v16637_v58 = vpop.f32.mrf.mxu0  ;;  %v13061_v25 = vld [vmem:[%s18963_s3 + $0x3a8] ss:$20 sps:$4 sm:$0xff]  }
 0x37b   : > { %19300 = vst [vmem:[#allocation19_spill] sm:$0xff] %v16631_v8  ;;  %19301 = vst [vmem:[#allocation23_spill] sm:$0xff] %v16637_v58  ;;  %11837 = vmatprep.subr.bf16.mxu0 %v13056_v44  ;;  %v4705_v24 = vpop.f32.mrf.mxu1  ;;  %v13060_v44 = vld [vmem:[%s18963_s3 + $0x60] ss:$20 sps:$4 sm:$0xff]  }
 0x37c   : > { %6310 = vmatmul.mubr.bf16.gmra.mxu0 %v15426_v59  ;;  %v4762_v29 = vpop.f32.mrf.mxu0  ;;  %v13062_v24 = vld [vmem:[%s18963_s3 + $0x178] ss:$20 sps:$4 sm:$0xff]  }
 0x37d   : > { %v4706_v4 = vpop.f32.mrf.mxu1  ;;  %6319 = vmatprep.mubr.bf16.mxu0 %v16322_v38  ;;  %v16650_v37 = vadd.f32 %v4762_v29, %v4692_v2  ;;  %v13065_v2 = vld [vmem:[%s18963_s3 + $0x380] ss:$20 sps:$4 sm:$0xff]  }
 0x37e   : > { %11838 = vmatpush3.bf16.msra.mxu0 %v13057_v53  ;;  %v4764_v33 = vpop.f32.mrf.mxu0 }
 0x37f   : > { %19302 = vst [vmem:[#allocation42_spill] sm:$0xff] %v16650_v37  ;;  %11839 = vmatprep.subr.bf16.mxu0 %v13058_v46  ;;  %11150 = vmatmul.mubr.msk.bf16.vlgmr.msra.gmra.mxu1 %vm4321_vm8, %v15543_v7  ;;  %v11755_v11 = vpop.f32.mrf.mxu1  ;;  %v16660_v4 = vadd.f32 %v4764_v33, %v4694_v30  ;;  %v13067_v46 = vld [vmem:[%s18963_s3 + $0x498] ss:$20 sps:$4 sm:$0xff]  }
 0x380   : > { %11870 = vmatpush3.bf16.msra.mxu1 %v13061_v25  ;;  %6370 = vmatprep.mubr.bf16.mxu1 %v19281_v60  ;;  %v4766_v53 = vpop.f32.mrf.mxu0  ;;  %v13064_v30 = vld [vmem:[%s18963_s3 + $0x38] ss:$20 sps:$4 sm:$0xff]  }
 0x381   : > { %19303 = vst [vmem:[#allocation10_spill] sm:$0xff] %v16660_v4  ;;  %v11756_v29 = vpop.f32.mrf.mxu1  ;;  %11871 = vmatprep.subr.bf16.mxu1 %v13063_v3  ;;  %v16669_v58 = vadd.f32 %v4766_v53, %v4696_v42  ;;  %v13066_v3 = vld [vmem:[%s18963_s3 + $0x150] ss:$20 sps:$4 sm:$0xff]   ;;  %v13069_v42 = vld [vmem:[%s18963_s3 + $0x358] ss:$20 sps:$4 sm:$0xff]  }
 0x382   : > { %11840 = vmatpush3.bf16.msra.mxu0 %v13060_v44  ;;  %v11757_v26 = vadd.f32 %v11756_v29, %v11755_v11  ;;  %v16674_v25 = vpop.f32.mrf.mxu0 }
 0x383   : > { %19304 = vst [vmem:[#allocation39_spill] sm:$0xff] %v16669_v58  ;;  %19305 = vst [vmem:[#allocation44_spill] sm:$0xff] %v16674_v25  ;;  %11841 = vmatprep.subr.bf16.mxu0 %v13062_v24  ;;  %v11758_v33 = vpop.f32.mrf.mxu1  ;;  %v13070_v24 = vld [vmem:[%s18963_s3 + $0x470] ss:$20 sps:$4 sm:$0xff]  }
 0x384   : > { %11872 = vmatpush3.bf16.msra.mxu1 %v13065_v2  ;;  %6320 = vmatmul.mubr.bf16.gmra.mxu0 %v16360_v62  ;;  %v4772_v44 = vpop.f32.mrf.mxu0  ;;  %v13068_v2 = vld [vmem:[%s18963_s3 + $0x10] ss:$20 sps:$4 sm:$0xff]  }
 0x385   : > { %v11759_v11 = vpop.f32.mrf.mxu1  ;;  %11873 = vmatprep.subr.bf16.mxu1 %v13067_v46  ;;  %6431 = vmatprep.mubr.bf16.mxu0 %v15061_v39  ;;  %v16690_v53 = vadd.f32 %v4772_v44, %v4702_v40  ;;  %v5971_v46 = vand.u32 %v13074_v35, %v14961_v45  ;;  %v13071_v40 = vld [vmem:[%s18963_s3 + $0x330] ss:$20 sps:$4 sm:$0xff]  }
 0x386   : > { %11842 = vmatpush3.bf16.msra.mxu0 %v13064_v30  ;;  %v4774_v29 = vpop.f32.mrf.mxu0  ;;  %v11760_v8 = vadd.f32 %v11759_v11, %v11758_v33 }
 0x387   : > { %19306 = vst [vmem:[#allocation28_spill] sm:$0xff] %v16690_v53  ;;  %11843 = vmatprep.subr.bf16.mxu0 %v13066_v3  ;;  %11151 = vmatmul.mubr.msk.bf16.gmra.mxu1 %vm4321_vm8, %v15527_v34  ;;  %v11761_v25 = vpop.f32.mrf.mxu1  ;;  %v16698_v22 = vadd.f32 %v4774_v29, %v4704_v15  ;;  %v13072_v3 = vld [vmem:[%s18963_s3 + $0x448] ss:$20 sps:$4 sm:$0xff]   ;;  %v13077_v15 = vld [vmem:[%s18963_s3 + $0x5b0] ss:$20 sps:$4 sm:$0xff]  }
 0x388   : > { %11874 = vmatpush3.bf16.msra.mxu1 %v13069_v42  ;;  %6380 = vmatprep.mubr.bf16.mxu1 %v19281_v60  ;;  %v4776_v30 = vpop.f32.mrf.mxu0  ;;  %v13073_v42 = vld [vmem:[%s18963_s3 + $0x308] ss:$20 sps:$4 sm:$0xff]  }
 0x389   : > { %19307 = vst [vmem:[#allocation17_spill] sm:$0xff] %v16698_v22  ;;  %v11762_v44 = vpop.f32.mrf.mxu1  ;;  %11875 = vmatprep.subr.bf16.mxu1 %v13070_v24  ;;  %v13078_v22 = vld [vmem:[%s18963_s3 + $0x3f8] ss:$20 sps:$4 sm:$0xff]  }
 0x38a   : > { %11844 = vmatpush3.bf16.msra.mxu0 %v13068_v2  ;;  %v11763_v53 = vadd.f32 %v11762_v44, %v11761_v25  ;;  %v4777_v58 = vpop.f32.mrf.mxu0  ;;  %v13076_v44 = vld [vmem:[%s18963_s3 + $0x2e0] ss:$20 sps:$4 sm:$0xff]  }
 0x38b   : > { %v16707_v35 = vpop.f32.mrf.mxu1  ;;  %12162 = vmatprep.subr.bf16.mxu0 %v5971_v46  ;;  %v13075_v58 = vld [vmem:[%s18963_s3 + $0x420] ss:$20 sps:$4 sm:$0xff]  }
 0x38c   : > { %11876 = vmatpush3.bf16.msra.mxu1 %v13071_v40  ;;  %v11795_v24 = vpop.f32.mrf.mxu0  ;;  %v13080_v40 = vld [vmem:[%s18963_s3 + $0x588] ss:$20 sps:$4 sm:$0xff]  }
 0x38d   : > { %6432 = vmatmul.mubr.bf16.vlgmr.msra.gmra.mxu0 %v15109_v21  ;;  %v11765_v29 = vpop.f32.mrf.mxu1  ;;  %11877 = vmatprep.subr.bf16.mxu1 %v13072_v3 }
 0x38e   : > { %6439 = vmatprep.mubr.bf16.mxu0 %v15065_v61  ;;  %12163 = vmatpush3.bf16.msra.mxu0 %v5971_v46  ;;  %v11796_v25 = vpop.f32.mrf.mxu0 }
 0x38f   : > { %11152 = vmatmul.mubr.msk.bf16.gmra.mxu1 %vm4321_vm8, %v15569_v43  ;;  %v11767_v2 = vpop.f32.mrf.mxu1  ;;  %12164 = vmatprep.subr.bf16.mxu0 %v13077_v15  ;;  %v11797_v30 = vadd.f32 %v11796_v25, %v11795_v24  ;;  %v13083_v25 = vld [vmem:[%s18963_s3 + $0x560] ss:$20 sps:$4 sm:$0xff]  }
 0x390   : > { %11878 = vmatpush3.bf16.msra.mxu1 %v13073_v42  ;;  %6390 = vmatprep.mubr.bf16.mxu1 %v19281_v60  ;;  %v11798_v3 = vpop.f32.mrf.mxu0 }
 0x391   : > { %v11768_v46 = vpop.f32.mrf.mxu1  ;;  %11879 = vmatprep.subr.bf16.mxu1 %v13075_v58  ;;  %v16734_v37 = vadd.f32 %v11797_v30, %v11757_v26  ;;  %v13079_v58 = vld [vmem:[%s18963_s3 + $0x2b8] ss:$20 sps:$4 sm:$0xff]  }
 0x392   : > { %v16732_v4 = vadd.f32 %v11768_v46, %v11767_v2  ;;  %12165 = vmatpush3.bf16.msra.mxu0 %v13077_v15  ;;  %v11799_v24 = vpop.f32.mrf.mxu0  ;;  %v13081_v2 = vld [vmem:[%s18963_s3 + $0x3d0] ss:$20 sps:$4 sm:$0xff]  }
 0x393   : > { %v16736_v42 = vpop.f32.mrf.mxu1  ;;  %12166 = vmatprep.subr.bf16.mxu0 %v13080_v40  ;;  %v11800_v5 = vadd.f32 %v11799_v24, %v11798_v3  ;;  %v13086_v3 = vld [vmem:[%s18963_s3 + $0xcd4] ss:$20 sps:$4 sm:$0xff]  }
 0x394   : > { %11880 = vmatpush3.bf16.msra.mxu1 %v13076_v44  ;;  %v11801_v15 = vpop.f32.mrf.mxu0  ;;  %v13087_v44 = vld [vmem:[%s18963_s3 + $0x538] ss:$20 sps:$4 sm:$0xff]  }
 0x395   : > { %6440 = vmatmul.mubr.bf16.gmra.mxu0 %v15098_v16  ;;  %v11771_v26 = vpop.f32.mrf.mxu1  ;;  %11881 = vmatprep.subr.bf16.mxu1 %v13078_v22  ;;  %v16749_v30 = vadd.f32 %v11800_v5, %v11760_v8 }
 0x396   : > { %6447 = vmatprep.mubr.bf16.mxu0 %v15159_v27  ;;  %12167 = vmatpush3.bf16.msra.mxu0 %v13080_v40  ;;  %v11802_v33 = vpop.f32.mrf.mxu0  ;;  %v13082_v40 = vld [vmem:[%s18963_s3 + $0x290] ss:$20 sps:$4 sm:$0xff]  }
 0x397   : > { %19308 = vst [vmem:[#allocation35_spill] sm:$0xff] %v16749_v30  ;;  %11153 = vmatmul.mubr.msk.bf16.gmra.mxu1 %vm4321_vm8, %v16418_v13  ;;  %v11773_v11 = vpop.f32.mrf.mxu1  ;;  %12168 = vmatprep.subr.bf16.mxu0 %v13083_v25  ;;  %v11803_v22 = vadd.f32 %v11802_v33, %v11801_v15  ;;  %v11766_v15 = vadd.f32 %v11765_v29, %v16707_v35 }
 0x398   : > { %11882 = vmatpush3.bf16.msra.mxu1 %v13079_v58  ;;  %6495 = vmatprep.mubr.bf16.mxu1 %v15364_v10  ;;  %v11804_v5 = vpop.f32.mrf.mxu0  ;;  %v13091_v58 = vld [vmem:[%s18963_s3 + $0x510] ss:$20 sps:$4 sm:$0xff]  }
 0x399   : > { %v11774_v8 = vpop.f32.mrf.mxu1  ;;  %11883 = vmatprep.subr.bf16.mxu1 %v13081_v2  ;;  %v4886_v24 = vadd.f32 %v11803_v22, %v11763_v53  ;;  %v13084_v2 = vld [vmem:[%s18963_s3 + $0xcd0] ss:$20 sps:$4 sm:$0xff]  }
 0x39a   : > { %v11775_v46 = vadd.f32 %v11774_v8, %v11773_v11  ;;  %12169 = vmatpush3.bf16.msra.mxu0 %v13083_v25  ;;  %v11805_v30 = vpop.f32.mrf.mxu0  ;;  %v13094_v8 = vld [vmem:[%s18963_s3 + $0xc84] ss:$20 sps:$4 sm:$0xff]  }
 0x39b   : > { %v11776_v18 = vpop.f32.mrf.mxu1  ;;  %12170 = vmatprep.subr.bf16.mxu0 %v13087_v44  ;;  %v11806_v33 = vadd.f32 %v11805_v30, %v11804_v5  ;;  %v13097_v30 = vld [vmem:[%s18963_s3 + $0xf54] ss:$20 sps:$4 sm:$0xff]  }
 0x39c   : > { %11884 = vmatpush3.bf16.msra.mxu1 %v13082_v40  ;;  %v11807_v11 = vpop.f32.mrf.mxu0  ;;  %v13090_v18 = vld [vmem:[%s18963_s3 + $0xcac] ss:$20 sps:$4 sm:$0xff]  }
 0x39d   : > { %6448 = vmatmul.mubr.bf16.gmra.mxu0 %v15182_v9  ;;  %v11777_v25 = vpop.f32.mrf.mxu1  ;;  %7870 = vmatprep.subr.bf16.mxu1 %v13086_v3  ;;  %v4889_v53 = vadd.f32 %v11806_v33, %v11766_v15 }
 0x39e   : > { %6455 = vmatprep.mubr.bf16.mxu0 %v16225_v32  ;;  %12171 = vmatpush3.bf16.msra.mxu0 %v13087_v44  ;;  %v11808_v35 = vpop.f32.mrf.mxu0  ;;  %v13088_v32 = vld [vmem:[%s18963_s3 + $0xca8] ss:$20 sps:$4 sm:$0xff]  }
 0x39f   : > { %6496 = vmatmul.mubr.bf16.vlgmr.msra.gmra.mxu1 %v15356_v19  ;;  %v12156_v29 = vpop.f32.mrf.mxu1  ;;  %12172 = vmatprep.subr.bf16.mxu0 %v13091_v58  ;;  %v11809_v22 = vadd.f32 %v11808_v35, %v11807_v11 }
 0x3a0   : > { %7871 = vmatpush1.bf16.msra.mxu1 %v13084_v2  ;;  %v16779_v40 = vadd.f32 %v12156_v29, %v4886_v24  ;;  %6503 = vmatprep.mubr.bf16.mxu1 %v15358_v20  ;;  %v11810_v44 = vpop.f32.mrf.mxu0  ;;  %v11772_v2 = vadd.f32 %v11771_v26, %v16736_v42 }
 0x3a1   : > { %v4941_v5 = vpop.f32.mrf.mxu1  ;;  %7872 = vmatprep.subr.bf16.mxu1 %v13090_v18  ;;  %v4894_v24 = vadd.f32 %v11809_v22, %v16732_v4  ;;  %v13092_v18 = vld [vmem:[%s18963_s3 + $0xc80] ss:$20 sps:$4 sm:$0xff]   ;;  %v13100_v4 = vld [vmem:[%s18963_s3 + $0xc5c] ss:$20 sps:$4 sm:$0xff]  }
 0x3a2   : > { %v16789_v3 = vadd.f32 %v4941_v5, %v16734_v37  ;;  %12173 = vmatpush3.bf16.msra.mxu0 %v13091_v58  ;;  %v11811_v15 = vpop.f32.mrf.mxu0  ;;  %v13106_v22 = vld [vmem:[%s18963_s3 + $0xc34] ss:$20 sps:$4 sm:$0xff]  }
 0x3a3   : > { %v12157_v33 = vpop.f32.mrf.mxu1  ;;  %7941 = vmatprep.subr.bf16.mxu0 %v13097_v30  ;;  %v11812_v11 = vadd.f32 %v11811_v15, %v11810_v44  ;;  %v13095_v44 = vld [vmem:[%s18963_s3 + $0xf50] ss:$20 sps:$4 sm:$0xff]  }
 0x3a4   : > { %7873 = vmatpush1.bf16.msra.mxu1 %v13088_v32  ;;  %v16793_v25 = vadd.f32 %v12157_v33, %v4889_v53  ;;  %v11813_v37 = vpop.f32.mrf.mxu0  ;;  %v13103_v33 = vld [vmem:[%s18963_s3 + $0xf2c] ss:$20 sps:$4 sm:$0xff]  }
 0x3a5   : > { %6456 = vmatmul.mubr.bf16.gmra.mxu0 %v16265_v31  ;;  %v16799_v35 = vpop.f32.mrf.mxu1  ;;  %7874 = vmatprep.subr.bf16.mxu1 %v13094_v8  ;;  %v16806_v42 = vadd.f32 %v11812_v11, %v11772_v2  ;;  %v13098_v31 = vld [vmem:[%s18963_s3 + $0xc58] ss:$20 sps:$4 sm:$0xff]   ;;  %v13104_v11 = vld [vmem:[%s18963_s3 + $0xc30] ss:$20 sps:$4 sm:$0xff]  }
 0x3a6   : > { %12174 = vmatprep.mubr.msk.bf16.mxu0 %vm4321_vm8, %v15543_v7  ;;  %v11814_v26 = vpop.f32.mrf.mxu0 }
 0x3a7   : > { %6504 = vmatmul.mubr.bf16.gmra.mxu1 %v15372_v49  ;;  %v12160_v58 = vpop.f32.mrf.mxu1  ;;  %v11815_v53 = vadd.f32 %v11814_v26, %v11813_v37  ;;  %v13110_v37 = vld [vmem:[%s18963_s3 + $0xc08] ss:$20 sps:$4 sm:$0xff]   ;;  %v13118_v26 = vld [vmem:[%s18963_s3 + $0xbe4] ss:$20 sps:$4 sm:$0xff]  }
 0x3a8   : > { %7875 = vmatpush1.bf16.msra.mxu1 %v13092_v18  ;;  %6511 = vmatprep.mubr.bf16.mxu1 %v15419_v28  ;;  %v11816_v29 = vpop.f32.mrf.mxu0  ;;  %v13109_v18 = vld [vmem:[%s18963_s3 + $0xf04] ss:$20 sps:$4 sm:$0xff]  }
 0x3a9   : > { %v4957_v30 = vpop.f32.mrf.mxu1  ;;  %7876 = vmatprep.subr.bf16.mxu1 %v13100_v4  ;;  %v4902_v32 = vadd.f32 %v11815_v53, %v11775_v46  ;;  %v13112_v46 = vld [vmem:[%s18963_s3 + $0xc0c] ss:$20 sps:$4 sm:$0xff]   ;;  %v6827_v4 = vrot.slane %v15358_v20, 2  ;;  %v6826_v53 = vrot.slane %v15364_v10, 2  ;;  %v6820_v10 = vrot.slane %v15061_v39, 2 }
 0x3aa   : > { %v16819_v5 = vadd.f32 %v4957_v30, %v4894_v24  ;;  %v11817_v8 = vpop.f32.mrf.mxu0  ;;  %v13101_v24 = vld [vmem:[%s18963_s3 + $0xf28] ss:$20 sps:$4 sm:$0xff]   ;;  %v13116_v29 = vld [vmem:[%s18963_s3 + $0xbe0] ss:$20 sps:$4 sm:$0xff]   ;;  %v13193_v20 = vld [vmem:[%s18963_s3 + $0xcb0] ss:$20 sps:$4 sm:$0xff]  }
 0x3ab   : > { %v12161_v15 = vpop.f32.mrf.mxu1  ;;  %v16824_v2 = vadd.f32 %v12160_v58, %v4902_v32  ;;  %v13107_v58 = vld [vmem:[%s18963_s3 + $0xf00] ss:$20 sps:$4 sm:$0xff]   ;;  %v16867_v30 = vsel %vm1888_vm4, %v6826_v53, %v6827_v4  ;;  %v13113_v32 = vld [vmem:[%s18963_s3 + $0xed8] ss:$20 sps:$4 sm:$0xff]   ;;  %v13119_v8 = vld [vmem:[%s18963_s3 + $0xeb0] ss:$20 sps:$4 sm:$0xff]  }
 0x3ac   : > { %7877 = vmatpush1.bf16.msra.mxu1 %v13098_v31  ;;  %v6821_v31 = vrot.slane %v15065_v61, 2  ;;  %v13121_v39 = vld [vmem:[%s18963_s3 + $0xeb4] ss:$20 sps:$4 sm:$0xff]   ;;  %v13127_v15 = vld [vmem:[%s18963_s3 + $0xe8c] ss:$20 sps:$4 sm:$0xff]  }
 0x3ad   : > { %12175 = vmatmul.mubr.msk.bf16.vlgmr.msra.gmra.mxu0 %vm4321_vm8, %v15527_v34  ;;  %7878 = vmatprep.subr.bf16.mxu1 %v13106_v22  ;;  %v13124_v22 = vld [vmem:[%s18963_s3 + $0xbbc] ss:$20 sps:$4 sm:$0xff]   ;;  %v13140_v53 = vld [vmem:[%s18963_s3 + $0xdc0] ss:$20 sps:$4 sm:$0xff]   ;;  %v13184_v61 = vld [vmem:[%s18963_s3 + $0x1158] ss:$20 sps:$4 sm:$0xff]  }
 0x3ae   : > { %7942 = vmatpush1.bf16.msra.mxu0 %v13095_v44  ;;  %12178 = vmatprep.mubr.msk.bf16.mxu0 %vm4321_vm8, %v15569_v43  ;;  %v13122_v44 = vld [vmem:[%s18963_s3 + $0xbb8] ss:$20 sps:$4 sm:$0xff]  }
 0x3af   : > { %7943 = vmatprep.subr.bf16.mxu0 %v13103_v33  ;;  %6512 = vmatmul.mubr.bf16.gmra.mxu1 %v15426_v59  ;;  %v13128_v33 = vld [vmem:[%s18963_s3 + $0xe10] ss:$20 sps:$4 sm:$0xff]  }
 0x3b0   : > { %7879 = vmatpush1.bf16.msra.mxu1 %v13104_v11  ;;  %6519 = vmatprep.mubr.bf16.mxu1 %v16322_v38  ;;  %v13115_v38 = vld [vmem:[%s18963_s3 + $0xedc] ss:$20 sps:$4 sm:$0xff]   ;;  %v13136_v11 = vld [vmem:[%s18963_s3 + $0xdec] ss:$20 sps:$4 sm:$0xff]  }
 0x3b1   : > { %7880 = vmatprep.subr.bf16.mxu1 %v13112_v46  ;;  %v13125_v46 = vld [vmem:[%s18963_s3 + $0xe88] ss:$20 sps:$4 sm:$0xff]  }
 0x3b2   : > { %7944 = vmatpush1.bf16.msra.mxu0 %v13101_v24  ;;  %v13133_v24 = vld [vmem:[%s18963_s3 + $0xe64] ss:$20 sps:$4 sm:$0xff]  }
 0x3b3   : > { %7945 = vmatprep.subr.bf16.mxu0 %v13109_v18  ;;  %v13134_v18 = vld [vmem:[%s18963_s3 + $0xde8] ss:$20 sps:$4 sm:$0xff]  }
 0x3b4   : > { %7881 = vmatpush1.bf16.msra.mxu1 %v13110_v37  ;;  %v13142_v37 = vld [vmem:[%s18963_s3 + $0xdc4] ss:$20 sps:$4 sm:$0xff]  }
 0x3b5   : > { %12179 = vmatmul.mubr.msk.bf16.gmra.mxu0 %vm4321_vm8, %v16418_v13  ;;  %7882 = vmatprep.subr.bf16.mxu1 %v13118_v26  ;;  %v16881_v13 = vsel %vm1888_vm4, %v6820_v10, %v6821_v31  ;;  %v13131_v26 = vld [vmem:[%s18963_s3 + $0xe60] ss:$20 sps:$4 sm:$0xff]  }
 0x3b6   : > { %7946 = vmatpush1.bf16.msra.mxu0 %v13107_v58  ;;  %7973 = vmatprep.mubr.bf16.mxu0 %v16867_v30  ;;  %v13139_v58 = vld [vmem:[%s18963_s3 + $0xe3c] ss:$20 sps:$4 sm:$0xff]   ;;  %v13145_v10 = vld [vmem:[%s18963_s3 + $0x1094] ss:$20 sps:$4 sm:$0xff]  }
 0x3b7   : > { %7947 = vmatprep.subr.bf16.mxu0 %v13115_v38  ;;  %6520 = vmatmul.mubr.bf16.gmra.mxu1 %v16360_v62  ;;  %v13130_v62 = vld [vmem:[%s18963_s3 + $0xe14] ss:$20 sps:$4 sm:$0xff]   ;;  %v13148_v38 = vld [vmem:[%s18963_s3 + $0xd9c] ss:$20 sps:$4 sm:$0xff]  }
 0x3b8   : > { %7883 = vmatpush1.bf16.msra.mxu1 %v13116_v29  ;;  %7902 = vmatprep.mubr.bf16.mxu1 %v16881_v13  ;;  %v13137_v29 = vld [vmem:[%s18963_s3 + $0xe38] ss:$20 sps:$4 sm:$0xff]  }
 0x3b9   : > { %7884 = vmatprep.subr.bf16.mxu1 %v13124_v22  ;;  %v13146_v22 = vld [vmem:[%s18963_s3 + $0xd98] ss:$20 sps:$4 sm:$0xff]  }
 0x3ba   : > { %7948 = vmatpush1.bf16.msra.mxu0 %v13113_v32  ;;  %v13154_v32 = vld [vmem:[%s18963_s3 + $0xd74] ss:$20 sps:$4 sm:$0xff]  }
 0x3bb   : > { %7949 = vmatprep.subr.bf16.mxu0 %v13121_v39  ;;  %v13143_v39 = vld [vmem:[%s18963_s3 + $0x1090] ss:$20 sps:$4 sm:$0xff]  }
 0x3bc   : > { %7885 = vmatpush1.bf16.msra.mxu1 %v13122_v44  ;;  %v13151_v44 = vld [vmem:[%s18963_s3 + $0x106c] ss:$20 sps:$4 sm:$0xff]  }
 0x3bd   : > { %7886 = vmatprep.subr.bf16.mxu1 %v13130_v62  ;;  %v13152_v62 = vld [vmem:[%s18963_s3 + $0xd70] ss:$20 sps:$4 sm:$0xff]  }
 0x3be   : > { %7950 = vmatpush1.bf16.msra.mxu0 %v13119_v8 }
 0x3bf   : > { %7951 = vmatprep.subr.bf16.mxu0 %v13127_v15  ;;  %v13160_v15 = vld [vmem:[%s18963_s3 + $0xd4c] ss:$20 sps:$4 sm:$0xff]  }
 0x3c0   : > { %7887 = vmatpush2.bf16.msra.mxu1 %v13128_v33 }
 0x3c1   : > { %7888 = vmatprep.subr.bf16.mxu1 %v13136_v11  ;;  %v13149_v11 = vld [vmem:[%s18963_s3 + $0x1068] ss:$20 sps:$4 sm:$0xff]  }
 0x3c2   : > { %7952 = vmatpush1.bf16.msra.mxu0 %v13125_v46 }
 0x3c3   : > { %7953 = vmatprep.subr.bf16.mxu0 %v13133_v24  ;;  %v13157_v24 = vld [vmem:[%s18963_s3 + $0x1044] ss:$20 sps:$4 sm:$0xff]  }
 0x3c4   : > { %7889 = vmatpush2.bf16.msra.mxu1 %v13134_v18 }
 0x3c5   : > { %7890 = vmatprep.subr.bf16.mxu1 %v13142_v37  ;;  %v13158_v37 = vld [vmem:[%s18963_s3 + $0xd48] ss:$20 sps:$4 sm:$0xff]  }
 0x3c6   : > { %7954 = vmatpush1.bf16.msra.mxu0 %v13131_v26  ;;  %v13166_v26 = vld [vmem:[%s18963_s3 + $0xd24] ss:$20 sps:$4 sm:$0xff]  }
 0x3c7   : > { %7955 = vmatprep.subr.bf16.mxu0 %v13139_v58 }
 0x3c8   : > { %7891 = vmatpush2.bf16.msra.mxu1 %v13140_v53  ;;  %v11380_v53 = vld [vmem:[%s18963_s3 + $0x1180] sm:$0xff] }
 0x3c9   : > { %7892 = vmatprep.subr.bf16.mxu1 %v13148_v38 }
 0x3ca   : > { %7956 = vmatpush1.bf16.msra.mxu0 %v13137_v29  ;;  %v13163_v29 = vld [vmem:[%s18963_s3 + $0x101c] ss:$20 sps:$4 sm:$0xff]  }
 0x3cb   : > { %7957 = vmatprep.subr.bf16.mxu0 %v13145_v10 }
 0x3cc   : > { %7893 = vmatpush2.bf16.msra.mxu1 %v13146_v22  ;;  %v6007_v8 = vpop.f32.mrf.mxu0  ;;  %v13172_v22 = vld [vmem:[%s18963_s3 + $0xcfc] ss:$20 sps:$4 sm:$0xff]  }
 0x3cd   : > { %7894 = vmatprep.subr.bf16.mxu1 %v13154_v32  ;;  %v16954_v33 = vadd.f32 %v6007_v8, %v16248_v47  ;;  %v11569_v32 = vcombine.high %v11380_v53, %v11380_v53  ;;  %v13169_v8 = vld [vmem:[%s18963_s3 + $0xff4] ss:$20 sps:$4 sm:$0xff]  }
 0x3ce   : > { %7958 = vmatpush2.bf16.msra.mxu0 %v13143_v39  ;;  %v6009_v46 = vpop.f32.mrf.mxu0 }
 0x3cf   : > { %7959 = vmatprep.subr.bf16.mxu0 %v13151_v44  ;;  %v16963_v18 = vadd.f32 %v6009_v46, %v16259_v50  ;;  %v13155_v50 = vld [vmem:[%s18963_s3 + $0x1040] ss:$20 sps:$4 sm:$0xff]   ;;  %v13161_v44 = vld [vmem:[%s18963_s3 + $0x1018] ss:$20 sps:$4 sm:$0xff]  }
 0x3d0   : > { %7895 = vmatpush2.bf16.msra.mxu1 %v13152_v62  ;;  %v6011_v47 = vpop.f32.mrf.mxu0 }
 0x3d1   : > { %7896 = vmatprep.subr.bf16.mxu1 %v13160_v15  ;;  %v16972_v58 = vadd.f32 %v6011_v47, %v16268_v55  ;;  %v13164_v55 = vld [vmem:[%s18963_s3 + $0xd20] ss:$20 sps:$4 sm:$0xff]   ;;  %v13167_v47 = vld [vmem:[%s18963_s3 + $0xff0] ss:$20 sps:$4 sm:$0xff]  }
 0x3d2   : > { %7960 = vmatpush2.bf16.msra.mxu0 %v13149_v11  ;;  %v16980_v38 = vpop.f32.mrf.mxu0  ;;  %v13170_v11 = vld [vmem:[%s18963_s3 + $0xcf8] ss:$20 sps:$4 sm:$0xff]  }
 0x3d3   : > { %7961 = vmatprep.subr.bf16.mxu0 %v13157_v24  ;;  %v7859_v24 = vand.u32 %v11569_v32, %v14961_v45 }
 0x3d4   : > { %7897 = vmatpush2.bf16.msra.mxu1 %v13158_v37  ;;  %v6017_v10 = vpop.f32.mrf.mxu0 }
 0x3d5   : > { %7898 = vmatprep.subr.bf16.mxu1 %v13166_v26  ;;  %v16992_v39 = vadd.f32 %v6017_v10, %v16287_v36  ;;  %v11568_v36 = vcombine.low %v11380_v53, %v11380_v53  ;;  %v6834_v53 = vrot.slane %v15159_v27, 2  ;;  %v13173_v27 = vld [vmem:[%s18963_s3 + $0xfc8] ss:$20 sps:$4 sm:$0xff]  }
 0x3d6   : > { %7962 = vmatpush2.bf16.msra.mxu0 %v13155_v50  ;;  %v6019_v62 = vpop.f32.mrf.mxu0  ;;  %v13175_v50 = vld [vmem:[%s18963_s3 + $0xfcc] ss:$20 sps:$4 sm:$0xff]  }
 0x3d7   : > { %7963 = vmatprep.subr.bf16.mxu0 %v13163_v29  ;;  %v17001_v15 = vadd.f32 %v6019_v62, %v16299_v57  ;;  %v6818_v57 = vrot.slane %v15098_v16, 2  ;;  %v6817_v29 = vrot.slane %v15109_v21, 2  ;;  %v13186_v16 = vld [vmem:[%s18963_s3 + $0x115c] ss:$20 sps:$4 sm:$0xff]   ;;  %v17040_v62 = vsel %vm1888_vm4, %v6821_v31, %v6834_v53 }
 0x3d8   : > { %7899 = vmatpush2.bf16.msra.mxu1 %v13164_v55  ;;  %v6021_v46 = vpop.f32.mrf.mxu0  ;;  %v17022_v55 = vpop.f32.mrf.mxu1 }
 0x3d9   : > { %7900 = vmatprep.subr.bf16.mxu1 %v13172_v22  ;;  %v17008_v37 = vadd.f32 %v6021_v46, %v16305_v23  ;;  %v7856_v23 = vand.u32 %v11568_v36, %v14961_v45  ;;  %v17034_v21 = vsel %vm1888_vm4, %v6817_v29, %v6818_v57  ;;  %v13192_v46 = vld [vmem:[%s18963_s3 + $0x1134] ss:$20 sps:$4 sm:$0xff]  }
 0x3da   : > { %7964 = vmatpush2.bf16.msra.mxu0 %v13161_v44  ;;  %v17014_v26 = vpop.f32.mrf.mxu0 }
 0x3db   : > { %19309 = vst [vmem:[#allocation36_spill] sm:$0xff] %v17014_v26  ;;  %7965 = vmatprep.subr.bf16.mxu0 %v13169_v8 }
 0x3dc   : > { %7901 = vmatpush2.bf16.msra.mxu1 %v13170_v11  ;;  %v6027_v10 = vpop.f32.mrf.mxu0 }
 0x3dd   : > { %8016 = vmatprep.subr.bf16.mxu1 %v7859_v24  ;;  %v17028_v22 = vadd.f32 %v6027_v10, %v16331_v54  ;;  %v13178_v54 = vld [vmem:[%s18963_s3 + $0xfa4] ss:$20 sps:$4 sm:$0xff]   ;;  %v13176_v24 = vld [vmem:[%s18963_s3 + $0xfa0] ss:$20 sps:$4 sm:$0xff]  }
 0x3de   : > { %7966 = vmatpush2.bf16.msra.mxu0 %v13167_v47  ;;  %v6029_v32 = vpop.f32.mrf.mxu0  ;;  %v6832_v47 = vrot.slane %v15182_v9, 2  ;;  %v13190_v10 = vld [vmem:[%s18963_s3 + $0x1130] ss:$20 sps:$4 sm:$0xff]  }
 0x3df   : > { %7967 = vmatprep.subr.bf16.mxu0 %v13175_v50  ;;  %7903 = vmatmul.mubr.bf16.vlgmr.msra.gmra.mxu1 %v17034_v21  ;;  %v6078_v44 = vpop.f32.mrf.mxu1  ;;  %v17046_v8 = vadd.f32 %v6029_v32, %v16343_v52 }
 0x3e0   : > { %v17049_v11 = vadd.f32 %v6078_v44, %v16954_v33  ;;  %7912 = vmatprep.mubr.bf16.mxu1 %v17040_v62  ;;  %8017 = vmatpush1.bf16.msra.mxu1 %v7856_v23  ;;  %v6031_v36 = vpop.f32.mrf.mxu0  ;;  %v13181_v23 = vld [vmem:[%s18963_s3 + $0xf7c] ss:$20 sps:$4 sm:$0xff]   ;;  %v17094_v32 = vsel %vm1888_vm4, %v6818_v57, %v6832_v47  ;;  %v6824_v57 = vrot.slane %v15372_v49, 2  ;;  %v6823_v49 = vrot.slane %v15356_v19, 2  ;;  %v13202_v19 = vld [vmem:[%s18963_s3 + $0x10e0] ss:$20 sps:$4 sm:$0xff]  }
 0x3e1   : > { %v6080_v31 = vpop.f32.mrf.mxu1  ;;  %8018 = vmatprep.subr.bf16.mxu1 %v13186_v16  ;;  %v17059_v52 = vadd.f32 %v6031_v36, %v16349_v48  ;;  %v17074_v48 = vrot.slane %v15399_v12, 2 }
 0x3e2   : > { %7968 = vmatpush2.bf16.msra.mxu0 %v13173_v27  ;;  %v17062_v33 = vadd.f32 %v6080_v31, %v16963_v18  ;;  %v17068_v50 = vpop.f32.mrf.mxu0  ;;  %v13198_v27 = vld [vmem:[%s18963_s3 + $0x110c] ss:$20 sps:$4 sm:$0xff]  }
 0x3e3   : > { %19310 = vst [vmem:[#allocation25_spill] sm:$0xff] %v17068_v50  ;;  %7969 = vmatprep.subr.bf16.mxu0 %v13178_v54  ;;  %v6082_v29 = vpop.f32.mrf.mxu1 }
 0x3e4   : > { %v17077_v18 = vadd.f32 %v6082_v29, %v16972_v58  ;;  %8019 = vmatpush1.bf16.msra.mxu1 %v13184_v61  ;;  %v6037_v9 = vpop.f32.mrf.mxu0  ;;  %v13179_v58 = vld [vmem:[%s18963_s3 + $0xf78] ss:$20 sps:$4 sm:$0xff]   ;;  %v17099_v61 = vsel %vm1888_vm4, %v6834_v53, %v17074_v48  ;;  %v13196_v53 = vld [vmem:[%s18963_s3 + $0x1108] ss:$20 sps:$4 sm:$0xff]   ;;  %v6838_v29 = vrot.slane %v15419_v28, 2 }
 0x3e5   : > { %v17082_v16 = vpop.f32.mrf.mxu1  ;;  %8020 = vmatprep.subr.bf16.mxu1 %v13192_v46  ;;  %v17088_v12 = vadd.f32 %v6037_v9, %v16375_v51  ;;  %v13189_v51 = vld [vmem:[%s18963_s3 + $0xcdc] ss:$20 sps:$4 sm:$0xff]  }
 0x3e6   : > { %7970 = vmatpush2.bf16.msra.mxu0 %v13176_v24  ;;  %v6039_v44 = vpop.f32.mrf.mxu0 }
 0x3e7   : > { %7971 = vmatprep.subr.bf16.mxu0 %v13181_v23  ;;  %7913 = vmatmul.mubr.bf16.gmra.mxu1 %v17094_v32  ;;  %v6088_v54 = vpop.f32.mrf.mxu1  ;;  %v17105_v36 = vadd.f32 %v6039_v44, %v16387_v0  ;;  %v13204_v0 = vld [vmem:[%s18963_s3 + $0x10e4] ss:$20 sps:$4 sm:$0xff]  }
 0x3e8   : > { %v17108_v31 = vadd.f32 %v6088_v54, %v16992_v39  ;;  %7922 = vmatprep.mubr.bf16.mxu1 %v17099_v61  ;;  %8021 = vmatpush1.bf16.msra.mxu1 %v13190_v10  ;;  %v6041_v46 = vpop.f32.mrf.mxu0  ;;  %v13187_v23 = vld [vmem:[%s18963_s3 + $0xcd8] ss:$20 sps:$4 sm:$0xff]   ;;  %v17127_v10 = vrot.slane %v15379_v17, 2  ;;  %v17143_v17 = vsel %vm1888_vm4, %v6827_v4, %v6838_v29 }
 0x3e9   : > { %v6090_v24 = vpop.f32.mrf.mxu1  ;;  %8022 = vmatprep.subr.bf16.mxu1 %v13198_v27  ;;  %v13195_v27 = vld [vmem:[%s18963_s3 + $0xcb4] ss:$20 sps:$4 sm:$0xff]  }
 0x3ea   : > { %7972 = vmatpush2.bf16.msra.mxu0 %v13179_v58  ;;  %v17120_v39 = vadd.f32 %v6090_v24, %v17001_v15  ;;  %v6042_v9 = vpop.f32.mrf.mxu0  ;;  %v17133_v58 = vsel %vm1888_vm4, %v6823_v49, %v6824_v57  ;;  %v17159_v4 = vsel %vm1888_vm4, %v6832_v47, %v17127_v10  ;;  %v13201_v24 = vld [vmem:[%s18963_s3 + $0xc8c] ss:$20 sps:$4 sm:$0xff]   ;;  %v6836_v49 = vrot.slane %v15426_v59, 2 }
 0x3eb   : > { %8083 = vmatprep.subr.bf16.mxu0 %v13189_v51  ;;  %v6092_v28 = vpop.f32.mrf.mxu1  ;;  %v13208_v47 = vld [vmem:[%s18963_s3 + $0x10b8] ss:$20 sps:$4 sm:$0xff]  }
 0x3ec   : > { %v6093_v15 = vadd.f32 %v6092_v28, %v17008_v37  ;;  %8023 = vmatpush1.bf16.msra.mxu1 %v13196_v53  ;;  %v6149_v44 = vpop.f32.mrf.mxu0  ;;  %v13210_v37 = vld [vmem:[%s18963_s3 + $0x10bc] ss:$20 sps:$4 sm:$0xff]   ;;  %v17175_v28 = vrot.slane %v15487_v41, 2 }
 0x3ed   : > { %7974 = vmatmul.mubr.bf16.vlgmr.msra.gmra.mxu0 %v17133_v58  ;;  %v17145_v54 = vpop.f32.mrf.mxu1  ;;  %8024 = vmatprep.subr.bf16.mxu1 %v13204_v0  ;;  %v17152_v51 = vadd.f32 %v6149_v44, %v17049_v11  ;;  %v13207_v44 = vld [vmem:[%s18963_s3 + $0xc64] ss:$20 sps:$4 sm:$0xff]  }
 0x3ee   : > { %19311 = vst [vmem:[#allocation46_spill] sm:$0xff] %v17145_v54  ;;  %7983 = vmatprep.mubr.bf16.mxu0 %v17143_v17  ;;  %8084 = vmatpush1.bf16.msra.mxu0 %v13187_v23  ;;  %v6151_v53 = vpop.f32.mrf.mxu0 }
 0x3ef   : > { %8085 = vmatprep.subr.bf16.mxu0 %v13195_v27  ;;  %7923 = vmatmul.mubr.bf16.gmra.mxu1 %v17159_v4  ;;  %v6098_v46 = vpop.f32.mrf.mxu1  ;;  %v17166_v11 = vadd.f32 %v6151_v53, %v17062_v33  ;;  %v13219_v33 = vld [vmem:[%s18963_s3 + $0xf5c] ss:$20 sps:$4 sm:$0xff]  }
 0x3f0   : > { %v6099_v0 = vadd.f32 %v6098_v46, %v17028_v22  ;;  %7932 = vmatprep.mubr.bf16.mxu1 %v17074_v48  ;;  %8025 = vmatpush1.bf16.msra.mxu1 %v13202_v19  ;;  %v6153_v23 = vpop.f32.mrf.mxu0  ;;  %v13199_v27 = vld [vmem:[%s18963_s3 + $0xc88] ss:$20 sps:$4 sm:$0xff]  }
 0x3f1   : > { %v6100_v9 = vpop.f32.mrf.mxu1  ;;  %8026 = vmatprep.subr.bf16.mxu1 %v13210_v37  ;;  %v17181_v22 = vadd.f32 %v6153_v23, %v17077_v18  ;;  %v17193_v37 = vsel %vm1888_vm4, %v6824_v57, %v6836_v49 }
 0x3f2   : > { %8086 = vmatpush1.bf16.msra.mxu0 %v13193_v20  ;;  %v6101_v59 = vadd.f32 %v6100_v9, %v17046_v8  ;;  %v17187_v19 = vpop.f32.mrf.mxu0  ;;  %v17199_v8 = vsel %vm1888_vm4, %v6838_v29, %v17175_v28 }
 0x3f3   : > { %8087 = vmatprep.subr.bf16.mxu0 %v13201_v24  ;;  %v6102_v41 = vpop.f32.mrf.mxu1  ;;  %v13213_v24 = vld [vmem:[%s18963_s3 + $0xc3c] ss:$20 sps:$4 sm:$0xff]  }
 0x3f4   : > { %v6103_v18 = vadd.f32 %v6102_v41, %v17059_v52  ;;  %8027 = vmatpush1.bf16.msra.mxu1 %v13208_v47  ;;  %v6159_v20 = vpop.f32.mrf.mxu0  ;;  %v13205_v52 = vld [vmem:[%s18963_s3 + $0xc60] ss:$20 sps:$4 sm:$0xff]  }
 0x3f5   : > { %7984 = vmatmul.mubr.bf16.gmra.mxu0 %v17193_v37  ;;  %v17201_v53 = vpop.f32.mrf.mxu1  ;;  %8154 = vmatprep.subr.bf16.mxu1 %v13219_v33  ;;  %v17205_v46 = vadd.f32 %v6159_v20, %v17108_v31  ;;  %v17219_v31 = vrot.slane %v15524_v14, 2 }
 0x3f6   : > { %19312 = vst [vmem:[#allocation16_spill] sm:$0xff] %v17201_v53  ;;  %7993 = vmatprep.mubr.bf16.mxu0 %v17199_v8  ;;  %8088 = vmatpush1.bf16.msra.mxu0 %v13199_v27  ;;  %v6161_v57 = vpop.f32.mrf.mxu0 }
 0x3f7   : > { %8089 = vmatprep.subr.bf16.mxu0 %v13207_v44  ;;  %7933 = vmatmul.mubr.bf16.gmra.mxu1 %v17127_v10  ;;  %v6108_v29 = vpop.f32.mrf.mxu1  ;;  %v17215_v47 = vadd.f32 %v6161_v57, %v17120_v39  ;;  %v13211_v44 = vld [vmem:[%s18963_s3 + $0xc38] ss:$20 sps:$4 sm:$0xff]   ;;  %v6830_v39 = vrot.slane %v15527_v34, 2 }
 0x3f8   : > { %v6109_v23 = vadd.f32 %v6108_v29, %v17088_v12  ;;  %8044 = vmatprep.mubr.bf16.mxu1 %v19281_v60  ;;  %v6163_v9 = vpop.f32.mrf.mxu0  ;;  %v13216_v12 = vld [vmem:[%s18963_s3 + $0xc14] ss:$20 sps:$4 sm:$0xff]  }
 0x3f9   : > { %v6110_v33 = vpop.f32.mrf.mxu1  ;;  %v17222_v27 = vadd.f32 %v6163_v9, %v6093_v15  ;;  %v17236_v15 = vsel %vm1888_vm4, %v6836_v49, %v17219_v31  ;;  %v13225_v29 = vld [vmem:[%s18963_s3 + $0xf34] ss:$20 sps:$4 sm:$0xff]   ;;  %v13214_v49 = vld [vmem:[%s18963_s3 + $0xc10] ss:$20 sps:$4 sm:$0xff]  }
 0x3fa   : > { %8090 = vmatpush1.bf16.msra.mxu0 %v13205_v52  ;;  %v6111_v41 = vadd.f32 %v6110_v33, %v17105_v36  ;;  %v17229_v20 = vpop.f32.mrf.mxu0  ;;  %v13217_v36 = vld [vmem:[%s18963_s3 + $0xf58] ss:$20 sps:$4 sm:$0xff]   ;;  %v6829_v52 = vrot.slane %v15543_v7, 2 }
 0x3fb   : > { %19313 = vst [vmem:[#allocation47_spill] sm:$0xff] %v17229_v20  ;;  %8091 = vmatprep.subr.bf16.mxu0 %v13213_v24  ;;  %v6112_v14 = vpop.f32.mrf.mxu1  ;;  %v13222_v33 = vld [vmem:[%s18963_s3 + $0xbec] ss:$20 sps:$4 sm:$0xff]  }
 0x3fc   : > { %v6169_v34 = vpop.f32.mrf.mxu0  ;;  %v17253_v9 = vsel %vm1888_vm4, %v6829_v52, %v6830_v39 }
 0x3fd   : > { %7994 = vmatmul.mubr.bf16.gmra.mxu0 %v17236_v15  ;;  %v6113_v57 = vpop.f32.mrf.mxu1  ;;  %v17247_v24 = vadd.f32 %v6169_v34, %v6099_v0  ;;  %v13223_v0 = vld [vmem:[%s18963_s3 + $0xf30] ss:$20 sps:$4 sm:$0xff]  }
 0x3fe   : > { %8003 = vmatprep.mubr.bf16.mxu0 %v17175_v28  ;;  %8092 = vmatpush1.bf16.msra.mxu0 %v13211_v44  ;;  %v6171_v7 = vpop.f32.mrf.mxu0  ;;  %v13228_v57 = vld [vmem:[%s18963_s3 + $0xbc4] ss:$20 sps:$4 sm:$0xff]  }
 0x3ff   : > { %19314 = vst [vmem:[#allocation26_spill] sm:$0xff] %v17247_v24  ;;  %8093 = vmatprep.subr.bf16.mxu0 %v13216_v12  ;;  %11573 = vmatmul.mubr.msk.bf16.vlgmr.msra.gmra.mxu1 %vm4321_vm8, %v17253_v9  ;;  %v17260_v14 = vadd.f32 %v6171_v7, %v6101_v59  ;;  %v13231_v12 = vld [vmem:[%s18963_s3 + $0xf0c] ss:$20 sps:$4 sm:$0xff]   ;;  %v13220_v59 = vld [vmem:[%s18963_s3 + $0xbe8] ss:$20 sps:$4 sm:$0xff]  }
 0x400   : > { %8155 = vmatpush1.bf16.msra.mxu1 %v13217_v36  ;;  %8054 = vmatprep.mubr.bf16.mxu1 %v19281_v60  ;;  %v6173_v44 = vpop.f32.mrf.mxu0  ;;  %v6840_v36 = vrot.slane %v15569_v43, 2  ;;  %v13237_v43 = vld [vmem:[%s18963_s3 + $0xee4] ss:$20 sps:$4 sm:$0xff]   ;;  %v13226_v7 = vld [vmem:[%s18963_s3 + $0xbc0] ss:$20 sps:$4 sm:$0xff]  }
 0x401   : > { %19315 = vst [vmem:[#allocation48_spill] sm:$0xff] %v17260_v14  ;;  %8156 = vmatprep.subr.bf16.mxu1 %v13225_v29  ;;  %v17269_v52 = vadd.f32 %v6173_v44, %v6103_v18  ;;  %v13229_v29 = vld [vmem:[%s18963_s3 + $0xf08] ss:$20 sps:$4 sm:$0xff]  }
 0x402   : > { %8094 = vmatpush1.bf16.msra.mxu0 %v13214_v49  ;;  %v17275_v34 = vpop.f32.mrf.mxu0  ;;  %v13234_v44 = vld [vmem:[%s18963_s3 + $0xe1c] ss:$20 sps:$4 sm:$0xff]  }
 0x403   : > { %19316 = vst [vmem:[#allocation18_spill] sm:$0xff] %v17269_v52  ;;  %19317 = vst [vmem:[#allocation49_spill] sm:$0xff] %v17275_v34  ;;  %8095 = vmatprep.subr.bf16.mxu0 %v13222_v33  ;;  %v17294_v33 = vsel %vm1888_vm4, %v6830_v39, %v6840_v36  ;;  %v19326_v34 = vld [vmem:[#allocation10_spill] sm:$0xff]  ;;  %v19331_v24 = vld [vmem:[#allocation17_spill] sm:$0xff] }
 0x404   : > { %8157 = vmatpush1.bf16.msra.mxu1 %v13223_v0  ;;  %v6179_v18 = vpop.f32.mrf.mxu0 }
 0x405   : > { %8004 = vmatmul.mubr.bf16.gmra.mxu0 %v17219_v31  ;;  %8158 = vmatprep.subr.bf16.mxu1 %v13231_v12  ;;  %v17288_v49 = vadd.f32 %v6179_v18, %v6109_v23  ;;  %v13235_v23 = vld [vmem:[%s18963_s3 + $0xee0] ss:$20 sps:$4 sm:$0xff]  }
 0x406   : > { %8096 = vmatpush1.bf16.msra.mxu0 %v13220_v59  ;;  %8115 = vmatprep.mubr.bf16.mxu0 %v16881_v13  ;;  %v6181_v0 = vpop.f32.mrf.mxu0  ;;  %v13243_v59 = vld [vmem:[%s18963_s3 + $0xebc] ss:$20 sps:$4 sm:$0xff]   ;;  %v13240_v18 = vld [vmem:[%s18963_s3 + $0xdf4] ss:$20 sps:$4 sm:$0xff]  }
 0x407   : > { %19318 = vst [vmem:[#allocation20_spill] sm:$0xff] %v17288_v49  ;;  %8097 = vmatprep.subr.bf16.mxu0 %v13228_v57  ;;  %11574 = vmatmul.mubr.msk.bf16.gmra.mxu1 %vm4321_vm8, %v17294_v33  ;;  %v17301_v12 = vadd.f32 %v6181_v0, %v6111_v41  ;;  %v17311_v57 = vrot.slane %v15608_v56, 2  ;;  %v13232_v41 = vld [vmem:[%s18963_s3 + $0xe18] ss:$20 sps:$4 sm:$0xff]   ;;  %v13249_v56 = vld [vmem:[%s18963_s3 + $0xe94] ss:$20 sps:$4 sm:$0xff]  }
 0x408   : > { %8159 = vmatpush1.bf16.msra.mxu1 %v13229_v29  ;;  %8064 = vmatprep.mubr.bf16.mxu1 %v19281_v60  ;;  %v6183_v39 = vpop.f32.mrf.mxu0 }
 0x409   : > { %19319 = vst [vmem:[#allocation43_spill] sm:$0xff] %v17301_v12  ;;  %8160 = vmatprep.subr.bf16.mxu1 %v13237_v43  ;;  %v13241_v43 = vld [vmem:[%s18963_s3 + $0xeb8] ss:$20 sps:$4 sm:$0xff]   ;;  %v17330_v0 = vsel %vm1888_vm4, %v6840_v36, %v17311_v57  ;;  %v13244_v39 = vld [vmem:[%s18963_s3 + $0xdc8] ss:$20 sps:$4 sm:$0xff]   ;;  %v19322_v12 = vld [vmem:[#allocation24_spill] sm:$0xff] }
 0x40a   : > { %8098 = vmatpush1.bf16.msra.mxu0 %v13226_v7  ;;  %v6184_v29 = vpop.f32.mrf.mxu0  ;;  %v13238_v7 = vld [vmem:[%s18963_s3 + $0xdf0] ss:$20 sps:$4 sm:$0xff]   ;;  %v13255_v36 = vld [vmem:[%s18963_s3 + $0xe6c] ss:$20 sps:$4 sm:$0xff]  }
 0x40b   : > { %8099 = vmatprep.subr.bf16.mxu0 %v13234_v44  ;;  %v13246_v44 = vld [vmem:[%s18963_s3 + $0xdcc] ss:$20 sps:$4 sm:$0xff]   ;;  %v13261_v29 = vld [vmem:[%s18963_s3 + $0xe44] ss:$20 sps:$4 sm:$0xff]  }
 0x40c   : > { %8161 = vmatpush1.bf16.msra.mxu1 %v13235_v23  ;;  %v13247_v23 = vld [vmem:[%s18963_s3 + $0xe90] ss:$20 sps:$4 sm:$0xff]  }
 0x40d   : > { %8162 = vmatprep.subr.bf16.mxu1 %v13243_v59  ;;  %v13252_v59 = vld [vmem:[%s18963_s3 + $0xda4] ss:$20 sps:$4 sm:$0xff]  }
 0x40e   : > { %8100 = vmatpush2.bf16.msra.mxu0 %v13232_v41  ;;  %v13253_v41 = vld [vmem:[%s18963_s3 + $0xe68] ss:$20 sps:$4 sm:$0xff]  }
 0x40f   : > { %8101 = vmatprep.subr.bf16.mxu0 %v13240_v18  ;;  %11575 = vmatmul.mubr.msk.bf16.gmra.mxu1 %vm4321_vm8, %v17330_v0  ;;  %v13250_v18 = vld [vmem:[%s18963_s3 + $0xda0] ss:$20 sps:$4 sm:$0xff]  }
 0x410   : > { %8163 = vmatpush1.bf16.msra.mxu1 %v13241_v43  ;;  %8074 = vmatprep.mubr.bf16.mxu1 %v19281_v60  ;;  %v13258_v43 = vld [vmem:[%s18963_s3 + $0xd7c] ss:$20 sps:$4 sm:$0xff]  }
 0x411   : > { %8164 = vmatprep.subr.bf16.mxu1 %v13249_v56  ;;  %v13259_v56 = vld [vmem:[%s18963_s3 + $0xe40] ss:$20 sps:$4 sm:$0xff]  }
 0x412   : > { %8102 = vmatpush2.bf16.msra.mxu0 %v13238_v7  ;;  %v13267_v7 = vld [vmem:[%s18963_s3 + $0x109c] ss:$20 sps:$4 sm:$0xff]  }
 0x413   : > { %8103 = vmatprep.subr.bf16.mxu0 %v13246_v44  ;;  %v13256_v44 = vld [vmem:[%s18963_s3 + $0xd78] ss:$20 sps:$4 sm:$0xff]  }
 0x414   : > { %8165 = vmatpush1.bf16.msra.mxu1 %v13247_v23  ;;  %v13264_v23 = vld [vmem:[%s18963_s3 + $0xd54] ss:$20 sps:$4 sm:$0xff]  }
 0x415   : > { %8166 = vmatprep.subr.bf16.mxu1 %v13255_v36  ;;  %v13265_v36 = vld [vmem:[%s18963_s3 + $0x1098] ss:$20 sps:$4 sm:$0xff]  }
 0x416   : > { %8104 = vmatpush2.bf16.msra.mxu0 %v13244_v39  ;;  %v13273_v39 = vld [vmem:[%s18963_s3 + $0x1074] ss:$20 sps:$4 sm:$0xff]  }
 0x417   : > { %8105 = vmatprep.subr.bf16.mxu0 %v13252_v59  ;;  %11576 = vmatmul.mubr.msk.bf16.gmra.mxu1 %vm4321_vm8, %v17311_v57  ;;  %v13262_v59 = vld [vmem:[%s18963_s3 + $0xd50] ss:$20 sps:$4 sm:$0xff]  }
 0x418   : > { %8167 = vmatpush1.bf16.msra.mxu1 %v13253_v41  ;;  %8186 = vmatprep.mubr.bf16.mxu1 %v16867_v30 }
 0x419   : > { %8168 = vmatprep.subr.bf16.mxu1 %v13261_v29  ;;  %v13270_v29 = vld [vmem:[%s18963_s3 + $0xd2c] ss:$20 sps:$4 sm:$0xff]  }
 0x41a   : > { %8106 = vmatpush2.bf16.msra.mxu0 %v13250_v18 }
 0x41b   : > { %8107 = vmatprep.subr.bf16.mxu0 %v13258_v43  ;;  %v13271_v43 = vld [vmem:[%s18963_s3 + $0x1070] ss:$20 sps:$4 sm:$0xff]  }
 0x41c   : > { %8169 = vmatpush1.bf16.msra.mxu1 %v13259_v56  ;;  %v11381_v56 = vld [vmem:[%s18963_s3 + $0x1188] sm:$0xff] }
 0x41d   : > { %8170 = vmatprep.subr.bf16.mxu1 %v13267_v7  ;;  %v11571_v20 = vcombine.high %v11381_v56, %v11381_v56 }
 0x41e   : > { %8108 = vmatpush2.bf16.msra.mxu0 %v13256_v44  ;;  %v13279_v44 = vld [vmem:[%s18963_s3 + $0x104c] ss:$20 sps:$4 sm:$0xff]  }
 0x41f   : > { %8109 = vmatprep.subr.bf16.mxu0 %v13264_v23  ;;  %v6220_v41 = vpop.f32.mrf.mxu1 }
 0x420   : > { %8171 = vmatpush2.bf16.msra.mxu1 %v13265_v36  ;;  %v6221_v18 = vadd.f32 %v6220_v41, %v16583_v63  ;;  %v13268_v63 = vld [vmem:[%s18963_s3 + $0xd28] ss:$20 sps:$4 sm:$0xff]   ;;  %v13276_v41 = vld [vmem:[%s18963_s3 + $0xd04] ss:$20 sps:$4 sm:$0xff]  }
 0x421   : > { %v6222_v7 = vpop.f32.mrf.mxu1  ;;  %8172 = vmatprep.subr.bf16.mxu1 %v13273_v39 }
 0x422   : > { %8110 = vmatpush2.bf16.msra.mxu0 %v13262_v59  ;;  %v6223_v23 = vadd.f32 %v6222_v7, %v16592_v6  ;;  %v13277_v59 = vld [vmem:[%s18963_s3 + $0x1048] ss:$20 sps:$4 sm:$0xff]   ;;  %v13282_v6 = vld [vmem:[%s18963_s3 + $0x1024] ss:$20 sps:$4 sm:$0xff]   ;;  %v11570_v7 = vcombine.low %v11381_v56, %v11381_v56 }
 0x423   : > { %8111 = vmatprep.subr.bf16.mxu0 %v13270_v29  ;;  %v6224_v36 = vpop.f32.mrf.mxu1  ;;  %v13274_v29 = vld [vmem:[%s18963_s3 + $0xd00] ss:$20 sps:$4 sm:$0xff]  }
 0x424   : > { %8173 = vmatpush2.bf16.msra.mxu1 %v13271_v43  ;;  %v6225_v39 = vadd.f32 %v6224_v36, %v16602_v1  ;;  %v7865_v1 = vand.u32 %v11571_v20, %v14961_v45  ;;  %v19321_v36 = vld [vmem:[#allocation40_spill] sm:$0xff]  ;;  %v13296_v20 = vld [vmem:[%s18963_s3 + $0x1164] ss:$20 sps:$4 sm:$0xff]  }
 0x425   : > { %v17410_v54 = vpop.f32.mrf.mxu1  ;;  %8174 = vmatprep.subr.bf16.mxu1 %v13279_v44  ;;  %v13280_v44 = vld [vmem:[%s18963_s3 + $0x1020] ss:$20 sps:$4 sm:$0xff]  }
 0x426   : > { %19320 = vst [vmem:[#allocation54_spill] sm:$0xff] %v17410_v54  ;;  %8112 = vmatpush2.bf16.msra.mxu0 %v13268_v63  ;;  %v13285_v63 = vld [vmem:[%s18963_s3 + $0xffc] ss:$20 sps:$4 sm:$0xff]  }
 0x427   : > { %8113 = vmatprep.subr.bf16.mxu0 %v13276_v41  ;;  %v6230_v43 = vpop.f32.mrf.mxu1  ;;  %v7862_v41 = vand.u32 %v11570_v7, %v14961_v45 }
 0x428   : > { %8175 = vmatpush2.bf16.msra.mxu1 %v13277_v59  ;;  %v6231_v26 = vadd.f32 %v6230_v43, %v19321_v36  ;;  %v19323_v59 = vld [vmem:[#allocation19_spill] sm:$0xff] }
 0x429   : > { %v6232_v54 = vpop.f32.mrf.mxu1  ;;  %8176 = vmatprep.subr.bf16.mxu1 %v13282_v6  ;;  %v13283_v6 = vld [vmem:[%s18963_s3 + $0xff8] ss:$20 sps:$4 sm:$0xff]  }
 0x42a   : > { %8114 = vmatpush2.bf16.msra.mxu0 %v13274_v29  ;;  %v6233_v56 = vadd.f32 %v6232_v54, %v19322_v12  ;;  %v13288_v54 = vld [vmem:[%s18963_s3 + $0xfd4] ss:$20 sps:$4 sm:$0xff]  }
 0x42b   : > { %v6234_v49 = vpop.f32.mrf.mxu1  ;;  %8229 = vmatprep.subr.bf16.mxu0 %v7865_v1 }
 0x42c   : > { %8177 = vmatpush2.bf16.msra.mxu1 %v13280_v44  ;;  %v6235_v43 = vadd.f32 %v6234_v49, %v19323_v59  ;;  %v6291_v29 = vpop.f32.mrf.mxu0  ;;  %v13294_v49 = vld [vmem:[%s18963_s3 + $0x1160] ss:$20 sps:$4 sm:$0xff]   ;;  %v13302_v44 = vld [vmem:[%s18963_s3 + $0x113c] ss:$20 sps:$4 sm:$0xff]  }
 0x42d   : > { %8116 = vmatmul.mubr.bf16.vlgmr.msra.gmra.mxu0 %v17034_v21  ;;  %v17436_v36 = vpop.f32.mrf.mxu1  ;;  %8178 = vmatprep.subr.bf16.mxu1 %v13285_v63  ;;  %v17441_v12 = vadd.f32 %v6291_v29, %v6221_v18  ;;  %v19325_v59 = vld [vmem:[#allocation42_spill] sm:$0xff] }
 0x42e   : > { %19324 = vst [vmem:[#allocation27_spill] sm:$0xff] %v17436_v36  ;;  %8125 = vmatprep.mubr.bf16.mxu0 %v17040_v62  ;;  %8230 = vmatpush1.bf16.msra.mxu0 %v7862_v41  ;;  %v6293_v7 = vpop.f32.mrf.mxu0  ;;  %v13286_v41 = vld [vmem:[%s18963_s3 + $0xfd0] ss:$20 sps:$4 sm:$0xff]  }
 0x42f   : > { %v6240_v1 = vpop.f32.mrf.mxu1  ;;  %8231 = vmatprep.subr.bf16.mxu0 %v13296_v20  ;;  %v17450_v63 = vadd.f32 %v6293_v7, %v6223_v23  ;;  %v13293_v20 = vld [vmem:[%s18963_s3 + $0xfac] ss:$20 sps:$4 sm:$0xff]  }
 0x430   : > { %8179 = vmatpush2.bf16.msra.mxu1 %v13283_v6  ;;  %v6241_v18 = vadd.f32 %v6240_v1, %v19325_v59  ;;  %v6295_v29 = vpop.f32.mrf.mxu0  ;;  %v13300_v23 = vld [vmem:[%s18963_s3 + $0x1138] ss:$20 sps:$4 sm:$0xff]  }
 0x431   : > { %v6242_v36 = vpop.f32.mrf.mxu1  ;;  %8180 = vmatprep.subr.bf16.mxu1 %v13288_v54  ;;  %v17459_v52 = vadd.f32 %v6295_v29, %v6225_v39  ;;  %v13305_v54 = vld [vmem:[%s18963_s3 + $0x1114] ss:$20 sps:$4 sm:$0xff]  }
 0x432   : > { %v6243_v14 = vadd.f32 %v6242_v36, %v19326_v34  ;;  %8232 = vmatpush1.bf16.msra.mxu0 %v13294_v49  ;;  %v17465_v6 = vpop.f32.mrf.mxu0  ;;  %v19328_v1 = vld [vmem:[#allocation39_spill] sm:$0xff]  ;;  %v13299_v49 = vld [vmem:[%s18963_s3 + $0xf84] ss:$20 sps:$4 sm:$0xff]  }
 0x433   : > { %19327 = vst [vmem:[#allocation50_spill] sm:$0xff] %v17465_v6  ;;  %v6244_v7 = vpop.f32.mrf.mxu1  ;;  %8233 = vmatprep.subr.bf16.mxu0 %v13302_v44  ;;  %v13291_v34 = vld [vmem:[%s18963_s3 + $0xfa8] ss:$20 sps:$4 sm:$0xff]   ;;  %v19330_v6 = vld [vmem:[#allocation28_spill] sm:$0xff] }
 0x434   : > { %8181 = vmatpush2.bf16.msra.mxu1 %v13286_v41  ;;  %v6245_v59 = vadd.f32 %v6244_v7, %v19328_v1  ;;  %v6301_v39 = vpop.f32.mrf.mxu0  ;;  %v13303_v41 = vld [vmem:[%s18963_s3 + $0x1110] ss:$20 sps:$4 sm:$0xff]  }
 0x435   : > { %8126 = vmatmul.mubr.bf16.gmra.mxu0 %v17094_v32  ;;  %v17475_v36 = vpop.f32.mrf.mxu1  ;;  %8182 = vmatprep.subr.bf16.mxu1 %v13293_v20  ;;  %v17480_v44 = vadd.f32 %v6301_v39, %v6231_v26  ;;  %v13310_v20 = vld [vmem:[%s18963_s3 + $0x10ec] ss:$20 sps:$4 sm:$0xff]  }
 0x436   : > { %19329 = vst [vmem:[#allocation53_spill] sm:$0xff] %v17475_v36  ;;  %8135 = vmatprep.mubr.bf16.mxu0 %v17099_v61  ;;  %8234 = vmatpush1.bf16.msra.mxu0 %v13300_v23  ;;  %v6303_v29 = vpop.f32.mrf.mxu0  ;;  %v13297_v23 = vld [vmem:[%s18963_s3 + $0xf80] ss:$20 sps:$4 sm:$0xff]  }
 0x437   : > { %v6250_v7 = vpop.f32.mrf.mxu1  ;;  %8235 = vmatprep.subr.bf16.mxu0 %v13305_v54  ;;  %v17489_v1 = vadd.f32 %v6303_v29, %v6233_v56  ;;  %v13306_v54 = vld [vmem:[%s18963_s3 + $0xe20] ss:$20 sps:$4 sm:$0xff]   ;;  %v13308_v56 = vld [vmem:[%s18963_s3 + $0x10e8] ss:$20 sps:$4 sm:$0xff]  }
 0x438   : > { %8183 = vmatpush2.bf16.msra.mxu1 %v13291_v34  ;;  %v6251_v26 = vadd.f32 %v6250_v7, %v19330_v6  ;;  %v6305_v39 = vpop.f32.mrf.mxu0  ;;  %v13313_v7 = vld [vmem:[%s18963_s3 + $0x10c0] ss:$20 sps:$4 sm:$0xff]  }
 0x439   : > { %v6252_v36 = vpop.f32.mrf.mxu1  ;;  %8184 = vmatprep.subr.bf16.mxu1 %v13299_v49  ;;  %v17498_v53 = vadd.f32 %v6305_v39, %v6235_v43  ;;  %v13315_v49 = vld [vmem:[%s18963_s3 + $0x10c4] ss:$20 sps:$4 sm:$0xff]   ;;  %v13307_v43 = vld [vmem:[%s18963_s3 + $0xce0] ss:$20 sps:$4 sm:$0xff]  }
 0x43a   : > { %v6253_v50 = vadd.f32 %v6252_v36, %v19331_v24  ;;  %8236 = vmatpush1.bf16.msra.mxu0 %v13303_v41  ;;  %v17504_v6 = vpop.f32.mrf.mxu0  ;;  %v13311_v41 = vld [vmem:[%s18963_s3 + $0xdf8] ss:$20 sps:$4 sm:$0xff]   ;;  %v13319_v39 = vld [vmem:[%s18963_s3 + $0x10a0] ss:$20 sps:$4 sm:$0xff]  }
 0x43b   : > { %19332 = vst [vmem:[#allocation30_spill] sm:$0xff] %v17504_v6  ;;  %v6254_v34 = vpop.f32.mrf.mxu1  ;;  %8237 = vmatprep.subr.bf16.mxu0 %v13310_v20 }
 0x43c   : > { %8185 = vmatpush2.bf16.msra.mxu1 %v13297_v23  ;;  %v6311_v24 = vpop.f32.mrf.mxu0 }
 0x43d   : > { %8136 = vmatmul.mubr.bf16.gmra.mxu0 %v17159_v4  ;;  %v6255_v36 = vpop.f32.mrf.mxu1  ;;  %11919 = vmatprep.subr.bf16.mxu1 %v13306_v54  ;;  %v17516_v29 = vadd.f32 %v6311_v24, %v6241_v18 }
 0x43e   : > { %8145 = vmatprep.mubr.bf16.mxu0 %v17074_v48  ;;  %8238 = vmatpush1.bf16.msra.mxu0 %v13308_v56  ;;  %v6313_v20 = vpop.f32.mrf.mxu0  ;;  %v13312_v56 = vld [vmem:[%s18963_s3 + $0xcb8] ss:$20 sps:$4 sm:$0xff]  }
 0x43f   : > { %8187 = vmatmul.mubr.bf16.vlgmr.msra.gmra.mxu1 %v17133_v58  ;;  %v6362_v23 = vpop.f32.mrf.mxu1  ;;  %8239 = vmatprep.subr.bf16.mxu0 %v13315_v49  ;;  %v17526_v54 = vadd.f32 %v6313_v20, %v6243_v14  ;;  %v13316_v49 = vld [vmem:[%s18963_s3 + $0xdd0] ss:$20 sps:$4 sm:$0xff]  }
 0x440   : > { %8196 = vmatprep.mubr.bf16.mxu1 %v17143_v17  ;;  %11920 = vmatpush3.bf16.msra.mxu1 %v13307_v43  ;;  %v17530_v18 = vadd.f32 %v6362_v23, %v17441_v12  ;;  %v6315_v34 = vpop.f32.mrf.mxu0 }
 0x441   : > { %v6364_v24 = vpop.f32.mrf.mxu1  ;;  %11921 = vmatprep.subr.bf16.mxu1 %v13311_v41  ;;  %v17538_v36 = vadd.f32 %v6315_v34, %v6245_v59  ;;  %v13317_v41 = vld [vmem:[%s18963_s3 + $0xc90] ss:$20 sps:$4 sm:$0xff]  }
 0x442   : > { %v17541_v14 = vadd.f32 %v6364_v24, %v17450_v63  ;;  %8240 = vmatpush1.bf16.msra.mxu0 %v13313_v7  ;;  %v17543_v43 = vpop.f32.mrf.mxu0  ;;  %v13318_v63 = vld [vmem:[%s18963_s3 + $0xda8] ss:$20 sps:$4 sm:$0xff]  }
 0x443   : > { %19333 = vst [vmem:[#allocation13_spill] sm:$0xff] %v17543_v43  ;;  %v6366_v12 = vpop.f32.mrf.mxu1  ;;  %11959 = vmatprep.subr.bf16.mxu0 %v13319_v39  ;;  %v13320_v24 = vld [vmem:[%s18963_s3 + $0xc68] ss:$20 sps:$4 sm:$0xff]  }
 0x444   : > { %11922 = vmatpush3.bf16.msra.mxu1 %v13312_v56  ;;  %v17546_v20 = vadd.f32 %v6366_v12, %v17459_v52  ;;  %v6321_v59 = vpop.f32.mrf.mxu0  ;;  %v13322_v12 = vld [vmem:[%s18963_s3 + $0xd80] ss:$20 sps:$4 sm:$0xff]  }
 0x445   : > { %8146 = vmatmul.mubr.bf16.gmra.mxu0 %v17127_v10  ;;  %v17552_v23 = vpop.f32.mrf.mxu1  ;;  %11923 = vmatprep.subr.bf16.mxu1 %v13316_v49  ;;  %v17557_v7 = vadd.f32 %v6321_v59, %v6251_v26 }
 0x446   : > { %19334 = vst [vmem:[#allocation32_spill] sm:$0xff] %v17552_v23  ;;  %8257 = vmatprep.mubr.bf16.mxu0 %v19281_v60  ;;  %v6323_v52 = vpop.f32.mrf.mxu0 }
 0x447   : > { %8197 = vmatmul.mubr.bf16.gmra.mxu1 %v17193_v37  ;;  %v6372_v39 = vpop.f32.mrf.mxu1  ;;  %v17561_v56 = vadd.f32 %v6323_v52, %v6253_v50  ;;  %v13323_v52 = vld [vmem:[%s18963_s3 + $0x1078] ss:$20 sps:$4 sm:$0xff]  }
 0x448   : > { %8206 = vmatprep.mubr.bf16.mxu1 %v17199_v8  ;;  %11924 = vmatpush3.bf16.msra.mxu1 %v13317_v41  ;;  %v17565_v34 = vadd.f32 %v6372_v39, %v17480_v44  ;;  %v6325_v26 = vpop.f32.mrf.mxu0  ;;  %v13321_v41 = vld [vmem:[%s18963_s3 + $0xf60] ss:$20 sps:$4 sm:$0xff]  }
 0x449   : > { %v6374_v49 = vpop.f32.mrf.mxu1  ;;  %11925 = vmatprep.subr.bf16.mxu1 %v13318_v63  ;;  %v13324_v39 = vld [vmem:[%s18963_s3 + $0xc40] ss:$20 sps:$4 sm:$0xff]  }
 0x44a   : > { %v17574_v50 = vadd.f32 %v6374_v49, %v17489_v1  ;;  %v6326_v44 = vpop.f32.mrf.mxu0  ;;  %v13326_v49 = vld [vmem:[%s18963_s3 + $0xd58] ss:$20 sps:$4 sm:$0xff]  }
 0x44b   : > { %v6376_v59 = vpop.f32.mrf.mxu1 }
 0x44c   : > { %11926 = vmatpush3.bf16.msra.mxu1 %v13320_v24  ;;  %v17583_v63 = vadd.f32 %v6376_v59, %v17498_v53  ;;  %v13325_v53 = vld [vmem:[%s18963_s3 + $0xf38] ss:$20 sps:$4 sm:$0xff]  }
 0x44d   : > { %11577 = vmatmul.mubr.msk.bf16.vlgmr.msra.gmra.mxu0 %vm4321_vm8, %v17253_v9  ;;  %v11845_v1 = vpop.f32.mrf.mxu0  ;;  %v17590_v26 = vpop.f32.mrf.mxu1  ;;  %11927 = vmatprep.subr.bf16.mxu1 %v13322_v12  ;;  %v13327_v12 = vld [vmem:[%s18963_s3 + $0x1050] ss:$20 sps:$4 sm:$0xff]  }
 0x44e   : > { %19335 = vst [vmem:[#allocation11_spill] sm:$0xff] %v17590_v26  ;;  %11960 = vmatpush3.bf16.msra.mxu0 %v13321_v41  ;;  %8267 = vmatprep.mubr.bf16.mxu0 %v19281_v60  ;;  %v13328_v26 = vld [vmem:[%s18963_s3 + $0xc18] ss:$20 sps:$4 sm:$0xff]  }
 0x44f   : > { %v11846_v24 = vpop.f32.mrf.mxu0  ;;  %8207 = vmatmul.mubr.bf16.gmra.mxu1 %v17236_v15  ;;  %11961 = vmatprep.subr.bf16.mxu0 %v13323_v52  ;;  %v6382_v44 = vpop.f32.mrf.mxu1  ;;  %v13330_v52 = vld [vmem:[%s18963_s3 + $0xd30] ss:$20 sps:$4 sm:$0xff]  }
 0x450   : > { %v11847_v59 = vadd.f32 %v11846_v24, %v11845_v1  ;;  %8216 = vmatprep.mubr.bf16.mxu1 %v17175_v28  ;;  %11928 = vmatpush3.bf16.msra.mxu1 %v13324_v39  ;;  %v17605_v41 = vadd.f32 %v6382_v44, %v17516_v29  ;;  %v13329_v29 = vld [vmem:[%s18963_s3 + $0xf10] ss:$20 sps:$4 sm:$0xff]   ;;  %v19337_v44 = vld [vmem:[#allocation35_spill] sm:$0xff] }
 0x451   : > { %v11848_v23 = vpop.f32.mrf.mxu0  ;;  %v6384_v6 = vpop.f32.mrf.mxu1  ;;  %11929 = vmatprep.subr.bf16.mxu1 %v13326_v49  ;;  %v13331_v49 = vld [vmem:[%s18963_s3 + $0x1028] ss:$20 sps:$4 sm:$0xff]  }
 0x452   : > { %19336 = vst [vmem:[#allocation9_spill] sm:$0xff] %v17605_v41  ;;  %v17614_v43 = vadd.f32 %v11847_v59, %v16789_v3  ;;  %11962 = vmatpush3.bf16.msra.mxu0 %v13325_v53  ;;  %v17617_v39 = vadd.f32 %v6384_v6, %v17526_v54  ;;  %v4945_v41 = vadd.f32 %v16799_v35, %v19337_v44  ;;  %v13332_v6 = vld [vmem:[%s18963_s3 + $0xbf0] ss:$20 sps:$4 sm:$0xff]   ;;  %v13334_v35 = vld [vmem:[%s18963_s3 + $0xd08] ss:$20 sps:$4 sm:$0xff]  }
 0x453   : > { %v11849_v1 = vpop.f32.mrf.mxu0  ;;  %11963 = vmatprep.subr.bf16.mxu0 %v13327_v12  ;;  %v6386_v24 = vpop.f32.mrf.mxu1 }
 0x454   : > { %v11850_v3 = vadd.f32 %v11849_v1, %v11848_v23  ;;  %11930 = vmatpush3.bf16.msra.mxu1 %v13328_v26  ;;  %v17628_v53 = vadd.f32 %v6386_v24, %v17538_v36  ;;  %v13343_v36 = vld [vmem:[%s18963_s3 + $0x1190] ss:$0 sps:$4 sm:$0xff]   ;;  %v13333_v26 = vld [vmem:[%s18963_s3 + $0xee8] ss:$20 sps:$4 sm:$0xff]   ;;  %v13335_v1 = vld [vmem:[%s18963_s3 + $0x1000] ss:$20 sps:$4 sm:$0xff]  }
 0x455   : > { %11578 = vmatmul.mubr.msk.bf16.gmra.mxu0 %vm4321_vm8, %v17294_v33  ;;  %v11851_v54 = vpop.f32.mrf.mxu0  ;;  %v17635_v12 = vpop.f32.mrf.mxu1  ;;  %11931 = vmatprep.subr.bf16.mxu1 %v13330_v52 }
 0x456   : > { %19338 = vst [vmem:[#allocation29_spill] sm:$0xff] %v17628_v53  ;;  %v17643_v23 = vadd.f32 %v11850_v3, %v4945_v41  ;;  %11964 = vmatpush3.bf16.msra.mxu0 %v13329_v29  ;;  %8277 = vmatprep.mubr.bf16.mxu0 %v19281_v60  ;;  %v13336_v29 = vld [vmem:[%s18963_s3 + $0xbc8] ss:$20 sps:$4 sm:$0xff]  }
 0x457   : > { %v11852_v59 = vpop.f32.mrf.mxu0  ;;  %8217 = vmatmul.mubr.bf16.gmra.mxu1 %v17219_v31  ;;  %11965 = vmatprep.subr.bf16.mxu0 %v13331_v49  ;;  %v6392_v52 = vpop.f32.mrf.mxu1  ;;  %v7868_v49 = vand.u32 %v13343_v36, %v14961_v45 }
 0x458   : > { %v11853_v24 = vadd.f32 %v11852_v59, %v11851_v54  ;;  %11932 = vmatpush3.bf16.msra.mxu1 %v13332_v6  ;;  %8328 = vmatprep.mubr.bf16.mxu1 %v16881_v13  ;;  %v17655_v41 = vadd.f32 %v6392_v52, %v17557_v7  ;;  %v13337_v13 = vld [vmem:[%s18963_s3 + $0xec0] ss:$20 sps:$4 sm:$0xff]  }
 0x459   : > { %v11854_v44 = vpop.f32.mrf.mxu0  ;;  %v6394_v3 = vpop.f32.mrf.mxu1  ;;  %11933 = vmatprep.subr.bf16.mxu1 %v13334_v35  ;;  %v13338_v35 = vld [vmem:[%s18963_s3 + $0xfd8] ss:$20 sps:$4 sm:$0xff]  }
 0x45a   : > { %v17662_v53 = vadd.f32 %v11853_v24, %v16779_v40  ;;  %11966 = vmatpush3.bf16.msra.mxu0 %v13333_v26  ;;  %v17665_v6 = vadd.f32 %v6394_v3, %v17561_v56  ;;  %v13345_v56 = vld [vmem:[%s18963_s3 + $0x1168] ss:$20 sps:$4 sm:$0xff]   ;;  %v13339_v26 = vld [vmem:[%s18963_s3 + $0xe98] ss:$20 sps:$4 sm:$0xff]   ;;  %v13340_v24 = vld [vmem:[%s18963_s3 + $0xfb0] ss:$20 sps:$4 sm:$0xff]  }
 0x45b   : > { %v11855_v7 = vpop.f32.mrf.mxu0  ;;  %11967 = vmatprep.subr.bf16.mxu0 %v13335_v1  ;;  %v6396_v54 = vpop.f32.mrf.mxu1  ;;  %v13346_v3 = vld [vmem:[%s18963_s3 + $0x1140] ss:$20 sps:$4 sm:$0xff]  }
 0x45c   : > { %v11856_v59 = vadd.f32 %v11855_v7, %v11854_v44  ;;  %11934 = vmatpush3.bf16.msra.mxu1 %v13336_v29  ;;  %v13341_v7 = vld [vmem:[%s18963_s3 + $0xe70] ss:$20 sps:$4 sm:$0xff]  }
 0x45d   : > { %11579 = vmatmul.mubr.msk.bf16.gmra.mxu0 %vm4321_vm8, %v17330_v0  ;;  %v11857_v45 = vpop.f32.mrf.mxu0  ;;  %v6397_v40 = vpop.f32.mrf.mxu1  ;;  %12182 = vmatprep.subr.bf16.mxu1 %v7868_v49 }
 0x45e   : > { %v17679_v36 = vadd.f32 %v11856_v59, %v16793_v25  ;;  %11968 = vmatpush3.bf16.msra.mxu0 %v13337_v13  ;;  %8287 = vmatprep.mubr.bf16.mxu0 %v19281_v60 }
 0x45f   : > { %v11858_v52 = vpop.f32.mrf.mxu0  ;;  %8329 = vmatmul.mubr.bf16.vlgmr.msra.gmra.mxu1 %v17034_v21  ;;  %11969 = vmatprep.subr.bf16.mxu0 %v13338_v35  ;;  %v11885_v1 = vpop.f32.mrf.mxu1  ;;  %v4961_v35 = vadd.f32 %v17022_v55, %v16806_v42  ;;  %v13344_v42 = vld [vmem:[%s18963_s3 + $0xe48] ss:$20 sps:$4 sm:$0xff]  }
 0x460   : > { %v11859_v29 = vadd.f32 %v11858_v52, %v11857_v45  ;;  %8336 = vmatprep.mubr.bf16.mxu1 %v17040_v62  ;;  %12183 = vmatpush3.bf16.msra.mxu1 %v7868_v49  ;;  %v13342_v49 = vld [vmem:[%s18963_s3 + $0xf88] ss:$20 sps:$4 sm:$0xff]  }
 0x461   : > { %v11860_v25 = vpop.f32.mrf.mxu0  ;;  %v11886_v44 = vpop.f32.mrf.mxu1  ;;  %12184 = vmatprep.subr.bf16.mxu1 %v13345_v56 }
 0x462   : > { %v17694_v13 = vadd.f32 %v11859_v29, %v16819_v5  ;;  %11970 = vmatpush3.bf16.msra.mxu0 %v13339_v26  ;;  %v11887_v21 = vadd.f32 %v11886_v44, %v11885_v1  ;;  %v13347_v26 = vld [vmem:[%s18963_s3 + $0x1118] ss:$20 sps:$4 sm:$0xff]  }
 0x463   : > { %v11861_v54 = vpop.f32.mrf.mxu0  ;;  %11971 = vmatprep.subr.bf16.mxu0 %v13340_v24  ;;  %v11888_v62 = vpop.f32.mrf.mxu1 }
 0x464   : > { %v11862_v59 = vadd.f32 %v11861_v54, %v11860_v25  ;;  %12185 = vmatpush3.bf16.msra.mxu1 %v13345_v56  ;;  %v6498_v5 = vadd.f32 %v11887_v21, %v17614_v43 }
 0x465   : > { %11580 = vmatmul.mubr.msk.bf16.gmra.mxu0 %vm4321_vm8, %v17311_v57  ;;  %v11863_v45 = vpop.f32.mrf.mxu0  ;;  %v11889_v40 = vpop.f32.mrf.mxu1  ;;  %12186 = vmatprep.subr.bf16.mxu1 %v13346_v3 }
 0x466   : > { %v6453_v52 = vadd.f32 %v11862_v59, %v4961_v35  ;;  %11972 = vmatpush3.bf16.msra.mxu0 %v13341_v7  ;;  %8392 = vmatprep.mubr.bf16.mxu0 %v16867_v30  ;;  %v11890_v1 = vadd.f32 %v11889_v40, %v11888_v62  ;;  %v13348_v30 = vld [vmem:[%s18963_s3 + $0x10f0] ss:$20 sps:$4 sm:$0xff]  }
 0x467   : > { %v11864_v55 = vpop.f32.mrf.mxu0  ;;  %8337 = vmatmul.mubr.bf16.gmra.mxu1 %v17094_v32  ;;  %11973 = vmatprep.subr.bf16.mxu0 %v13342_v49  ;;  %v11891_v43 = vpop.f32.mrf.mxu1 }
 0x468   : > { %v11865_v56 = vadd.f32 %v11864_v55, %v11863_v45  ;;  %8344 = vmatprep.mubr.bf16.mxu1 %v17099_v61  ;;  %12187 = vmatpush3.bf16.msra.mxu1 %v13346_v3  ;;  %v6501_v24 = vadd.f32 %v11890_v1, %v17643_v23  ;;  %v13349_v3 = vld [vmem:[%s18963_s3 + $0x10c8] ss:$20 sps:$4 sm:$0xff]  }
 0x469   : > { %v11866_v29 = vpop.f32.mrf.mxu0  ;;  %v11892_v25 = vpop.f32.mrf.mxu1  ;;  %12188 = vmatprep.subr.bf16.mxu1 %v13347_v26 }
 0x46a   : > { %v6458_v44 = vadd.f32 %v11865_v56, %v16824_v2  ;;  %11974 = vmatpush3.bf16.msra.mxu0 %v13344_v42  ;;  %v11893_v21 = vadd.f32 %v11892_v25, %v11891_v43 }
 0x46b   : > { %v11867_v32 = vpop.f32.mrf.mxu0  ;;  %v11894_v7 = vpop.f32.mrf.mxu1 }
 0x46c   : > { %v6506_v54 = vadd.f32 %v11893_v21, %v17662_v53  ;;  %12189 = vmatpush3.bf16.msra.mxu1 %v13347_v26 }
 0x46d   : > { %8393 = vmatmul.mubr.bf16.vlgmr.msra.gmra.mxu0 %v17133_v58  ;;  %v12176_v61 = vpop.f32.mrf.mxu0  ;;  %v11895_v23 = vpop.f32.mrf.mxu1  ;;  %12190 = vmatprep.subr.bf16.mxu1 %v13348_v30 }
 0x46e   : > { %v17726_v62 = vadd.f32 %v12176_v61, %v6506_v54  ;;  %8400 = vmatprep.mubr.bf16.mxu0 %v17143_v17  ;;  %v11896_v2 = vadd.f32 %v11895_v23, %v11894_v7 }
 0x46f   : > { %v6561_v49 = vpop.f32.mrf.mxu0  ;;  %8345 = vmatmul.mubr.bf16.gmra.mxu1 %v17159_v4  ;;  %v11897_v35 = vpop.f32.mrf.mxu1 }
 0x470   : > { %v17730_v53 = vadd.f32 %v6561_v49, %v6498_v5  ;;  %v6509_v58 = vadd.f32 %v11896_v2, %v17679_v36  ;;  %8352 = vmatprep.mubr.bf16.mxu1 %v17074_v48  ;;  %12191 = vmatpush3.bf16.msra.mxu1 %v13348_v30 }
 0x471   : > { %v12177_v59 = vpop.f32.mrf.mxu0  ;;  %v11898_v45 = vpop.f32.mrf.mxu1  ;;  %12192 = vmatprep.subr.bf16.mxu1 %v13349_v3 }
 0x472   : > { %19339 = vst [vmem:[#allocation14_spill] sm:$0xff] %v17730_v53  ;;  %v17734_v40 = vadd.f32 %v12177_v59, %v6509_v58  ;;  %v11899_v26 = vadd.f32 %v11898_v45, %v11897_v35 }
 0x473   : > { %v6564_v1 = vpop.f32.mrf.mxu0  ;;  %v11900_v17 = vpop.f32.mrf.mxu1 }
 0x474   : > { %19340 = vst [vmem:[#allocation41_spill] sm:$0xff] %v17734_v40  ;;  %v17736_v42 = vadd.f32 %v6564_v1, %v6501_v24  ;;  %v6514_v4 = vadd.f32 %v11899_v26, %v17694_v13  ;;  %12193 = vmatpush3.bf16.msra.mxu1 %v13349_v3 }
 0x475   : > { %8401 = vmatmul.mubr.bf16.gmra.mxu0 %v17193_v37  ;;  %v12180_v5 = vpop.f32.mrf.mxu0  ;;  %v11901_v36 = vpop.f32.mrf.mxu1 }
 0x476   : > { %19341 = vst [vmem:[#allocation45_spill] sm:$0xff] %v17736_v42  ;;  %8408 = vmatprep.mubr.bf16.mxu0 %v17199_v8  ;;  %v11902_v48 = vadd.f32 %v11901_v36, %v11900_v17 }
 0x477   : > { %v6577_v55 = vpop.f32.mrf.mxu0  ;;  %8353 = vmatmul.mubr.bf16.gmra.mxu1 %v17127_v10  ;;  %v11903_v43 = vpop.f32.mrf.mxu1 }
 0x478   : > { %v17742_v56 = vadd.f32 %v6577_v55, %v6514_v4  ;;  %12194 = vmatprep.mubr.msk.bf16.mxu1 %vm4321_vm8, %v17253_v9  ;;  %v6517_v24 = vadd.f32 %v11902_v48, %v6453_v52 }
 0x479   : > { %v12181_v29 = vpop.f32.mrf.mxu0  ;;  %v11904_v13 = vpop.f32.mrf.mxu1 }
 0x47a   : > { %v11905_v25 = vadd.f32 %v11904_v13, %v11903_v43  ;;  %v19342_v13 = vld [vmem:[#allocation15_spill] sm:$0xff] }
 0x47b   : > { %v6580_v30 = vpop.f32.mrf.mxu0  ;;  %v11906_v37 = vpop.f32.mrf.mxu1 }
 0x47c   : > { %v17746_v21 = vadd.f32 %v6580_v30, %v6517_v24  ;;  %v6522_v32 = vadd.f32 %v11905_v25, %v6458_v44  ;;  %v19343_v25 = vld [vmem:[#allocation37_spill] sm:$0xff] }
 0x47d   : > { %8409 = vmatmul.mubr.bf16.gmra.mxu0 %v17236_v15  ;;  %v11907_v8 = vpop.f32.mrf.mxu1  ;;  %v4465_v30 = vadd.f32 %v19343_v25, %v19342_v13 }
 0x47e   : > { %8416 = vmatprep.mubr.bf16.mxu0 %v17175_v28  ;;  %v17750_v10 = vadd.f32 %v12180_v5, %v6522_v32  ;;  %v17770_v8 = vld [vmem:[%s18964_s4] sm:$0x1f] }
 0x47f   : > { %12195 = vmatmul.mubr.msk.bf16.vlgmr.msra.gmra.mxu1 %vm4321_vm8, %v17294_v33 }
 0x480   : > { %12198 = vmatprep.mubr.msk.bf16.mxu1 %vm4321_vm8, %v17330_v0 }
 0x485   : > { %8417 = vmatmul.mubr.bf16.gmra.mxu0 %v17219_v31 }
 0x486   : > { %9180 = vmatprep.mubr.bf16.mxu0 %v19281_v60 }
 0x487   : > { %12199 = vmatmul.mubr.msk.bf16.gmra.mxu1 %vm4321_vm8, %v17311_v57 }
 0x488   : > { %9137 = vmatprep.mubr.bf16.mxu1 %v19281_v60 }
 0x49f   : > { %v7904_v15 = vpop.f32.mrf.mxu1 }
 0x4a1   : > { %v7906_v9 = vpop.f32.mrf.mxu1 }
 0x4a3   : > { %v7908_v28 = vpop.f32.mrf.mxu1 }
 0x4a5   : > { %v7910_v52 = vpop.f32.mrf.mxu1 }
 0x4a7   : > { %v7914_v44 = vpop.f32.mrf.mxu1 }
 0x4a9   : > { %v7916_v7 = vpop.f32.mrf.mxu1 }
 0x4ab   : > { %v7918_v54 = vpop.f32.mrf.mxu1 }
 0x4ad   : > { %v7975_v33 = vpop.f32.mrf.mxu0  ;;  %v7920_v61 = vpop.f32.mrf.mxu1 }
 0x4ae   : > { %v7976_v23 = vadd.f32 %v7975_v33, %v7904_v15 }
 0x4af   : > { %v7977_v0 = vpop.f32.mrf.mxu0  ;;  %v7924_v3 = vpop.f32.mrf.mxu1 }
 0x4b0   : > { %v7978_v31 = vadd.f32 %v7977_v0, %v7906_v9  ;;  %v19344_v9 = vld [vmem:[#allocation2_spill] sm:$0xff] }
 0x4b1   : > { %v7979_v2 = vpop.f32.mrf.mxu0  ;;  %v17761_v49 = vpop.f32.mrf.mxu1 }
 0x4b2   : > { %v7980_v35 = vadd.f32 %v7979_v2, %v7908_v28  ;;  %v4536_v28 = vadd.f32 %v19344_v9, %v4465_v30 }
 0x4b3   : > { %v7981_v57 = vpop.f32.mrf.mxu0  ;;  %v7928_v58 = vpop.f32.mrf.mxu1 }
 0x4b4   : > { %v7982_v59 = vadd.f32 %v7981_v57, %v7910_v52  ;;  %v6014_v0 = vadd.f32 %v16980_v38, %v4536_v28 }
 0x4b5   : > { %v7985_v45 = vpop.f32.mrf.mxu0  ;;  %v7930_v26 = vpop.f32.mrf.mxu1 }
 0x4b6   : > { %v7986_v1 = vadd.f32 %v7985_v45, %v7914_v44 }
 0x4b7   : > { %v7987_v17 = vpop.f32.mrf.mxu0  ;;  %v17763_v4 = vpop.f32.mrf.mxu1 }
 0x4b8   : > { %v7988_v5 = vadd.f32 %v7987_v17, %v7916_v7 }
 0x4b9   : > { %v7989_v36 = vpop.f32.mrf.mxu0  ;;  %v7936_v48 = vpop.f32.mrf.mxu1 }
 0x4ba   : > { %v7990_v55 = vadd.f32 %v7989_v36, %v7918_v54  ;;  %v19345_v54 = vld [vmem:[#allocation55_spill] sm:$0xff]  ;;  %v19346_v36 = vld [vmem:[#allocation52_spill] sm:$0xff] }
 0x4bb   : > { %v7991_v43 = vpop.f32.mrf.mxu0  ;;  %v7938_v24 = vpop.f32.mrf.mxu1  ;;  %v17775_v33 = vrot.slane %v17770_v8, %v19345_v54 }
 0x4bc   : > { %v7992_v29 = vadd.f32 %v7991_v43, %v7920_v61  ;;  %v17780_v61 = vld [vmem:[%s18965_s5] sm:$0x1f]  ;;  %v6085_v43 = vadd.f32 %v17082_v16, %v6014_v0 }
 0x4bd   : > { %v7995_v37 = vpop.f32.mrf.mxu0  ;;  %v7939_v32 = vpop.f32.mrf.mxu1  ;;  %v17791_v25 = vrot.slane %v17780_v61, %v19345_v54 }
 0x4be   : > { %v7996_v15 = vadd.f32 %v7995_v37, %v7924_v3  ;;  %v17797_v32 = vrot.slane %v17780_v61, %v19346_v36  ;;  %v6156_v16 = vadd.f32 %v17187_v19, %v6085_v43 }
 0x4bf   : > { %v7997_v52 = vpop.f32.mrf.mxu0  ;;  %v8046_v44 = vpop.f32.mrf.mxu1 }
 0x4c0   : > { %v8047_v7 = vadd.f32 %v8046_v44, %v7976_v23  ;;  %v17786_v23 = vrot.slane %v17770_v8, %v19346_v36 }
 0x4c1   : > { %v7999_v2 = vpop.f32.mrf.mxu0  ;;  %v8048_v57 = vpop.f32.mrf.mxu1 }
 0x4c2   : > { %v8000_v45 = vadd.f32 %v7999_v2, %v7928_v58  ;;  %v8488_v3 = vadd.f32 %v8047_v7, %v17152_v51  ;;  %v8049_v17 = vadd.f32 %v8048_v57, %v7978_v31 }
 0x4c3   : > { %v8001_v24 = vpop.f32.mrf.mxu0  ;;  %v8050_v13 = vpop.f32.mrf.mxu1 }
 0x4c4   : > { %v8550_v38 = vmul.f32 %v17775_v33, %v8488_v3  ;;  %v8002_v30 = vadd.f32 %v8001_v24, %v7930_v26  ;;  %v8489_v58 = vadd.f32 %v8049_v17, %v17166_v11  ;;  %v8051_v37 = vadd.f32 %v8050_v13, %v7980_v35 }
 0x4c5   : > { %v8005_v51 = vpop.f32.mrf.mxu0  ;;  %v8052_v31 = vpop.f32.mrf.mxu1 }
 0x4c6   : > { %v8551_v9 = vmul.f32 %v17786_v23, %v8489_v58  ;;  %v8493_v28 = vadd.f32 %v8051_v37, %v17181_v22  ;;  %v8053_v44 = vadd.f32 %v8052_v31, %v7982_v59  ;;  %v17803_v26 = vadd.f32 %v17791_v25, %v8550_v38  ;;  %v19351_v58 = vld [vmem:[#allocation3_spill] sm:$0xff] }
 0x4c7   : > { %v8007_v7 = vpop.f32.mrf.mxu0  ;;  %v8056_v54 = vpop.f32.mrf.mxu1  ;;  %v19352_v37 = vld [vmem:[#allocation31_spill] sm:$0xff] }
 0x4c8   : > { %19347 = vst [vmem:[#allocation40_spill] sm:$0xff] %v17803_v26  ;;  %v8555_v11 = vmul.f32 %v17775_v33, %v8493_v28  ;;  %v8008_v35 = vadd.f32 %v8007_v7, %v7936_v48  ;;  %v8494_v0 = vadd.f32 %v8053_v44, %v6156_v16  ;;  %v8057_v2 = vadd.f32 %v8056_v54, %v7986_v1  ;;  %v19354_v7 = vld [vmem:[#allocation4_spill] sm:$0xff] }
 0x4c9   : > { %v8009_v57 = vpop.f32.mrf.mxu0  ;;  %v8058_v3 = vpop.f32.mrf.mxu1  ;;  %v17807_v17 = vadd.f32 %v17797_v32, %v8551_v9  ;;  %v4485_v31 = vadd.f32 %v19352_v37, %v19351_v58  ;;  %v8006_v37 = vadd.f32 %v8005_v51, %v17763_v4 }
 0x4ca   : > { %v8556_v19 = vmul.f32 %v17786_v23, %v8494_v0  ;;  %v8498_v22 = vadd.f32 %v8057_v2, %v17205_v46  ;;  %v8059_v59 = vadd.f32 %v8058_v3, %v7988_v5  ;;  %v17812_v36 = vadd.f32 %v17791_v25, %v8555_v11  ;;  %v19356_v57 = vld [vmem:[#allocation25_spill] sm:$0xff] }
 0x4cb   : > { %19348 = vst [vmem:[#allocation24_spill] sm:$0xff] %v17807_v17  ;;  %v8010_v43 = vpop.f32.mrf.mxu0  ;;  %v8060_v24 = vpop.f32.mrf.mxu1 }
 0x4cc   : > { %19349 = vst [vmem:[#allocation19_spill] sm:$0xff] %v17812_v36  ;;  %v8560_v13 = vmul.f32 %v17775_v33, %v8498_v22  ;;  %v8499_v48 = vadd.f32 %v8059_v59, %v17215_v47  ;;  %v8061_v1 = vadd.f32 %v8060_v24, %v7990_v55  ;;  %v17817_v38 = vadd.f32 %v17797_v32, %v8556_v19  ;;  %v19359_v43 = vld [vmem:[#allocation16_spill] sm:$0xff] }
 0x4cd   : > { %v8062_v16 = vpop.f32.mrf.mxu1  ;;  %v4556_v47 = vadd.f32 %v19354_v7, %v4485_v31  ;;  %v7998_v55 = vadd.f32 %v7997_v52, %v17761_v49  ;;  %v19360_v52 = vld [vmem:[#allocation48_spill] sm:$0xff]  ;;  %v19362_v31 = vld [vmem:[#allocation18_spill] sm:$0xff] }
 0x4ce   : > { %19350 = vst [vmem:[#allocation42_spill] sm:$0xff] %v17817_v38  ;;  %v8561_v46 = vmul.f32 %v17786_v23, %v8499_v48  ;;  %v8503_v5 = vadd.f32 %v8061_v1, %v17222_v27  ;;  %v17823_v9 = vadd.f32 %v8062_v16, %v7992_v29  ;;  %v17826_v28 = vadd.f32 %v17791_v25, %v8560_v13  ;;  %v19357_v27 = vld [vmem:[#allocation26_spill] sm:$0xff]  ;;  %v19361_v1 = vld [vmem:[#allocation49_spill] sm:$0xff] }
 0x4cf   : > { %v8066_v44 = vpop.f32.mrf.mxu1  ;;  %v6034_v3 = vadd.f32 %v19356_v57, %v4556_v47 }
 0x4d0   : > { %19353 = vst [vmem:[#allocation10_spill] sm:$0xff] %v17826_v28  ;;  %v8565_v54 = vmul.f32 %v17775_v33, %v8503_v5  ;;  %v8067_v11 = vadd.f32 %v8066_v44, %v7996_v15  ;;  %v17832_v2 = vadd.f32 %v17797_v32, %v8561_v46 }
 0x4d1   : > { %v8068_v0 = vpop.f32.mrf.mxu1  ;;  %v6105_v24 = vadd.f32 %v19359_v43, %v6034_v3 }
 0x4d2   : > { %19355 = vst [vmem:[#allocation39_spill] sm:$0xff] %v17832_v2  ;;  %v8508_v29 = vadd.f32 %v8067_v11, %v19357_v27  ;;  %v8069_v19 = vadd.f32 %v8068_v0, %v7998_v55  ;;  %v17837_v22 = vadd.f32 %v17791_v25, %v8565_v54  ;;  %v19364_v0 = vld [vmem:[#allocation20_spill] sm:$0xff]  ;;  %v19366_v27 = vld [vmem:[#allocation43_spill] sm:$0xff] }
 0x4d3   : > { %v8070_v59 = vpop.f32.mrf.mxu1  ;;  %v6176_v58 = vadd.f32 %v19361_v1, %v6105_v24 }
 0x4d4   : > { %19358 = vst [vmem:[#allocation28_spill] sm:$0xff] %v17837_v22  ;;  %v8570_v49 = vmul.f32 %v17775_v33, %v8508_v29  ;;  %v8509_v13 = vadd.f32 %v8069_v19, %v19360_v52  ;;  %v8071_v15 = vadd.f32 %v8070_v59, %v8000_v45 }
 0x4d5   : > { %v8072_v48 = vpop.f32.mrf.mxu1 }
 0x4d6   : > { %v8513_v16 = vadd.f32 %v8071_v15, %v19362_v31  ;;  %v8073_v46 = vadd.f32 %v8072_v48, %v8002_v30  ;;  %v17846_v44 = vadd.f32 %v17791_v25, %v8570_v49  ;;  %v8571_v7 = vmul.f32 %v17786_v23, %v8509_v13 }
 0x4d7   : > { %v8076_v5 = vpop.f32.mrf.mxu1 }
 0x4d8   : > { %19363 = vst [vmem:[#allocation17_spill] sm:$0xff] %v17846_v44  ;;  %v8575_v47 = vmul.f32 %v17775_v33, %v8513_v16  ;;  %v8514_v55 = vadd.f32 %v8073_v46, %v6176_v58  ;;  %v8077_v54 = vadd.f32 %v8076_v5, %v8006_v37  ;;  %v17858_v19 = vadd.f32 %v17797_v32, %v8571_v7 }
 0x4d9   : > { %v8078_v11 = vpop.f32.mrf.mxu1 }
 0x4da   : > { %v8576_v45 = vmul.f32 %v17786_v23, %v8514_v55  ;;  %v8518_v57 = vadd.f32 %v8077_v54, %v19364_v0  ;;  %v8079_v3 = vadd.f32 %v8078_v11, %v8008_v35  ;;  %v17853_v51 = vadd.f32 %v17791_v25, %v8575_v47  ;;  %19367 = vst [vmem:[#allocation15_spill] sm:$0xff] %v17858_v19 }
 0x4db   : > { %v8080_v4 = vpop.f32.mrf.mxu1  ;;  %v19046_v35 = vmax.f32 %v17858_v19, 0.0 }
 0x4dc   : > { %19365 = vst [vmem:[#allocation35_spill] sm:$0xff] %v17853_v51  ;;  %v8580_v30 = vmul.f32 %v17775_v33, %v8518_v57  ;;  %v8519_v29 = vadd.f32 %v8079_v3, %v19366_v27  ;;  %v17861_v59 = vadd.f32 %v17797_v32, %v8576_v45  ;;  %v19371_v27 = vld [vmem:[#allocation33_spill] sm:$0xff] }
 0x4dd   : > { %v8081_v43 = vpop.f32.mrf.mxu1 }
 0x4de   : > { %19368 = vst [vmem:[#allocation37_spill] sm:$0xff] %v17861_v59  ;;  %v8581_v24 = vmul.f32 %v17786_v23, %v8519_v29  ;;  %v17865_v49 = vadd.f32 %v17791_v25, %v8580_v30  ;;  %v19372_v29 = vld [vmem:[#allocation5_spill] sm:$0xff] }
 0x4df   : > { %v4475_v43 = vadd.f32 %v19372_v29, %v19371_v27  ;;  %v19376_v27 = vld [vmem:[#allocation47_spill] sm:$0xff] }
 0x4e0   : > { %19369 = vst [vmem:[#allocation2_spill] sm:$0xff] %v17865_v49  ;;  %v19045_v52 = vmax.f32 %v17865_v49, 0.0  ;;  %v17870_v33 = vadd.f32 %v17797_v32, %v8581_v24 }
 0x4e2   : > { %19370 = vst [vmem:[#allocation55_spill] sm:$0xff] %v17870_v33  ;;  %v12333_v13 = vpack.i.bf16 %v19046_v35, %v19045_v52  ;;  %v19373_v52 = vld [vmem:[#allocation6_spill] sm:$0xff] }
 0x4e4   : > { %12334 = vrot.lane.b32.xlu0 %v12333_v13, %s13500_s22 }
 0x4ed   : > { %v8117_v15 = vpop.f32.mrf.mxu0 }
 0x4ef   : > { %v8119_v48 = vpop.f32.mrf.mxu0 }
 0x4f1   : > { %v8121_v1 = vpop.f32.mrf.mxu0 }
 0x4f3   : > { %v8123_v58 = vpop.f32.mrf.mxu0 }
 0x4f5   : > { %v8127_v25 = vpop.f32.mrf.mxu0 }
 0x4f7   : > { %v8129_v37 = vpop.f32.mrf.mxu0 }
 0x4f9   : > { %v8131_v31 = vpop.f32.mrf.mxu0 }
 0x4fb   : > { %v8133_v16 = vpop.f32.mrf.mxu0 }
 0x4fd   : > { %v17877_v46 = vpop.f32.mrf.mxu0 }
 0x4ff   : > { %v17879_v5 = vpop.f32.mrf.mxu0  ;;  %v8188_v7 = vpop.f32.mrf.mxu1 }
 0x500   : > { %v8189_v47 = vadd.f32 %v8188_v7, %v8117_v15  ;;  %v4546_v15 = vadd.f32 %v19373_v52, %v4475_v43 }
 0x501   : > { %v17881_v55 = vpop.f32.mrf.mxu0  ;;  %v8190_v54 = vpop.f32.mrf.mxu1 }
 0x502   : > { %v8191_v11 = vadd.f32 %v8190_v54, %v8119_v48  ;;  %v19374_v48 = vld [vmem:[#allocation36_spill] sm:$0xff] }
 0x503   : > { %v17883_v45 = vpop.f32.mrf.mxu0  ;;  %v8192_v0 = vpop.f32.mrf.mxu1  ;;  %v6024_v54 = vadd.f32 %v19374_v48, %v4546_v15 }
 0x504   : > { %v8193_v57 = vadd.f32 %v8192_v0, %v8121_v1  ;;  %v19375_v1 = vld [vmem:[#allocation46_spill] sm:$0xff] }
 0x505   : > { %v17885_v3 = vpop.f32.mrf.mxu0  ;;  %v8194_v4 = vpop.f32.mrf.mxu1  ;;  %v6095_v0 = vadd.f32 %v19375_v1, %v6024_v54 }
 0x506   : > { %v8195_v30 = vadd.f32 %v8194_v4, %v8123_v58 }
 0x507   : > { %v17889_v24 = vpop.f32.mrf.mxu0  ;;  %v8198_v13 = vpop.f32.mrf.mxu1  ;;  %v6166_v29 = vadd.f32 %v19376_v27, %v6095_v0 }
 0x509   : > { %v8151_v7 = vpop.f32.mrf.mxu0  ;;  %v8200_v35 = vpop.f32.mrf.mxu1 }
 0x50a   : > { %v8201_v60 = vadd.f32 %v8200_v35, %v8129_v37  ;;  %v8504_v35 = vadd.f32 %v17823_v9, %v6166_v29 }
 0x50b   : > { %v8152_v49 = vpop.f32.mrf.mxu0  ;;  %v8202_v19 = vpop.f32.mrf.mxu1 }
 0x50c   : > { %v8203_v0 = vadd.f32 %v8202_v19, %v8131_v31  ;;  %v19381_v31 = vld [vmem:[#allocation34_spill] sm:$0xff] }
 0x50d   : > { %v8259_v36 = vpop.f32.mrf.mxu0  ;;  %v8204_v42 = vpop.f32.mrf.mxu1 }
 0x50e   : > { %v8260_v58 = vadd.f32 %v8259_v36, %v8189_v47  ;;  %v17894_v4 = vadd.f32 %v8204_v42, %v8133_v16  ;;  %v8199_v42 = vadd.f32 %v8198_v13, %v8127_v25 }
 0x50f   : > { %v8261_v26 = vpop.f32.mrf.mxu0  ;;  %v8208_v38 = vpop.f32.mrf.mxu1 }
 0x510   : > { %v17898_v52 = vadd.f32 %v8260_v58, %v17530_v18  ;;  %v8262_v43 = vadd.f32 %v8261_v26, %v8191_v11  ;;  %v8566_v18 = vmul.f32 %v17786_v23, %v8504_v35  ;;  %v19379_v58 = vld [vmem:[#allocation51_spill] sm:$0xff] }
 0x511   : > { %v8263_v37 = vpop.f32.mrf.mxu0  ;;  %v8210_v49 = vpop.f32.mrf.mxu1  ;;  %v17924_v19 = vrot.slane %v17780_v61, %v19379_v58 }
 0x512   : > { %v17902_v15 = vadd.f32 %v8262_v43, %v17541_v14  ;;  %v8264_v7 = vadd.f32 %v8263_v37, %v8193_v57  ;;  %v17912_v14 = vrot.slane %v17770_v8, %v19379_v58  ;;  %v19382_v43 = vld [vmem:[#allocation22_spill] sm:$0xff]  ;;  %v8209_v37 = vadd.f32 %v8208_v38, %v17877_v46 }
 0x513   : > { %v8265_v48 = vpop.f32.mrf.mxu0  ;;  %v8212_v36 = vpop.f32.mrf.mxu1  ;;  %v4698_v35 = vadd.f32 %v19382_v43, %v19381_v31  ;;  %v19388_v43 = vld [vmem:[#allocation56_spill] sm:$0xff] }
 0x514   : > { %19377 = vst [vmem:[#allocation52_spill] sm:$0xff] %v17902_v15  ;;  %v17905_v16 = vadd.f32 %v8264_v7, %v17546_v20  ;;  %v17907_v47 = vadd.f32 %v8265_v48, %v8195_v30  ;;  %v17916_v30 = vadd.f32 %v17797_v32, %v8566_v18 }
 0x515   : > { %v8269_v54 = vpop.f32.mrf.mxu0  ;;  %v8214_v26 = vpop.f32.mrf.mxu1 }
 0x516   : > { %19378 = vst [vmem:[#allocation3_spill] sm:$0xff] %v17907_v47  ;;  %v8270_v11 = vadd.f32 %v8269_v54, %v8199_v42  ;;  %19380 = vst [vmem:[#allocation31_spill] sm:$0xff] %v17916_v30  ;;  %v19059_v54 = vmax.f32 %v17916_v30, 0.0  ;;  %v19400_v30 = vld [vmem:[#allocation38_spill] sm:$0xff] }
 0x517   : > { %v8271_v9 = vpop.f32.mrf.mxu0  ;;  %v8218_v1 = vpop.f32.mrf.mxu1 }
 0x518   : > { %v8500_v57 = vadd.f32 %v8270_v11, %v17565_v34  ;;  %v8272_v25 = vadd.f32 %v8271_v9, %v8201_v60  ;;  %v8211_v11 = vadd.f32 %v8210_v49, %v17879_v5  ;;  %v19387_v49 = vld [vmem:[#allocation13_spill] sm:$0xff] }
 0x519   : > { %v8273_v13 = vpop.f32.mrf.mxu0  ;;  %v8220_v20 = vpop.f32.mrf.mxu1 }
 0x51a   : > { %v8562_v23 = vmul.f32 %v17912_v14, %v8500_v57  ;;  %v17920_v27 = vadd.f32 %v8272_v25, %v17574_v50  ;;  %v8274_v29 = vadd.f32 %v8273_v13, %v8203_v0  ;;  %v19384_v50 = vld [vmem:[#allocation44_spill] sm:$0xff]  ;;  %v19385_v57 = vld [vmem:[#allocation53_spill] sm:$0xff]  ;;  %v8213_v25 = vadd.f32 %v8212_v36, %v17881_v55 }
 0x51b   : > { %v17928_v34 = vpop.f32.mrf.mxu0  ;;  %v8222_v60 = vpop.f32.mrf.mxu1  ;;  %v4769_v48 = vadd.f32 %v19384_v50, %v4698_v35  ;;  %v19386_v13 = vld [vmem:[#allocation9_spill] sm:$0xff]  ;;  %v17952_v35 = vrot.slane %v17770_v8, %v19388_v43  ;;  %v8215_v55 = vadd.f32 %v8214_v26, %v17883_v45 }
 0x51c   : > { %v8505_v32 = vadd.f32 %v8274_v29, %v17583_v63  ;;  %v17933_v7 = vadd.f32 %v17924_v19, %v8562_v23  ;;  %v19390_v26 = vld [vmem:[#allocation29_spill] sm:$0xff] }
 0x51d   : > { %v8279_v42 = vpop.f32.mrf.mxu0  ;;  %v8223_v18 = vpop.f32.mrf.mxu1  ;;  %v6247_v38 = vadd.f32 %v19385_v57, %v4769_v48  ;;  %v19056_v57 = vmax.f32 %v17826_v28, 0.0  ;;  %v19398_v28 = vld [vmem:[#allocation21_spill] sm:$0xff] }
 0x51e   : > { %19383 = vst [vmem:[#allocation4_spill] sm:$0xff] %v17933_v7  ;;  %v8567_v9 = vmul.f32 %v17912_v14, %v8505_v32  ;;  %v8280_v0 = vadd.f32 %v8279_v42, %v8209_v37  ;;  %v19053_v58 = vmax.f32 %v17933_v7, 0.0  ;;  %v8219_v18 = vadd.f32 %v8218_v1, %v17885_v3 }
 0x51f   : > { %v8281_v46 = vpop.f32.mrf.mxu0  ;;  %v17941_v63 = vpop.f32.mrf.mxu1  ;;  %v6318_v31 = vadd.f32 %v19387_v49, %v6247_v38  ;;  %v17982_v1 = vrot.slane %v17780_v61, %v19388_v43 }
 0x520   : > { %v8510_v23 = vadd.f32 %v8280_v0, %v19386_v13  ;;  %v8282_v29 = vadd.f32 %v8281_v46, %v8211_v11  ;;  %v12338_v5 = vpack.i.bf16 %v19059_v54, %v19053_v58  ;;  %v17957_v32 = vadd.f32 %v17924_v19, %v8567_v9 }
 0x521   : > { %v8283_v60 = vpop.f32.mrf.mxu0  ;;  %v17954_v37 = vpop.f32.mrf.mxu1  ;;  %v6389_v42 = vadd.f32 %v17635_v12, %v6318_v31  ;;  %v8221_v13 = vadd.f32 %v8220_v20, %v17889_v24 }
 0x522   : > { %19389 = vst [vmem:[#allocation25_spill] sm:$0xff] %v17957_v32  ;;  %v8572_v36 = vmul.f32 %v17912_v14, %v8510_v23  ;;  %v8511_v50 = vadd.f32 %v8282_v29, %v17617_v39  ;;  %v8284_v48 = vadd.f32 %v8283_v60, %v8213_v25  ;;  %12339 = vrot.lane.b32.xlu1 %v12338_v5, %s13500_s22  ;;  %v19054_v9 = vmax.f32 %v17957_v32, 0.0 }
 0x523   : > { %v8285_v11 = vpop.f32.mrf.mxu0  ;;  %v17965_v0 = vpop.f32.mrf.mxu1 }
 0x524   : > { %v8573_v45 = vmul.f32 %v17952_v35, %v8511_v50  ;;  %v8515_v38 = vadd.f32 %v8284_v48, %v19390_v26  ;;  %v8286_v46 = vadd.f32 %v8285_v11, %v8215_v55  ;;  %v17972_v39 = vadd.f32 %v17924_v19, %v8572_v36 }
 0x525   : > { %v8289_v25 = vpop.f32.mrf.mxu0  ;;  %v12343_v12 = vpack.i.bf16 %v19056_v57, %v19054_v9  ;;  %v17978_v3 = vpop.f32.mrf.mxu1  ;;  %v19064_v55 = vmax.f32 %v17861_v59, 0.0  ;;  %v19062_v26 = vmax.f32 %v17846_v44, 0.0 }
 0x526   : > { %19391 = vst [vmem:[#allocation26_spill] sm:$0xff] %v17972_v39  ;;  %19392 = vst [vmem:[#allocation16_spill] sm:$0xff] %v17978_v3  ;;  %v8577_v23 = vmul.f32 %v17912_v14, %v8515_v38  ;;  %v17986_v29 = vadd.f32 %v8286_v46, %v6389_v42  ;;  %v8290_v5 = vadd.f32 %v8289_v25, %v8219_v18  ;;  %v19057_v60 = vmax.f32 %v17972_v39, 0.0 }
 0x527   : > { %12344 = vrot.lane.b32.xlu0 %v12343_v12, %s13500_s22  ;;  %v8291_v49 = vpop.f32.mrf.mxu0  ;;  %v17989_v31 = vpop.f32.mrf.mxu1  ;;  %v17994_v36 = vadd.f32 %v17982_v1, %v8573_v45  ;;  %v19060_v25 = vmax.f32 %v17837_v22, 0.0  ;;  %v19401_v22 = vld [vmem:[#allocation12_spill] sm:$0xff] }
 0x528   : > { %v8520_v43 = vadd.f32 %v8290_v5, %v17655_v41  ;;  %v8292_v24 = vadd.f32 %v8291_v49, %v8221_v13  ;;  %v17998_v20 = vadd.f32 %v17924_v19, %v8577_v23  ;;  %v12348_v48 = vpack.i.bf16 %v19064_v55, %v19057_v60 }
 0x529   : > { %19393 = vst [vmem:[#allocation48_spill] sm:$0xff] %v17994_v36  ;;  %v8293_v50 = vpop.f32.mrf.mxu0  ;;  %v11942_v42 = vpop.f32.mrf.mxu1  ;;  %v19055_v18 = vmax.f32 %v17994_v36, 0.0  ;;  %v19397_v36 = vld [vmem:[#allocation7_spill] sm:$0xff] }
 0x52a   : > { %19394 = vst [vmem:[#allocation49_spill] sm:$0xff] %v17998_v20  ;;  %v8582_v11 = vmul.f32 %v17912_v14, %v8520_v43  ;;  %v8521_v45 = vadd.f32 %v8292_v24, %v17665_v6  ;;  %v19058_v41 = vmax.f32 %v17998_v20, 0.0  ;;  %12349 = vrot.lane.b32.xlu1 %v12348_v48, %s13500_s22  ;;  %v19063_v43 = vmax.f32 %v17870_v33, 0.0  ;;  %v19399_v20 = vld [vmem:[#allocation8_spill] sm:$0xff] }
 0x52b   : > { %v8294_v38 = vpop.f32.mrf.mxu0  ;;  %v18010_v46 = vpop.f32.mrf.mxu1  ;;  %v12353_v5 = vpack.i.bf16 %v19055_v18, %v19060_v25  ;;  %v19074_v18 = vmax.f32 %v17853_v51, 0.0  ;;  %v4678_v39 = vadd.f32 %v19398_v28, %v19397_v36  ;;  %v19405_v36 = vld [vmem:[#allocation50_spill] sm:$0xff] }
 0x52c   : > { %v8583_v12 = vmul.f32 %v17952_v35, %v8521_v45  ;;  %v12358_v13 = vpack.i.bf16 %v19062_v26, %v19058_v41  ;;  %v18019_v6 = vadd.f32 %v17924_v19, %v8582_v11 }
 0x52d   : > { %v11975_v23 = vpop.f32.mrf.mxu0  ;;  %v18025_v49 = vpop.f32.mrf.mxu1 }
 0x52e   : > { %19395 = vst [vmem:[#allocation18_spill] sm:$0xff] %v18019_v6  ;;  %12359 = vrot.lane.b32.xlu0 %v12358_v13, %s13500_s22  ;;  %v19061_v24 = vmax.f32 %v18019_v6, 0.0  ;;  %v18031_v50 = vadd.f32 %v17982_v1, %v8583_v12  ;;  %12354 = vrot.lane.b32.xlu1 %v12353_v5, %s13500_s22  ;;  %v19402_v6 = vld [vmem:[#allocation23_spill] sm:$0xff] }
 0x52f   : > { %v11976_v48 = vpop.f32.mrf.mxu0  ;;  %v11947_v11 = vpop.f32.mrf.mxu1 }
 0x530   : > { %19396 = vst [vmem:[#allocation20_spill] sm:$0xff] %v18031_v50  ;;  %v12363_v45 = vpack.i.bf16 %v19061_v24, %v19063_v43  ;;  %v19073_v13 = vmax.f32 %v18031_v50, 0.0  ;;  %v4688_v50 = vadd.f32 %v19400_v30, %v19399_v20  ;;  %v19406_v20 = vld [vmem:[#allocation30_spill] sm:$0xff] }
 0x531   : > { %v18038_v38 = vpop.f32.mrf.mxu0  ;;  %v11948_v58 = vpop.f32.mrf.mxu1 }
 0x532   : > { %12364 = vrot.lane.b32.xlu1 %v12363_v45, %s13500_s22  ;;  %v12368_v57 = vpack.i.bf16 %v19073_v13, %v19074_v18  ;;  %v4759_v51 = vadd.f32 %v19402_v6, %v4688_v50  ;;  %v11949_v28 = vadd.f32 %v11948_v58, %v11947_v11 }
 0x533   : > { %v18042_v9 = vpop.f32.mrf.mxu0  ;;  %v11950_v12 = vpop.f32.mrf.mxu1 }
 0x535   : > { %v11981_v5 = vpop.f32.mrf.mxu0  ;;  %v11951_v60 = vpop.f32.mrf.mxu1 }
 0x536   : > { %12369 = vrot.lane.b32.xlu1 %v12368_v57, %s13500_s22  ;;  %v4749_v57 = vadd.f32 %v19401_v22, %v4678_v39  ;;  %v11943_v22 = vadd.f32 %v11942_v42, %v17989_v31 }
 0x537   : > { %v11982_v41 = vpop.f32.mrf.mxu0  ;;  %v11953_v54 = vpop.f32.mrf.mxu1 }
 0x538   : > { %v11983_v17 = vadd.f32 %v11982_v41, %v11981_v5  ;;  %v11977_v41 = vadd.f32 %v11976_v48, %v11975_v23  ;;  %v19408_v48 = vld [vmem:[#allocation32_spill] sm:$0xff] }
 0x539   : > { %v11984_v25 = vpop.f32.mrf.mxu0  ;;  %v11954_v24 = vpop.f32.mrf.mxu1 }
 0x53a   : > { %v11955_v50 = vadd.f32 %v11954_v24, %v11953_v54  ;;  %v8403_v5 = vadd.f32 %v11983_v17, %v11943_v22  ;;  %v19411_v22 = vld [vmem:[#allocation14_spill] sm:$0xff] }
 0x53b   : > { %v11985_v26 = vpop.f32.mrf.mxu0  ;;  %v11956_v45 = vpop.f32.mrf.mxu1 }
 0x53c   : > { %v19403_v45 = vld [vmem:[#allocation54_spill] sm:$0xff] }
 0x53d   : > { %v11987_v43 = vpop.f32.mrf.mxu0  ;;  %v11957_v55 = vpop.f32.mrf.mxu1  ;;  %v6227_v15 = vadd.f32 %v19403_v45, %v4749_v57  ;;  %v19407_v57 = vld [vmem:[#allocation57_spill] sm:$0xff]  ;;  %v11986_v45 = vadd.f32 %v11985_v26, %v11984_v25 }
 0x53e   : > { %v19404_v55 = vld [vmem:[#allocation27_spill] sm:$0xff]  ;;  %v18067_v58 = vrot.slane %v17770_v8, %v19407_v57  ;;  %v18075_v17 = vrot.slane %v17780_v61, %v19407_v57  ;;  %v11946_v8 = vadd.f32 %v18025_v49, %v18010_v46 }
 0x53f   : > { %v11988_v7 = vpop.f32.mrf.mxu0  ;;  %v12196_v32 = vpop.f32.mrf.mxu1  ;;  %v6237_v47 = vadd.f32 %v19404_v55, %v4759_v51  ;;  %v6298_v30 = vadd.f32 %v19405_v36, %v6227_v15  ;;  %v8578_v51 = vmul.f32 %v17952_v35, %v17986_v29  ;;  %v19415_v57 = vld [vmem:[#allocation3_spill] sm:$0xff] }
 0x540   : > { %v11989_v59 = vadd.f32 %v11988_v7, %v11987_v43  ;;  %v8406_v61 = vadd.f32 %v11986_v45, %v11946_v8 }
 0x541   : > { %v11990_v13 = vpop.f32.mrf.mxu0  ;;  %v8458_v18 = vpop.f32.mrf.mxu1  ;;  %v6308_v53 = vadd.f32 %v19406_v20, %v6237_v47  ;;  %v11952_v47 = vadd.f32 %v11951_v60, %v11950_v12  ;;  %v18085_v23 = vadd.f32 %v17982_v1, %v8578_v51  ;;  %v19413_v51 = vld [vmem:[#allocation39_spill] sm:$0xff] }
 0x542   : > { %v8411_v43 = vadd.f32 %v11989_v59, %v11949_v28  ;;  %v8467_v59 = vadd.f32 %v12196_v32, %v8403_v5 }
 0x543   : > { %v11991_v44 = vpop.f32.mrf.mxu0  ;;  %v12197_v33 = vpop.f32.mrf.mxu1 }
 0x544   : > { %v11992_v3 = vadd.f32 %v11991_v44, %v11990_v13  ;;  %v8552_v44 = vmul.f32 %v17912_v14, %v17898_v52  ;;  %v8557_v52 = vmul.f32 %v17912_v14, %v17905_v16  ;;  %v8502_v16 = vadd.f32 %v8467_v59, %v17726_v62 }
 0x545   : > { %v11993_v2 = vpop.f32.mrf.mxu0  ;;  %v18058_v40 = vpop.f32.mrf.mxu1  ;;  %v8470_v12 = vadd.f32 %v12197_v33, %v8406_v61 }
 0x546   : > { %v8414_v25 = vadd.f32 %v11992_v3, %v11952_v47  ;;  %v19409_v3 = vld [vmem:[#allocation11_spill] sm:$0xff]  ;;  %v18100_v36 = vadd.f32 %v17924_v19, %v8552_v44  ;;  %v8564_v20 = vmul.f32 %v18067_v58, %v8502_v16 }
 0x547   : > { %v11994_v39 = vpop.f32.mrf.mxu0  ;;  %v12200_v6 = vpop.f32.mrf.mxu1  ;;  %v6379_v13 = vadd.f32 %v19409_v3, %v6308_v53  ;;  %v18103_v53 = vadd.f32 %v17924_v19, %v8557_v52  ;;  %v19418_v52 = vld [vmem:[#allocation52_spill] sm:$0xff] }
 0x548   : > { %v11995_v7 = vadd.f32 %v11994_v39, %v11993_v2  ;;  %v11937_v2 = vadd.f32 %v17954_v37, %v17941_v63  ;;  %v8276_v63 = vadd.f32 %v17928_v34, %v17894_v4  ;;  %v19412_v39 = vld [vmem:[#allocation41_spill] sm:$0xff]  ;;  %v19089_v45 = vmax.f32 %v18100_v36, 0.0 }
 0x549   : > { %v11996_v15 = vpop.f32.mrf.mxu0  ;;  %v8474_v11 = vpop.f32.mrf.mxu1  ;;  %v19086_v44 = vmax.f32 %v18103_v53, 0.0  ;;  %v18149_v8 = vadd.f32 %v18075_v17, %v8564_v20 }
 0x54a   : > { %v8419_v31 = vadd.f32 %v11995_v7, %v11955_v50  ;;  %v8475_v42 = vadd.f32 %v8474_v11, %v8411_v43  ;;  %v8395_v37 = vadd.f32 %v11977_v41, %v11937_v2  ;;  %v8506_v28 = vadd.f32 %v8276_v63, %v6379_v13  ;;  %v19420_v13 = vld [vmem:[#allocation19_spill] sm:$0xff] }
 0x54b   : > { %v11997_v54 = vpop.f32.mrf.mxu0  ;;  %v12201_v29 = vpop.f32.mrf.mxu1  ;;  %v8658_v41 = vmax.f32 %v19413_v51, 0.0  ;;  %v8553_v63 = vmul.f32 %v17952_v35, %v19418_v52  ;;  %v8652_v16 = vmax.f32 %v19420_v13, 0.0  ;;  %v19454_v13 = vld [vmem:[#allocation4_spill] sm:$0xff] }
 0x54c   : > { %v8483_v60 = vadd.f32 %v12200_v6, %v8419_v31  ;;  %v8512_v26 = vadd.f32 %v8475_v42, %v17742_v56  ;;  %v6369_v56 = vadd.f32 %v19408_v48, %v6298_v30  ;;  %v8459_v14 = vadd.f32 %v8458_v18, %v8395_v37 }
 0x54d   : > { %v8477_v32 = vpop.f32.mrf.mxu1  ;;  %v8675_v18 = vmax.f32 %v18085_v23, 0.0  ;;  %v8563_v30 = vmul.f32 %v17952_v35, %v17920_v27  ;;  %v8507_v6 = vadd.f32 %v8470_v12, %v19412_v39  ;;  %v8568_v11 = vmul.f32 %v17952_v35, %v8506_v28 }
 0x54e   : > { %v8522_v24 = vadd.f32 %v8483_v60, %v17750_v10  ;;  %v8574_v46 = vmul.f32 %v18067_v58, %v8512_v26  ;;  %v8478_v49 = vadd.f32 %v8477_v32, %v8414_v25  ;;  %v11980_v10 = vadd.f32 %v18042_v9, %v18038_v38  ;;  %v19410_v9 = vld [vmem:[#allocation16_spill] sm:$0xff] }
 0x54f   : > { %v11940_v38 = vadd.f32 %v19410_v9, %v17965_v0  ;;  %v8492_v19 = vadd.f32 %v8459_v14, %v19411_v22  ;;  %v19414_v0 = vld [vmem:[#allocation24_spill] sm:$0xff]  ;;  %v8496_v15 = vadd.f32 %v19415_v57, %v6369_v56  ;;  %v18137_v2 = vadd.f32 %v17982_v1, %v8563_v30 }
 0x550   : > { %v8584_v4 = vmul.f32 %v18067_v58, %v8522_v24  ;;  %v8517_v34 = vadd.f32 %v8478_v49, %v17746_v21  ;;  %v18095_v55 = vadd.f32 %v18075_v17, %v8574_v46  ;;  %v8648_v5 = vmax.f32 %v19414_v0, 0.0  ;;  %v19417_v26 = vld [vmem:[#allocation40_spill] sm:$0xff] }
 0x551   : > { %v8398_v27 = vadd.f32 %v11980_v10, %v11940_v38  ;;  %v8554_v31 = vmul.f32 %v18067_v58, %v8492_v19  ;;  %v8569_v59 = vmul.f32 %v18067_v58, %v8507_v6  ;;  %v19094_v25 = vmax.f32 %v19417_v26, 0.0 }
 0x552   : > { %v8579_v62 = vmul.f32 %v18067_v58, %v8517_v34  ;;  %v8671_v33 = vmax.f32 %v18095_v55, 0.0  ;;  %v18109_v21 = vadd.f32 %v18075_v17, %v8584_v4  ;;  %v8558_v37 = vmul.f32 %v17952_v35, %v8496_v15  ;;  %v19419_v35 = vld [vmem:[#allocation45_spill] sm:$0xff] }
 0x553   : > { %v8462_v42 = vadd.f32 %v18058_v40, %v8398_v27  ;;  %v19416_v40 = vld [vmem:[#allocation42_spill] sm:$0xff]  ;;  %v18159_v32 = vadd.f32 %v17982_v1, %v8568_v11  ;;  %v12393_v24 = vpack.i.bf16 %v19094_v25, %v19086_v44  ;;  %v19092_v46 = vmax.f32 %v18137_v2, 0.0 }
 0x554   : > { %v12373_v50 = vpack.i.bf16 %v8675_v18, %v8671_v33  ;;  %v8681_v7 = vmax.f32 %v18109_v21, 0.0  ;;  %v18124_v43 = vadd.f32 %v18075_v17, %v8579_v62  ;;  %v19093_v60 = vmax.f32 %v19416_v40, 0.0 }
 0x555   : > { %v8497_v49 = vadd.f32 %v8462_v42, %v19419_v35  ;;  %v19091_v48 = vmax.f32 %v18149_v8, 0.0  ;;  %v18173_v56 = vadd.f32 %v18075_v17, %v8569_v59  ;;  %v18176_v3 = vadd.f32 %v18075_v17, %v8554_v31 }
 0x556   : > { %12374 = vrot.lane.b32.xlu0 %v12373_v50, %s13500_s22  ;;  %v8676_v47 = vmax.f32 %v18124_v43, 0.0  ;;  %v12383_v54 = vpack.i.bf16 %v8658_v41, %v8681_v7  ;;  %v12388_v61 = vpack.i.bf16 %v19093_v60, %v19089_v45  ;;  %v19090_v14 = vmax.f32 %v18159_v32, 0.0  ;;  %v12335_v19 = vpop.permute.xlu0 %12334 }
 0x557   : > { %v18183_v12 = vadd.f32 %v17982_v1, %v8553_v63  ;;  %v18186_v4 = vadd.f32 %v17982_v1, %v8558_v37  ;;  %v12398_v34 = vpack.i.bf16 %v19092_v46, %v8652_v16  ;;  %v8559_v28 = vmul.f32 %v18067_v58, %v8497_v49  ;;  %v19421_v63 = vld [vmem:[#allocation37_spill] sm:$0xff]  ;;  %v19423_v49 = vld [vmem:[#allocation15_spill] sm:$0xff] }
 0x558   : > { %v12378_v29 = vpack.i.bf16 %v8648_v5, %v8676_v47  ;;  %v12403_v10 = vpack.i.bf16 %v19090_v14, %v19091_v48  ;;  %v19085_v62 = vmax.f32 %v18173_v56, 0.0  ;;  %v19083_v30 = vmax.f32 %v18176_v3, 0.0 }
 0x559   : > { %v19088_v1 = vmax.f32 %v18183_v12, 0.0  ;;  %v19087_v9 = vmax.f32 %v18186_v4, 0.0  ;;  %v18212_v20 = vadd.f32 %v18075_v17, %v8559_v28  ;;  %v12337_v31 = vunpack.i.h.bf16 %v12335_v19 }
 0x55a   : > { %12384 = vrot.lane.b32.xlu0 %v12383_v54, %s13500_s22  ;;  %12379 = vrot.lane.b32.xlu1 %v12378_v29, %s13500_s22  ;;  %v12336_v52 = vunpack.i.l.bf16 %v12335_v19  ;;  %v19422_v37 = vmax.f32 %v19421_v63, 0.0  ;;  %v19427_v19 = vld [vmem:[#allocation55_spill] sm:$0xff]  ;;  %v19457_v0 = vmax.f32 %v18149_v8, 0.0 }
 0x55b   : > { %v12408_v58 = vpack.i.bf16 %v19088_v1, %v19085_v62  ;;  %v12413_v38 = vpack.i.bf16 %v19087_v9, %v19083_v30  ;;  %v19084_v22 = vmax.f32 %v18212_v20, 0.0  ;;  %v19425_v30 = vld [vmem:[#allocation2_spill] sm:$0xff]  ;;  %v19428_v44 = vmax.f32 %v19427_v19, 0.0  ;;  %v19430_v9 = vld [vmem:[#allocation17_spill] sm:$0xff] }
 0x55c   : > { %v19431_v1 = vmax.f32 %v19430_v9, 0.0 }
 0x55e   : > { %12389 = vrot.lane.b32.xlu0 %v12388_v61, %s13500_s22  ;;  %12394 = vrot.lane.b32.xlu1 %v12393_v24, %s13500_s22 }
 0x562   : > { %12399 = vrot.lane.b32.xlu0 %v12398_v34, %s13500_s22  ;;  %12404 = vrot.lane.b32.xlu1 %v12403_v10, %s13500_s22  ;;  %v19424_v34 = vmax.f32 %v19423_v49, 0.0 }
 0x566   : > { %12409 = vrot.lane.b32.xlu0 %v12408_v58, %s13500_s22  ;;  %12414 = vrot.lane.b32.xlu1 %v12413_v38, %s13500_s22 }
 0x56a   : > { %8735 = vrot.lane.b32.xlu0 %v19084_v22, %s13500_s22  ;;  %v19426_v22 = vmax.f32 %v19425_v30, 0.0 }
 0x594   : > { %v18220_v39 = vpop.permute.xlu1 %12339 }
 0x599   : > { %v18222_v6 = vpop.permute.xlu0 %12344 }
 0x59c   : > { %v18224_v50 = vpop.permute.xlu1 %12349 }
 0x59d   : > { %v12352_v17 = vunpack.i.h.bf16 %v18224_v50  ;;  %v12351_v57 = vunpack.i.l.bf16 %v18224_v50  ;;  %v12347_v50 = vunpack.i.h.bf16 %v18222_v6 }
 0x59f   : > { %v8804_v59 = vsel %vm2490_vm7, %v12337_v31, %v12351_v57 }
 0x5a0   : > { %v18226_v27 = vpop.permute.xlu0 %12359  ;;  %v18230_v15 = vpop.permute.xlu1 %12354  ;;  %v18244_v28 = vmax.f32 %v19424_v34, %v8804_v59  ;;  %v19429_v34 = vmov 65535  }
 0x5a1   : > { %v12361_v11 = vunpack.i.l.bf16 %v18226_v27  ;;  %v12362_v54 = vunpack.i.h.bf16 %v18226_v27 }
 0x5a3   : > { %v8808_v42 = vsel %vm2490_vm7, %v12352_v17, %v12361_v11  ;;  %v8803_v38 = vsel %vm2490_vm7, %v12362_v54, %v12337_v31  ;;  %v19432_v54 = vld [vmem:[#allocation35_spill] sm:$0xff] }
 0x5a4   : > { %v12365_v29 = vpop.permute.xlu1 %12364  ;;  %v8876_v61 = vmax.f32 %v19422_v37, %v8808_v42  ;;  %v8870_v31 = vmax.f32 %v19431_v1, %v8803_v38 }
 0x5a5   : > { %v12367_v24 = vunpack.i.h.bf16 %v12365_v29  ;;  %v12366_v35 = vunpack.i.l.bf16 %v12365_v29 }
 0x5a6   : > { %v8968_v29 = vrot.slane %v8876_v61, 2  ;;  %v8956_v25 = vrot.slane %v8870_v31, 2 }
 0x5a7   : > { %v8811_v10 = vsel %vm2490_vm7, %v12336_v52, %v12366_v35  ;;  %v8812_v58 = vsel %vm2490_vm7, %v12366_v35, %v12367_v24  ;;  %v9088_v52 = vsel %vm9087_vm9, 4294967295, %v19429_v34  ;;  %v8958_v35 = vrot.slane %v18244_v28, 2 }
 0x5a8   : > { %v8880_v62 = vmax.f32 %v19426_v22, %v8811_v10  ;;  %v8881_v63 = vmax.f32 %v19428_v44, %v8812_v58  ;;  %v18253_v42 = vpop.permute.xlu1 %12369  ;;  %v19433_v10 = vmax.f32 %v19432_v54, 0.0  ;;  %v18264_v19 = vsel %vm4334_vm5, %v9088_v52, 0 }
 0x5a9   : > { %v12371_v37 = vunpack.i.l.bf16 %v18253_v42  ;;  %v8969_v45 = vsel %vm1888_vm4, %v8958_v35, %v8968_v29 }
 0x5aa   : > { %v8976_v59 = vrot.slane %v8880_v62, 2  ;;  %v8978_v49 = vrot.slane %v8881_v63, 2  ;;  %v9042_v38 = vmax.f32 %v18244_v28, %v8969_v45  ;;  %v12342_v45 = vunpack.i.h.bf16 %v18220_v39  ;;  %v19434_v28 = vld [vmem:[#allocation18_spill] sm:$0xff] }
 0x5ab   : > { %v8807_v30 = vsel %vm2490_vm7, %v12371_v37, %v12352_v17 }
 0x5ac   : > { %v9051_v22 = vmax.f32 %v8880_v62, %v8976_v59  ;;  %v8875_v44 = vmax.f32 %v19433_v10, %v8807_v30  ;;  %v9052_v58 = vmax.f32 %v8881_v63, %v8978_v49  ;;  %v8979_v14 = vsel %vm1888_vm4, %v8968_v29, %v8978_v49 }
 0x5ad   : > { %v9047_v9 = vmax.f32 %v8876_v61, %v8979_v14  ;;  %v12372_v14 = vunpack.i.h.bf16 %v18253_v42  ;;  %v12356_v61 = vunpack.i.l.bf16 %v18230_v15  ;;  %v19436_v42 = vld [vmem:[#allocation28_spill] sm:$0xff] }
 0x5ae   : > { %v8966_v48 = vrot.slane %v8875_v44, 2  ;;  %v9072_v46 = vpack.c.bf16 %v9052_v58, %v9052_v58  ;;  %v9071_v60 = vpack.c.bf16 %v9051_v22, %v9051_v22  ;;  %v12357_v22 = vunpack.i.h.bf16 %v18230_v15 }
 0x5af   : > { %v9067_v52 = vpack.c.bf16 %v9047_v9, %v9042_v38  ;;  %v8799_v49 = vsel %vm2490_vm7, %v12356_v61, %v12342_v45  ;;  %v19437_v54 = vmax.f32 %v19436_v42, 0.0 }
 0x5b0   : > { %v8977_v1 = vsel %vm1888_vm4, %v8966_v48, %v8976_v59  ;;  %v9094_v62 = vand.u32 %v18264_v19, %v9072_v46  ;;  %v9091_v17 = vand.u32 %v18264_v19, %v9071_v60  ;;  %v8967_v37 = vsel %vm1888_vm4, %v8956_v25, %v8966_v48 }
 0x5b1   : > { %v9046_v63 = vmax.f32 %v8875_v44, %v8977_v1  ;;  %v9041_v30 = vmax.f32 %v8870_v31, %v8967_v37  ;;  %v8813_v46 = vsel %vm2490_vm7, %v12367_v24, %v12372_v14  ;;  %v12346_v60 = vunpack.i.l.bf16 %v18222_v6  ;;  %v19438_v44 = vld [vmem:[#allocation31_spill] sm:$0xff] }
 0x5b2   : > { %9113 = vmatprep.subr.bf16.mxu1 %v9094_v62  ;;  %v19435_v59 = vmax.f32 %v19434_v28, 0.0  ;;  %v18287_v10 = vmax.f32 %v19437_v54, %v8799_v49  ;;  %v19439_v58 = vmax.f32 %v19438_v44, 0.0 }
 0x5b3   : > { %9114 = vmatpush1.bf16.msra.mxu1 %v9091_v17  ;;  %v9066_v29 = vpack.c.bf16 %v9046_v63, %v9041_v30  ;;  %v8800_v31 = vsel %vm2490_vm7, %v12342_v45, %v12346_v60  ;;  %v8805_v17 = vsel %vm2490_vm7, %v12351_v57, %v12357_v22  ;;  %v19440_v30 = vld [vmem:[#allocation49_spill] sm:$0xff] }
 0x5b4   : > { %9115 = vmatprep.subr.bf16.mxu1 %v9067_v52  ;;  %v8882_v48 = vmax.f32 %v19435_v59, %v8813_v46  ;;  %v18291_v9 = vmax.f32 %v19439_v58, %v8800_v31  ;;  %v8946_v38 = vrot.slane %v18287_v10, 2  ;;  %v12341_v59 = vunpack.i.l.bf16 %v18220_v39 }
 0x5b6   : > { %v8980_v24 = vrot.slane %v8882_v48, 2  ;;  %v8948_v52 = vrot.slane %v18291_v9, 2  ;;  %v18319_v54 = vsel %vm1888_vm4, %v8946_v38, %v8956_v25 }
 0x5b7   : > { %9116 = vmatpush1.bf16.msra.mxu1 %v9066_v29  ;;  %v19441_v29 = vmax.f32 %v19440_v30, 0.0 }
 0x5b8   : > { %v9053_v63 = vmax.f32 %v8882_v48, %v8980_v24  ;;  %v19442_v48 = vld [vmem:[#allocation26_spill] sm:$0xff]  ;;  %v18314_v27 = vsel %vm1888_vm4, %v8948_v52, %v8958_v35 }
 0x5b9   : > { %v19443_v49 = vmax.f32 %v19442_v48, 0.0 }
 0x5ba   : > { %v9073_v44 = vpack.c.bf16 %v9053_v63, %v9053_v63 }
 0x5bb   : > { %v18309_v31 = vmax.f32 %v19443_v49, %v8805_v17 }
 0x5bc   : > { %v18352_v21 = vand.u32 %v18264_v19, %v9073_v44 }
 0x5c8   : > { %v12375_v1 = vpop.permute.xlu0 %12374 }
 0x5c9   : > { %v12377_v62 = vunpack.i.h.bf16 %v12375_v1  ;;  %v12376_v37 = vunpack.i.l.bf16 %v12375_v1 }
 0x5cb   : > { %v8809_v15 = vsel %vm2490_vm7, %v12361_v11, %v12377_v62  ;;  %v8806_v11 = vsel %vm2490_vm7, %v12357_v22, %v12376_v37  ;;  %v18323_v39 = vmax.f32 %v8671_v33, %v12376_v37  ;;  %v19444_v22 = vld [vmem:[#allocation10_spill] sm:$0xff]  ;;  %v19446_v33 = vld [vmem:[#allocation48_spill] sm:$0xff] }
 0x5cc   : > { %v18303_v61 = vmax.f32 %v19441_v29, %v8809_v15  ;;  %v12385_v46 = vpop.permute.xlu0 %12384  ;;  %v12380_v45 = vpop.permute.xlu1 %12379  ;;  %v19445_v30 = vmax.f32 %v19444_v22, 0.0  ;;  %v19447_v63 = vmax.f32 %v19446_v33, 0.0 }
 0x5cd   : > { %v12387_v28 = vunpack.i.h.bf16 %v12385_v46  ;;  %v12386_v57 = vunpack.i.l.bf16 %v12385_v46  ;;  %v12381_v17 = vunpack.i.l.bf16 %v12380_v45 }
 0x5ce   : > { %v19095_v58 = vrot.slane %v18303_v61, 2  ;;  %v18340_v37 = vmax.f32 %v19447_v63, %v8806_v11  ;;  %v12382_v11 = vunpack.i.h.bf16 %v12380_v45 }
 0x5cf   : > { %v8795_v42 = vsel %vm2490_vm7, %v12347_v50, %v12387_v28  ;;  %v8796_v1 = vsel %vm2490_vm7, %v12387_v28, %v12341_v59  ;;  %v8884_v25 = vmax.f32 %v8681_v7, %v12386_v57  ;;  %v8814_v28 = vsel %vm2490_vm7, %v12372_v14, %v12386_v57 }
 0x5d0   : > { %v18327_v15 = vpop.permute.xlu0 %12389  ;;  %v18329_v35 = vpop.permute.xlu1 %12394  ;;  %v18333_v29 = vmax.f32 %v19445_v30, %v8795_v42  ;;  %v18346_v50 = vmax.f32 %v8658_v41, %v8796_v1  ;;  %v19097_v7 = vrot.slane %v18323_v39, 2  ;;  %v18358_v49 = vsel %vm1888_vm4, %v19095_v58, %v8980_v24  ;;  %v19448_v30 = vld [vmem:[#allocation20_spill] sm:$0xff] }
 0x5d1   : > { %v8810_v51 = vsel %vm2490_vm7, %v12377_v62, %v12381_v17  ;;  %v8984_v14 = vrot.slane %v8884_v25, 2  ;;  %v12391_v57 = vunpack.i.l.bf16 %v18327_v15  ;;  %v12397_v1 = vunpack.i.h.bf16 %v18329_v35 }
 0x5d2   : > { %v19096_v42 = vrot.slane %v18333_v29, 2  ;;  %v19449_v33 = vmax.f32 %v19448_v30, 0.0  ;;  %v12392_v24 = vunpack.i.h.bf16 %v18327_v15  ;;  %v12396_v45 = vunpack.i.l.bf16 %v18329_v35 }
 0x5d3   : > { %v19098_v62 = vrot.slane %v18346_v50, 2  ;;  %v18374_v58 = vmax.f32 %v8675_v18, %v8810_v51  ;;  %v18378_v55 = vmax.f32 %v8676_v47, %v12381_v17  ;;  %v18385_v35 = vmax.f32 %v8884_v25, %v8984_v14 }
 0x5d4   : > { %v12400_v41 = vpop.permute.xlu0 %12399  ;;  %v12405_v44 = vpop.permute.xlu1 %12404  ;;  %v18367_v63 = vmax.f32 %v19449_v33, %v8814_v28  ;;  %v8947_v15 = vsel %vm1888_vm4, %v19096_v42, %v8946_v38  ;;  %v8788_v23 = vsel %vm2490_vm7, %v12382_v11, %v12391_v57  ;;  %v8787_v18 = vsel %vm2490_vm7, %v12397_v1, %v12382_v11 }
 0x5d5   : > { %v12402_v48 = vunpack.i.h.bf16 %v12400_v41  ;;  %v12401_v28 = vunpack.i.l.bf16 %v12400_v41  ;;  %v12407_v33 = vunpack.i.h.bf16 %v12405_v44  ;;  %v12406_v22 = vunpack.i.l.bf16 %v12405_v44 }
 0x5d6   : > { %v8792_v47 = vsel %vm2490_vm7, %v12392_v24, %v12396_v45  ;;  %v8972_v44 = vrot.slane %v18374_v58, 2  ;;  %v8974_v38 = vrot.slane %v18378_v55, 2  ;;  %v9031_v11 = vmax.f32 %v18333_v29, %v8947_v15 }
 0x5d7   : > { %v8797_v17 = vsel %vm2490_vm7, %v12341_v59, %v12402_v48  ;;  %v8791_v51 = vsel %vm2490_vm7, %v12401_v28, %v12392_v24  ;;  %v8801_v41 = vsel %vm2490_vm7, %v12346_v60, %v12407_v33  ;;  %v8798_v25 = vsel %vm2490_vm7, %v12402_v48, %v12406_v22  ;;  %v19450_v60 = vld [vmem:[#allocation25_spill] sm:$0xff] }
 0x5d8   : > { %v12410_v43 = vpop.permute.xlu0 %12409  ;;  %v18398_v30 = vpop.permute.xlu1 %12414  ;;  %v8949_v59 = vsel %vm1888_vm4, %v19098_v62, %v8948_v52  ;;  %v18408_v6 = vmax.f32 %v8652_v16, %v8791_v51  ;;  %v19451_v1 = vmax.f32 %v19450_v60, 0.0  ;;  %v18416_v48 = vmax.f32 %v8648_v5, %v8788_v23 }
 0x5d9   : > { %v12411_v28 = vunpack.i.l.bf16 %v12410_v43  ;;  %v19452_v42 = vmax.f32 %v19417_v26, 0.0  ;;  %v19453_v52 = vmax.f32 %v19416_v40, 0.0  ;;  %v19455_v16 = vmax.f32 %v19454_v13, 0.0 }
 0x5da   : > { %v18412_v24 = vmax.f32 %v19451_v1, %v8801_v41  ;;  %v19456_v41 = vmax.f32 %v18137_v2, 0.0  ;;  %v18436_v5 = vmax.f32 %v19457_v0, %v12406_v22  ;;  %v12412_v23 = vunpack.i.h.bf16 %v12410_v43 }
 0x5db   : > { %v18420_v46 = vmax.f32 %v19452_v42, %v8787_v18  ;;  %v18424_v15 = vmax.f32 %v19453_v52, %v8792_v47  ;;  %v18428_v51 = vmax.f32 %v19455_v16, %v8797_v17  ;;  %v12416_v26 = vunpack.i.l.bf16 %v18398_v30 }
 0x5dc   : > { %v18432_v60 = vmax.f32 %v19456_v41, %v8798_v25  ;;  %v18444_v42 = vsel %vm1888_vm4, %v19097_v7, %v8974_v38  ;;  %v12417_v18 = vunpack.i.h.bf16 %v18398_v30  ;;  %v9032_v2 = vmax.f32 %v18346_v50, %v8949_v59  ;;  %v8736_v13 = vpop.permute.xlu0 %8735 }
 0x5dd   : > { %v18449_v47 = vsel %vm1888_vm4, %v8974_v38, %v8984_v14  ;;  %v8922_v8 = vrot.slane %v18408_v6, 2  ;;  %v8802_v43 = vsel %vm2490_vm7, %v12407_v33, %v12411_v28  ;;  %v8924_v17 = vrot.slane %v18416_v48, 2 }
 0x5de   : > { %v8921_v25 = vrot.slane %v18420_v46, 2  ;;  %v8925_v1 = vrot.slane %v18424_v15, 2  ;;  %v8942_v59 = vrot.slane %v18432_v60, 2  ;;  %v8789_v38 = vsel %vm2490_vm7, %v12391_v57, %v12412_v23 }
 0x5df   : > { %v8790_v16 = vsel %vm2490_vm7, %v12412_v23, %v12416_v26  ;;  %v19458_v33 = vmax.f32 %v18159_v32, 0.0  ;;  %v8793_v0 = vsel %vm2490_vm7, %v12396_v45, %v12417_v18  ;;  %v19459_v40 = vmax.f32 %v18291_v9, %v18314_v27 }
 0x5e0   : > { %v19460_v52 = vmax.f32 %v18287_v10, %v18319_v54  ;;  %v19461_v14 = vrot.slane %v18333_v29, 2  ;;  %v19462_v22 = vrot.slane %v18309_v31, 2  ;;  %v19463_v23 = vrot.slane %v18412_v24, 2 }
 0x5e1   : > { %v8868_v41 = vmax.f32 %v19458_v33, %v8802_v43  ;;  %v9062_v7 = vpack.c.bf16 %v19459_v40, %v9032_v2  ;;  %v8982_v45 = vrot.slane %v18367_v63, 2  ;;  %v8794_v9 = vsel %vm2490_vm7, %v12417_v18, %v8736_v13 }
 0x5e2   : > { %v9061_v62 = vpack.c.bf16 %v19460_v52, %v9031_v11  ;;  %v8937_v57 = vsel %vm1888_vm4, %v8922_v8, %v19461_v14  ;;  %v18481_v32 = vsel %vm1888_vm4, %v19463_v23, %v19462_v22  ;;  %v19464_v27 = vmax.f32 %v18100_v36, 0.0 }
 0x5e3   : > { %v19465_v10 = vmax.f32 %v18183_v12, 0.0  ;;  %9117 = vmatprep.subr.bf16.mxu1 %v9062_v7  ;;  %v19466_v29 = vmax.f32 %v18186_v4, 0.0  ;;  %v19467_v2 = vrot.slane %v18340_v37, 2  ;;  %v19468_v43 = vmax.f32 %v18103_v53, 0.0 }
 0x5e4   : > { %v18487_v40 = vmax.f32 %v19464_v27, %v8789_v38  ;;  %9118 = vmatpush1.bf16.msra.mxu1 %v9061_v62  ;;  %v9054_v36 = vmax.f32 %v18367_v63, %v8982_v45  ;;  %v8983_v18 = vsel %vm1888_vm4, %v8972_v44, %v8982_v45  ;;  %v8926_v12 = vsel %vm1888_vm4, %v8924_v17, %v8925_v1 }
 0x5e5   : > { %v18491_v54 = vmax.f32 %v19465_v10, %v8790_v16  ;;  %v8858_v11 = vmax.f32 %v19466_v29, %v8794_v9  ;;  %v8973_v22 = vsel %vm1888_vm4, %v19467_v2, %v8972_v44  ;;  %v18500_v52 = vmax.f32 %v19468_v43, %v8793_v0 }
 0x5e6   : > { %v19469_v7 = vmax.f32 %v18173_v56, 0.0  ;;  %v8952_v4 = vrot.slane %v8868_v41, 2  ;;  %v9044_v16 = vmax.f32 %v18340_v37, %v8973_v22  ;;  %v9074_v33 = vpack.c.bf16 %v9054_v36, %v9054_v36 }
 0x5e7   : > { %v8931_v38 = vrot.slane %v8858_v11, 2  ;;  %v9049_v53 = vmax.f32 %v18374_v58, %v8983_v18  ;;  %v19470_v0 = vrot.slane %v18346_v50, 2  ;;  %v19471_v63 = vrot.slane %v18303_v61, 2 }
 0x5e8   : > { %v18507_v14 = vmax.f32 %v19469_v7, %v12411_v28  ;;  %v19472_v44 = vrot.slane %v18309_v31, 2  ;;  %v9026_v56 = vmax.f32 %v18408_v6, %v8937_v57  ;;  %v9038_v28 = vmax.f32 %v18412_v24, %v18481_v32 }
 0x5e9   : > { %v8939_v62 = vsel %vm1888_vm4, %v8925_v1, %v19470_v0  ;;  %v8927_v23 = vrot.slane %v18487_v40, 2  ;;  %v9022_v45 = vmax.f32 %v18416_v48, %v8926_v12  ;;  %v8928_v58 = vrot.slane %v18500_v52, 2 }
 0x5ea   : > { %v8971_v17 = vsel %vm1888_vm4, %v19472_v44, %v19471_v63  ;;  %v8930_v50 = vrot.slane %v18491_v54, 2  ;;  %v9100_v1 = vand.u32 %v18264_v19, %v9074_v33  ;;  %v8943_v9 = vsel %vm1888_vm4, %v8931_v38, %v8942_v59 }
 0x5eb   : > { %v9027_v27 = vmax.f32 %v18424_v15, %v8939_v62  ;;  %v9043_v10 = vmax.f32 %v18309_v31, %v8971_v17  ;;  %v8923_v6 = vsel %vm1888_vm4, %v8921_v25, %v8922_v8  ;;  %v8953_v57 = vsel %vm1888_vm4, %v8942_v59, %v8952_v4 }
 0x5ec   : > { %9156 = vmatprep.subr.bf16.mxu0 %v9100_v1  ;;  %v9069_v32 = vpack.c.bf16 %v9049_v53, %v9044_v16  ;;  %v9021_v48 = vmax.f32 %v18420_v46, %v8923_v6  ;;  %v19473_v29 = vmov %v19467_v2  ;;  %v9034_v22 = vmax.f32 %v18432_v60, %v8953_v57  ;;  %v13368_v6 = vld [vmem:[%s18967_s7 + $0x214] ss:$12 sps:$4 sm:$0xff]   ;;  %v13365_v57 = vld [vmem:[%s18967_s7 + $0x64] ss:$12 sps:$4 sm:$0xff]  }
 0x5ed   : > { %v8963_v2 = vsel %vm1888_vm4, %v8952_v4, %v19473_v29  ;;  %v8954_v43 = vrot.slane %v18507_v14, 2  ;;  %9157 = vmatpush1.bf16.msra.mxu0 %v18352_v21  ;;  %v19474_v31 = vmax.f32 %v18212_v20, 0.0  ;;  %v9057_v8 = vpack.c.bf16 %v9027_v27, %v9022_v45  ;;  %v13360_v27 = vld [vmem:[%s18967_s7 + $0x228] ss:$12 sps:$4 sm:$0xff]  }
 0x5ee   : > { %v9039_v25 = vmax.f32 %v8868_v41, %v8963_v2  ;;  %v9029_v59 = vmax.f32 %v8858_v11, %v8943_v9  ;;  %9158 = vmatprep.subr.bf16.mxu0 %v9069_v32  ;;  %v9056_v36 = vpack.c.bf16 %v9026_v56, %v9021_v48  ;;  %v19475_v46 = vrot.slane %v18412_v24, 2  ;;  %v13359_v9 = vld [vmem:[%s18967_s7 + $0x7c] ss:$12 sps:$4 sm:$0xff]   ;;  %v13363_v48 = vld [vmem:[%s18967_s7 + $0x60] ss:$12 sps:$4 sm:$0xff]  }
 0x5ef   : > { %v18541_v15 = vmax.f32 %v19474_v31, %v8736_v13  ;;  %v19476_v37 = vrot.slane %v18428_v51, 2  ;;  %v8932_v60 = vsel %vm1888_vm4, %v8930_v50, %v8931_v38  ;;  %9119 = vmatprep.subr.bf16.mxu1 %v9057_v8  ;;  %v19477_v21 = vmax.f32 %v18303_v61, %v18358_v49  ;;  %v18555_v13 = vld [vmem:[%s18966_s6] sm:$0x7f]   ;;  %v13362_v50 = vld [vmem:[%s18967_s7 + $0x22c] ss:$12 sps:$4 sm:$0xff]  }
 0x5f0   : > { %v9064_v41 = vpack.c.bf16 %v9039_v25, %v9034_v22  ;;  %v9024_v24 = vmax.f32 %v18491_v54, %v8932_v60  ;;  %9120 = vmatpush1.bf16.msra.mxu1 %v9056_v36  ;;  %v8929_v4 = vsel %vm1888_vm4, %v8927_v23, %v8928_v58  ;;  %v9050_v61 = vmax.f32 %v18378_v55, %v18449_v47  ;;  %v13366_v32 = vld [vmem:[%s18967_s7 + $0x210] ss:$12 sps:$4 sm:$0xff]   ;;  %v13371_v2 = vld [vmem:[%s18967_s7 + $0x4c] ss:$12 sps:$4 sm:$0xff]  }
 0x5f1   : > { %v8951_v18 = vsel %vm1888_vm4, %v19476_v37, %v19475_v46  ;;  %v9068_v20 = vpack.c.bf16 %v19477_v21, %v9043_v10  ;;  %v19478_v12 = vmov %v19476_v37  ;;  %v19479_v49 = vrot.slane %v18436_v5, 2  ;;  %v13357_v10 = vld [vmem:[%s18967_s7 + $0x78] ss:$12 sps:$4 sm:$0xff]   ;;  %v13374_v29 = vld [vmem:[%s18967_s7 + $0x1fc] ss:$12 sps:$4 sm:$0xff]  }
 0x5f2   : > { %v9033_v11 = vmax.f32 %v18428_v51, %v8951_v18  ;;  %v8941_v7 = vsel %vm1888_vm4, %v8928_v58, %v19478_v12  ;;  %v19480_v16 = vmax.f32 %v18176_v3, 0.0  ;;  %v13502_v51 = vmov 0.0   ;;  %v13354_v58 = vld [vmem:[%s18967_s7 + $0x90] ss:$12 sps:$4 sm:$0xff]   ;;  %v13372_v22 = vld [vmem:[%s18967_s7 + $0x1f8] ss:$12 sps:$4 sm:$0xff]  }
 0x5f3   : > { %v8955_v38 = vsel %vm1888_vm4, %v19479_v49, %v8954_v43  ;;  %9159 = vmatpush1.bf16.msra.mxu0 %v9068_v20  ;;  %12202 = vmatprep.subr.bf16.mxu1 %v13502_v51  ;;  %v19481_v33 = vrot.slane %v18323_v39, 2  ;;  %v19482_v55 = vpack.c.bf16 %v18385_v35, %v18385_v35  ;;  %v9059_v0 = vpack.c.bf16 %v9029_v59, %v9024_v24  ;;  %v13380_v31 = vld [vmem:[%s18967_s7 + $0x1e4] ss:$12 sps:$4 sm:$0xff]   ;;  %v13378_v8 = vld [vmem:[%s18967_s7 + $0x1e0] ss:$12 sps:$4 sm:$0xff]  }
 0x5f4   : > { %v8854_v54 = vmax.f32 %v19480_v16, %v12416_v26  ;;  %9160 = vmatprep.subr.bf16.mxu0 %v9064_v41  ;;  %v9045_v30 = vmax.f32 %v18323_v39, %v18444_v42  ;;  %v9028_v3 = vmax.f32 %v18500_v52, %v8941_v7  ;;  %v8934_v26 = vrot.slane %v18541_v15, 2  ;;  %11586 = vmatmul.mubr.msk.bf16.vlgmr.msra.gmra.mxu1 %vm9083_vm10, %v18555_v13  ;;  %v13353_v52 = vld [vmem:[%s18967_s7 + $0xac] ss:$12 sps:$4 sm:$0xff]   ;;  %v13375_v25 = vld [vmem:[%s18967_s7 + $0x30] ss:$12 sps:$4 sm:$0xff]  }
 0x5f5   : > { %v8965_v53 = vsel %vm1888_vm4, %v8954_v43, %v19481_v33  ;;  %v9103_v47 = vand.u32 %v18264_v19, %v19482_v55  ;;  %v9063_v62 = vpack.c.bf16 %v9038_v28, %v9033_v11  ;;  %v9023_v63 = vmax.f32 %v18487_v40, %v8929_v4  ;;  %12210 = vmatprep.mubr.msk.bf16.mxu1 %vm13503_vm11, %v13502_v51  ;;  %v13369_v43 = vld [vmem:[%s18967_s7 + $0x48] ss:$12 sps:$4 sm:$0xff]   ;;  %v13386_v59 = vld [vmem:[%s18967_s7 + $0x1cc] ss:$12 sps:$4 sm:$0xff]   ;;  %v13389_v60 = vld [vmem:[%s18967_s7 + $0x4] ss:$12 sps:$4 sm:$0xff]  }
 0x5f6   : > { %v8933_v19 = vrot.slane %v8854_v54, 2  ;;  %v9040_v39 = vmax.f32 %v18507_v14, %v8965_v53  ;;  %v9070_v35 = vpack.c.bf16 %v9050_v61, %v9045_v30  ;;  %v9035_v42 = vmax.f32 %v18436_v5, %v8955_v38  ;;  %v13351_v14 = vld [vmem:[%s18967_s7 + $0xa8] ss:$12 sps:$4 sm:$0xff]   ;;  %v13381_v37 = vld [vmem:[%s18967_s7 + $0x18] ss:$12 sps:$4 sm:$0xff]  }
 0x5f7   : > { %12203 = vmatpush3.bf16.msra.mxu1 %v9103_v47  ;;  %9161 = vmatpush1.bf16.msra.mxu0 %v9063_v62  ;;  %v19483_v44 = vmov %v19479_v49  ;;  %v9058_v56 = vpack.c.bf16 %v9028_v3, %v9023_v63  ;;  %v13356_v5 = vld [vmem:[%s18967_s7 + $0x94] ss:$12 sps:$4 sm:$0xff]   ;;  %v13383_v36 = vld [vmem:[%s18967_s7 + $0x1c] ss:$12 sps:$4 sm:$0xff]   ;;  %v13395_v41 = vld [vmem:[%s18967_s7 + $0x16c] ss:$12 sps:$4 sm:$0xff]  }
 0x5f8   : > { %12204 = vmatprep.subr.bf16.mxu1 %v13502_v51  ;;  %9162 = vmatprep.subr.bf16.mxu0 %v9059_v0  ;;  %v8935_v40 = vsel %vm1888_vm4, %v8933_v19, %v8934_v26  ;;  %v8945_v17 = vsel %vm1888_vm4, %v8934_v26, %v19483_v44  ;;  %v9065_v45 = vpack.c.bf16 %v9040_v39, %v9035_v42  ;;  %v13384_v46 = vld [vmem:[%s18967_s7 + $0x1c8] ss:$12 sps:$4 sm:$0xff]   ;;  %v13390_v21 = vld [vmem:[%s18967_s7 + $0x1b0] ss:$12 sps:$4 sm:$0xff]   ;;  %v13387_v20 = vld [vmem:[%s18967_s7] ss:$12 sps:$4 sm:$0xff]  }
 0x5f9   : > { %v9025_v28 = vmax.f32 %v8854_v54, %v8935_v40  ;;  %v9030_v23 = vmax.f32 %v18541_v15, %v8945_v17  ;;  %v13377_v15 = vld [vmem:[%s18967_s7 + $0x34] ss:$12 sps:$4 sm:$0xff]   ;;  %v13396_v11 = vld [vmem:[%s18967_s7 + $0x198] ss:$12 sps:$4 sm:$0xff]   ;;  %v13399_v61 = vld [vmem:[%s18967_s7 + $0x150] ss:$12 sps:$4 sm:$0xff]  }
 0x5fa   : > { %v13392_v18 = vld [vmem:[%s18967_s7 + $0x1b4] ss:$12 sps:$4 sm:$0xff]   ;;  %v13404_v12 = vld [vmem:[%s18967_s7 + $0x184] ss:$12 sps:$4 sm:$0xff]   ;;  %v13410_v49 = vld [vmem:[%s18967_s7 + $0x2ec] ss:$12 sps:$4 sm:$0xff]  }
 0x5fb   : > { %12205 = vmatpush3.bf16.msra.mxu1 %v9070_v35  ;;  %9163 = vmatpush1.bf16.msra.mxu0 %v9058_v56  ;;  %v9060_v1 = vpack.c.bf16 %v9030_v23, %v9025_v28  ;;  %v13393_v24 = vld [vmem:[%s18967_s7 + $0x168] ss:$12 sps:$4 sm:$0xff]   ;;  %v13402_v4 = vld [vmem:[%s18967_s7 + $0x180] ss:$12 sps:$4 sm:$0xff]   ;;  %v13405_v54 = vld [vmem:[%s18967_s7 + $0x138] ss:$12 sps:$4 sm:$0xff]  }
 0x5fc   : > { %12206 = vmatprep.subr.bf16.mxu1 %v13502_v51  ;;  %9950 = vmatprep.subr.bf16.mxu0 %v13353_v52  ;;  %v13401_v7 = vld [vmem:[%s18967_s7 + $0x154] ss:$12 sps:$4 sm:$0xff]   ;;  %v13407_v38 = vld [vmem:[%s18967_s7 + $0x13c] ss:$12 sps:$4 sm:$0xff]   ;;  %v13413_v53 = vld [vmem:[%s18967_s7 + $0x124] ss:$12 sps:$4 sm:$0xff]  }
 0x5fd   : > { %v13408_v16 = vld [vmem:[%s18967_s7 + $0x2e8] ss:$12 sps:$4 sm:$0xff]   ;;  %v13414_v55 = vld [vmem:[%s18967_s7 + $0x2d0] ss:$12 sps:$4 sm:$0xff]   ;;  %v13411_v47 = vld [vmem:[%s18967_s7 + $0x120] ss:$12 sps:$4 sm:$0xff]  }
 0x5fe   : > { %11587 = vmatmul.mubr.msk.bf16.vlgmr.msra.gmra.mxu0 %vm9083_vm10, %v18555_v13  ;;  %v13416_v33 = vld [vmem:[%s18967_s7 + $0x2d4] ss:$12 sps:$4 sm:$0xff]   ;;  %v13422_v0 = vld [vmem:[%s18967_s7 + $0x2bc] ss:$12 sps:$4 sm:$0xff]   ;;  %v13419_v30 = vld [vmem:[%s18967_s7 + $0x10c] ss:$12 sps:$4 sm:$0xff]  }
 0x5ff   : > { %12207 = vmatpush3.bf16.msra.mxu1 %v9065_v45  ;;  %9951 = vmatpush1.bf16.msra.mxu0 %v13351_v14  ;;  %v13420_v3 = vld [vmem:[%s18967_s7 + $0x2b8] ss:$12 sps:$4 sm:$0xff]   ;;  %v13417_v26 = vld [vmem:[%s18967_s7 + $0x108] ss:$12 sps:$4 sm:$0xff]   ;;  %v13426_v19 = vld [vmem:[%s18967_s7 + $0x2a0] ss:$12 sps:$4 sm:$0xff]  }
 0x600   : > { %12208 = vmatprep.subr.bf16.mxu1 %v13502_v51  ;;  %9952 = vmatprep.subr.bf16.mxu0 %v13356_v5  ;;  %v13428_v62 = vld [vmem:[%s18967_s7 + $0x2a4] ss:$12 sps:$4 sm:$0xff]   ;;  %v13425_v63 = vld [vmem:[%s18967_s7 + $0xf4] ss:$12 sps:$4 sm:$0xff]   ;;  %v13431_v42 = vld [vmem:[%s18967_s7 + $0xdc] ss:$12 sps:$4 sm:$0xff]  }
 0x601   : > { %v13423_v39 = vld [vmem:[%s18967_s7 + $0xf0] ss:$12 sps:$4 sm:$0xff]   ;;  %v13429_v35 = vld [vmem:[%s18967_s7 + $0xd8] ss:$12 sps:$4 sm:$0xff]   ;;  %v13432_v52 = vld [vmem:[%s18967_s7 + $0x288] ss:$12 sps:$4 sm:$0xff]  }
 0x602   : > { %v13434_v40 = vld [vmem:[%s18967_s7 + $0x28c] ss:$12 sps:$4 sm:$0xff]   ;;  %v13437_v17 = vld [vmem:[%s18967_s7 + $0xc4] ss:$12 sps:$4 sm:$0xff]   ;;  %v13440_v14 = vld [vmem:[%s18967_s7 + $0x274] ss:$12 sps:$4 sm:$0xff]  }
 0x603   : > { %12209 = vmatpush3.bf16.msra.mxu1 %v9060_v1  ;;  %9953 = vmatpush1.bf16.msra.mxu0 %v13354_v58  ;;  %v13435_v44 = vld [vmem:[%s18967_s7 + $0xc0] ss:$12 sps:$4 sm:$0xff]   ;;  %v13438_v56 = vld [vmem:[%s18967_s7 + $0x270] ss:$12 sps:$4 sm:$0xff]   ;;  %v13441_v28 = vld [vmem:[%s18967_s7 + $0x258] ss:$12 sps:$4 sm:$0xff]  }
 0x604   : > { %9993 = vmatprep.subr.bf16.mxu1 %v13362_v50  ;;  %9954 = vmatprep.subr.bf16.mxu0 %v13359_v9  ;;  %v13443_v23 = vld [vmem:[%s18967_s7 + $0x25c] ss:$12 sps:$4 sm:$0xff]   ;;  %v13446_v45 = vld [vmem:[%s18967_s7 + $0x334] ss:$12 sps:$4 sm:$0xff]   ;;  %v9939_v5 = vsel %vm1080_vm3, 4294967295, %v19429_v34 }
 0x605   : > { %v18794_v58 = vsel %vm9938_vm12, %v9939_v5, 0  ;;  %v13447_v1 = vld [vmem:[%s18967_s7 + $0x240] ss:$12 sps:$4 sm:$0xff]   ;;  %v13449_v9 = vld [vmem:[%s18967_s7 + $0x244] ss:$12 sps:$4 sm:$0xff]  }
 0x606   : > { %12211 = vmatmul.mubr.msk.bf16.vlgmr.msra.gmra.mxu1 %vm9083_vm10, %v18555_v13  ;;  %v13398_v13 = vld [vmem:[%s18967_s7 + $0x19c] ss:$12 sps:$4 sm:$0xff]   ;;  %v9945_v50 = vand.u32 %v13446_v45, %v18794_v58  ;;  %v13489_v5 = vld [vmem:[%s18967_s7 + $0x320] ss:$12 sps:$4 sm:$0xff]  }
 0x607   : > { %9994 = vmatpush1.bf16.msra.mxu1 %v13360_v27  ;;  %9955 = vmatpush1.bf16.msra.mxu0 %v13357_v10  ;;  %v13456_v34 = vld [vmem:[%s18967_s7 + $0x170] ss:$12 sps:$4 sm:$0xff]  }
 0x608   : > { %9995 = vmatprep.subr.bf16.mxu1 %v13368_v6  ;;  %9956 = vmatprep.subr.bf16.mxu0 %v13365_v57  ;;  %v13444_v6 = vld [vmem:[%s18967_s7 + $0x330] ss:$12 sps:$4 sm:$0xff]  }
 0x60b   : > { %9996 = vmatpush1.bf16.msra.mxu1 %v13366_v32  ;;  %9957 = vmatpush1.bf16.msra.mxu0 %v13363_v48 }
 0x60c   : > { %9997 = vmatprep.subr.bf16.mxu1 %v13374_v29  ;;  %9958 = vmatprep.subr.bf16.mxu0 %v13371_v2  ;;  %v9942_v29 = vand.u32 %v13444_v6, %v18794_v58 }
 0x60f   : > { %9998 = vmatpush1.bf16.msra.mxu1 %v13372_v22  ;;  %9959 = vmatpush1.bf16.msra.mxu0 %v13369_v43  ;;  %v13452_v22 = vld [vmem:[%s18967_s7 + $0x31c] ss:$12 sps:$4 sm:$0xff]  }
 0x610   : > { %9999 = vmatprep.subr.bf16.mxu1 %v13380_v31  ;;  %9960 = vmatprep.subr.bf16.mxu0 %v13377_v15  ;;  %v13450_v15 = vld [vmem:[%s18967_s7 + $0x318] ss:$12 sps:$4 sm:$0xff]  }
 0x613   : > { %10000 = vmatpush1.bf16.msra.mxu1 %v13378_v8  ;;  %9961 = vmatpush1.bf16.msra.mxu0 %v13375_v25  ;;  %v19484_v8 = vmov 0   ;;  %v13455_v25 = vld [vmem:[%s18967_s7 + $0x304] ss:$12 sps:$4 sm:$0xff]  }
 0x614   : > { %10001 = vmatprep.subr.bf16.mxu1 %v13386_v59  ;;  %9962 = vmatprep.subr.bf16.mxu0 %v13383_v36 }
 0x617   : > { %10002 = vmatpush1.bf16.msra.mxu1 %v13384_v46  ;;  %9963 = vmatpush1.bf16.msra.mxu0 %v13381_v37  ;;  %v13453_v46 = vld [vmem:[%s18967_s7 + $0x300] ss:$12 sps:$4 sm:$0xff]  }
 0x618   : > { %10003 = vmatprep.subr.bf16.mxu1 %v13392_v18  ;;  %9964 = vmatprep.subr.bf16.mxu0 %v13389_v60  ;;  %v13457_v60 = vld [vmem:[%s18967_s7 + $0xb0] ss:$12 sps:$4 sm:$0xff]  }
 0x61b   : > { %10004 = vmatpush1.bf16.msra.mxu1 %v13390_v21  ;;  %9965 = vmatpush1.bf16.msra.mxu0 %v13387_v20  ;;  %v13458_v20 = vld [vmem:[%s18967_s7 + $0x158] ss:$12 sps:$4 sm:$0xff]  }
 0x61c   : > { %10005 = vmatprep.subr.bf16.mxu1 %v13398_v13  ;;  %9966 = vmatprep.subr.bf16.mxu0 %v13395_v41  ;;  %v13459_v13 = vld [vmem:[%s18967_s7 + $0x2f0] ss:$12 sps:$4 sm:$0xff]  }
 0x61f   : > { %10006 = vmatpush1.bf16.msra.mxu1 %v13396_v11  ;;  %9967 = vmatpush2.bf16.msra.mxu0 %v13393_v24  ;;  %v13460_v24 = vld [vmem:[%s18967_s7 + $0x98] ss:$12 sps:$4 sm:$0xff]  }
 0x620   : > { %10007 = vmatprep.subr.bf16.mxu1 %v13404_v12  ;;  %9968 = vmatprep.subr.bf16.mxu0 %v13401_v7  ;;  %v13461_v12 = vld [vmem:[%s18967_s7 + $0x230] ss:$12 sps:$4 sm:$0xff]  }
 0x623   : > { %10008 = vmatpush1.bf16.msra.mxu1 %v13402_v4  ;;  %9969 = vmatpush2.bf16.msra.mxu0 %v13399_v61  ;;  %v13462_v4 = vld [vmem:[%s18967_s7 + $0x140] ss:$12 sps:$4 sm:$0xff]   ;;  %v13463_v61 = vld [vmem:[%s18967_s7 + $0x2d8] ss:$12 sps:$4 sm:$0xff]  }
 0x624   : > { %10009 = vmatprep.subr.bf16.mxu1 %v13410_v49  ;;  %9970 = vmatprep.subr.bf16.mxu0 %v13407_v38  ;;  %v13464_v38 = vld [vmem:[%s18967_s7 + $0x80] ss:$12 sps:$4 sm:$0xff]  }
 0x627   : > { %10010 = vmatpush2.bf16.msra.mxu1 %v13408_v16  ;;  %9971 = vmatpush2.bf16.msra.mxu0 %v13405_v54  ;;  %v13465_v16 = vld [vmem:[%s18967_s7 + $0x218] ss:$12 sps:$4 sm:$0xff]   ;;  %v13466_v54 = vld [vmem:[%s18967_s7 + $0x128] ss:$12 sps:$4 sm:$0xff]  }
 0x628   : > { %10011 = vmatprep.subr.bf16.mxu1 %v13416_v33  ;;  %9972 = vmatprep.subr.bf16.mxu0 %v13413_v53  ;;  %v13467_v33 = vld [vmem:[%s18967_s7 + $0x2c0] ss:$12 sps:$4 sm:$0xff]   ;;  %v13468_v53 = vld [vmem:[%s18967_s7 + $0x68] ss:$12 sps:$4 sm:$0xff]  }
 0x62b   : > { %10012 = vmatpush2.bf16.msra.mxu1 %v13414_v55  ;;  %9973 = vmatpush2.bf16.msra.mxu0 %v13411_v47  ;;  %v13469_v55 = vld [vmem:[%s18967_s7 + $0x200] ss:$12 sps:$4 sm:$0xff]   ;;  %v13470_v47 = vld [vmem:[%s18967_s7 + $0x110] ss:$12 sps:$4 sm:$0xff]  }
 0x62c   : > { %10013 = vmatprep.subr.bf16.mxu1 %v13422_v0  ;;  %9974 = vmatprep.subr.bf16.mxu0 %v13419_v30  ;;  %v13471_v0 = vld [vmem:[%s18967_s7 + $0x2a8] ss:$12 sps:$4 sm:$0xff]   ;;  %v13472_v30 = vld [vmem:[%s18967_s7 + $0x50] ss:$12 sps:$4 sm:$0xff]  }
 0x62f   : > { %10014 = vmatpush2.bf16.msra.mxu1 %v13420_v3  ;;  %9975 = vmatpush2.bf16.msra.mxu0 %v13417_v26  ;;  %v13473_v3 = vld [vmem:[%s18967_s7 + $0x1e8] ss:$12 sps:$4 sm:$0xff]   ;;  %v13474_v26 = vld [vmem:[%s18967_s7 + $0xf8] ss:$12 sps:$4 sm:$0xff]  }
 0x630   : > { %10015 = vmatprep.subr.bf16.mxu1 %v13428_v62  ;;  %9976 = vmatprep.subr.bf16.mxu0 %v13425_v63  ;;  %v13475_v62 = vld [vmem:[%s18967_s7 + $0x290] ss:$12 sps:$4 sm:$0xff]   ;;  %v13476_v63 = vld [vmem:[%s18967_s7 + $0x38] ss:$12 sps:$4 sm:$0xff]  }
 0x633   : > { %10016 = vmatpush2.bf16.msra.mxu1 %v13426_v19  ;;  %9977 = vmatpush2.bf16.msra.mxu0 %v13423_v39  ;;  %v13477_v19 = vld [vmem:[%s18967_s7 + $0x1d0] ss:$12 sps:$4 sm:$0xff]   ;;  %v13478_v39 = vld [vmem:[%s18967_s7 + $0xe0] ss:$12 sps:$4 sm:$0xff]  }
 0x634   : > { %9978 = vmatprep.subr.bf16.mxu0 %v13431_v42  ;;  %10017 = vmatprep.subr.bf16.mxu1 %v13434_v40  ;;  %v13480_v42 = vld [vmem:[%s18967_s7 + $0x20] ss:$12 sps:$4 sm:$0xff]   ;;  %v13482_v40 = vld [vmem:[%s18967_s7 + $0xc8] ss:$12 sps:$4 sm:$0xff]  }
 0x637   : > { %9979 = vmatpush2.bf16.msra.mxu0 %v13429_v35  ;;  %10018 = vmatpush2.bf16.msra.mxu1 %v13432_v52  ;;  %v13479_v35 = vld [vmem:[%s18967_s7 + $0x278] ss:$12 sps:$4 sm:$0xff]  }
 0x638   : > { %9980 = vmatprep.subr.bf16.mxu0 %v13437_v17  ;;  %10019 = vmatprep.subr.bf16.mxu1 %v13440_v14  ;;  %v13481_v52 = vld [vmem:[%s18967_s7 + $0x1b8] ss:$12 sps:$4 sm:$0xff]   ;;  %v13484_v17 = vld [vmem:[%s18967_s7 + $0x8] ss:$12 sps:$4 sm:$0xff]  }
 0x639   : > { %v13488_v14 = vld [vmem:[%s18967_s7 + $0x338] ss:$12 sps:$4 sm:$0xff]  }
 0x63a   : > { %v9948_v45 = vand.u32 %v13488_v14, %v18794_v58  ;;  %v13490_v58 = vld [vmem:[%s18967_s7 + $0x308] ss:$12 sps:$4 sm:$0xff]  }
 0x63b   : > { %9981 = vmatpush2.bf16.msra.mxu0 %v13435_v44  ;;  %10020 = vmatpush2.bf16.msra.mxu1 %v13438_v56  ;;  %v13483_v44 = vld [vmem:[%s18967_s7 + $0x260] ss:$12 sps:$4 sm:$0xff]  }
 0x63c   : > { %10021 = vmatprep.subr.bf16.mxu1 %v13443_v23  ;;  %10046 = vmatprep.subr.bf16.mxu0 %v9945_v50  ;;  %v13485_v56 = vld [vmem:[%s18967_s7 + $0x1a0] ss:$12 sps:$4 sm:$0xff]   ;;  %v13487_v23 = vld [vmem:[%s18967_s7 + $0x188] ss:$12 sps:$4 sm:$0xff]  }
 0x63f   : > { %10022 = vmatpush2.bf16.msra.mxu1 %v13441_v28  ;;  %v13486_v28 = vld [vmem:[%s18967_s7 + $0x248] ss:$12 sps:$4 sm:$0xff]  }
 0x640   : > { %10023 = vmatprep.subr.bf16.mxu1 %v13449_v9 }
 0x643   : > { %10024 = vmatpush2.bf16.msra.mxu1 %v13447_v1 }
 0x644   : > { %12014 = vmatprep.subr.bf16.mxu1 %v13456_v34 }
 0x6b4   : > { %v9139_v27 = vpop.f32.mrf.mxu1 }
 0x6b6   : > { %v9141_v10 = vpop.f32.mrf.mxu1 }
 0x6b8   : > { %v9143_v57 = vpop.f32.mrf.mxu1 }
 0x6b9   : > { %v18810_v2 = vpack.c.bf16 %v9143_v57, %v9139_v27 }
 0x6ba   : > { %v9145_v32 = vpop.f32.mrf.mxu1 }
 0x6bb   : > { %v9233_v48 = vpack.c.bf16 %v9145_v32, %v9141_v10 }
 0x6bd   : > { %9982 = vmatprep.mubr.bf16.mxu0 %v9233_v48 }
 0x6be   : > { %v9182_v43 = vpop.f32.mrf.mxu0  ;;  %9983 = vmatmul.mubr.bf16.vlgmr.msra.gmra.mxu0 %v18810_v2 }
 0x6bf   : > { %10047 = vmatpush1.bf16.msra.mxu0 %v9942_v29  ;;  %10068 = vmatprep.mubr.bf16.mxu0 %v19484_v8 }
 0x6c0   : > { %v9184_v31 = vpop.f32.mrf.mxu0  ;;  %10048 = vmatprep.subr.bf16.mxu0 %v13452_v22 }
 0x6c2   : > { %v9186_v59 = vpop.f32.mrf.mxu0 }
 0x6c3   : > { %10049 = vmatpush1.bf16.msra.mxu0 %v13450_v15  ;;  %v18829_v21 = vpack.c.bf16 %v9186_v59, %v9182_v43 }
 0x6c4   : > { %v9188_v36 = vpop.f32.mrf.mxu0  ;;  %10050 = vmatprep.subr.bf16.mxu0 %v13455_v25 }
 0x6c5   : > { %v9235_v37 = vpack.c.bf16 %v9188_v36, %v9184_v31 }
 0x6c6   : > { %v9225_v18 = vpop.f32.mrf.mxu1 }
 0x6c7   : > { %10025 = vmatprep.mubr.bf16.mxu1 %v9235_v37  ;;  %10051 = vmatpush1.bf16.msra.mxu0 %v13453_v46 }
 0x6c8   : > { %v12212_v41 = vpop.f32.mrf.mxu1  ;;  %10026 = vmatmul.mubr.bf16.vlgmr.msra.gmra.mxu1 %v18829_v21  ;;  %12036 = vmatprep.subr.bf16.mxu0 %v13459_v13 }
 0x6c9   : > { %12015 = vmatpush3.bf16.msra.mxu1 %v13457_v60  ;;  %10111 = vmatprep.mubr.bf16.mxu1 %v9233_v48 }
 0x6ca   : > { %v9228_v11 = vpop.f32.mrf.mxu1  ;;  %12016 = vmatprep.subr.bf16.mxu1 %v13458_v20 }
 0x6cb   : > { %v18844_v7 = vpack.c.bf16 %v9228_v11, %v9225_v18 }
 0x6cc   : > { %v12213_v49 = vpop.f32.mrf.mxu1 }
 0x6cd   : > { %11694 = vmatmul.mubr.msk.bf16.vlgmr.msra.gmra.mxu0 %vm9934_vm13, %v18844_v7  ;;  %12017 = vmatpush3.bf16.msra.mxu1 %v13460_v24 }
 0x6ce   : > { %12037 = vmatpush3.bf16.msra.mxu0 %v13461_v12  ;;  %12018 = vmatprep.subr.bf16.mxu1 %v13462_v4 }
 0x6cf   : > { %12038 = vmatprep.subr.bf16.mxu0 %v13463_v61  ;;  %10152 = vmatprep.mubr.bf16.mxu0 %v9235_v37 }
 0x6d1   : > { %12019 = vmatpush3.bf16.msra.mxu1 %v13464_v38 }
 0x6d2   : > { %12039 = vmatpush3.bf16.msra.mxu0 %v13465_v16  ;;  %12020 = vmatprep.subr.bf16.mxu1 %v13466_v54 }
 0x6d3   : > { %12040 = vmatprep.subr.bf16.mxu0 %v13467_v33 }
 0x6d5   : > { %12021 = vmatpush3.bf16.msra.mxu1 %v13468_v53 }
 0x6d6   : > { %12041 = vmatpush3.bf16.msra.mxu0 %v13469_v55  ;;  %12022 = vmatprep.subr.bf16.mxu1 %v13470_v47 }
 0x6d7   : > { %12042 = vmatprep.subr.bf16.mxu0 %v13471_v0 }
 0x6d9   : > { %12023 = vmatpush3.bf16.msra.mxu1 %v13472_v30 }
 0x6da   : > { %12043 = vmatpush3.bf16.msra.mxu0 %v13473_v3  ;;  %12024 = vmatprep.subr.bf16.mxu1 %v13474_v26 }
 0x6db   : > { %12044 = vmatprep.subr.bf16.mxu0 %v13475_v62 }
 0x6dd   : > { %12025 = vmatpush3.bf16.msra.mxu1 %v13476_v63 }
 0x6de   : > { %12045 = vmatpush3.bf16.msra.mxu0 %v13477_v19  ;;  %12026 = vmatprep.subr.bf16.mxu1 %v13478_v39 }
 0x6df   : > { %12046 = vmatprep.subr.bf16.mxu0 %v13479_v35 }
 0x6e1   : > { %12027 = vmatpush3.bf16.msra.mxu1 %v13480_v42 }
 0x6e2   : > { %12047 = vmatpush3.bf16.msra.mxu0 %v13481_v52  ;;  %12028 = vmatprep.subr.bf16.mxu1 %v13482_v40 }
 0x6e3   : > { %12048 = vmatprep.subr.bf16.mxu0 %v13483_v44 }
 0x6e5   : > { %12029 = vmatpush3.bf16.msra.mxu1 %v13484_v17 }
 0x6e6   : > { %12049 = vmatpush3.bf16.msra.mxu0 %v13485_v56  ;;  %12214 = vmatprep.subr.bf16.mxu1 %v13502_v51 }
 0x6e7   : > { %12050 = vmatprep.subr.bf16.mxu0 %v13486_v28 }
 0x6e8   : > { %10112 = vmatmul.mubr.bf16.vlgmr.msra.gmra.mxu1 %v18810_v2 }
 0x6e9   : > { %12215 = vmatpush3.bf16.msra.mxu1 %v9948_v45  ;;  %12220 = vmatprep.mubr.msk.bf16.mxu1 %vm13503_vm11, %v13502_v51 }
 0x6ea   : > { %12051 = vmatpush3.bf16.msra.mxu0 %v13487_v23  ;;  %12216 = vmatprep.subr.bf16.mxu1 %v13502_v51 }
 0x6ed   : > { %10153 = vmatmul.mubr.bf16.vlgmr.msra.gmra.mxu0 %v18829_v21  ;;  %12217 = vmatpush3.bf16.msra.mxu1 %v13489_v5 }
 0x6ee   : > { %12218 = vmatprep.subr.bf16.mxu1 %v13502_v51 }
 0x6f1   : > { %12219 = vmatpush3.bf16.msra.mxu1 %v13490_v58 }
 0x6f4   : > { %12221 = vmatmul.mubr.msk.bf16.vlgmr.msra.gmra.mxu1 %vm9934_vm13, %v18844_v7 }
 0x77e   : > { %v9984_v50 = vpop.f32.mrf.mxu0 }
 0x780   : > { %v9986_v1 = vpop.f32.mrf.mxu0 }
 0x782   : > { %v9988_v9 = vpop.f32.mrf.mxu0 }
 0x784   : > { %v9990_v27 = vpop.f32.mrf.mxu0 }
 0x788   : > { %v10027_v34 = vpop.f32.mrf.mxu1 }
 0x789   : > { %v10028_v6 = vadd.f32 %v10027_v34, %v9984_v50 }
 0x78a   : > { %v10029_v10 = vpop.f32.mrf.mxu1 }
 0x78b   : > { %v10030_v32 = vadd.f32 %v10029_v10, %v9986_v1 }
 0x78c   : > { %v10031_v57 = vpop.f32.mrf.mxu1 }
 0x78d   : > { %v10070_v51 = vpop.f32.mrf.mxu0  ;;  %v10032_v22 = vadd.f32 %v10031_v57, %v9988_v9 }
 0x78e   : > { %v10071_v48 = vadd.f32 %v10070_v51, %v10028_v6  ;;  %v10033_v29 = vpop.f32.mrf.mxu1 }
 0x78f   : > { %v10072_v2 = vpop.f32.mrf.mxu0  ;;  %v10034_v15 = vadd.f32 %v10033_v29, %v9990_v27 }
 0x790   : > { %10202 = vst [vmem:[%s18949_s16] sm:$0xff] %v10071_v48  ;;  %v10073_v43 = vadd.f32 %v10072_v2, %v10030_v32 }
 0x791   : > { %v10074_v31 = vpop.f32.mrf.mxu0 }
 0x792   : > { %10203 = vst [vmem:[%s18949_s16 + $0x8] sm:$0xff] %v10073_v43  ;;  %v10075_v8 = vadd.f32 %v10074_v31, %v10032_v22 }
 0x793   : > { %v10076_v25 = vpop.f32.mrf.mxu0 }
 0x794   : > { %10206 = vst [vmem:[%s18949_s16 + $0x18] sm:$0x3f] %v10075_v8  ;;  %v10077_v59 = vadd.f32 %v10076_v25, %v10034_v15 }
 0x796   : > { %10207 = vst [vmem:[%s18949_s16 + $0x20] sm:$0x3f] %v10077_v59 }
 0x7a8   : > { %v12030_v36 = vpop.f32.mrf.mxu1 }
 0x7aa   : > { %v12031_v46 = vpop.f32.mrf.mxu1 }
 0x7ab   : > { %v12032_v13 = vadd.f32 %v12031_v46, %v12030_v36 }
 0x7ac   : > { %v12033_v18 = vpop.f32.mrf.mxu1 }
 0x7ad   : > { %v12052_v37 = vpop.f32.mrf.mxu0 }
 0x7ae   : > { %v12034_v41 = vpop.f32.mrf.mxu1 }
 0x7af   : > { %v12053_v60 = vpop.f32.mrf.mxu0  ;;  %v12035_v4 = vadd.f32 %v12034_v41, %v12033_v18 }
 0x7b0   : > { %v12054_v21 = vadd.f32 %v12053_v60, %v12052_v37 }
 0x7b1   : > { %v12055_v20 = vpop.f32.mrf.mxu0 }
 0x7b2   : > { %v10155_v12 = vadd.f32 %v12054_v21, %v12032_v13 }
 0x7b3   : > { %v12056_v11 = vpop.f32.mrf.mxu0 }
 0x7b4   : > { %v12057_v24 = vadd.f32 %v12056_v11, %v12055_v20  ;;  %v10195_v7 = vpop.f32.mrf.mxu1 }
 0x7b5   : > { %v10196_v61 = vadd.f32 %v10195_v7, %v10155_v12 }
 0x7b6   : > { %v12222_v49 = vpop.f32.mrf.mxu1  ;;  %v10158_v38 = vadd.f32 %v12057_v24, %v12035_v4 }
 0x7b7   : > { %10205 = vst.msk [vmem:[%s18949_s16 + $0x10] sm:$0xff] %vm10204_vm14, %v10196_v61 }
 0x7b8   : > { %v10198_v16 = vpop.f32.mrf.mxu1 }
 0x7b9   : > { %v10199_v54 = vadd.f32 %v10198_v16, %v10158_v38 }
 0x7ba   : > { %v12223_v33 = vpop.f32.mrf.mxu1 }
 0x7bb   : > { %10209 = vst.msk [vmem:[%s18949_s16 + $0x28] sm:$0x3f] %vm10208_vm15, %v10199_v54 }
 0x7bc PF: > { %s18_s27 = sadd.s32 1, %s13497_s27  }
 0x7bd   : > { %p15_p4 = scmp.ge.s32.totalorder %s18_s27, 4  }
 0x7bf   :  { %17 = sbr.rel (!%p15_p4) target bundleno = 1 (0x1), region = 88 }

</bundles_post_ra>
